<compile_context>
chip_gen: v6e
topology: v6e:2x2x1
jax: 0.10.0
libtpu: 0.0.40
codegen_flags: <defaults>
</compile_context>

<pallas_src>
import functools
import numpy as np
import jax
import jax.numpy as jnp
from jax.experimental import pallas as pl
from jax.experimental.pallas import tpu as pltpu

EPS = 1e-08
ahr = 20
equiv0dBSPL = 100
equiv_0dB_SPL = equiv0dBSPL + ahr  # 120

TIME_TILE = 256  # output time samples per matmul tile (lane axis)


# ----------------------------------------------------------------------------
# Faithful numpy ports of the module's dependent functions (np.int -> int,
# local variable `pl` renamed so it does not shadow pallas).
# ----------------------------------------------------------------------------
def audfilt(rl, ru, size, sr):
    aud_filter = np.zeros([size, size])
    aud_filter[0, 0] = 1.0
    aud_filter[0, 0] = aud_filter[0, 0] / ((rl + ru) / 2)
    g = np.zeros(size)
    for i in np.arange(2, size + 1, 1, dtype=int):
        fhz = (i - 1) * sr / (2 * size)
        erbhz = 24.7 * (fhz * 0.00437 + 1)
        p_low = 4 * fhz / (erbhz * rl)
        p_up = 4 * fhz / (erbhz * ru)
        j = np.arange(1, i, dtype=int)
        g[j - 1] = np.abs((i - j) / (i - 1))
        aud_filter[i - 1, j - 1] = (1 + p_low * g[j - 1]) * np.exp(-p_low * g[j - 1])
        j = np.arange(i, size + 1, dtype=int)
        g[j - 1] = np.abs((i - j) / (i - 1))
        aud_filter[i - 1, j - 1] = (1 + p_up * g[j - 1]) * np.exp(-p_up * g[j - 1])
        aud_filter[i - 1, :] = aud_filter[i - 1, :] / (erbhz * (rl + ru) / (2 * 24.7))
    return aud_filter


def makesmearmat3(rl, ru, sr):
    fftsize = 512
    nyquist = fftsize // 2
    fnor = audfilt(1, 1, nyquist, sr)
    fwid = audfilt(rl, ru, nyquist, sr)
    fnext = np.hstack([fnor, np.zeros([nyquist, nyquist // 2])])
    for i in np.arange(nyquist // 2 + 1, nyquist + 1, dtype=int):
        fnext[i - 1, nyquist:np.min([2 * i - 1, 3 * nyquist // 2])] = np.flip(
            fnor[i - 1, np.max([1, 2 * i - 3 * nyquist // 2]) - 1:2 * i - nyquist - 1])
    fsmear = np.linalg.lstsq(fnext, fwid, rcond=None)[0]
    fsmear = fsmear[:nyquist, :]
    return fsmear


# ----------------------------------------------------------------------------
# Deterministic synthetic filter design helpers (stand-ins for scipy).
# ----------------------------------------------------------------------------
def synth_firwin2(ntaps, freq, gain, beta=4.0):
    """firwin2-like linear-phase FIR from a desired magnitude response."""
    nfreqs = 1 + 2 ** int(np.ceil(np.log2(ntaps)))
    x = np.linspace(0.0, 1.0, nfreqs)
    fx = np.interp(x, freq, gain).astype(np.complex128)
    fx *= np.exp(-(ntaps - 1) / 2.0 * 1j * np.pi * x)
    out_full = np.fft.irfft(fx)
    return out_full[:ntaps] * np.kaiser(ntaps, beta)


def synth_firwin_lowpass(ntaps, cutoff):
    """firwin-like Hamming windowed-sinc lowpass, unity DC gain."""
    n = np.arange(ntaps) - (ntaps - 1) / 2.0
    h = cutoff * np.sinc(cutoff * n) * np.hamming(ntaps)
    return h / np.sum(h)


def erb_rate(f):
    return 21.4 * np.log10(0.00437 * f + 1.0)


def inv_erb_rate(e):
    return (10 ** (e / 21.4) - 1.0) / 0.00437


def _round_up(x, m):
    return ((x + m - 1) // m) * m


def _choose_m_tile(m):
    """Row tile for the Toeplitz-conv matmuls: <=256, multiple of 16 (bf16 packing)."""
    if m >= 256:
        return 256
    return max(16, _round_up(m, 16))


def toeplitz_conv_matrix(h, t_out, l_pad):
    """W[m, j] = h[m - j]; (l_pad, t_out) banded matrix so that
    (input window of length l_pad) @ W = t_out consecutive 'same'-conv outputs."""
    h = np.asarray(h, dtype=np.float64)
    k = h.shape[0]
    w = np.zeros((l_pad, t_out), dtype=np.float64)
    for j in range(t_out):
        w[j:j + k, j] = h
    return w


def build_windows(x, pad, t_out, l_pad):
    """x: (..., N) with N % t_out == 0 -> (..., N//t_out, l_pad) overlapping windows
    matching zero-padded ('same') conv framing. Built from shifted chunk slices
    (no gather); requires l_pad % t_out == 0."""
    assert l_pad % t_out == 0
    n = x.shape[-1]
    r = l_pad // t_out
    right = l_pad - t_out - pad
    cfg = [(0, 0)] * (x.ndim - 1) + [(pad, right)]
    xp = jnp.pad(x, cfg)
    nw = n // t_out
    chunks = xp.reshape(x.shape[:-1] + (nw + r - 1, t_out))
    parts = [chunks[..., j:j + nw, :] for j in range(r)]
    win = jnp.stack(parts, axis=-2)          # (..., nw, r, t_out)
    return win.reshape(x.shape[:-1] + (nw, l_pad))


# ----------------------------------------------------------------------------
# Pallas kernels
# ----------------------------------------------------------------------------
def _conv_toeplitz_kernel(a_ref, w_ref, o_ref):
    # (MT, Lp) @ (Lp, T) -> (MT, T), lane-dense output tile, weight resident.
    o_ref[...] = jnp.dot(a_ref[...], w_ref[...], preferred_element_type=jnp.float32)


def _gt_env_kernel(a_ref, w_ref, real_ref, env_ref, *, t_out):
    # Per-channel gammatone (cos & sin) conv + envelope, fused.
    # w_ref holds ALL channels resident in VMEM; select the channel slice in-kernel.
    c = pl.program_id(1)
    out = jnp.dot(a_ref[...], w_ref[c], preferred_element_type=jnp.float32)   # (MT, 2T)
    r = out[:, :t_out]
    im = out[:, t_out:]
    real_ref[0] = r
    env_ref[0] = jnp.sqrt(r * r + im * im + EPS)


def _lpf_gain_sum_kernel(expn_ref, inv_emax_ref, a_ref, w_ref, real_ref, o_ref, *,
                         out_coef):
    # Per-channel envelope low-pass (Toeplitz matmul, resident weights) +
    # recruitment gain + channel-sum accumulation into a revisited output block.
    # Per-channel constants come from SMEM tables indexed by program_id(1).
    c = pl.program_id(1)
    env_lpf = jnp.dot(a_ref[0], w_ref[c], preferred_element_type=jnp.float32)  # (MT, T)

    e = expn_ref[c]
    inv_mx = inv_emax_ref[c]
    g = jnp.clip(env_lpf * inv_mx, EPS, 1.0)
    g = jnp.exp(e * jnp.log(g))             # g ** expnsn_m1[c]

    @pl.when(c == 0)
    def _():
        o_ref[...] = jnp.zeros_like(o_ref)

    o_ref[...] += (g * real_ref[0].astype(jnp.float32)) * out_coef


def _smear_fused_kernel(fr_ref, wc_ref, ws_ref, fsT_ref, ic_ref, is_ref, o_ref):
    # forward windowed DFT -> power smearing -> inverse windowed DFT, all resident.
    fr = fr_ref[...]                                                           # bf16
    re = jnp.dot(fr, wc_ref[...], preferred_element_type=jnp.float32)          # (FT, 256)
    im = jnp.dot(fr, ws_ref[...], preferred_element_type=jnp.float32)
    power = re * re + im * im
    mag = jnp.sqrt(power + EPS)
    inv_mag = pl.reciprocal(mag + EPS, approx=True)
    pr = re * inv_mag
    pi_ = im * inv_mag
    sp = jnp.dot(power, fsT_ref[...], preferred_element_type=jnp.float32) + EPS
    sp = jnp.maximum(sp, 0.0)
    smag = jnp.sqrt(sp + EPS)
    o_ref[...] = (
        jnp.dot((smag * pr).astype(jnp.bfloat16), ic_ref[...],
                preferred_element_type=jnp.float32)
        + jnp.dot((smag * pi_).astype(jnp.bfloat16), is_ref[...],
                  preferred_element_type=jnp.float32))


# ----------------------------------------------------------------------------
# Model
# ----------------------------------------------------------------------------
class MSBGHearingModelPallas:
    def __init__(self, audiogram, audiometric, sr=44100, spl_cali=True,
                 src_posn="ff", kernel_size=1025, nchans=8,
                 conv_dtype=jnp.bfloat16):
        self.sr = sr
        self.spl_cali = spl_cali
        self.kernel_size = kernel_size
        self.nchans = nchans
        self.conv_dtype = conv_dtype
        self.T = TIME_TILE

        audiogram = np.array(audiogram, dtype=np.float64)
        audiometric = np.array(audiometric, dtype=np.float64)
        audiogram = np.append(audiogram, audiogram[-1])
        audiometric = np.append(audiometric, 16000)
        audiogram = np.append(audiogram[0], audiogram)
        audiometric = np.append(125, audiometric)
        audiogram_cfs = np.array([0.125, 0.25, 0.5, 0.75, 1, 1.5, 2, 3, 4, 6,
                                  8, 10, 12, 14, 16]) * 1000
        audiogram = np.interp(audiogram_cfs, audiometric, audiogram)

        # Synthetic (deterministic) free-field / middle-ear correction tables.
        HZ = np.array([0., 20., 25., 31.5, 40., 50., 63., 80., 100., 125., 160.,
                       200., 250., 315., 400., 500., 630., 800., 1000., 1250.,
                       1600., 2000., 2500., 3150., 4000., 5000., 6300., 8000.,
                       10000., 12500., 16000., 20000., 25000.])
        FF_ED = 17.0 * np.exp(-0.5 * ((np.log10(HZ + 1.0) - np.log10(2700.0)) / 0.30) ** 2)
        MIDEAR = np.clip(9.0 * np.abs(np.log10((HZ + 20.0) / 1000.0)), 0.0, 30.0)
        src_corrn = FF_ED  # src_posn == 'ff'

        nyquist = sr / 2
        ixf_useful = np.where(HZ < nyquist)[0]
        hz_used = np.append(HZ[ixf_useful], nyquist)
        corrn = src_corrn - MIDEAR
        last_corrn = np.interp(nyquist, HZ, corrn)
        corrn_used = np.append(corrn[ixf_useful], last_corrn)
        corrn_forward = 10 ** (0.05 * corrn_used)
        corrn_backward = 10 ** (0.05 * -1 * corrn_used)
        n_wdw = int(2 * np.floor(sr / 16000.0 * 368 / 2))
        cff = synth_firwin2(n_wdw + 1, hz_used / nyquist, corrn_forward, beta=4.0)
        cfb = synth_firwin2(n_wdw + 1, hz_used / nyquist, corrn_backward, beta=4.0)
        k_coch = len(cff)
        self.coch_pad = k_coch // 2
        lp_coch = _round_up(TIME_TILE + k_coch - 1, TIME_TILE)   # multiple of T for slicing
        self.W_coch_fwd = jnp.asarray(
            toeplitz_conv_matrix(cff, TIME_TILE, lp_coch), self.conv_dtype)
        self.W_coch_bwd = jnp.asarray(
            toeplitz_conv_matrix(cfb, TIME_TILE, lp_coch), self.conv_dtype)

        catch_up = 105.0
        impaired_freqs = np.where((audiogram_cfs >= 2000) & (audiogram_cfs <= 8000))[0]
        impaired_degree = np.mean(audiogram[impaired_freqs])
        if impaired_degree > 56:
            severe_not_moderate, bw_broaden_coef = 1, 3
        elif impaired_degree > 35:
            severe_not_moderate, bw_broaden_coef = 0, 2
        elif impaired_degree > 15:
            severe_not_moderate, bw_broaden_coef = -1, 1
        else:
            severe_not_moderate, bw_broaden_coef = -2, 1

        if severe_not_moderate > 0:
            fsmear = makesmearmat3(4, 2, sr)
        elif severe_not_moderate == 0:
            fsmear = makesmearmat3(2.4, 1.6, sr)
        elif severe_not_moderate == -1:
            fsmear = makesmearmat3(1.6, 1.1, sr)
        else:
            fsmear = makesmearmat3(1.001, 1.001, sr)
        self.fsmear_T = jnp.asarray(fsmear.T, jnp.float32)               # (256, 256) f32

        self.smear_nfft, self.smear_win_len, self.smear_hop_len = 512, 256, 64
        sw = (0.5 - 0.5 * np.cos(2 * np.pi * (np.arange(1, 257) - 0.5) / 256)) / np.sqrt(1.5)
        win512 = np.zeros(512)
        win512[128:384] = sw                 # torch.stft centers the window in n_fft
        self.win512_np = win512.astype(np.float64)

        # Windowed DFT / inverse-DFT matrices, bins 0..255 (Nyquist bin zeroed as in ref).
        kbins = np.arange(256)
        nn = np.arange(512)
        ang = 2 * np.pi * np.outer(nn, kbins) / 512.0
        self.Wc = jnp.asarray(win512[:, None] * np.cos(ang), jnp.bfloat16)     # (512, 256)
        self.Ws = jnp.asarray(-win512[:, None] * np.sin(ang), jnp.bfloat16)    # (512, 256)
        coefk = np.ones(256)
        coefk[1:] = 2.0
        angi = 2 * np.pi * np.outer(kbins, nn) / 512.0
        self.Ic = jnp.asarray((coefk[:, None] * np.cos(angi) / 512.0) * win512[None, :],
                              jnp.bfloat16)                                    # (256, 512)
        self.Is = jnp.asarray((-coefk[:, None] * np.sin(angi) / 512.0) * win512[None, :],
                              jnp.bfloat16)                                    # (256, 512)

        # Synthetic gammatone filterbank (stand-in for GT4FBank json).
        e = np.linspace(erb_rate(150.0), erb_rate(8000.0), nchans)
        gt_cfreq = inv_erb_rate(e)
        erbn_centfrq = 24.7 * (0.00437 * gt_cfreq + 1.0)
        gt_bw = erbn_centfrq * 1.1019 * bw_broaden_coef
        recombination_dB = 9.0

        cf_expnsn = np.zeros(nchans)
        eq_loud_db = np.zeros(nchans)
        for ix in range(nchans):
            cf = gt_cfreq[ix]
            if cf < audiogram_cfs[0]:
                a = audiogram[0]
            elif cf > audiogram_cfs[-1]:
                a = audiogram[-1]
            else:
                a = np.interp(cf, audiogram_cfs, audiogram)
            cf_expnsn[ix] = catch_up / (catch_up - a)
            eq_loud_db[ix] = catch_up

        fir_lpf = []
        for ix in range(nchans):
            fc_envlp = 30.0 / 40.0 * min(100.0, erbn_centfrq[ix])
            fir_lpf.append(synth_firwin_lowpass(kernel_size, fc_envlp / (sr / 2)) / np.sqrt(2))
        fir_lpf = np.array(fir_lpf)                                      # (C, K)

        # Per-channel constants as SMEM tables (expansion-1, 1/env_max).
        self.expn_arr = jnp.asarray(cf_expnsn - 1.0, jnp.float32)
        self.inv_emax_arr = jnp.asarray(
            10 ** (-0.05 * (eq_loud_db - equiv_0dB_SPL)), jnp.float32)
        self.recruitment_out_coef = float(10 ** (-0.05 * recombination_dB))

        # FIR gammatone filters, same construction as the torch module.
        self.padding = (kernel_size - 1) // 2
        K = kernel_size
        n_lin = np.arange(K, dtype=np.float64)
        window_ = 0.54 - 0.46 * np.cos(2 * np.pi * n_lin / K)
        n_ = (np.arange(K, dtype=np.float64) / sr)[None, :]
        f_t = gt_cfreq[:, None] * n_
        carrier = np.cos(2 * np.pi * f_t)
        carrier_sin = np.sin(2 * np.pi * f_t)
        b_t = gt_bw[:, None] * n_
        kern = (n_ ** 3) * np.exp(-2 * np.pi * b_t)
        gammatone = kern * carrier
        self.peaks_np = np.argmax(gammatone, axis=1).astype(np.int32)
        gammatone_sin = kern * carrier_sin
        filters = gammatone * window_
        fr_max = np.array([np.max(np.abs(np.fft.fft(filters[i]))[:K // 2])
                           for i in range(nchans)])
        gammatone = gammatone / fr_max[:, None]
        gammatone_sin = gammatone_sin / fr_max[:, None]
        gt_fir = gammatone * window_
        gt_fir_sin = gammatone_sin * window_

        # Banded-Toeplitz weights: gammatone (cos|sin) stacked on the lane axis,
        # and per-channel envelope low-pass.  Both are kept fully VMEM-resident.
        lp_gt = _round_up(TIME_TILE + K - 1, TIME_TILE)
        self.Lp_gt = lp_gt
        W_gt2 = np.zeros((nchans, lp_gt, 2 * TIME_TILE))
        W_lpf = np.zeros((nchans, lp_gt, TIME_TILE))
        for c in range(nchans):
            W_gt2[c, :, :TIME_TILE] = toeplitz_conv_matrix(gt_fir[c], TIME_TILE, lp_gt)
            W_gt2[c, :, TIME_TILE:] = toeplitz_conv_matrix(gt_fir_sin[c], TIME_TILE, lp_gt)
            W_lpf[c] = toeplitz_conv_matrix(fir_lpf[c], TIME_TILE, lp_gt)
        self.W_gt2 = jnp.asarray(W_gt2, self.conv_dtype)                 # (C, Lp, 2T)
        self.W_lpf = jnp.asarray(W_lpf, self.conv_dtype)                 # (C, Lp, T)

        # SPL calibration settings.
        self.db_relative_rms = -12.0
        self.win_len = int(sr * 0.01)

    # --------------------------- SPL calibration (cheap reductions, plain JAX)
    def measure_rms(self, wav):
        bs = wav.shape[0]
        ave_rms = jnp.sqrt(jnp.mean(wav ** 2, axis=1) + EPS)
        thr_db = 20 * jnp.log10(ave_rms + EPS) + self.db_relative_rms
        num_frames = wav.shape[1] // self.win_len
        wav_r = wav[:, :num_frames * self.win_len].reshape(bs, num_frames, self.win_len)
        db_frames = 10 * jnp.log10(jnp.mean(wav_r ** 2, axis=2) + EPS)
        key = jnp.where(db_frames > thr_db[:, None], 1.0, 0.0)
        key_frames = jnp.repeat(key[:, :, None], self.win_len, axis=2).reshape(
            bs, num_frames * self.win_len)
        key_rms = jnp.sqrt(
            jnp.sum((wav[:, :num_frames * self.win_len] * key_frames) ** 2, axis=1)
            / (jnp.sum(key_frames, axis=1) + EPS) + EPS)
        return key_rms[:, None]

    def calibrate_spl(self, x):
        if not self.spl_cali:
            return x
        levelreFS = 10 * jnp.log10(jnp.mean(x ** 2, axis=1, keepdims=True) + EPS)
        leveldBSPL = equiv_0dB_SPL + levelreFS
        rms = self.measure_rms(x)
        change_dB = leveldBSPL - (equiv_0dB_SPL + 20 * jnp.log10(rms + EPS))
        return x * 10 ** (0.05 * change_dB)

    # --------------------------- single-filter 'same' FIR conv (Toeplitz matmul)
    def _conv_same(self, x, w_toep, pad):
        B, N = x.shape
        T = self.T
        Np = _round_up(N, T)
        xq = jnp.pad(x, ((0, 0), (0, Np - N)))
        Lp = w_toep.shape[0]
        M = B * (Np // T)
        A = build_windows(xq, pad, T, Lp).reshape(M, Lp).astype(self.conv_dtype)
        MT = _choose_m_tile(M)
        Mp = _round_up(M, MT)
        A = jnp.pad(A, ((0, Mp - M), (0, 0)))
        y = pl.pallas_call(
            _conv_toeplitz_kernel,
            out_shape=jax.ShapeDtypeStruct((Mp, T), jnp.float32),
            grid=(Mp // MT,),
            in_specs=[pl.BlockSpec((MT, Lp), lambda i: (i, 0)),
                      pl.BlockSpec((Lp, T), lambda i: (0, 0))],      # weight resident
            out_specs=pl.BlockSpec((MT, T), lambda i: (i, 0)),
            compiler_params=pltpu.CompilerParams(
                dimension_semantics=("parallel",),
                vmem_limit_bytes=32 * 1024 * 1024),
        )(A, w_toep)
        return y[:M].reshape(B, Np)[:, :N]

    # --------------------------- spectral smearing (fused DFT->smear->iDFT kernel)
    def _smear(self, x):
        B, N = x.shape
        nfft, hop = self.smear_nfft, self.smear_hop_len
        ratio = nfft // hop
        Fn = 1 + N // hop
        xp = jnp.pad(x, ((0, 0), (nfft // 2, nfft // 2)), mode="reflect")
        need = (Fn + ratio - 1) * hop
        xp = xp[:, :need]
        chunks = xp.reshape(B, Fn + ratio - 1, hop)
        # slice-based framing (no gather): frame f = concat of hop-chunks f..f+7
        frames = jnp.stack([chunks[:, j:j + Fn, :] for j in range(ratio)], axis=2)
        frames = frames.reshape(B * Fn, nfft).astype(jnp.bfloat16)
        M = B * Fn
        FT = _choose_m_tile(M)
        Mp = _round_up(M, FT)
        frames = jnp.pad(frames, ((0, Mp - M), (0, 0)))

        out = pl.pallas_call(
            _smear_fused_kernel,
            out_shape=jax.ShapeDtypeStruct((Mp, nfft), jnp.float32),
            grid=(Mp // FT,),
            in_specs=[pl.BlockSpec((FT, nfft), lambda i: (i, 0)),
                      pl.BlockSpec((nfft, 256), lambda i: (0, 0)),
                      pl.BlockSpec((nfft, 256), lambda i: (0, 0)),
                      pl.BlockSpec((256, 256), lambda i: (0, 0)),
                      pl.BlockSpec((256, nfft), lambda i: (0, 0)),
                      pl.BlockSpec((256, nfft), lambda i: (0, 0))],
            out_specs=pl.BlockSpec((FT, nfft), lambda i: (i, 0)),
            compiler_params=pltpu.CompilerParams(
                dimension_semantics=("parallel",),
                vmem_limit_bytes=32 * 1024 * 1024),
        )(frames, self.Wc, self.Ws, self.fsmear_T, self.Ic, self.Is)

        frames_t = out[:M].reshape(B, Fn, nfft)
        # overlap-add as an 8-way pad+add fold (no scatter), then window-square
        # envelope normalization (matches torch.istft).
        segs = frames_t.reshape(B, Fn, ratio, hop)
        acc = None
        for s in range(ratio):
            part = jnp.pad(segs[:, :, s, :], ((0, 0), (s, ratio - 1 - s), (0, 0)))
            acc = part if acc is None else acc + part
        y = acc.reshape(B, (Fn + ratio - 1) * hop)

        np_idx = (np.arange(Fn)[:, None] * hop + np.arange(nfft)[None, :]).reshape(-1)
        wsum = np.zeros((Fn + ratio - 1) * hop, np.float64)
        np.add.at(wsum, np_idx, np.tile(self.win512_np ** 2, Fn))
        env = jnp.asarray(wsum[nfft // 2: nfft // 2 + N], jnp.float32)
        return y[:, nfft // 2: nfft // 2 + N] / env

    # --------------------------- recruitment (fused gammatone + env, fused LPF+gain+sum)
    def _recruitment(self, x):
        B, N = x.shape
        T, C, pad, Lp = self.T, self.nchans, self.padding, self.Lp_gt
        Np = _round_up(N, T)
        xq = jnp.pad(x, ((0, 0), (0, Np - N)))
        M = B * (Np // T)
        A = build_windows(xq, pad, T, Lp).reshape(M, Lp).astype(self.conv_dtype)
        MT = _choose_m_tile(M)
        Mp = _round_up(M, MT)
        A = jnp.pad(A, ((0, Mp - M), (0, 0)))

        real, env = pl.pallas_call(
            functools.partial(_gt_env_kernel, t_out=T),
            out_shape=(jax.ShapeDtypeStruct((C, Mp, T), jnp.float32),
                       jax.ShapeDtypeStruct((C, Mp, T), jnp.float32)),
            grid=(Mp // MT, C),
            in_specs=[pl.BlockSpec((MT, Lp), lambda i, c: (i, 0)),        # shared windows
                      pl.BlockSpec((C, Lp, 2 * T), lambda i, c: (0, 0, 0))],  # resident W
            out_specs=(pl.BlockSpec((1, MT, T), lambda i, c: (c, i, 0)),
                       pl.BlockSpec((1, MT, T), lambda i, c: (c, i, 0))),
            compiler_params=pltpu.CompilerParams(
                dimension_semantics=("parallel", "parallel"),
                vmem_limit_bytes=48 * 1024 * 1024),
        )(A, self.W_gt2)

        real = real[:, :M].reshape(C, B, Np)[:, :, :N]
        env = env[:, :M].reshape(C, B, Np)[:, :, :N]

        # Peak alignment: peaks are host constants -> static per-channel slice + pad
        # (no gathers).  Env tail filled with sqrt(EPS) to match sqrt(0+0+EPS).
        sqrt_eps = float(np.sqrt(EPS))
        real_list, env_list = [], []
        for c in range(C):
            p = int(min(self.peaks_np[c], N))
            real_list.append(jnp.pad(real[c, :, p:], ((0, 0), (0, p))))
            env_list.append(jnp.pad(env[c, :, p:], ((0, 0), (0, p)),
                                    constant_values=sqrt_eps))
        real_cali = jnp.stack(real_list, axis=0)                          # (C, B, N)
        env_cali = jnp.stack(env_list, axis=0)

        # Fused per-channel envelope LPF + recruitment gain + channel sum.
        env_q = jnp.pad(env_cali, ((0, 0), (0, 0), (0, Np - N)))
        Aw = build_windows(env_q, pad, T, Lp).reshape(C, M, Lp).astype(self.conv_dtype)
        Aw = jnp.pad(Aw, ((0, 0), (0, Mp - M), (0, 0)))
        real_m = jnp.pad(real_cali, ((0, 0), (0, 0), (0, Np - N))).reshape(C, M, T)
        real_m = jnp.pad(real_m, ((0, 0), (0, Mp - M), (0, 0))).astype(self.conv_dtype)

        y = pl.pallas_call(
            functools.partial(_lpf_gain_sum_kernel,
                              out_coef=self.recruitment_out_coef),
            out_shape=jax.ShapeDtypeStruct((Mp, T), jnp.float32),
            grid=(Mp // MT, C),
            in_specs=[pl.BlockSpec(memory_space=pltpu.MemorySpace.SMEM),   # expn (C,)
                      pl.BlockSpec(memory_space=pltpu.MemorySpace.SMEM),   # 1/emax (C,)
                      pl.BlockSpec((1, MT, Lp), lambda i, c: (c, i, 0)),
                      pl.BlockSpec((C, Lp, T), lambda i, c: (0, 0, 0)),    # resident W_lpf
                      pl.BlockSpec((1, MT, T), lambda i, c: (c, i, 0))],
            out_specs=pl.BlockSpec((MT, T), lambda i, c: (i, 0)),          # accumulator
            compiler_params=pltpu.CompilerParams(
                dimension_semantics=("parallel", "arbitrary"),
                vmem_limit_bytes=32 * 1024 * 1024),
        )(self.expn_arr, self.inv_emax_arr, Aw, self.W_lpf, real_m)
        return y[:M].reshape(B, Np)[:, :N]

    # --------------------------- full forward pass
    def forward(self, x):
        x = self.calibrate_spl(x)                                 # (B, N)
        x = self._conv_same(x, self.W_coch_fwd, self.coch_pad)    # src -> cochlea
        x = self._smear(x)                                        # spectral smearing
        x = self._recruitment(x)                                  # loudness recruitment
        y = self._conv_same(x, self.W_coch_bwd, self.coch_pad)    # cochlea -> src
        return y


# ----------------------------------------------------------------------------
if __name__ == "__main__":
    B, N = 2, 2048
    key = jax.random.PRNGKey(0)
    x = 0.1 * jax.random.normal(key, (B, N), dtype=jnp.float32)

    model = MSBGHearingModelPallas(
        audiogram=[20, 25, 30, 40, 45, 50, 55],
        audiometric=[250, 500, 1000, 2000, 4000, 6000, 8000],
        sr=44100, spl_cali=True, kernel_size=1025, nchans=8)

    fwd = jax.jit(model.forward)
    y = fwd(x)
    y = jax.block_until_ready(y)
    assert y.shape == (B, N), y.shape
    assert bool(jnp.all(jnp.isfinite(y)))
    print("KERNEL_OK")
</pallas_src>

<mosaic_0001>
module attributes {stable_mosaic.version = 11 : i64} {
  func.func @_conv_toeplitz_kernel(%arg0: i32, %arg1: memref<16x1280xbf16, #tpu.memory_space<vmem>>, %arg2: memref<1280x256xbf16, #tpu.memory_space<vmem>>, %arg3: memref<16x256xf32, #tpu.memory_space<vmem>>) attributes {dimension_semantics = [#tpu.dimension_semantics<parallel>], iteration_bounds = array<i64: 1>, scalar_prefetch = 0 : i64, scratch_operands = 0 : i64, tpu.core_type = #tpu.core_type<tc>, window_params = [{transform_indices = @transform_0, window_bounds = array<i64: 16, 1280>}, {pipeline_mode = #tpu.pipeline_mode<synchronous>, transform_indices = @transform_1, window_bounds = array<i64: 1280, 256>}, {transform_indices = @transform_2, window_bounds = array<i64: 16, 256>}]} {
    %c0 = arith.constant 0 : index
    %c0_0 = arith.constant 0 : index
    %0 = vector.load %arg1[%c0, %c0_0] : memref<16x1280xbf16, #tpu.memory_space<vmem>>, vector<16x1280xbf16>
    %c0_1 = arith.constant 0 : index
    %c0_2 = arith.constant 0 : index
    %1 = vector.load %arg2[%c0_1, %c0_2] : memref<1280x256xbf16, #tpu.memory_space<vmem>>, vector<1280x256xbf16>
    %cst = arith.constant dense<0.000000e+00> : vector<16x256xf32>
    %2 = tpu.matmul %0, %1, %cst {dimension_numbers = #tpu.dot_dimension_numbers<[1], [0], [0], [1], [0, 0, 1, 1], [], []>} : vector<16x1280xbf16>, vector<1280x256xbf16>, vector<16x256xf32> -> vector<16x256xf32>
    %c0_3 = arith.constant 0 : index
    %c0_4 = arith.constant 0 : index
    %3 = vector.load %arg3[%c0_3, %c0_4] : memref<16x256xf32, #tpu.memory_space<vmem>>, vector<16x256xf32>
    tpu.vector_store %arg3[%c0_3, %c0_4], %2 {strides = array<i32>} : memref<16x256xf32, #tpu.memory_space<vmem>>, vector<16x256xf32>,
    return
  }
  func.func @transform_0(%arg0: i32) -> (i32, i32) {
    %c0_i32 = arith.constant 0 : i32
    %c0_i32_0 = arith.constant 0 : i32
    return %arg0, %c0_i32 : i32, i32
  }
  func.func @transform_1(%arg0: i32) -> (i32, i32) {
    %c0_i32 = arith.constant 0 : i32
    %c0_i32_0 = arith.constant 0 : i32
    %c0_i32_1 = arith.constant 0 : i32
    return %c0_i32, %c0_i32_0 : i32, i32
  }
  func.func @transform_2(%arg0: i32) -> (i32, i32) {
    %c0_i32 = arith.constant 0 : i32
    %c0_i32_0 = arith.constant 0 : i32
    return %arg0, %c0_i32 : i32, i32
  }
}

module attributes {stable_mosaic.version = 11 : i64} {
  func.func @_smear_fused_kernel(%arg0: i32, %arg1: memref<80x512xbf16, #tpu.memory_space<vmem>>, %arg2: memref<512x256xbf16, #tpu.memory_space<vmem>>, %arg3: memref<512x256xbf16, #tpu.memory_space<vmem>>, %arg4: memref<256x256xf32, #tpu.memory_space<vmem>>, %arg5: memref<256x512xbf16, #tpu.memory_space<vmem>>, %arg6: memref<256x512xbf16, #tpu.memory_space<vmem>>, %arg7: memref<80x512xf32, #tpu.memory_space<vmem>>) attributes {dimension_semantics = [#tpu.dimension_semantics<parallel>], iteration_bounds = array<i64: 1>, scalar_prefetch = 0 : i64, scratch_operands = 0 : i64, tpu.core_type = #tpu.core_type<tc>, window_params = [{transform_indices = @transform_0, window_bounds = array<i64: 80, 512>}, {pipeline_mode = #tpu.pipeline_mode<synchronous>, transform_indices = @transform_1, window_bounds = array<i64: 512, 256>}, {pipeline_mode = #tpu.pipeline_mode<synchronous>, transform_indices = @transform_2, window_bounds = array<i64: 512, 256>}, {pipeline_mode = #tpu.pipeline_mode<synchronous>, transform_indices = @transform_3, window_bounds = array<i64: 256, 256>}, {pipeline_mode = #tpu.pipeline_mode<synchronous>, transform_indices = @transform_4, window_bounds = array<i64: 256, 512>}, {pipeline_mode = #tpu.pipeline_mode<synchronous>, transform_indices = @transform_5, window_bounds = array<i64: 256, 512>}, {transform_indices = @transform_6, window_bounds = array<i64: 80, 512>}]} {
    %c0 = arith.constant 0 : index
    %c0_0 = arith.constant 0 : index
    %0 = vector.load %arg1[%c0, %c0_0] : memref<80x512xbf16, #tpu.memory_space<vmem>>, vector<80x512xbf16>
    %c0_1 = arith.constant 0 : index
    %c0_2 = arith.constant 0 : index
    %1 = vector.load %arg2[%c0_1, %c0_2] : memref<512x256xbf16, #tpu.memory_space<vmem>>, vector<512x256xbf16>
    %cst = arith.constant dense<0.000000e+00> : vector<80x256xf32>
    %2 = tpu.matmul %0, %1, %cst {dimension_numbers = #tpu.dot_dimension_numbers<[1], [0], [0], [1], [0, 0, 1, 1], [], []>} : vector<80x512xbf16>, vector<512x256xbf16>, vector<80x256xf32> -> vector<80x256xf32>
    %c0_3 = arith.constant 0 : index
    %c0_4 = arith.constant 0 : index
    %3 = vector.load %arg3[%c0_3, %c0_4] : memref<512x256xbf16, #tpu.memory_space<vmem>>, vector<512x256xbf16>
    %cst_5 = arith.constant dense<0.000000e+00> : vector<80x256xf32>
    %4 = tpu.matmul %0, %3, %cst_5 {dimension_numbers = #tpu.dot_dimension_numbers<[1], [0], [0], [1], [0, 0, 1, 1], [], []>} : vector<80x512xbf16>, vector<512x256xbf16>, vector<80x256xf32> -> vector<80x256xf32>
    %5 = arith.mulf %2, %2 : vector<80x256xf32>
    %6 = arith.mulf %4, %4 : vector<80x256xf32>
    %7 = arith.addf %5, %6 : vector<80x256xf32>
    %cst_6 = arith.constant 9.99999993E-9 : f32
    %8 = vector.broadcast %cst_6 : f32 to vector<80x256xf32>
    %9 = arith.addf %7, %8 : vector<80x256xf32>
    %10 = math.sqrt %9 : vector<80x256xf32>
    %cst_7 = arith.constant 9.99999993E-9 : f32
    %11 = vector.broadcast %cst_7 : f32 to vector<80x256xf32>
    %12 = arith.addf %10, %11 : vector<80x256xf32>
    %13 = tpu.reciprocal %12 {approx = true} : vector<80x256xf32> -> vector<80x256xf32>
    %14 = arith.mulf %2, %13 : vector<80x256xf32>
    %15 = arith.mulf %4, %13 : vector<80x256xf32>
    %c0_8 = arith.constant 0 : index
    %c0_9 = arith.constant 0 : index
    %16 = vector.load %arg4[%c0_8, %c0_9] : memref<256x256xf32, #tpu.memory_space<vmem>>, vector<256x256xf32>
    %cst_10 = arith.constant dense<0.000000e+00> : vector<80x256xf32>
    %17 = tpu.matmul %7, %16, %cst_10 {dimension_numbers = #tpu.dot_dimension_numbers<[1], [0], [0], [1], [0, 0, 1, 1], [], []>} : vector<80x256xf32>, vector<256x256xf32>, vector<80x256xf32> -> vector<80x256xf32>
    %cst_11 = arith.constant 9.99999993E-9 : f32
    %18 = vector.broadcast %cst_11 : f32 to vector<80x256xf32>
    %19 = arith.addf %17, %18 : vector<80x256xf32>
    %cst_12 = arith.constant 0.000000e+00 : f32
    %20 = vector.broadcast %cst_12 : f32 to vector<80x256xf32>
    %21 = arith.maximumf %19, %20 : vector<80x256xf32>
    %cst_13 = arith.constant 9.99999993E-9 : f32
    %22 = vector.broadcast %cst_13 : f32 to vector<80x256xf32>
    %23 = arith.addf %21, %22 : vector<80x256xf32>
    %24 = math.sqrt %23 : vector<80x256xf32>
    %25 = arith.mulf %24, %14 : vector<80x256xf32>
    %26 = arith.truncf %25 : vector<80x256xf32> to vector<80x256xbf16>
    %c0_14 = arith.constant 0 : index
    %c0_15 = arith.constant 0 : index
    %27 = vector.load %arg5[%c0_14, %c0_15] : memref<256x512xbf16, #tpu.memory_space<vmem>>, vector<256x512xbf16>
    %cst_16 = arith.constant dense<0.000000e+00> : vector<80x512xf32>
    %28 = tpu.matmul %26, %27, %cst_16 {dimension_numbers = #tpu.dot_dimension_numbers<[1], [0], [0], [1], [0, 0, 1, 1], [], []>} : vector<80x256xbf16>, vector<256x512xbf16>, vector<80x512xf32> -> vector<80x512xf32>
    %29 = arith.mulf %24, %15 : vector<80x256xf32>
    %30 = arith.truncf %29 : vector<80x256xf32> to vector<80x256xbf16>
    %c0_17 = arith.constant 0 : index
    %c0_18 = arith.constant 0 : index
    %31 = vector.load %arg6[%c0_17, %c0_18] : memref<256x512xbf16, #tpu.memory_space<vmem>>, vector<256x512xbf16>
    %cst_19 = arith.constant dense<0.000000e+00> : vector<80x512xf32>
    %32 = tpu.matmul %30, %31, %cst_19 {dimension_numbers = #tpu.dot_dimension_numbers<[1], [0], [0], [1], [0, 0, 1, 1], [], []>} : vector<80x256xbf16>, vector<256x512xbf16>, vector<80x512xf32> -> vector<80x512xf32>
    %33 = arith.addf %28, %32 : vector<80x512xf32>
    %c0_20 = arith.constant 0 : index
    %c0_21 = arith.constant 0 : index
    %34 = vector.load %arg7[%c0_20, %c0_21] : memref<80x512xf32, #tpu.memory_space<vmem>>, vector<80x512xf32>
    tpu.vector_store %arg7[%c0_20, %c0_21], %33 {strides = array<i32>} : memref<80x512xf32, #tpu.memory_space<vmem>>, vector<80x512xf32>,
    return
  }
  func.func @transform_0(%arg0: i32) -> (i32, i32) {
    %c0_i32 = arith.constant 0 : i32
    %c0_i32_0 = arith.constant 0 : i32
    return %arg0, %c0_i32 : i32, i32
  }
  func.func @transform_1(%arg0: i32) -> (i32, i32) {
    %c0_i32 = arith.constant 0 : i32
    %c0_i32_0 = arith.constant 0 : i32
    %c0_i32_1 = arith.constant 0 : i32
    return %c0_i32, %c0_i32_0 : i32, i32
  }
  func.func @transform_2(%arg0: i32) -> (i32, i32) {
    %c0_i32 = arith.constant 0 : i32
    %c0_i32_0 = arith.constant 0 : i32
    %c0_i32_1 = arith.constant 0 : i32
    return %c0_i32, %c0_i32_0 : i32, i32
  }
  func.func @transform_3(%arg0: i32) -> (i32, i32) {
    %c0_i32 = arith.constant 0 : i32
    %c0_i32_0 = arith.constant 0 : i32
    %c0_i32_1 = arith.constant 0 : i32
    return %c0_i32, %c0_i32_0 : i32, i32
  }
  func.func @transform_4(%arg0: i32) -> (i32, i32) {
    %c0_i32 = arith.constant 0 : i32
    %c0_i32_0 = arith.constant 0 : i32
    %c0_i32_1 = arith.constant 0 : i32
    return %c0_i32, %c0_i32_0 : i32, i32
  }
  func.func @transform_5(%arg0: i32) -> (i32, i32) {
    %c0_i32 = arith.constant 0 : i32
    %c0_i32_0 = arith.constant 0 : i32
    %c0_i32_1 = arith.constant 0 : i32
    return %c0_i32, %c0_i32_0 : i32, i32
  }
  func.func @transform_6(%arg0: i32) -> (i32, i32) {
    %c0_i32 = arith.constant 0 : i32
    %c0_i32_0 = arith.constant 0 : i32
    return %arg0, %c0_i32 : i32, i32
  }
}

module attributes {stable_mosaic.version = 11 : i64} {
  func.func @_gt_env_kernel(%arg0: i32, %arg1: i32, %arg2: memref<16x1280xbf16, #tpu.memory_space<vmem>>, %arg3: memref<8x1280x512xbf16, #tpu.memory_space<vmem>>, %arg4: memref<1x16x256xf32, #tpu.memory_space<vmem>>, %arg5: memref<1x16x256xf32, #tpu.memory_space<vmem>>) attributes {dimension_semantics = [#tpu.dimension_semantics<parallel>, #tpu.dimension_semantics<parallel>], iteration_bounds = array<i64: 1, 8>, scalar_prefetch = 0 : i64, scratch_operands = 0 : i64, tpu.core_type = #tpu.core_type<tc>, window_params = [{transform_indices = @transform_0, window_bounds = array<i64: 16, 1280>}, {pipeline_mode = #tpu.pipeline_mode<synchronous>, transform_indices = @transform_1, window_bounds = array<i64: 8, 1280, 512>}, {transform_indices = @transform_2, window_bounds = array<i64: 1, 16, 256>}, {transform_indices = @transform_3, window_bounds = array<i64: 1, 16, 256>}]} {
    %c0 = arith.constant 0 : index
    %c0_0 = arith.constant 0 : index
    %0 = vector.load %arg2[%c0, %c0_0] : memref<16x1280xbf16, #tpu.memory_space<vmem>>, vector<16x1280xbf16>
    %1 = arith.index_cast %arg1 : i32 to index
    %c0_1 = arith.constant 0 : index
    %c0_2 = arith.constant 0 : index
    %2 = vector.load %arg3[%1, %c0_1, %c0_2] : memref<8x1280x512xbf16, #tpu.memory_space<vmem>>, vector<1x1280x512xbf16>
    %3 = vector.shape_cast %2 : vector<1x1280x512xbf16> to vector<1280x512xbf16>
    %cst = arith.constant dense<0.000000e+00> : vector<16x512xf32>
    %4 = tpu.matmul %0, %3, %cst {dimension_numbers = #tpu.dot_dimension_numbers<[1], [0], [0], [1], [0, 0, 1, 1], [], []>} : vector<16x1280xbf16>, vector<1280x512xbf16>, vector<16x512xf32> -> vector<16x512xf32>
    %5 = vector.extract_strided_slice %4 {offsets = [0, 0], sizes = [16, 256], strides = [1, 1]} : vector<16x512xf32> to vector<16x256xf32>
    %6 = vector.extract_strided_slice %4 {offsets = [0, 256], sizes = [16, 256], strides = [1, 1]} : vector<16x512xf32> to vector<16x256xf32>
    %c0_3 = arith.constant 0 : index
    %c0_4 = arith.constant 0 : index
    %c0_5 = arith.constant 0 : index
    %7 = vector.load %arg4[%c0_3, %c0_4, %c0_5] : memref<1x16x256xf32, #tpu.memory_space<vmem>>, vector<1x16x256xf32>
    %8 = vector.shape_cast %7 : vector<1x16x256xf32> to vector<16x256xf32>
    %9 = vector.shape_cast %5 : vector<16x256xf32> to vector<1x16x256xf32>
    tpu.vector_store %arg4[%c0_3, %c0_4, %c0_5], %9 {strides = array<i32>} : memref<1x16x256xf32, #tpu.memory_space<vmem>>, vector<1x16x256xf32>,
    %10 = arith.mulf %5, %5 : vector<16x256xf32>
    %11 = arith.mulf %6, %6 : vector<16x256xf32>
    %12 = arith.addf %10, %11 : vector<16x256xf32>
    %cst_6 = arith.constant 9.99999993E-9 : f32
    %13 = vector.broadcast %cst_6 : f32 to vector<16x256xf32>
    %14 = arith.addf %12, %13 : vector<16x256xf32>
    %15 = math.sqrt %14 : vector<16x256xf32>
    %c0_7 = arith.constant 0 : index
    %c0_8 = arith.constant 0 : index
    %c0_9 = arith.constant 0 : index
    %16 = vector.load %arg5[%c0_7, %c0_8, %c0_9] : memref<1x16x256xf32, #tpu.memory_space<vmem>>, vector<1x16x256xf32>
    %17 = vector.shape_cast %16 : vector<1x16x256xf32> to vector<16x256xf32>
    %18 = vector.shape_cast %15 : vector<16x256xf32> to vector<1x16x256xf32>
    tpu.vector_store %arg5[%c0_7, %c0_8, %c0_9], %18 {strides = array<i32>} : memref<1x16x256xf32, #tpu.memory_space<vmem>>, vector<1x16x256xf32>,
    return
  }
  func.func @transform_0(%arg0: i32, %arg1: i32) -> (i32, i32) {
    %c0_i32 = arith.constant 0 : i32
    %c0_i32_0 = arith.constant 0 : i32
    return %arg0, %c0_i32 : i32, i32
  }
  func.func @transform_1(%arg0: i32, %arg1: i32) -> (i32, i32, i32) {
    %c0_i32 = arith.constant 0 : i32
    %c0_i32_0 = arith.constant 0 : i32
    %c0_i32_1 = arith.constant 0 : i32
    %c0_i32_2 = arith.constant 0 : i32
    return %c0_i32, %c0_i32_0, %c0_i32_1 : i32, i32, i32
  }
  func.func @transform_2(%arg0: i32, %arg1: i32) -> (i32, i32, i32) {
    %c0_i32 = arith.constant 0 : i32
    %c0_i32_0 = arith.constant 0 : i32
    return %arg1, %arg0, %c0_i32 : i32, i32, i32
  }
  func.func @transform_3(%arg0: i32, %arg1: i32) -> (i32, i32, i32) {
    %c0_i32 = arith.constant 0 : i32
    %c0_i32_0 = arith.constant 0 : i32
    return %arg1, %arg0, %c0_i32 : i32, i32, i32
  }
}

module attributes {stable_mosaic.version = 11 : i64} {
  func.func @_lpf_gain_sum_kernel(%arg0: i32, %arg1: i32, %arg2: memref<8xf32, #tpu.memory_space<smem>>, %arg3: memref<8xf32, #tpu.memory_space<smem>>, %arg4: memref<1x16x1280xbf16, #tpu.memory_space<vmem>>, %arg5: memref<8x1280x256xbf16, #tpu.memory_space<vmem>>, %arg6: memref<1x16x256xbf16, #tpu.memory_space<vmem>>, %arg7: memref<16x256xf32, #tpu.memory_space<vmem>>) attributes {dimension_semantics = [#tpu.dimension_semantics<parallel>, #tpu.dimension_semantics<arbitrary>], iteration_bounds = array<i64: 1, 8>, scalar_prefetch = 0 : i64, scratch_operands = 0 : i64, tpu.core_type = #tpu.core_type<tc>, window_params = [{transform_indices = @transform_0, window_bounds = array<i64: 8>}, {transform_indices = @transform_1, window_bounds = array<i64: 8>}, {transform_indices = @transform_2, window_bounds = array<i64: 1, 16, 1280>}, {pipeline_mode = #tpu.pipeline_mode<synchronous>, transform_indices = @transform_3, window_bounds = array<i64: 8, 1280, 256>}, {transform_indices = @transform_4, window_bounds = array<i64: 1, 16, 256>}, {transform_indices = @transform_5, window_bounds = array<i64: 16, 256>}]} {
    %c0 = arith.constant 0 : index
    %c0_0 = arith.constant 0 : index
    %c0_1 = arith.constant 0 : index
    %0 = vector.load %arg4[%c0, %c0_0, %c0_1] : memref<1x16x1280xbf16, #tpu.memory_space<vmem>>, vector<1x16x1280xbf16>
    %1 = vector.shape_cast %0 : vector<1x16x1280xbf16> to vector<16x1280xbf16>
    %2 = arith.index_cast %arg1 : i32 to index
    %c0_2 = arith.constant 0 : index
    %c0_3 = arith.constant 0 : index
    %3 = vector.load %arg5[%2, %c0_2, %c0_3] : memref<8x1280x256xbf16, #tpu.memory_space<vmem>>, vector<1x1280x256xbf16>
    %4 = vector.shape_cast %3 : vector<1x1280x256xbf16> to vector<1280x256xbf16>
    %cst = arith.constant dense<0.000000e+00> : vector<16x256xf32>
    %5 = tpu.matmul %1, %4, %cst {dimension_numbers = #tpu.dot_dimension_numbers<[1], [0], [0], [1], [0, 0, 1, 1], [], []>} : vector<16x1280xbf16>, vector<1280x256xbf16>, vector<16x256xf32> -> vector<16x256xf32>
    %6 = arith.index_cast %arg1 : i32 to index
    %7 = memref.load %arg2[%6] : memref<8xf32, #tpu.memory_space<smem>>
    %8 = arith.index_cast %arg1 : i32 to index
    %9 = memref.load %arg3[%8] : memref<8xf32, #tpu.memory_space<smem>>
    %10 = vector.broadcast %9 : f32 to vector<16x256xf32>
    %11 = arith.mulf %5, %10 : vector<16x256xf32>
    %cst_4 = arith.constant 9.99999993E-9 : f32
    %cst_5 = arith.constant 1.000000e+00 : f32
    %12 = vector.broadcast %cst_4 : f32 to vector<16x256xf32>
    %13 = arith.maximumf %12, %11 : vector<16x256xf32>
    %14 = vector.broadcast %cst_5 : f32 to vector<16x256xf32>
    %15 = arith.minimumf %14, %13 : vector<16x256xf32>
    %16 = math.log %15 : vector<16x256xf32>
    %17 = vector.broadcast %7 : f32 to vector<16x256xf32>
    %18 = arith.mulf %17, %16 : vector<16x256xf32>
    %19 = math.exp %18 : vector<16x256xf32>
    %c0_i32 = arith.constant 0 : i32
    %20 = arith.cmpi eq, %arg1, %c0_i32 : i32
    %21 = arith.extui %20 : i1 to i32
    %c0_i32_6 = arith.constant 0 : i32
    %22 = arith.cmpi ne, %21, %c0_i32_6 : i32
    scf.if %22 {
      %cst_15 = arith.constant 0.000000e+00 : f32
      %32 = vector.broadcast %cst_15 : f32 to vector<16x256xf32>
      %c0_16 = arith.constant 0 : index
      %c0_17 = arith.constant 0 : index
      %33 = vector.load %arg7[%c0_16, %c0_17] : memref<16x256xf32, #tpu.memory_space<vmem>>, vector<16x256xf32>
      tpu.vector_store %arg7[%c0_16, %c0_17], %32 {strides = array<i32>} : memref<16x256xf32, #tpu.memory_space<vmem>>, vector<16x256xf32>,
    } else {
    }
    %c0_7 = arith.constant 0 : index
    %c0_8 = arith.constant 0 : index
    %23 = vector.load %arg7[%c0_7, %c0_8] : memref<16x256xf32, #tpu.memory_space<vmem>>, vector<16x256xf32>
    %c0_9 = arith.constant 0 : index
    %c0_10 = arith.constant 0 : index
    %c0_11 = arith.constant 0 : index
    %24 = vector.load %arg6[%c0_9, %c0_10, %c0_11] : memref<1x16x256xbf16, #tpu.memory_space<vmem>>, vector<1x16x256xbf16>
    %25 = vector.shape_cast %24 : vector<1x16x256xbf16> to vector<16x256xbf16>
    %26 = arith.extf %25 : vector<16x256xbf16> to vector<16x256xf32>
    %27 = arith.mulf %19, %26 : vector<16x256xf32>
    %cst_12 = arith.constant 0.354813397 : f32
    %28 = vector.broadcast %cst_12 : f32 to vector<16x256xf32>
    %29 = arith.mulf %27, %28 : vector<16x256xf32>
    %30 = arith.addf %23, %29 : vector<16x256xf32>
    %c0_13 = arith.constant 0 : index
    %c0_14 = arith.constant 0 : index
    %31 = vector.load %arg7[%c0_13, %c0_14] : memref<16x256xf32, #tpu.memory_space<vmem>>, vector<16x256xf32>
    tpu.vector_store %arg7[%c0_13, %c0_14], %30 {strides = array<i32>} : memref<16x256xf32, #tpu.memory_space<vmem>>, vector<16x256xf32>,
    return
  }
  func.func @transform_0(%arg0: i32, %arg1: i32) -> i32 {
    %c0_i32 = arith.constant 0 : i32
    %c0_i32_0 = arith.constant 0 : i32
    return %c0_i32 : i32
  }
  func.func @transform_1(%arg0: i32, %arg1: i32) -> i32 {
    %c0_i32 = arith.constant 0 : i32
    %c0_i32_0 = arith.constant 0 : i32
    return %c0_i32 : i32
  }
  func.func @transform_2(%arg0: i32, %arg1: i32) -> (i32, i32, i32) {
    %c0_i32 = arith.constant 0 : i32
    %c0_i32_0 = arith.constant 0 : i32
    return %arg1, %arg0, %c0_i32 : i32, i32, i32
  }
  func.func @transform_3(%arg0: i32, %arg1: i32) -> (i32, i32, i32) {
    %c0_i32 = arith.constant 0 : i32
    %c0_i32_0 = arith.constant 0 : i32
    %c0_i32_1 = arith.constant 0 : i32
    %c0_i32_2 = arith.constant 0 : i32
    return %c0_i32, %c0_i32_0, %c0_i32_1 : i32, i32, i32
  }
  func.func @transform_4(%arg0: i32, %arg1: i32) -> (i32, i32, i32) {
    %c0_i32 = arith.constant 0 : i32
    %c0_i32_0 = arith.constant 0 : i32
    return %arg1, %arg0, %c0_i32 : i32, i32, i32
  }
  func.func @transform_5(%arg0: i32, %arg1: i32) -> (i32, i32) {
    %c0_i32 = arith.constant 0 : i32
    %c0_i32_0 = arith.constant 0 : i32
    return %arg0, %c0_i32 : i32, i32
  }
}

module attributes {stable_mosaic.version = 11 : i64} {
  func.func @_conv_toeplitz_kernel(%arg0: i32, %arg1: memref<16x1280xbf16, #tpu.memory_space<vmem>>, %arg2: memref<1280x256xbf16, #tpu.memory_space<vmem>>, %arg3: memref<16x256xf32, #tpu.memory_space<vmem>>) attributes {dimension_semantics = [#tpu.dimension_semantics<parallel>], iteration_bounds = array<i64: 1>, scalar_prefetch = 0 : i64, scratch_operands = 0 : i64, tpu.core_type = #tpu.core_type<tc>, window_params = [{transform_indices = @transform_0, window_bounds = array<i64: 16, 1280>}, {pipeline_mode = #tpu.pipeline_mode<synchronous>, transform_indices = @transform_1, window_bounds = array<i64: 1280, 256>}, {transform_indices = @transform_2, window_bounds = array<i64: 16, 256>}]} {
    %c0 = arith.constant 0 : index
    %c0_0 = arith.constant 0 : index
    %0 = vector.load %arg1[%c0, %c0_0] : memref<16x1280xbf16, #tpu.memory_space<vmem>>, vector<16x1280xbf16>
    %c0_1 = arith.constant 0 : index
    %c0_2 = arith.constant 0 : index
    %1 = vector.load %arg2[%c0_1, %c0_2] : memref<1280x256xbf16, #tpu.memory_space<vmem>>, vector<1280x256xbf16>
    %cst = arith.constant dense<0.000000e+00> : vector<16x256xf32>
    %2 = tpu.matmul %0, %1, %cst {dimension_numbers = #tpu.dot_dimension_numbers<[1], [0], [0], [1], [0, 0, 1, 1], [], []>} : vector<16x1280xbf16>, vector<1280x256xbf16>, vector<16x256xf32> -> vector<16x256xf32>
    %c0_3 = arith.constant 0 : index
    %c0_4 = arith.constant 0 : index
    %3 = vector.load %arg3[%c0_3, %c0_4] : memref<16x256xf32, #tpu.memory_space<vmem>>, vector<16x256xf32>
    tpu.vector_store %arg3[%c0_3, %c0_4], %2 {strides = array<i32>} : memref<16x256xf32, #tpu.memory_space<vmem>>, vector<16x256xf32>,
    return
  }
  func.func @transform_0(%arg0: i32) -> (i32, i32) {
    %c0_i32 = arith.constant 0 : i32
    %c0_i32_0 = arith.constant 0 : i32
    return %arg0, %c0_i32 : i32, i32
  }
  func.func @transform_1(%arg0: i32) -> (i32, i32) {
    %c0_i32 = arith.constant 0 : i32
    %c0_i32_0 = arith.constant 0 : i32
    %c0_i32_1 = arith.constant 0 : i32
    return %c0_i32, %c0_i32_0 : i32, i32
  }
  func.func @transform_2(%arg0: i32) -> (i32, i32) {
    %c0_i32 = arith.constant 0 : i32
    %c0_i32_0 = arith.constant 0 : i32
    return %arg0, %c0_i32 : i32, i32
  }
}

</mosaic_0001>

<bundles_post_ra>
// kernel: forward.5
= control target key start
LH: loop header
LB: loop body
LE: loop exit
PB: predicated region body
PF: predicated region fallthrough
CT: control target
= control target key end

     0   :  { %7 = vsyncpa [#allocation3], 0  ;;  %s1719_s9 = smov [#allocation2]   ;;  %s1782_s0 = inlined_call_operand.vmem [shape: bf16[16,1280], index: 0, kind: input, shape index: {}]   ;;  %s1783_s1 = inlined_call_operand.hbm [shape: bf16[1280,256], index: 1, kind: input, shape index: {}]   ;;  %s1784_s2 = inlined_call_operand.vmem [shape: f32[16,256], index: 2, kind: output, shape index: {}]  }
   0x1   :  { %s15_s10 = sshll.u32 %s1719_s9, 4  ;;  %s16_s10 = int_to_ptr.vmem [resolvable:$true] %s15_s10 }
   0x2   :  { %s1705_s11 = scalar_lea.vmem %s16_s10, 20480  ;;  %p1710_p1 = scmp.lt.s32.totalorder %s16_s10, %s16_s10 }
   0x3   :  { %p1706_p0 = scmp.ne.s32.totalorder %s16_s10, %s1705_s11  ;;  %p1711_p2 = scmp.lt.s32.totalorder %s1705_s11, %s1705_s11 }
   0x5   :  { %p1712_p3 = por %p1711_p2, %p1710_p1 }
   0x7   :  { %p1713_p4 = pnand %p1712_p3, %p1706_p0 }
   0x9   :  { %1716 = shalt.err (!%p1713_p4)
}
   0xa   :  { %s1720_s12 = smov 128   ;;  %s1721_s13 = smov 8  }
   0xb   :  { %21 = dma.hbm_to_vmem [thread:$0]  %s1783_s1, 20480, %s16_s10, [#allocation3], %s1720_s12, %s1720_s12, %s1721_s13  }
   0xc   :  { %1717 = dma.done.wait [#allocation3], 20480  }
   0xd   :  { %1718 = vsyncadd [#allocation3], 4294946816  ;;  %v1442_v0 = vld [vmem:[#allocation2 + $0x74] ss:$8 sps:$4 sm:$0xff]   ;;  %v1446_v2 = vld [vmem:[#allocation2 + $0x70] ss:$8 sps:$4 sm:$0xff]  }
   0xe   :  { %v1444_v1 = vld [vmem:[#allocation2 + $0x174] ss:$8 sps:$4 sm:$0xff]   ;;  %1045 = vmatprep.subr.bf16.mxu0 %v1442_v0  ;;  %v1447_v3 = vld [vmem:[#allocation2 + $0x170] ss:$8 sps:$4 sm:$0xff]   ;;  %v1448_v4 = vld [vmem:[#allocation2 + $0x64] ss:$8 sps:$4 sm:$0xff]  }
   0xf   :  { %1088 = vmatprep.subr.bf16.mxu1 %v1444_v1  ;;  %1046 = vmatpush1.bf16.msra.mxu0 %v1446_v2  ;;  %v1450_v5 = vld [vmem:[#allocation2 + $0x164] ss:$8 sps:$4 sm:$0xff]   ;;  %v1452_v6 = vld [vmem:[#allocation2 + $0x60] ss:$8 sps:$4 sm:$0xff]   ;;  %v1454_v8 = vld [vmem:[#allocation2 + $0x54] ss:$8 sps:$4 sm:$0xff]  }
  0x10   :  { %1089 = vmatpush1.bf16.msra.mxu1 %v1447_v3  ;;  %1047 = vmatprep.subr.bf16.mxu0 %v1448_v4  ;;  %v1453_v7 = vld [vmem:[#allocation2 + $0x160] ss:$8 sps:$4 sm:$0xff]   ;;  %v1456_v9 = vld [vmem:[#allocation2 + $0x154] ss:$8 sps:$4 sm:$0xff]   ;;  %v1458_v10 = vld [vmem:[#allocation2 + $0x50] ss:$8 sps:$4 sm:$0xff]  }
  0x11   :  { %1090 = vmatprep.subr.bf16.mxu1 %v1450_v5  ;;  %v1459_v11 = vld [vmem:[#allocation2 + $0x150] ss:$8 sps:$4 sm:$0xff]   ;;  %v1460_v12 = vld [vmem:[#allocation2 + $0x44] ss:$8 sps:$4 sm:$0xff]   ;;  %v1464_v14 = vld [vmem:[#allocation2 + $0x40] ss:$8 sps:$4 sm:$0xff]  }
  0x12   :  { %v1462_v13 = vld [vmem:[#allocation2 + $0x144] ss:$8 sps:$4 sm:$0xff]   ;;  %v1465_v15 = vld [vmem:[#allocation2 + $0x140] ss:$8 sps:$4 sm:$0xff]   ;;  %v1466_v16 = vld [vmem:[#allocation2 + $0x34] ss:$8 sps:$4 sm:$0xff]  }
  0x13   :  { %1048 = vmatpush1.bf16.msra.mxu0 %v1452_v6  ;;  %v1468_v17 = vld [vmem:[#allocation2 + $0x134] ss:$8 sps:$4 sm:$0xff]   ;;  %v1470_v18 = vld [vmem:[#allocation2 + $0x30] ss:$8 sps:$4 sm:$0xff]   ;;  %v1472_v20 = vld [vmem:[#allocation2 + $0x24] ss:$8 sps:$4 sm:$0xff]  }
  0x14   :  { %1091 = vmatpush1.bf16.msra.mxu1 %v1453_v7  ;;  %1049 = vmatprep.subr.bf16.mxu0 %v1454_v8  ;;  %v1471_v19 = vld [vmem:[#allocation2 + $0x130] ss:$8 sps:$4 sm:$0xff]   ;;  %v1474_v21 = vld [vmem:[#allocation2 + $0x124] ss:$8 sps:$4 sm:$0xff]   ;;  %v1476_v22 = vld [vmem:[#allocation2 + $0x20] ss:$8 sps:$4 sm:$0xff]  }
  0x15   :  { %1092 = vmatprep.subr.bf16.mxu1 %v1456_v9  ;;  %v1477_v23 = vld [vmem:[#allocation2 + $0x120] ss:$8 sps:$4 sm:$0xff]   ;;  %v1478_v24 = vld [vmem:[#allocation2 + $0x14] ss:$8 sps:$4 sm:$0xff]   ;;  %v1482_v26 = vld [vmem:[#allocation2 + $0x10] ss:$8 sps:$4 sm:$0xff]  }
  0x16   :  { %v1480_v25 = vld [vmem:[#allocation2 + $0x114] ss:$8 sps:$4 sm:$0xff]   ;;  %v1483_v27 = vld [vmem:[#allocation2 + $0x110] ss:$8 sps:$4 sm:$0xff]   ;;  %v1484_v28 = vld [vmem:[#allocation2 + $0x4] ss:$8 sps:$4 sm:$0xff]  }
  0x17   :  { %1050 = vmatpush1.bf16.msra.mxu0 %v1458_v10  ;;  %v1486_v29 = vld [vmem:[#allocation2 + $0x104] ss:$8 sps:$4 sm:$0xff]   ;;  %v1488_v30 = vld [vmem:[#allocation2] ss:$8 sps:$4 sm:$0xff]   ;;  %v1490_v32 = vld [vmem:[#allocation2 + $0xf4] ss:$8 sps:$4 sm:$0xff]  }
  0x18   :  { %1093 = vmatpush1.bf16.msra.mxu1 %v1459_v11  ;;  %1051 = vmatprep.subr.bf16.mxu0 %v1460_v12  ;;  %v1489_v31 = vld [vmem:[#allocation2 + $0x100] ss:$8 sps:$4 sm:$0xff]   ;;  %v1492_v33 = vld [vmem:[#allocation2 + $0x1f4] ss:$8 sps:$4 sm:$0xff]   ;;  %v1494_v34 = vld [vmem:[#allocation2 + $0xf0] ss:$8 sps:$4 sm:$0xff]  }
  0x19   :  { %1094 = vmatprep.subr.bf16.mxu1 %v1462_v13  ;;  %v1495_v35 = vld [vmem:[#allocation2 + $0x1f0] ss:$8 sps:$4 sm:$0xff]   ;;  %v1496_v36 = vld [vmem:[#allocation2 + $0xe4] ss:$8 sps:$4 sm:$0xff]   ;;  %v1500_v38 = vld [vmem:[#allocation2 + $0xe0] ss:$8 sps:$4 sm:$0xff]  }
  0x1a   :  { %v1498_v37 = vld [vmem:[#allocation2 + $0x1e4] ss:$8 sps:$4 sm:$0xff]   ;;  %v1501_v39 = vld [vmem:[#allocation2 + $0x1e0] ss:$8 sps:$4 sm:$0xff]   ;;  %v1502_v40 = vld [vmem:[#allocation2 + $0xd4] ss:$8 sps:$4 sm:$0xff]  }
  0x1b   :  { %1052 = vmatpush1.bf16.msra.mxu0 %v1464_v14  ;;  %v1504_v41 = vld [vmem:[#allocation2 + $0x1d4] ss:$8 sps:$4 sm:$0xff]   ;;  %v1506_v42 = vld [vmem:[#allocation2 + $0xd0] ss:$8 sps:$4 sm:$0xff]   ;;  %v1508_v44 = vld [vmem:[#allocation2 + $0xc4] ss:$8 sps:$4 sm:$0xff]  }
  0x1c   :  { %1095 = vmatpush1.bf16.msra.mxu1 %v1465_v15  ;;  %1053 = vmatprep.subr.bf16.mxu0 %v1466_v16  ;;  %v1507_v43 = vld [vmem:[#allocation2 + $0x1d0] ss:$8 sps:$4 sm:$0xff]   ;;  %v1510_v45 = vld [vmem:[#allocation2 + $0x1c4] ss:$8 sps:$4 sm:$0xff]   ;;  %v1512_v46 = vld [vmem:[#allocation2 + $0xc0] ss:$8 sps:$4 sm:$0xff]  }
  0x1d   :  { %1096 = vmatprep.subr.bf16.mxu1 %v1468_v17  ;;  %v1513_v47 = vld [vmem:[#allocation2 + $0x1c0] ss:$8 sps:$4 sm:$0xff]   ;;  %v1514_v48 = vld [vmem:[#allocation2 + $0xb4] ss:$8 sps:$4 sm:$0xff]   ;;  %v1540_v49 = vld [vmem:[%s1782_s0 + $0x4] ss:$40 sps:$4 sm:$0xff]  }
  0x1e   :  { %v1516_v50 = vld [vmem:[#allocation2 + $0x1b4] ss:$8 sps:$4 sm:$0xff]   ;;  %1077 = vmatprep.mubr.bf16.mxu0 %v1540_v49  ;;  %v1518_v52 = vld [vmem:[#allocation2 + $0xb0] ss:$8 sps:$4 sm:$0xff]   ;;  %v1520_v54 = vld [vmem:[#allocation2 + $0xa4] ss:$8 sps:$4 sm:$0xff]  }
  0x1f   :  { %1054 = vmatpush1.bf16.msra.mxu0 %v1470_v18  ;;  %v1543_v51 = vld [vmem:[%s1782_s0 + $0xc] ss:$40 sps:$4 sm:$0xff]   ;;  %v1519_v53 = vld [vmem:[#allocation2 + $0x1b0] ss:$8 sps:$4 sm:$0xff]   ;;  %v1524_v56 = vld [vmem:[#allocation2 + $0xa0] ss:$8 sps:$4 sm:$0xff]  }
  0x20   :  { %1097 = vmatpush1.bf16.msra.mxu1 %v1471_v19  ;;  %1055 = vmatprep.subr.bf16.mxu0 %v1472_v20  ;;  %v1522_v55 = vld [vmem:[#allocation2 + $0x1a4] ss:$8 sps:$4 sm:$0xff]   ;;  %v1525_v57 = vld [vmem:[#allocation2 + $0x1a0] ss:$8 sps:$4 sm:$0xff]   ;;  %v1526_v58 = vld [vmem:[#allocation2 + $0x94] ss:$8 sps:$4 sm:$0xff]  }
  0x21   :  { %1098 = vmatprep.subr.bf16.mxu1 %v1474_v21  ;;  %1120 = vmatprep.mubr.bf16.mxu1 %v1543_v51  ;;  %v1528_v59 = vld [vmem:[#allocation2 + $0x194] ss:$8 sps:$4 sm:$0xff]   ;;  %v1530_v60 = vld [vmem:[#allocation2 + $0x90] ss:$8 sps:$4 sm:$0xff]   ;;  %v1532_v62 = vld [vmem:[#allocation2 + $0x84] ss:$8 sps:$4 sm:$0xff]  }
  0x22   :  { %v1531_v61 = vld [vmem:[#allocation2 + $0x190] ss:$8 sps:$4 sm:$0xff]   ;;  %v1534_v63 = vld [vmem:[#allocation2 + $0x184] ss:$8 sps:$4 sm:$0xff]   ;;  %v1536_v0 = vld [vmem:[#allocation2 + $0x80] ss:$8 sps:$4 sm:$0xff]  }
  0x23   :  { %1056 = vmatpush1.bf16.msra.mxu0 %v1476_v22  ;;  %v1537_v1 = vld [vmem:[#allocation2 + $0x180] ss:$8 sps:$4 sm:$0xff]   ;;  %v1546_v2 = vld [vmem:[#allocation2 + $0x274] ss:$8 sps:$4 sm:$0xff]   ;;  %v1544_v6 = vld [vmem:[#allocation2 + $0x270] ss:$8 sps:$4 sm:$0xff]  }
  0x24   :  { %1099 = vmatpush1.bf16.msra.mxu1 %v1477_v23  ;;  %1057 = vmatprep.subr.bf16.mxu0 %v1478_v24  ;;  %v1549_v3 = vld [vmem:[#allocation2 + $0x374] ss:$8 sps:$4 sm:$0xff]   ;;  %v1538_v4 = vld [vmem:[%s1782_s0] ss:$40 sps:$4 sm:$0xff]   ;;  %v1547_v7 = vld [vmem:[#allocation2 + $0x370] ss:$8 sps:$4 sm:$0xff]  }
  0x25   :  { %1100 = vmatprep.subr.bf16.mxu1 %v1480_v25  ;;  %v1541_v5 = vld [vmem:[%s1782_s0 + $0x8] ss:$40 sps:$4 sm:$0xff]   ;;  %v1552_v8 = vld [vmem:[#allocation2 + $0x264] ss:$8 sps:$4 sm:$0xff]   ;;  %v1558_v12 = vld [vmem:[#allocation2 + $0x254] ss:$8 sps:$4 sm:$0xff]  }
  0x26   :  { %v1555_v9 = vld [vmem:[#allocation2 + $0x364] ss:$8 sps:$4 sm:$0xff]   ;;  %v1550_v10 = vld [vmem:[#allocation2 + $0x260] ss:$8 sps:$4 sm:$0xff]   ;;  %v1561_v13 = vld [vmem:[#allocation2 + $0x354] ss:$8 sps:$4 sm:$0xff]  }
  0x27   :  { %1058 = vmatpush1.bf16.msra.mxu0 %v1482_v26  ;;  %v1553_v11 = vld [vmem:[#allocation2 + $0x360] ss:$8 sps:$4 sm:$0xff]   ;;  %v1556_v14 = vld [vmem:[#allocation2 + $0x250] ss:$8 sps:$4 sm:$0xff]   ;;  %v1564_v16 = vld [vmem:[#allocation2 + $0x244] ss:$8 sps:$4 sm:$0xff]  }
  0x28   :  { %1101 = vmatpush1.bf16.msra.mxu1 %v1483_v27  ;;  %1059 = vmatprep.subr.bf16.mxu0 %v1484_v28  ;;  %v1559_v15 = vld [vmem:[#allocation2 + $0x350] ss:$8 sps:$4 sm:$0xff]   ;;  %v1567_v17 = vld [vmem:[#allocation2 + $0x344] ss:$8 sps:$4 sm:$0xff]   ;;  %v1562_v18 = vld [vmem:[#allocation2 + $0x240] ss:$8 sps:$4 sm:$0xff]  }
  0x29   :  { %1102 = vmatprep.subr.bf16.mxu1 %v1486_v29  ;;  %v1565_v19 = vld [vmem:[#allocation2 + $0x340] ss:$8 sps:$4 sm:$0xff]   ;;  %v1570_v20 = vld [vmem:[#allocation2 + $0x234] ss:$8 sps:$4 sm:$0xff]   ;;  %v1568_v22 = vld [vmem:[#allocation2 + $0x230] ss:$8 sps:$4 sm:$0xff]  }
  0x2a   :  { %v1573_v21 = vld [vmem:[#allocation2 + $0x334] ss:$8 sps:$4 sm:$0xff]   ;;  %v1571_v23 = vld [vmem:[#allocation2 + $0x330] ss:$8 sps:$4 sm:$0xff]   ;;  %v1576_v24 = vld [vmem:[#allocation2 + $0x224] ss:$8 sps:$4 sm:$0xff]  }
  0x2b   :  { %1060 = vmatpush1.bf16.msra.mxu0 %v1488_v30  ;;  %v1579_v25 = vld [vmem:[#allocation2 + $0x324] ss:$8 sps:$4 sm:$0xff]   ;;  %v1574_v26 = vld [vmem:[#allocation2 + $0x220] ss:$8 sps:$4 sm:$0xff]   ;;  %v1582_v28 = vld [vmem:[#allocation2 + $0x214] ss:$8 sps:$4 sm:$0xff]  }
  0x2c   :  { %1103 = vmatpush1.bf16.msra.mxu1 %v1489_v31  ;;  %1061 = vmatprep.subr.bf16.mxu0 %v1490_v32  ;;  %v1577_v27 = vld [vmem:[#allocation2 + $0x320] ss:$8 sps:$4 sm:$0xff]   ;;  %v1585_v29 = vld [vmem:[#allocation2 + $0x314] ss:$8 sps:$4 sm:$0xff]   ;;  %v1580_v30 = vld [vmem:[#allocation2 + $0x210] ss:$8 sps:$4 sm:$0xff]  }
  0x2d   :  { %1104 = vmatprep.subr.bf16.mxu1 %v1492_v33  ;;  %v1583_v31 = vld [vmem:[#allocation2 + $0x310] ss:$8 sps:$4 sm:$0xff]   ;;  %v1588_v32 = vld [vmem:[#allocation2 + $0x204] ss:$8 sps:$4 sm:$0xff]  }
  0x2e   :  { %v1591_v33 = vld [vmem:[#allocation2 + $0x304] ss:$8 sps:$4 sm:$0xff]   ;;  %v1607_v49 = vld [vmem:[#allocation2 + $0x3d0] ss:$8 sps:$4 sm:$0xff]  }
  0x2f   :  { %1062 = vmatpush2.bf16.msra.mxu0 %v1494_v34  ;;  %v1642_v34 = vld [vmem:[%s1782_s0 + $0x14] ss:$40 sps:$4 sm:$0xff]   ;;  %v1615_v51 = vld [vmem:[#allocation2 + $0x3c4] ss:$8 sps:$4 sm:$0xff]  }
  0x30   :  { %1105 = vmatpush2.bf16.msra.mxu1 %v1495_v35  ;;  %1063 = vmatprep.subr.bf16.mxu0 %v1496_v36  ;;  %v1586_v35 = vld [vmem:[#allocation2 + $0x200] ss:$8 sps:$4 sm:$0xff]  }
  0x31   :  { %1106 = vmatprep.subr.bf16.mxu1 %v1498_v37  ;;  %v1589_v36 = vld [vmem:[#allocation2 + $0x300] ss:$8 sps:$4 sm:$0xff]   ;;  %v1648_v37 = vld [vmem:[%s1782_s0 + $0x1c] ss:$40 sps:$4 sm:$0xff]  }
  0x33   :  { %1064 = vmatpush2.bf16.msra.mxu0 %v1500_v38  ;;  %v1594_v38 = vld [vmem:[#allocation2 + $0x2f4] ss:$8 sps:$4 sm:$0xff]  }
  0x34   :  { %1107 = vmatpush2.bf16.msra.mxu1 %v1501_v39  ;;  %1065 = vmatprep.subr.bf16.mxu0 %v1502_v40  ;;  %v1597_v39 = vld [vmem:[#allocation2 + $0x3f4] ss:$8 sps:$4 sm:$0xff]   ;;  %v1592_v40 = vld [vmem:[#allocation2 + $0x2f0] ss:$8 sps:$4 sm:$0xff]  }
  0x35   :  { %1108 = vmatprep.subr.bf16.mxu1 %v1504_v41  ;;  %v1595_v41 = vld [vmem:[#allocation2 + $0x3f0] ss:$8 sps:$4 sm:$0xff]  }
  0x37   :  { %1066 = vmatpush2.bf16.msra.mxu0 %v1506_v42  ;;  %v1600_v42 = vld [vmem:[#allocation2 + $0x2e4] ss:$8 sps:$4 sm:$0xff]  }
  0x38   :  { %1109 = vmatpush2.bf16.msra.mxu1 %v1507_v43  ;;  %1067 = vmatprep.subr.bf16.mxu0 %v1508_v44  ;;  %v1603_v43 = vld [vmem:[#allocation2 + $0x3e4] ss:$8 sps:$4 sm:$0xff]   ;;  %v1598_v44 = vld [vmem:[#allocation2 + $0x2e0] ss:$8 sps:$4 sm:$0xff]  }
  0x39   :  { %1110 = vmatprep.subr.bf16.mxu1 %v1510_v45  ;;  %v1601_v45 = vld [vmem:[#allocation2 + $0x3e0] ss:$8 sps:$4 sm:$0xff]  }
  0x3b   :  { %1068 = vmatpush2.bf16.msra.mxu0 %v1512_v46  ;;  %v1606_v46 = vld [vmem:[#allocation2 + $0x2d4] ss:$8 sps:$4 sm:$0xff]  }
  0x3c   :  { %1111 = vmatpush2.bf16.msra.mxu1 %v1513_v47  ;;  %1069 = vmatprep.subr.bf16.mxu0 %v1514_v48  ;;  %v1609_v47 = vld [vmem:[#allocation2 + $0x3d4] ss:$8 sps:$4 sm:$0xff]   ;;  %v1604_v48 = vld [vmem:[#allocation2 + $0x2d0] ss:$8 sps:$4 sm:$0xff]  }
  0x3d   :  { %1112 = vmatprep.subr.bf16.mxu1 %v1516_v50  ;;  %v1612_v50 = vld [vmem:[#allocation2 + $0x2c4] ss:$8 sps:$4 sm:$0xff]  }
  0x3f   :  { %1070 = vmatpush2.bf16.msra.mxu0 %v1518_v52  ;;  %v1610_v52 = vld [vmem:[#allocation2 + $0x2c0] ss:$8 sps:$4 sm:$0xff]  }
  0x40   :  { %1113 = vmatpush2.bf16.msra.mxu1 %v1519_v53  ;;  %1071 = vmatprep.subr.bf16.mxu0 %v1520_v54  ;;  %v1613_v53 = vld [vmem:[#allocation2 + $0x3c0] ss:$8 sps:$4 sm:$0xff]   ;;  %v1618_v54 = vld [vmem:[#allocation2 + $0x2b4] ss:$8 sps:$4 sm:$0xff]  }
  0x41   :  { %1114 = vmatprep.subr.bf16.mxu1 %v1522_v55  ;;  %v1621_v55 = vld [vmem:[#allocation2 + $0x3b4] ss:$8 sps:$4 sm:$0xff]  }
  0x43   :  { %1072 = vmatpush2.bf16.msra.mxu0 %v1524_v56  ;;  %v1616_v56 = vld [vmem:[#allocation2 + $0x2b0] ss:$8 sps:$4 sm:$0xff]  }
  0x44   :  { %1115 = vmatpush2.bf16.msra.mxu1 %v1525_v57  ;;  %1073 = vmatprep.subr.bf16.mxu0 %v1526_v58  ;;  %v1619_v57 = vld [vmem:[#allocation2 + $0x3b0] ss:$8 sps:$4 sm:$0xff]   ;;  %v1624_v58 = vld [vmem:[#allocation2 + $0x2a4] ss:$8 sps:$4 sm:$0xff]  }
  0x45   :  { %1116 = vmatprep.subr.bf16.mxu1 %v1528_v59  ;;  %v1627_v59 = vld [vmem:[#allocation2 + $0x3a4] ss:$8 sps:$4 sm:$0xff]  }
  0x47   :  { %1074 = vmatpush2.bf16.msra.mxu0 %v1530_v60  ;;  %v1622_v60 = vld [vmem:[#allocation2 + $0x2a0] ss:$8 sps:$4 sm:$0xff]  }
  0x48   :  { %1117 = vmatpush2.bf16.msra.mxu1 %v1531_v61  ;;  %1075 = vmatprep.subr.bf16.mxu0 %v1532_v62  ;;  %v1625_v61 = vld [vmem:[#allocation2 + $0x3a0] ss:$8 sps:$4 sm:$0xff]   ;;  %v1630_v62 = vld [vmem:[#allocation2 + $0x294] ss:$8 sps:$4 sm:$0xff]  }
  0x49   :  { %1118 = vmatprep.subr.bf16.mxu1 %v1534_v63  ;;  %v1633_v63 = vld [vmem:[#allocation2 + $0x394] ss:$8 sps:$4 sm:$0xff]  }
  0x4b   :  { %1076 = vmatpush2.bf16.msra.mxu0 %v1536_v0  ;;  %v1628_v0 = vld [vmem:[#allocation2 + $0x290] ss:$8 sps:$4 sm:$0xff]  }
  0x4c   :  { %1119 = vmatpush2.bf16.msra.mxu1 %v1537_v1  ;;  %1131 = vmatprep.subr.bf16.mxu0 %v1546_v2  ;;  %v1631_v1 = vld [vmem:[#allocation2 + $0x390] ss:$8 sps:$4 sm:$0xff]   ;;  %v1636_v2 = vld [vmem:[#allocation2 + $0x284] ss:$8 sps:$4 sm:$0xff]  }
  0x4d   :  { %1174 = vmatprep.subr.bf16.mxu1 %v1549_v3  ;;  %v1639_v3 = vld [vmem:[#allocation2 + $0x384] ss:$8 sps:$4 sm:$0xff]  }
  0x4e   :  { %1078 = vmatmul.mubr.bf16.vlgmr.msra.gmra.mxu0 %v1538_v4  ;;  %v1634_v4 = vld [vmem:[#allocation2 + $0x280] ss:$8 sps:$4 sm:$0xff]  }
  0x4f   :  { %1121 = vmatmul.mubr.bf16.vlgmr.msra.gmra.mxu1 %v1541_v5  ;;  %1132 = vmatpush1.bf16.msra.mxu0 %v1544_v6  ;;  %v1637_v5 = vld [vmem:[#allocation2 + $0x380] ss:$8 sps:$4 sm:$0xff]   ;;  %v1645_v6 = vld [vmem:[#allocation2 + $0x474] ss:$8 sps:$4 sm:$0xff]  }
  0x50   :  { %1175 = vmatpush1.bf16.msra.mxu1 %v1547_v7  ;;  %1133 = vmatprep.subr.bf16.mxu0 %v1552_v8  ;;  %v1640_v7 = vld [vmem:[%s1782_s0 + $0x10] ss:$40 sps:$4 sm:$0xff]  }
  0x51   :  { %1176 = vmatprep.subr.bf16.mxu1 %v1555_v9  ;;  %1163 = vmatprep.mubr.bf16.mxu0 %v1642_v34  ;;  %v1646_v8 = vld [vmem:[%s1782_s0 + $0x18] ss:$40 sps:$4 sm:$0xff]  }
  0x52   :  { %1206 = vmatprep.mubr.bf16.mxu1 %v1648_v37  ;;  %v1643_v9 = vld [vmem:[#allocation2 + $0x470] ss:$8 sps:$4 sm:$0xff]   ;;  %v1690_v37 = vld [vmem:[#allocation2 + $0x494] ss:$8 sps:$4 sm:$0xff]  }
  0x53   :  { %1134 = vmatpush1.bf16.msra.mxu0 %v1550_v10  ;;  %v1696_v10 = vld [vmem:[%s1782_s0 + $0x24] ss:$40 sps:$4 sm:$0xff]   ;;  %v1682_v34 = vld [vmem:[#allocation2 + $0x4b0] ss:$8 sps:$4 sm:$0xff]  }
  0x54   :  { %1177 = vmatpush1.bf16.msra.mxu1 %v1553_v11  ;;  %1135 = vmatprep.subr.bf16.mxu0 %v1558_v12  ;;  %v1651_v11 = vld [vmem:[#allocation2 + $0x464] ss:$8 sps:$4 sm:$0xff]   ;;  %v1649_v12 = vld [vmem:[#allocation2 + $0x460] ss:$8 sps:$4 sm:$0xff]  }
  0x55   :  { %1178 = vmatprep.subr.bf16.mxu1 %v1561_v13  ;;  %v1654_v13 = vld [vmem:[#allocation2 + $0x454] ss:$8 sps:$4 sm:$0xff]  }
  0x57   :  { %1136 = vmatpush1.bf16.msra.mxu0 %v1556_v14  ;;  %v1652_v14 = vld [vmem:[#allocation2 + $0x450] ss:$8 sps:$4 sm:$0xff]  }
  0x58   :  { %1179 = vmatpush1.bf16.msra.mxu1 %v1559_v15  ;;  %1137 = vmatprep.subr.bf16.mxu0 %v1564_v16  ;;  %v1657_v15 = vld [vmem:[#allocation2 + $0x444] ss:$8 sps:$4 sm:$0xff]   ;;  %v1655_v16 = vld [vmem:[#allocation2 + $0x440] ss:$8 sps:$4 sm:$0xff]  }
  0x59   :  { %1180 = vmatprep.subr.bf16.mxu1 %v1567_v17  ;;  %v1660_v17 = vld [vmem:[#allocation2 + $0x434] ss:$8 sps:$4 sm:$0xff]  }
  0x5b   :  { %1138 = vmatpush1.bf16.msra.mxu0 %v1562_v18  ;;  %v1658_v18 = vld [vmem:[#allocation2 + $0x430] ss:$8 sps:$4 sm:$0xff]  }
  0x5c   :  { %1181 = vmatpush1.bf16.msra.mxu1 %v1565_v19  ;;  %1139 = vmatprep.subr.bf16.mxu0 %v1570_v20  ;;  %v1663_v19 = vld [vmem:[#allocation2 + $0x424] ss:$8 sps:$4 sm:$0xff]   ;;  %v1661_v20 = vld [vmem:[#allocation2 + $0x420] ss:$8 sps:$4 sm:$0xff]  }
  0x5d   :  { %1182 = vmatprep.subr.bf16.mxu1 %v1573_v21  ;;  %v1666_v21 = vld [vmem:[#allocation2 + $0x414] ss:$8 sps:$4 sm:$0xff]  }
  0x5f   :  { %1140 = vmatpush1.bf16.msra.mxu0 %v1568_v22  ;;  %v1664_v22 = vld [vmem:[#allocation2 + $0x410] ss:$8 sps:$4 sm:$0xff]  }
  0x60   :  { %1183 = vmatpush1.bf16.msra.mxu1 %v1571_v23  ;;  %1141 = vmatprep.subr.bf16.mxu0 %v1576_v24  ;;  %v1669_v23 = vld [vmem:[#allocation2 + $0x404] ss:$8 sps:$4 sm:$0xff]   ;;  %v1667_v24 = vld [vmem:[#allocation2 + $0x400] ss:$8 sps:$4 sm:$0xff]  }
  0x61   :  { %1184 = vmatprep.subr.bf16.mxu1 %v1579_v25  ;;  %v1672_v25 = vld [vmem:[#allocation2 + $0x4f4] ss:$8 sps:$4 sm:$0xff]  }
  0x63   :  { %1142 = vmatpush1.bf16.msra.mxu0 %v1574_v26  ;;  %v1670_v26 = vld [vmem:[#allocation2 + $0x4f0] ss:$8 sps:$4 sm:$0xff]  }
  0x64   :  { %1185 = vmatpush1.bf16.msra.mxu1 %v1577_v27  ;;  %1143 = vmatprep.subr.bf16.mxu0 %v1582_v28  ;;  %v1675_v27 = vld [vmem:[#allocation2 + $0x4e4] ss:$8 sps:$4 sm:$0xff]   ;;  %v1673_v28 = vld [vmem:[#allocation2 + $0x4e0] ss:$8 sps:$4 sm:$0xff]  }
  0x65   :  { %1186 = vmatprep.subr.bf16.mxu1 %v1585_v29  ;;  %v1678_v29 = vld [vmem:[#allocation2 + $0x4d4] ss:$8 sps:$4 sm:$0xff]  }
  0x67   :  { %1144 = vmatpush1.bf16.msra.mxu0 %v1580_v30  ;;  %v1676_v30 = vld [vmem:[#allocation2 + $0x4d0] ss:$8 sps:$4 sm:$0xff]  }
  0x68   :  { %1187 = vmatpush1.bf16.msra.mxu1 %v1583_v31  ;;  %1145 = vmatprep.subr.bf16.mxu0 %v1588_v32  ;;  %v1681_v31 = vld [vmem:[#allocation2 + $0x4c4] ss:$8 sps:$4 sm:$0xff]   ;;  %v1679_v32 = vld [vmem:[#allocation2 + $0x4c0] ss:$8 sps:$4 sm:$0xff]  }
  0x69   :  { %1188 = vmatprep.subr.bf16.mxu1 %v1591_v33  ;;  %v1684_v33 = vld [vmem:[#allocation2 + $0x4b4] ss:$8 sps:$4 sm:$0xff]  }
  0x6b   :  { %1146 = vmatpush1.bf16.msra.mxu0 %v1586_v35  ;;  %v1687_v35 = vld [vmem:[#allocation2 + $0x4a4] ss:$8 sps:$4 sm:$0xff]  }
  0x6c   :  { %1189 = vmatpush1.bf16.msra.mxu1 %v1589_v36  ;;  %1147 = vmatprep.subr.bf16.mxu0 %v1594_v38  ;;  %v1685_v36 = vld [vmem:[#allocation2 + $0x4a0] ss:$8 sps:$4 sm:$0xff]   ;;  %v1688_v38 = vld [vmem:[#allocation2 + $0x490] ss:$8 sps:$4 sm:$0xff]  }
  0x6d   :  { %1190 = vmatprep.subr.bf16.mxu1 %v1597_v39  ;;  %v1693_v39 = vld [vmem:[#allocation2 + $0x484] ss:$8 sps:$4 sm:$0xff]  }
  0x6f   :  { %1148 = vmatpush2.bf16.msra.mxu0 %v1592_v40  ;;  %v1691_v40 = vld [vmem:[#allocation2 + $0x480] ss:$8 sps:$4 sm:$0xff]  }
  0x70   :  { %1191 = vmatpush2.bf16.msra.mxu1 %v1595_v41  ;;  %1149 = vmatprep.subr.bf16.mxu0 %v1600_v42  ;;  %v1694_v41 = vld [vmem:[%s1782_s0 + $0x20] ss:$40 sps:$4 sm:$0xff]  }
  0x71   :  { %1192 = vmatprep.subr.bf16.mxu1 %v1603_v43 }
  0x73   :  { %1150 = vmatpush2.bf16.msra.mxu0 %v1598_v44 }
  0x74   :  { %1193 = vmatpush2.bf16.msra.mxu1 %v1601_v45  ;;  %1151 = vmatprep.subr.bf16.mxu0 %v1606_v46 }
  0x75   :  { %1194 = vmatprep.subr.bf16.mxu1 %v1609_v47 }
  0x77   :  { %1152 = vmatpush2.bf16.msra.mxu0 %v1604_v48 }
  0x78   :  { %1195 = vmatpush2.bf16.msra.mxu1 %v1607_v49  ;;  %1153 = vmatprep.subr.bf16.mxu0 %v1612_v50 }
  0x79   :  { %1196 = vmatprep.subr.bf16.mxu1 %v1615_v51 }
  0x7b   :  { %1154 = vmatpush2.bf16.msra.mxu0 %v1610_v52 }
  0x7c   :  { %1197 = vmatpush2.bf16.msra.mxu1 %v1613_v53  ;;  %1155 = vmatprep.subr.bf16.mxu0 %v1618_v54 }
  0x7d   :  { %1198 = vmatprep.subr.bf16.mxu1 %v1621_v55 }
  0x7f   :  { %1156 = vmatpush2.bf16.msra.mxu0 %v1616_v56 }
  0x80   :  { %1199 = vmatpush2.bf16.msra.mxu1 %v1619_v57  ;;  %1157 = vmatprep.subr.bf16.mxu0 %v1624_v58 }
  0x81   :  { %1200 = vmatprep.subr.bf16.mxu1 %v1627_v59 }
  0x83   :  { %1158 = vmatpush2.bf16.msra.mxu0 %v1622_v60 }
  0x84   :  { %1201 = vmatpush2.bf16.msra.mxu1 %v1625_v61  ;;  %1159 = vmatprep.subr.bf16.mxu0 %v1630_v62 }
  0x85   :  { %1202 = vmatprep.subr.bf16.mxu1 %v1633_v63 }
  0x87   :  { %1160 = vmatpush2.bf16.msra.mxu0 %v1628_v0 }
  0x88   :  { %1203 = vmatpush2.bf16.msra.mxu1 %v1631_v1  ;;  %1161 = vmatprep.subr.bf16.mxu0 %v1636_v2 }
  0x89   :  { %1204 = vmatprep.subr.bf16.mxu1 %v1639_v3 }
  0x8b   :  { %1162 = vmatpush2.bf16.msra.mxu0 %v1634_v4 }
  0x8c   :  { %1205 = vmatpush2.bf16.msra.mxu1 %v1637_v5  ;;  %1217 = vmatprep.subr.bf16.mxu0 %v1645_v6 }
  0x8e   :  { %1164 = vmatmul.mubr.bf16.vlgmr.msra.gmra.mxu0 %v1640_v7 }
  0x8f   :  { %1207 = vmatmul.mubr.bf16.vlgmr.msra.gmra.mxu1 %v1646_v8  ;;  %1218 = vmatpush1.bf16.msra.mxu0 %v1643_v9 }
  0x90   :  { %1249 = vmatprep.mubr.bf16.mxu0 %v1696_v10  ;;  %1219 = vmatprep.subr.bf16.mxu0 %v1651_v11 }
  0x93   :  { %1220 = vmatpush1.bf16.msra.mxu0 %v1649_v12 }
  0x94   :  { %1221 = vmatprep.subr.bf16.mxu0 %v1654_v13 }
  0x97   :  { %1222 = vmatpush1.bf16.msra.mxu0 %v1652_v14 }
  0x98   :  { %1223 = vmatprep.subr.bf16.mxu0 %v1657_v15 }
  0x9b   :  { %1224 = vmatpush1.bf16.msra.mxu0 %v1655_v16 }
  0x9c   :  { %1225 = vmatprep.subr.bf16.mxu0 %v1660_v17 }
  0x9f   :  { %1226 = vmatpush1.bf16.msra.mxu0 %v1658_v18 }
  0xa0   :  { %1227 = vmatprep.subr.bf16.mxu0 %v1663_v19 }
  0xa3   :  { %1228 = vmatpush1.bf16.msra.mxu0 %v1661_v20 }
  0xa4   :  { %1229 = vmatprep.subr.bf16.mxu0 %v1666_v21 }
  0xa7   :  { %1230 = vmatpush1.bf16.msra.mxu0 %v1664_v22 }
  0xa8   :  { %1231 = vmatprep.subr.bf16.mxu0 %v1669_v23 }
  0xab   :  { %1232 = vmatpush1.bf16.msra.mxu0 %v1667_v24 }
  0xac   :  { %1233 = vmatprep.subr.bf16.mxu0 %v1672_v25 }
  0xaf   :  { %1234 = vmatpush2.bf16.msra.mxu0 %v1670_v26 }
  0xb0   :  { %1235 = vmatprep.subr.bf16.mxu0 %v1675_v27 }
  0xb3   :  { %1236 = vmatpush2.bf16.msra.mxu0 %v1673_v28 }
  0xb4   :  { %1237 = vmatprep.subr.bf16.mxu0 %v1678_v29 }
  0xb7   :  { %1238 = vmatpush2.bf16.msra.mxu0 %v1676_v30 }
  0xb8   :  { %1239 = vmatprep.subr.bf16.mxu0 %v1681_v31 }
  0xbb   :  { %1240 = vmatpush2.bf16.msra.mxu0 %v1679_v32 }
  0xbc   :  { %1241 = vmatprep.subr.bf16.mxu0 %v1684_v33 }
  0xbf   :  { %1242 = vmatpush2.bf16.msra.mxu0 %v1682_v34 }
  0xc0   :  { %1243 = vmatprep.subr.bf16.mxu0 %v1687_v35 }
  0xc3   :  { %1244 = vmatpush2.bf16.msra.mxu0 %v1685_v36 }
  0xc4   :  { %1245 = vmatprep.subr.bf16.mxu0 %v1690_v37 }
  0xc7   :  { %1246 = vmatpush2.bf16.msra.mxu0 %v1688_v38 }
  0xc8   :  { %1247 = vmatprep.subr.bf16.mxu0 %v1693_v39 }
  0xcb   :  { %1248 = vmatpush2.bf16.msra.mxu0 %v1691_v40 }
  0xce   :  { %1250 = vmatmul.mubr.bf16.vlgmr.msra.gmra.mxu0 %v1694_v41 }
 0x10e   :  { %v1079_v42 = vpop.f32.mrf.mxu0 }
 0x10f   :  { %v1122_v43 = vpop.f32.mrf.mxu1 }
 0x110   :  { %v1081_v44 = vpop.f32.mrf.mxu0  ;;  %v1123_v53 = vadd.f32 %v1122_v43, %v1079_v42 }
 0x111   :  { %v1124_v45 = vpop.f32.mrf.mxu1 }
 0x112   :  { %v1083_v46 = vpop.f32.mrf.mxu0  ;;  %v1125_v56 = vadd.f32 %v1124_v45, %v1081_v44 }
 0x113   :  { %v1126_v47 = vpop.f32.mrf.mxu1 }
 0x114   :  { %v1085_v48 = vpop.f32.mrf.mxu0  ;;  %v1127_v58 = vadd.f32 %v1126_v47, %v1083_v46 }
 0x115   :  { %v1128_v50 = vpop.f32.mrf.mxu1 }
 0x116   :  { %v1129_v62 = vadd.f32 %v1128_v50, %v1085_v48 }
 0x14e   :  { %v1165_v49 = vpop.f32.mrf.mxu0 }
 0x14f   :  { %v1208_v52 = vpop.f32.mrf.mxu1  ;;  %v1166_v57 = vadd.f32 %v1165_v49, %v1123_v53 }
 0x150   :  { %v1167_v51 = vpop.f32.mrf.mxu0 }
 0x151   :  { %v1210_v55 = vpop.f32.mrf.mxu1  ;;  %v1168_v59 = vadd.f32 %v1167_v51, %v1125_v56  ;;  %v1209_v63 = vadd.f32 %v1208_v52, %v1166_v57 }
 0x152   :  { %v1169_v54 = vpop.f32.mrf.mxu0 }
 0x153   :  { %v1212_v61 = vpop.f32.mrf.mxu1  ;;  %v1170_v0 = vadd.f32 %v1169_v54, %v1127_v58  ;;  %v1211_v2 = vadd.f32 %v1210_v55, %v1168_v59 }
 0x154   :  { %v1171_v60 = vpop.f32.mrf.mxu0 }
 0x155   :  { %v1172_v3 = vadd.f32 %v1171_v60, %v1129_v62  ;;  %v1214_v5 = vpop.f32.mrf.mxu1  ;;  %v1213_v7 = vadd.f32 %v1212_v61, %v1170_v0 }
 0x157   :  { %v1215_v10 = vadd.f32 %v1214_v5, %v1172_v3 }
 0x18e   :  { %v1251_v1 = vpop.f32.mrf.mxu0 }
 0x18f   :  { %v1252_v4 = vadd.f32 %v1251_v1, %v1209_v63 }
 0x190   :  { %v1253_v6 = vpop.f32.mrf.mxu0 }
 0x191   :  { %1260 = vst [vmem:[%s1784_s2] sm:$0xff] %v1252_v4  ;;  %v1254_v8 = vadd.f32 %v1253_v6, %v1211_v2 }
 0x192   :  { %v1255_v9 = vpop.f32.mrf.mxu0 }
 0x193   :  { %1261 = vst [vmem:[%s1784_s2 + $0x8] sm:$0xff] %v1254_v8  ;;  %v1256_v11 = vadd.f32 %v1255_v9, %v1213_v7 }
 0x194   :  { %v1257_v12 = vpop.f32.mrf.mxu0 }
 0x195   :  { %1262 = vst [vmem:[%s1784_s2 + $0x10] sm:$0xff] %v1256_v11  ;;  %v1258_v13 = vadd.f32 %v1257_v12, %v1215_v10 }
 0x197   :  { %1263 = vst [vmem:[%s1784_s2 + $0x18] sm:$0xff] %v1258_v13 }
 0x198   :  { %1268 = vsyncpa [#allocation3], 1 }

// kernel: forward.6
= control target key start
LH: loop header
LB: loop body
LE: loop exit
PB: predicated region body
PF: predicated region fallthrough
CT: control target
= control target key end

     0   :  { %11 = vsyncpa [#allocation3], 0  ;;  %s5636_s0 = inlined_call_operand.vmem [shape: bf16[80,512], index: 0, kind: input, shape index: {}]   ;;  %s5637_s1 = inlined_call_operand.hbm [shape: bf16[512,256], index: 1, kind: input, shape index: {}]   ;;  %s5638_s2 = inlined_call_operand.hbm [shape: bf16[512,256], index: 2, kind: input, shape index: {}]   ;;  %s5639_s3 = inlined_call_operand.hbm [shape: f32[256,256], index: 3, kind: input, shape index: {}]   ;;  %s5640_s4 = inlined_call_operand.hbm [shape: bf16[256,512], index: 4, kind: input, shape index: {}]   ;;  %s5641_s5 = inlined_call_operand.hbm [shape: bf16[256,512], index: 5, kind: input, shape index: {}]   ;;  %s5642_s6 = inlined_call_operand.vmem [shape: f32[80,512], index: 6, kind: output, shape index: {}]  }
   0x1   :  { %12 = vsyncpa [#allocation5], 0 }
   0x2   :  { %13 = vsyncpa [#allocation8], 0  ;;  %s4144_s21 = smov [#allocation4]  }
   0x3   :  { %s33_s22 = sshll.u32 %s4144_s21, 4  ;;  %s34_s22 = int_to_ptr.vmem [resolvable:$true] %s33_s22 }
   0x4   :  { %s4046_s23 = scalar_lea.vmem %s34_s22, 8192  ;;  %p4051_p1 = scmp.lt.s32.totalorder %s34_s22, %s34_s22 }
   0x5   :  { %p4047_p0 = scmp.ne.s32.totalorder %s34_s22, %s4046_s23  ;;  %p4052_p2 = scmp.lt.s32.totalorder %s4046_s23, %s4046_s23 }
   0x7   :  { %p4053_p3 = por %p4052_p2, %p4051_p1 }
   0x9   :  { %p4054_p4 = pnand %p4053_p3, %p4047_p0 }
   0xb   :  { %4057 = shalt.err (!%p4054_p4)
}
   0xc   :  { %s4145_s24 = smov 128   ;;  %s4146_s25 = smov 8  }
   0xd   :  { %39 = dma.hbm_to_vmem [thread:$0]  %s5638_s2, 8192, %s34_s22, [#allocation5], %s4145_s24, %s4145_s24, %s4146_s25  }
   0xe   :  { %s4147_s28 = smov [#allocation7]   ;;  %s4148_s30 = smov [#allocation2]  }
   0xf   :  { %s57_s29 = sshll.u32 %s4147_s28, 4  ;;  %s21_s7 = sshll.u32 %s4148_s30, 4  ;;  %s58_s29 = int_to_ptr.vmem [resolvable:$true] %s57_s29  ;;  %s22_s7 = int_to_ptr.vmem [resolvable:$true] %s21_s7 }
  0x10   :  { %s4066_s8 = scalar_lea.vmem %s58_s29, 8192  ;;  %p4071_p6 = scmp.lt.s32.totalorder %s58_s29, %s58_s29 }
  0x11   :  { %p4067_p5 = scmp.ne.s32.totalorder %s58_s29, %s4066_s8  ;;  %p4072_p7 = scmp.lt.s32.totalorder %s4066_s8, %s4066_s8 }
  0x13   :  { %p4073_p8 = por %p4072_p7, %p4071_p6 }
  0x15   :  { %p4074_p9 = pnand %p4073_p8, %p4067_p5 }
  0x17   :  { %4077 = shalt.err (!%p4074_p9)
}
  0x18   :  { %s4149_s9 = smov 256   ;;  %s4150_s10 = smov 16  }
  0x19   :  { %63 = dma.hbm_to_vmem [thread:$0]  %s5640_s4, 8192, %s58_s29, [#allocation8], %s4149_s9, %s4149_s9, %s4150_s10  }
  0x1a   :  { %s4086_s2 = scalar_lea.vmem %s22_s7, 8192  ;;  %p4091_p11 = scmp.lt.s32.totalorder %s22_s7, %s22_s7 }
  0x1b   :  { %p4087_p10 = scmp.ne.s32.totalorder %s22_s7, %s4086_s2  ;;  %p4092_p12 = scmp.lt.s32.totalorder %s4086_s2, %s4086_s2 }
  0x1d   :  { %p4093_p13 = por %p4092_p12, %p4091_p11 }
  0x1f   :  { %p4094_p0 = pnand %p4093_p13, %p4087_p10 }
  0x21   :  { %4097 = shalt.err (!%p4094_p0)
}
  0x22   :  { %27 = dma.hbm_to_vmem [thread:$0]  %s5637_s1, 8192, %s22_s7, [#allocation3], %s4145_s24, %s4145_s24, %s4146_s25  }
  0x23   :  { %s4151_s15 = smov [#allocation6]   ;;  %s4152_s17 = smov [#allocation9]  }
  0x24   :  { %s45_s16 = sshll.u32 %s4151_s15, 4  ;;  %s69_s18 = sshll.u32 %s4152_s17, 4  ;;  %s46_s16 = int_to_ptr.vmem [resolvable:$true] %s45_s16  ;;  %s70_s18 = int_to_ptr.vmem [resolvable:$true] %s69_s18 }
  0x25   :  { %s4106_s19 = scalar_lea.vmem %s46_s16, 8192  ;;  %p4111_p2 = scmp.lt.s32.totalorder %s46_s16, %s46_s16 }
  0x26   :  { %p4107_p1 = scmp.ne.s32.totalorder %s46_s16, %s4106_s19  ;;  %p4112_p3 = scmp.lt.s32.totalorder %s4106_s19, %s4106_s19 }
  0x28   :  { %p4113_p4 = por %p4112_p3, %p4111_p2 }
  0x2a   :  { %p4114_p5 = pnand %p4113_p4, %p4107_p1 }
  0x2c   :  { %4117 = shalt.err (!%p4114_p5)
}
  0x2d   :  { %51 = dma.hbm_to_vmem [thread:$0]  %s5639_s3, 8192, %s46_s16, [#allocation5], %s4149_s9, %s4149_s9, %s4150_s10  }
  0x2e   :  { %s4126_s1 = scalar_lea.vmem %s70_s18, 8192  ;;  %p4131_p7 = scmp.lt.s32.totalorder %s70_s18, %s70_s18 }
  0x2f   :  { %p4127_p6 = scmp.ne.s32.totalorder %s70_s18, %s4126_s1  ;;  %p4132_p8 = scmp.lt.s32.totalorder %s4126_s1, %s4126_s1 }
  0x31   :  { %p4133_p9 = por %p4132_p8, %p4131_p7 }
  0x33   :  { %p4134_p10 = pnand %p4133_p9, %p4127_p6 }
  0x35   :  { %4137 = shalt.err (!%p4134_p10)
}
  0x36   :  { %75 = dma.hbm_to_vmem [thread:$0]  %s5641_s5, 8192, %s70_s18, [#allocation8], %s4149_s9, %s4149_s9, %s4150_s10  }
  0x37   :  { %4138 = dma.done.wait [#allocation3], 8192  }
  0x38   :  { %4139 = vsyncadd [#allocation3], 4294959104 }
  0x39   :  { %4140 = dma.done.wait [#allocation5], 16384  }
  0x3a   :  { %4141 = vsyncadd [#allocation5], 4294950912 }
  0x3b   :  { %4142 = dma.done.wait [#allocation8], 16384  }
  0x3c   :  { %4143 = vsyncadd [#allocation8], 4294950912  ;;  %v3504_v0 = vld [vmem:[#allocation2 + $0x74] ss:$8 sps:$4 sm:$0xff]   ;;  %v3508_v2 = vld [vmem:[#allocation2 + $0x70] ss:$8 sps:$4 sm:$0xff]  }
  0x3d   :  { %v3506_v1 = vld [vmem:[#allocation2 + $0x174] ss:$8 sps:$4 sm:$0xff]   ;;  %595 = vmatprep.subr.bf16.mxu0 %v3504_v0  ;;  %v3509_v3 = vld [vmem:[#allocation2 + $0x170] ss:$8 sps:$4 sm:$0xff]   ;;  %v3510_v4 = vld [vmem:[#allocation2 + $0x64] ss:$8 sps:$4 sm:$0xff]  }
  0x3e   :  { %678 = vmatprep.subr.bf16.mxu1 %v3506_v1  ;;  %596 = vmatpush1.bf16.msra.mxu0 %v3508_v2  ;;  %v3512_v5 = vld [vmem:[#allocation2 + $0x164] ss:$8 sps:$4 sm:$0xff]   ;;  %v3514_v6 = vld [vmem:[#allocation2 + $0x60] ss:$8 sps:$4 sm:$0xff]   ;;  %v3516_v8 = vld [vmem:[#allocation2 + $0x54] ss:$8 sps:$4 sm:$0xff]  }
  0x3f   :  { %679 = vmatpush1.bf16.msra.mxu1 %v3509_v3  ;;  %597 = vmatprep.subr.bf16.mxu0 %v3510_v4  ;;  %v3515_v7 = vld [vmem:[#allocation2 + $0x160] ss:$8 sps:$4 sm:$0xff]   ;;  %v3518_v9 = vld [vmem:[#allocation2 + $0x154] ss:$8 sps:$4 sm:$0xff]   ;;  %v3520_v10 = vld [vmem:[#allocation2 + $0x50] ss:$8 sps:$4 sm:$0xff]  }
  0x40   :  { %680 = vmatprep.subr.bf16.mxu1 %v3512_v5  ;;  %v3521_v11 = vld [vmem:[#allocation2 + $0x150] ss:$8 sps:$4 sm:$0xff]   ;;  %v3522_v12 = vld [vmem:[#allocation2 + $0x44] ss:$8 sps:$4 sm:$0xff]   ;;  %v3526_v14 = vld [vmem:[#allocation2 + $0x40] ss:$8 sps:$4 sm:$0xff]  }
  0x41   :  { %v3524_v13 = vld [vmem:[#allocation2 + $0x144] ss:$8 sps:$4 sm:$0xff]   ;;  %v3527_v15 = vld [vmem:[#allocation2 + $0x140] ss:$8 sps:$4 sm:$0xff]   ;;  %v3528_v16 = vld [vmem:[#allocation2 + $0x34] ss:$8 sps:$4 sm:$0xff]  }
  0x42   :  { %598 = vmatpush1.bf16.msra.mxu0 %v3514_v6  ;;  %v3530_v17 = vld [vmem:[#allocation2 + $0x134] ss:$8 sps:$4 sm:$0xff]   ;;  %v3532_v18 = vld [vmem:[#allocation2 + $0x30] ss:$8 sps:$4 sm:$0xff]   ;;  %v3534_v20 = vld [vmem:[#allocation2 + $0x24] ss:$8 sps:$4 sm:$0xff]  }
  0x43   :  { %681 = vmatpush1.bf16.msra.mxu1 %v3515_v7  ;;  %599 = vmatprep.subr.bf16.mxu0 %v3516_v8  ;;  %v3533_v19 = vld [vmem:[#allocation2 + $0x130] ss:$8 sps:$4 sm:$0xff]   ;;  %v3536_v21 = vld [vmem:[#allocation2 + $0x124] ss:$8 sps:$4 sm:$0xff]   ;;  %v3538_v22 = vld [vmem:[#allocation2 + $0x20] ss:$8 sps:$4 sm:$0xff]  }
  0x44   :  { %682 = vmatprep.subr.bf16.mxu1 %v3518_v9  ;;  %v3539_v23 = vld [vmem:[#allocation2 + $0x120] ss:$8 sps:$4 sm:$0xff]   ;;  %v3540_v24 = vld [vmem:[#allocation2 + $0x14] ss:$8 sps:$4 sm:$0xff]   ;;  %v3544_v26 = vld [vmem:[#allocation2 + $0x10] ss:$8 sps:$4 sm:$0xff]  }
  0x45   :  { %v3542_v25 = vld [vmem:[#allocation2 + $0x114] ss:$8 sps:$4 sm:$0xff]   ;;  %v3545_v27 = vld [vmem:[#allocation2 + $0x110] ss:$8 sps:$4 sm:$0xff]   ;;  %v3546_v28 = vld [vmem:[#allocation2 + $0x4] ss:$8 sps:$4 sm:$0xff]  }
  0x46   :  { %600 = vmatpush1.bf16.msra.mxu0 %v3520_v10  ;;  %v3548_v29 = vld [vmem:[#allocation2 + $0x104] ss:$8 sps:$4 sm:$0xff]   ;;  %v3550_v30 = vld [vmem:[#allocation2] ss:$8 sps:$4 sm:$0xff]   ;;  %v3552_v32 = vld [vmem:[#allocation2 + $0xf4] ss:$8 sps:$4 sm:$0xff]  }
  0x47   :  { %683 = vmatpush1.bf16.msra.mxu1 %v3521_v11  ;;  %601 = vmatprep.subr.bf16.mxu0 %v3522_v12  ;;  %v3551_v31 = vld [vmem:[#allocation2 + $0x100] ss:$8 sps:$4 sm:$0xff]   ;;  %v3554_v33 = vld [vmem:[#allocation2 + $0x1f4] ss:$8 sps:$4 sm:$0xff]   ;;  %v3556_v34 = vld [vmem:[#allocation2 + $0xf0] ss:$8 sps:$4 sm:$0xff]  }
  0x48   :  { %684 = vmatprep.subr.bf16.mxu1 %v3524_v13  ;;  %v3557_v35 = vld [vmem:[#allocation2 + $0x1f0] ss:$8 sps:$4 sm:$0xff]   ;;  %v3558_v36 = vld [vmem:[#allocation2 + $0xe4] ss:$8 sps:$4 sm:$0xff]   ;;  %v3562_v38 = vld [vmem:[#allocation2 + $0xe0] ss:$8 sps:$4 sm:$0xff]  }
  0x49   :  { %v3560_v37 = vld [vmem:[#allocation2 + $0x1e4] ss:$8 sps:$4 sm:$0xff]   ;;  %v3563_v39 = vld [vmem:[#allocation2 + $0x1e0] ss:$8 sps:$4 sm:$0xff]   ;;  %v3564_v40 = vld [vmem:[#allocation2 + $0xd4] ss:$8 sps:$4 sm:$0xff]  }
  0x4a   :  { %602 = vmatpush1.bf16.msra.mxu0 %v3526_v14  ;;  %v3566_v41 = vld [vmem:[#allocation2 + $0x1d4] ss:$8 sps:$4 sm:$0xff]   ;;  %v3568_v42 = vld [vmem:[#allocation2 + $0xd0] ss:$8 sps:$4 sm:$0xff]   ;;  %v3570_v44 = vld [vmem:[#allocation2 + $0xc4] ss:$8 sps:$4 sm:$0xff]  }
  0x4b   :  { %685 = vmatpush1.bf16.msra.mxu1 %v3527_v15  ;;  %603 = vmatprep.subr.bf16.mxu0 %v3528_v16  ;;  %v3569_v43 = vld [vmem:[#allocation2 + $0x1d0] ss:$8 sps:$4 sm:$0xff]   ;;  %v3572_v45 = vld [vmem:[#allocation2 + $0x1c4] ss:$8 sps:$4 sm:$0xff]   ;;  %v3574_v46 = vld [vmem:[#allocation2 + $0xc0] ss:$8 sps:$4 sm:$0xff]  }
  0x4c   :  { %686 = vmatprep.subr.bf16.mxu1 %v3530_v17  ;;  %v3575_v47 = vld [vmem:[#allocation2 + $0x1c0] ss:$8 sps:$4 sm:$0xff]   ;;  %v3576_v48 = vld [vmem:[#allocation2 + $0xb4] ss:$8 sps:$4 sm:$0xff]   ;;  %v3580_v52 = vld [vmem:[#allocation2 + $0xb0] ss:$8 sps:$4 sm:$0xff]  }
  0x4d   :  { %v4215_v49 = vld [vmem:[%s5636_s0 + $0x4] ss:$16 sps:$4 sm:$0xff]   ;;  %v4220_v51 = vld [vmem:[%s5636_s0 + $0xc] ss:$16 sps:$4 sm:$0xff]   ;;  %v3581_v53 = vld [vmem:[#allocation2 + $0x1b0] ss:$8 sps:$4 sm:$0xff]  }
  0x4e   :  { %604 = vmatpush1.bf16.msra.mxu0 %v3532_v18  ;;  %v3578_v50 = vld [vmem:[#allocation2 + $0x1b4] ss:$8 sps:$4 sm:$0xff]   ;;  %627 = vmatprep.mubr.bf16.mxu0 %v4215_v49  ;;  %v3582_v54 = vld [vmem:[#allocation2 + $0xa4] ss:$8 sps:$4 sm:$0xff]   ;;  %v3586_v56 = vld [vmem:[#allocation2 + $0xa0] ss:$8 sps:$4 sm:$0xff]  }
  0x4f   :  { %687 = vmatpush1.bf16.msra.mxu1 %v3533_v19  ;;  %605 = vmatprep.subr.bf16.mxu0 %v3534_v20  ;;  %v3584_v55 = vld [vmem:[#allocation2 + $0x1a4] ss:$8 sps:$4 sm:$0xff]   ;;  %v3587_v57 = vld [vmem:[#allocation2 + $0x1a0] ss:$8 sps:$4 sm:$0xff]   ;;  %v3588_v58 = vld [vmem:[#allocation2 + $0x94] ss:$8 sps:$4 sm:$0xff]  }
  0x50   :  { %688 = vmatprep.subr.bf16.mxu1 %v3536_v21  ;;  %710 = vmatprep.mubr.bf16.mxu1 %v4220_v51  ;;  %v3590_v59 = vld [vmem:[#allocation2 + $0x194] ss:$8 sps:$4 sm:$0xff]   ;;  %v3592_v60 = vld [vmem:[#allocation2 + $0x90] ss:$8 sps:$4 sm:$0xff]   ;;  %v3594_v62 = vld [vmem:[#allocation2 + $0x84] ss:$8 sps:$4 sm:$0xff]  }
  0x51   :  { %v3593_v61 = vld [vmem:[#allocation2 + $0x190] ss:$8 sps:$4 sm:$0xff]   ;;  %v3596_v63 = vld [vmem:[#allocation2 + $0x184] ss:$8 sps:$4 sm:$0xff]   ;;  %v3598_v0 = vld [vmem:[#allocation2 + $0x80] ss:$8 sps:$4 sm:$0xff]  }
  0x52   :  { %606 = vmatpush1.bf16.msra.mxu0 %v3538_v22  ;;  %v3599_v1 = vld [vmem:[#allocation2 + $0x180] ss:$8 sps:$4 sm:$0xff]   ;;  %v3608_v2 = vld [vmem:[#allocation4 + $0x74] ss:$8 sps:$4 sm:$0xff]   ;;  %v3606_v6 = vld [vmem:[#allocation4 + $0x70] ss:$8 sps:$4 sm:$0xff]  }
  0x53   :  { %689 = vmatpush1.bf16.msra.mxu1 %v3539_v23  ;;  %607 = vmatprep.subr.bf16.mxu0 %v3540_v24  ;;  %v3611_v3 = vld [vmem:[#allocation4 + $0x174] ss:$8 sps:$4 sm:$0xff]   ;;  %v4227_v4 = vld [vmem:[%s5636_s0] ss:$16 sps:$4 sm:$0xff]   ;;  %v4232_v5 = vld [vmem:[%s5636_s0 + $0x8] ss:$16 sps:$4 sm:$0xff]  }
  0x54   :  { %690 = vmatprep.subr.bf16.mxu1 %v3542_v25  ;;  %v3609_v7 = vld [vmem:[#allocation4 + $0x170] ss:$8 sps:$4 sm:$0xff]   ;;  %v3614_v8 = vld [vmem:[#allocation4 + $0x64] ss:$8 sps:$4 sm:$0xff]   ;;  %v3612_v12 = vld [vmem:[#allocation4 + $0x60] ss:$8 sps:$4 sm:$0xff]  }
  0x55   :  { %v3617_v9 = vld [vmem:[#allocation4 + $0x164] ss:$8 sps:$4 sm:$0xff]   ;;  %v3615_v13 = vld [vmem:[#allocation4 + $0x160] ss:$8 sps:$4 sm:$0xff]   ;;  %v3620_v14 = vld [vmem:[#allocation4 + $0x54] ss:$8 sps:$4 sm:$0xff]  }
  0x56   :  { %608 = vmatpush1.bf16.msra.mxu0 %v3544_v26  ;;  %v4237_v10 = vld [vmem:[%s5636_s0 + $0x24] ss:$16 sps:$4 sm:$0xff]   ;;  %v4242_v11 = vld [vmem:[%s5636_s0 + $0x2c] ss:$16 sps:$4 sm:$0xff]   ;;  %v3618_v16 = vld [vmem:[#allocation4 + $0x50] ss:$8 sps:$4 sm:$0xff]  }
  0x57   :  { %691 = vmatpush1.bf16.msra.mxu1 %v3545_v27  ;;  %609 = vmatprep.subr.bf16.mxu0 %v3546_v28  ;;  %v3623_v15 = vld [vmem:[#allocation4 + $0x154] ss:$8 sps:$4 sm:$0xff]   ;;  %v3621_v17 = vld [vmem:[#allocation4 + $0x150] ss:$8 sps:$4 sm:$0xff]   ;;  %v3626_v20 = vld [vmem:[#allocation4 + $0x44] ss:$8 sps:$4 sm:$0xff]  }
  0x58   :  { %692 = vmatprep.subr.bf16.mxu1 %v3548_v29  ;;  %v4251_v18 = vld [vmem:[%s5636_s0 + $0x20] ss:$16 sps:$4 sm:$0xff]   ;;  %v4256_v19 = vld [vmem:[%s5636_s0 + $0x28] ss:$16 sps:$4 sm:$0xff]   ;;  %v3629_v21 = vld [vmem:[#allocation4 + $0x144] ss:$8 sps:$4 sm:$0xff]  }
  0x59   :  { %v4261_v22 = vld [vmem:[%s5636_s0 + $0x44] ss:$16 sps:$4 sm:$0xff]   ;;  %v4266_v23 = vld [vmem:[%s5636_s0 + $0x4c] ss:$16 sps:$4 sm:$0xff]   ;;  %v3624_v24 = vld [vmem:[#allocation4 + $0x40] ss:$8 sps:$4 sm:$0xff]  }
  0x5a   :  { %610 = vmatpush1.bf16.msra.mxu0 %v3550_v30  ;;  %v3627_v25 = vld [vmem:[#allocation4 + $0x140] ss:$8 sps:$4 sm:$0xff]   ;;  %v3632_v26 = vld [vmem:[#allocation4 + $0x34] ss:$8 sps:$4 sm:$0xff]   ;;  %v3630_v28 = vld [vmem:[#allocation4 + $0x30] ss:$8 sps:$4 sm:$0xff]  }
  0x5b   :  { %693 = vmatpush1.bf16.msra.mxu1 %v3551_v31  ;;  %611 = vmatprep.subr.bf16.mxu0 %v3552_v32  ;;  %v3635_v27 = vld [vmem:[#allocation4 + $0x134] ss:$8 sps:$4 sm:$0xff]   ;;  %v3633_v29 = vld [vmem:[#allocation4 + $0x130] ss:$8 sps:$4 sm:$0xff]   ;;  %v3638_v32 = vld [vmem:[#allocation4 + $0x24] ss:$8 sps:$4 sm:$0xff]  }
  0x5c   :  { %694 = vmatprep.subr.bf16.mxu1 %v3554_v33  ;;  %v4275_v30 = vld [vmem:[%s5636_s0 + $0x40] ss:$16 sps:$4 sm:$0xff]   ;;  %v4280_v31 = vld [vmem:[%s5636_s0 + $0x48] ss:$16 sps:$4 sm:$0xff]   ;;  %v3641_v33 = vld [vmem:[#allocation4 + $0x124] ss:$8 sps:$4 sm:$0xff]  }
  0x5e   :  { %612 = vmatpush2.bf16.msra.mxu0 %v3556_v34  ;;  %v4285_v34 = vld [vmem:[%s5636_s0 + $0x64] ss:$16 sps:$4 sm:$0xff]  }
  0x5f   :  { %695 = vmatpush2.bf16.msra.mxu1 %v3557_v35  ;;  %613 = vmatprep.subr.bf16.mxu0 %v3558_v36  ;;  %v4290_v35 = vld [vmem:[%s5636_s0 + $0x6c] ss:$16 sps:$4 sm:$0xff]   ;;  %v3636_v36 = vld [vmem:[#allocation4 + $0x20] ss:$8 sps:$4 sm:$0xff]  }
  0x60   :  { %696 = vmatprep.subr.bf16.mxu1 %v3560_v37  ;;  %v3639_v37 = vld [vmem:[#allocation4 + $0x120] ss:$8 sps:$4 sm:$0xff]  }
  0x62   :  { %614 = vmatpush2.bf16.msra.mxu0 %v3562_v38  ;;  %v3644_v38 = vld [vmem:[#allocation4 + $0x14] ss:$8 sps:$4 sm:$0xff]  }
  0x63   :  { %697 = vmatpush2.bf16.msra.mxu1 %v3563_v39  ;;  %615 = vmatprep.subr.bf16.mxu0 %v3564_v40  ;;  %v3647_v39 = vld [vmem:[#allocation4 + $0x114] ss:$8 sps:$4 sm:$0xff]   ;;  %v3642_v40 = vld [vmem:[#allocation4 + $0x10] ss:$8 sps:$4 sm:$0xff]  }
  0x64   :  { %698 = vmatprep.subr.bf16.mxu1 %v3566_v41  ;;  %v3645_v41 = vld [vmem:[#allocation4 + $0x110] ss:$8 sps:$4 sm:$0xff]  }
  0x66   :  { %616 = vmatpush2.bf16.msra.mxu0 %v3568_v42  ;;  %v4299_v42 = vld [vmem:[%s5636_s0 + $0x60] ss:$16 sps:$4 sm:$0xff]  }
  0x67   :  { %699 = vmatpush2.bf16.msra.mxu1 %v3569_v43  ;;  %617 = vmatprep.subr.bf16.mxu0 %v3570_v44  ;;  %v4304_v43 = vld [vmem:[%s5636_s0 + $0x68] ss:$16 sps:$4 sm:$0xff]   ;;  %v3656_v44 = vld [vmem:[#allocation4 + $0x4] ss:$8 sps:$4 sm:$0xff]  }
  0x68   :  { %700 = vmatprep.subr.bf16.mxu1 %v3572_v45  ;;  %v3659_v45 = vld [vmem:[#allocation4 + $0x104] ss:$8 sps:$4 sm:$0xff]  }
  0x6a   :  { %618 = vmatpush2.bf16.msra.mxu0 %v3574_v46  ;;  %v4309_v46 = vld [vmem:[%s5636_s0 + $0x84] ss:$16 sps:$4 sm:$0xff]  }
  0x6b   :  { %701 = vmatpush2.bf16.msra.mxu1 %v3575_v47  ;;  %619 = vmatprep.subr.bf16.mxu0 %v3576_v48  ;;  %v4314_v47 = vld [vmem:[%s5636_s0 + $0x8c] ss:$16 sps:$4 sm:$0xff]   ;;  %v3654_v48 = vld [vmem:[#allocation4] ss:$8 sps:$4 sm:$0xff]  }
  0x6c   :  { %702 = vmatprep.subr.bf16.mxu1 %v3578_v50  ;;  %v3657_v50 = vld [vmem:[#allocation4 + $0x100] ss:$8 sps:$4 sm:$0xff]  }
  0x6e   :  { %620 = vmatpush2.bf16.msra.mxu0 %v3580_v52  ;;  %v3662_v52 = vld [vmem:[#allocation4 + $0xf4] ss:$8 sps:$4 sm:$0xff]  }
  0x6f   :  { %703 = vmatpush2.bf16.msra.mxu1 %v3581_v53  ;;  %621 = vmatprep.subr.bf16.mxu0 %v3582_v54  ;;  %v3665_v53 = vld [vmem:[#allocation4 + $0x1f4] ss:$8 sps:$4 sm:$0xff]   ;;  %v3660_v54 = vld [vmem:[#allocation4 + $0xf0] ss:$8 sps:$4 sm:$0xff]  }
  0x70   :  { %704 = vmatprep.subr.bf16.mxu1 %v3584_v55  ;;  %v3663_v55 = vld [vmem:[#allocation4 + $0x1f0] ss:$8 sps:$4 sm:$0xff]  }
  0x72   :  { %622 = vmatpush2.bf16.msra.mxu0 %v3586_v56  ;;  %v4323_v56 = vld [vmem:[%s5636_s0 + $0x80] ss:$16 sps:$4 sm:$0xff]  }
  0x73   :  { %705 = vmatpush2.bf16.msra.mxu1 %v3587_v57  ;;  %623 = vmatprep.subr.bf16.mxu0 %v3588_v58  ;;  %v4328_v57 = vld [vmem:[%s5636_s0 + $0x88] ss:$16 sps:$4 sm:$0xff]   ;;  %v3674_v58 = vld [vmem:[#allocation4 + $0xe4] ss:$8 sps:$4 sm:$0xff]  }
  0x74   :  { %706 = vmatprep.subr.bf16.mxu1 %v3590_v59  ;;  %v3677_v59 = vld [vmem:[#allocation4 + $0x1e4] ss:$8 sps:$4 sm:$0xff]  }
  0x76   :  { %624 = vmatpush2.bf16.msra.mxu0 %v3592_v60  ;;  %v3672_v60 = vld [vmem:[#allocation4 + $0xe0] ss:$8 sps:$4 sm:$0xff]  }
  0x77   :  { %707 = vmatpush2.bf16.msra.mxu1 %v3593_v61  ;;  %625 = vmatprep.subr.bf16.mxu0 %v3594_v62  ;;  %v3675_v61 = vld [vmem:[#allocation4 + $0x1e0] ss:$8 sps:$4 sm:$0xff]   ;;  %v3680_v62 = vld [vmem:[#allocation4 + $0xd4] ss:$8 sps:$4 sm:$0xff]  }
  0x78   :  { %708 = vmatprep.subr.bf16.mxu1 %v3596_v63  ;;  %v3683_v63 = vld [vmem:[#allocation4 + $0x1d4] ss:$8 sps:$4 sm:$0xff]  }
  0x7a   :  { %626 = vmatpush2.bf16.msra.mxu0 %v3598_v0  ;;  %v3678_v0 = vld [vmem:[#allocation4 + $0xd0] ss:$8 sps:$4 sm:$0xff]  }
  0x7b   :  { %709 = vmatpush2.bf16.msra.mxu1 %v3599_v1  ;;  %1145 = vmatprep.subr.bf16.mxu0 %v3608_v2  ;;  %v3681_v1 = vld [vmem:[#allocation4 + $0x1d0] ss:$8 sps:$4 sm:$0xff]   ;;  %v3692_v2 = vld [vmem:[#allocation4 + $0xc4] ss:$8 sps:$4 sm:$0xff]  }
  0x7c   :  { %1228 = vmatprep.subr.bf16.mxu1 %v3611_v3  ;;  %v3695_v3 = vld [vmem:[#allocation4 + $0x1c4] ss:$8 sps:$4 sm:$0xff]  }
  0x7d   :  { %628 = vmatmul.mubr.bf16.vlgmr.msra.gmra.mxu0 %v4227_v4 }
  0x7e   :  { %711 = vmatmul.mubr.bf16.vlgmr.msra.gmra.mxu1 %v4232_v5  ;;  %1146 = vmatpush1.bf16.msra.mxu0 %v3606_v6  ;;  %v3690_v6 = vld [vmem:[#allocation4 + $0xc0] ss:$8 sps:$4 sm:$0xff]  }
  0x7f   :  { %1229 = vmatpush1.bf16.msra.mxu1 %v3609_v7  ;;  %1147 = vmatprep.subr.bf16.mxu0 %v3614_v8  ;;  %v3693_v7 = vld [vmem:[#allocation4 + $0x1c0] ss:$8 sps:$4 sm:$0xff]   ;;  %v3698_v8 = vld [vmem:[#allocation4 + $0xb4] ss:$8 sps:$4 sm:$0xff]  }
  0x80   :  { %1230 = vmatprep.subr.bf16.mxu1 %v3617_v9  ;;  %637 = vmatprep.mubr.bf16.mxu0 %v4237_v10  ;;  %v3701_v9 = vld [vmem:[#allocation4 + $0x1b4] ss:$8 sps:$4 sm:$0xff]  }
  0x81   :  { %720 = vmatprep.mubr.bf16.mxu1 %v4242_v11 }
  0x82   :  { %1148 = vmatpush1.bf16.msra.mxu0 %v3612_v12  ;;  %v3696_v12 = vld [vmem:[#allocation4 + $0xb0] ss:$8 sps:$4 sm:$0xff]  }
  0x83   :  { %1231 = vmatpush1.bf16.msra.mxu1 %v3615_v13  ;;  %1149 = vmatprep.subr.bf16.mxu0 %v3620_v14  ;;  %v3699_v13 = vld [vmem:[#allocation4 + $0x1b0] ss:$8 sps:$4 sm:$0xff]   ;;  %v3710_v14 = vld [vmem:[#allocation4 + $0xa4] ss:$8 sps:$4 sm:$0xff]  }
  0x84   :  { %1232 = vmatprep.subr.bf16.mxu1 %v3623_v15  ;;  %v3711_v15 = vld [vmem:[#allocation4 + $0x1a0] ss:$8 sps:$4 sm:$0xff]  }
  0x85   :  { %638 = vmatmul.mubr.bf16.gmra.mxu0 %v4251_v18 }
  0x86   :  { %721 = vmatmul.mubr.bf16.gmra.mxu1 %v4256_v19  ;;  %1150 = vmatpush1.bf16.msra.mxu0 %v3618_v16  ;;  %v3716_v16 = vld [vmem:[#allocation4 + $0x94] ss:$8 sps:$4 sm:$0xff]  }
  0x87   :  { %1233 = vmatpush1.bf16.msra.mxu1 %v3621_v17  ;;  %1151 = vmatprep.subr.bf16.mxu0 %v3626_v20  ;;  %v3719_v17 = vld [vmem:[#allocation4 + $0x194] ss:$8 sps:$4 sm:$0xff]   ;;  %v3714_v20 = vld [vmem:[#allocation4 + $0x90] ss:$8 sps:$4 sm:$0xff]  }
  0x88   :  { %1234 = vmatprep.subr.bf16.mxu1 %v3629_v21  ;;  %647 = vmatprep.mubr.bf16.mxu0 %v4261_v22  ;;  %v3717_v21 = vld [vmem:[#allocation4 + $0x190] ss:$8 sps:$4 sm:$0xff]  }
  0x89   :  { %730 = vmatprep.mubr.bf16.mxu1 %v4266_v23 }
  0x8a   :  { %1152 = vmatpush1.bf16.msra.mxu0 %v3624_v24  ;;  %v3722_v24 = vld [vmem:[#allocation4 + $0x84] ss:$8 sps:$4 sm:$0xff]  }
  0x8b   :  { %1235 = vmatpush1.bf16.msra.mxu1 %v3627_v25  ;;  %1153 = vmatprep.subr.bf16.mxu0 %v3632_v26  ;;  %v3725_v25 = vld [vmem:[#allocation4 + $0x184] ss:$8 sps:$4 sm:$0xff]   ;;  %v3720_v26 = vld [vmem:[#allocation4 + $0x80] ss:$8 sps:$4 sm:$0xff]  }
  0x8c   :  { %1236 = vmatprep.subr.bf16.mxu1 %v3635_v27  ;;  %v3723_v27 = vld [vmem:[#allocation4 + $0x180] ss:$8 sps:$4 sm:$0xff]  }
  0x8d   :  { %648 = vmatmul.mubr.bf16.gmra.mxu0 %v4275_v30 }
  0x8e   :  { %731 = vmatmul.mubr.bf16.gmra.mxu1 %v4280_v31  ;;  %1154 = vmatpush1.bf16.msra.mxu0 %v3630_v28  ;;  %v1642_v28 = vld [vmem:[#allocation6 + $0xf8] sm:$0xff] }
  0x8f   :  { %1237 = vmatpush1.bf16.msra.mxu1 %v3633_v29  ;;  %1155 = vmatprep.subr.bf16.mxu0 %v3638_v32  ;;  %v1641_v29 = vld [vmem:[#allocation6 + $0xf0] sm:$0xff]  ;;  %v1640_v32 = vld [vmem:[#allocation6 + $0xe8] sm:$0xff] }
  0x90   :  { %1238 = vmatprep.subr.bf16.mxu1 %v3641_v33  ;;  %657 = vmatprep.mubr.bf16.mxu0 %v4285_v34  ;;  %v1639_v33 = vld [vmem:[#allocation6 + $0xe0] sm:$0xff] }
  0x91   :  { %740 = vmatprep.mubr.bf16.mxu1 %v4290_v35 }
  0x92   :  { %1156 = vmatpush1.bf16.msra.mxu0 %v3636_v36  ;;  %v1630_v36 = vld [vmem:[#allocation6 + $0x98] sm:$0xff] }
  0x93   :  { %1239 = vmatpush1.bf16.msra.mxu1 %v3639_v37  ;;  %1157 = vmatprep.subr.bf16.mxu0 %v3644_v38  ;;  %v1625_v37 = vld [vmem:[#allocation6 + $0x70] sm:$0xff]  ;;  %v1624_v38 = vld [vmem:[#allocation6 + $0x68] sm:$0xff] }
  0x94   :  { %1240 = vmatprep.subr.bf16.mxu1 %v3647_v39  ;;  %v1623_v39 = vld [vmem:[#allocation6 + $0x60] sm:$0xff] }
  0x95   :  { %658 = vmatmul.mubr.bf16.gmra.mxu0 %v4299_v42 }
  0x96   :  { %741 = vmatmul.mubr.bf16.gmra.mxu1 %v4304_v43  ;;  %1158 = vmatpush1.bf16.msra.mxu0 %v3642_v40  ;;  %v1622_v40 = vld [vmem:[#allocation6 + $0x58] sm:$0xff] }
  0x97   :  { %1241 = vmatpush1.bf16.msra.mxu1 %v3645_v41  ;;  %1159 = vmatprep.subr.bf16.mxu0 %v3656_v44  ;;  %v1621_v41 = vld [vmem:[#allocation6 + $0x50] sm:$0xff]  ;;  %v1618_v44 = vld [vmem:[#allocation6 + $0x38] sm:$0xff] }
  0x98   :  { %1242 = vmatprep.subr.bf16.mxu1 %v3659_v45  ;;  %667 = vmatprep.mubr.bf16.mxu0 %v4309_v46  ;;  %v1617_v45 = vld [vmem:[#allocation6 + $0x30] sm:$0xff] }
  0x99   :  { %750 = vmatprep.mubr.bf16.mxu1 %v4314_v47 }
  0x9a   :  { %1160 = vmatpush1.bf16.msra.mxu0 %v3654_v48  ;;  %v1614_v48 = vld [vmem:[#allocation6 + $0x18] sm:$0xff] }
  0x9b   :  { %1243 = vmatpush1.bf16.msra.mxu1 %v3657_v50  ;;  %1161 = vmatprep.subr.bf16.mxu0 %v3662_v52  ;;  %v1613_v50 = vld [vmem:[#allocation6 + $0x10] sm:$0xff]  ;;  %v1612_v52 = vld [vmem:[#allocation6 + $0x8] sm:$0xff] }
  0x9c   :  { %1244 = vmatprep.subr.bf16.mxu1 %v3665_v53  ;;  %v1611_v53 = vld [vmem:[#allocation6] sm:$0xff] }
  0x9d   :  { %668 = vmatmul.mubr.bf16.gmra.mxu0 %v4323_v56 }
  0x9e   :  { %751 = vmatmul.mubr.bf16.gmra.mxu1 %v4328_v57  ;;  %1162 = vmatpush2.bf16.msra.mxu0 %v3660_v54  ;;  %v1674_v54 = vld [vmem:[#allocation6 + $0x1f8] sm:$0xff] }
  0x9f   :  { %1245 = vmatpush2.bf16.msra.mxu1 %v3663_v55  ;;  %1163 = vmatprep.subr.bf16.mxu0 %v3674_v58  ;;  %v1673_v55 = vld [vmem:[#allocation6 + $0x1f0] sm:$0xff]  ;;  %v1670_v58 = vld [vmem:[#allocation6 + $0x1d8] sm:$0xff] }
  0xa0   :  { %1246 = vmatprep.subr.bf16.mxu1 %v3677_v59  ;;  %1177 = vmatprep.mubr.bf16.mxu0 %v4215_v49  ;;  %v3713_v49 = vld [vmem:[#allocation4 + $0x1a4] ss:$8 sps:$4 sm:$0xff]   ;;  %v1669_v59 = vld [vmem:[#allocation6 + $0x1d0] sm:$0xff] }
  0xa1   :  { %1260 = vmatprep.mubr.bf16.mxu1 %v4220_v51  ;;  %v3708_v51 = vld [vmem:[#allocation4 + $0xa0] ss:$8 sps:$4 sm:$0xff]  }
  0xa2   :  { %1164 = vmatpush2.bf16.msra.mxu0 %v3672_v60  ;;  %v1668_v60 = vld [vmem:[#allocation6 + $0x1c8] sm:$0xff] }
  0xa3   :  { %1247 = vmatpush2.bf16.msra.mxu1 %v3675_v61  ;;  %1165 = vmatprep.subr.bf16.mxu0 %v3680_v62  ;;  %v1667_v61 = vld [vmem:[#allocation6 + $0x1c0] sm:$0xff]  ;;  %v1666_v62 = vld [vmem:[#allocation6 + $0x1b8] sm:$0xff] }
  0xa4   :  { %1248 = vmatprep.subr.bf16.mxu1 %v3683_v63  ;;  %v1665_v63 = vld [vmem:[#allocation6 + $0x1b0] sm:$0xff] }
  0xa6   :  { %1166 = vmatpush2.bf16.msra.mxu0 %v3678_v0  ;;  %v1664_v0 = vld [vmem:[#allocation6 + $0x1a8] sm:$0xff] }
  0xa7   :  { %1249 = vmatpush2.bf16.msra.mxu1 %v3681_v1  ;;  %1167 = vmatprep.subr.bf16.mxu0 %v3692_v2  ;;  %v1663_v1 = vld [vmem:[#allocation6 + $0x1a0] sm:$0xff]  ;;  %v1662_v2 = vld [vmem:[#allocation6 + $0x198] sm:$0xff] }
  0xa8   :  { %1250 = vmatprep.subr.bf16.mxu1 %v3695_v3  ;;  %v1661_v3 = vld [vmem:[#allocation6 + $0x190] sm:$0xff] }
  0xaa   :  { %1168 = vmatpush2.bf16.msra.mxu0 %v3690_v6  ;;  %v1660_v6 = vld [vmem:[#allocation6 + $0x188] sm:$0xff] }
  0xab   :  { %1251 = vmatpush2.bf16.msra.mxu1 %v3693_v7  ;;  %1169 = vmatprep.subr.bf16.mxu0 %v3698_v8  ;;  %v1659_v7 = vld [vmem:[#allocation6 + $0x180] sm:$0xff]  ;;  %v1658_v8 = vld [vmem:[#allocation6 + $0x178] sm:$0xff] }
  0xac   :  { %1252 = vmatprep.subr.bf16.mxu1 %v3701_v9  ;;  %v1657_v9 = vld [vmem:[#allocation6 + $0x170] sm:$0xff] }
  0xae   :  { %1170 = vmatpush2.bf16.msra.mxu0 %v3696_v12  ;;  %v1656_v12 = vld [vmem:[#allocation6 + $0x168] sm:$0xff] }
  0xaf   :  { %1253 = vmatpush2.bf16.msra.mxu1 %v3699_v13  ;;  %1171 = vmatprep.subr.bf16.mxu0 %v3710_v14  ;;  %v1655_v13 = vld [vmem:[#allocation6 + $0x160] sm:$0xff]  ;;  %v1654_v14 = vld [vmem:[#allocation6 + $0x158] sm:$0xff] }
  0xb0   :  { %1254 = vmatprep.subr.bf16.mxu1 %v3713_v49  ;;  %v1653_v49 = vld [vmem:[#allocation6 + $0x150] sm:$0xff] }
  0xb2   :  { %1172 = vmatpush2.bf16.msra.mxu0 %v3708_v51  ;;  %v1652_v51 = vld [vmem:[#allocation6 + $0x148] sm:$0xff] }
  0xb3   :  { %1255 = vmatpush2.bf16.msra.mxu1 %v3711_v15  ;;  %1173 = vmatprep.subr.bf16.mxu0 %v3716_v16  ;;  %v1651_v15 = vld [vmem:[#allocation6 + $0x140] sm:$0xff]  ;;  %v1650_v16 = vld [vmem:[#allocation6 + $0x138] sm:$0xff] }
  0xb4   :  { %1256 = vmatprep.subr.bf16.mxu1 %v3719_v17  ;;  %v1649_v17 = vld [vmem:[#allocation6 + $0x130] sm:$0xff] }
  0xb6   :  { %1174 = vmatpush2.bf16.msra.mxu0 %v3714_v20  ;;  %v1648_v20 = vld [vmem:[#allocation6 + $0x128] sm:$0xff] }
  0xb7   :  { %1257 = vmatpush2.bf16.msra.mxu1 %v3717_v21  ;;  %1175 = vmatprep.subr.bf16.mxu0 %v3722_v24  ;;  %v1647_v21 = vld [vmem:[#allocation6 + $0x120] sm:$0xff]  ;;  %v1646_v24 = vld [vmem:[#allocation6 + $0x118] sm:$0xff] }
  0xb8   :  { %1258 = vmatprep.subr.bf16.mxu1 %v3725_v25  ;;  %v1645_v25 = vld [vmem:[#allocation6 + $0x110] sm:$0xff] }
  0xba   :  { %1176 = vmatpush2.bf16.msra.mxu0 %v3720_v26  ;;  %v1644_v26 = vld [vmem:[#allocation6 + $0x108] sm:$0xff] }
  0xbb   :  { %1259 = vmatpush2.bf16.msra.mxu1 %v3723_v27  ;;  %1675 = vmatprep.subr.mxu0 %v1642_v28  ;;  %v1643_v27 = vld [vmem:[#allocation6 + $0x100] sm:$0xff] }
  0xbd   :  { %1178 = vmatmul.mubr.bf16.vlgmr.msra.gmra.mxu0 %v4227_v4  ;;  %v1638_v4 = vld [vmem:[#allocation6 + $0xd8] sm:$0xff] }
  0xbe   :  { %1261 = vmatmul.mubr.bf16.vlgmr.msra.gmra.mxu1 %v4232_v5  ;;  %1187 = vmatprep.mubr.bf16.mxu0 %v4237_v10  ;;  %v1637_v5 = vld [vmem:[#allocation6 + $0xd0] sm:$0xff]  ;;  %v1636_v10 = vld [vmem:[#allocation6 + $0xc8] sm:$0xff] }
  0xbf   :  { %1270 = vmatprep.mubr.bf16.mxu1 %v4242_v11  ;;  %1676 = vmatpush1.msra.mxu0 %v1641_v29  ;;  %v1635_v11 = vld [vmem:[#allocation6 + $0xc0] sm:$0xff] }
  0xc0   :  { %1677 = vmatprep.subr.mxu0 %v1640_v32 }
  0xc1   :  { %1678 = vmatpush1.msra.mxu0 %v1639_v33 }
  0xc2   :  { %1679 = vmatprep.subr.mxu0 %v1638_v4 }
  0xc3   :  { %1680 = vmatpush1.msra.mxu0 %v1637_v5 }
  0xc4   :  { %1681 = vmatprep.subr.mxu0 %v1636_v10 }
  0xc5   :  { %1188 = vmatmul.mubr.bf16.gmra.mxu0 %v4251_v18  ;;  %v1634_v18 = vld [vmem:[#allocation6 + $0xb8] sm:$0xff] }
  0xc6   :  { %1271 = vmatmul.mubr.bf16.gmra.mxu1 %v4256_v19  ;;  %1197 = vmatprep.mubr.bf16.mxu0 %v4261_v22  ;;  %v1633_v19 = vld [vmem:[#allocation6 + $0xb0] sm:$0xff]  ;;  %v1632_v22 = vld [vmem:[#allocation6 + $0xa8] sm:$0xff] }
  0xc7   :  { %1280 = vmatprep.mubr.bf16.mxu1 %v4266_v23  ;;  %1682 = vmatpush1.msra.mxu0 %v1635_v11  ;;  %v1631_v23 = vld [vmem:[#allocation6 + $0xa0] sm:$0xff] }
  0xc8   :  { %1683 = vmatprep.subr.mxu0 %v1634_v18 }
  0xc9   :  { %1684 = vmatpush1.msra.mxu0 %v1633_v19 }
  0xca   :  { %1685 = vmatprep.subr.mxu0 %v1632_v22 }
  0xcb   :  { %1686 = vmatpush1.msra.mxu0 %v1631_v23 }
  0xcc   :  { %1687 = vmatprep.subr.mxu0 %v1630_v36 }
  0xcd   :  { %1198 = vmatmul.mubr.bf16.gmra.mxu0 %v4275_v30  ;;  %v1629_v30 = vld [vmem:[#allocation6 + $0x90] sm:$0xff] }
  0xce   :  { %1281 = vmatmul.mubr.bf16.gmra.mxu1 %v4280_v31  ;;  %1207 = vmatprep.mubr.bf16.mxu0 %v4285_v34  ;;  %v1628_v31 = vld [vmem:[#allocation6 + $0x88] sm:$0xff]  ;;  %v1627_v34 = vld [vmem:[#allocation6 + $0x80] sm:$0xff] }
  0xcf   :  { %1290 = vmatprep.mubr.bf16.mxu1 %v4290_v35  ;;  %1688 = vmatpush1.msra.mxu0 %v1629_v30  ;;  %v1626_v35 = vld [vmem:[#allocation6 + $0x78] sm:$0xff] }
  0xd0   :  { %1689 = vmatprep.subr.mxu0 %v1628_v31 }
  0xd1   :  { %1690 = vmatpush1.msra.mxu0 %v1627_v34 }
  0xd2   :  { %1691 = vmatprep.subr.mxu0 %v1626_v35 }
  0xd3   :  { %1692 = vmatpush1.msra.mxu0 %v1625_v37 }
  0xd4   :  { %1693 = vmatprep.subr.mxu0 %v1624_v38 }
  0xd5   :  { %1208 = vmatmul.mubr.bf16.gmra.mxu0 %v4299_v42  ;;  %v1620_v42 = vld [vmem:[#allocation6 + $0x48] sm:$0xff] }
  0xd6   :  { %1291 = vmatmul.mubr.bf16.gmra.mxu1 %v4304_v43  ;;  %1217 = vmatprep.mubr.bf16.mxu0 %v4309_v46  ;;  %v1619_v43 = vld [vmem:[#allocation6 + $0x40] sm:$0xff]  ;;  %v1616_v46 = vld [vmem:[#allocation6 + $0x28] sm:$0xff] }
  0xd7   :  { %1300 = vmatprep.mubr.bf16.mxu1 %v4314_v47  ;;  %1694 = vmatpush1.msra.mxu0 %v1623_v39  ;;  %v1615_v47 = vld [vmem:[#allocation6 + $0x20] sm:$0xff] }
  0xd8   :  { %1695 = vmatprep.subr.mxu0 %v1622_v40 }
  0xd9   :  { %1696 = vmatpush1.msra.mxu0 %v1621_v41 }
  0xda   :  { %1697 = vmatprep.subr.mxu0 %v1620_v42 }
  0xdb   :  { %1698 = vmatpush1.msra.mxu0 %v1619_v43 }
  0xdc   :  { %1699 = vmatprep.subr.mxu0 %v1618_v44 }
  0xdd   :  { %1218 = vmatmul.mubr.bf16.gmra.mxu0 %v4323_v56  ;;  %v1672_v56 = vld [vmem:[#allocation6 + $0x1e8] sm:$0xff] }
  0xde   :  { %1301 = vmatmul.mubr.bf16.gmra.mxu1 %v4328_v57  ;;  %1700 = vmatpush1.msra.mxu0 %v1617_v45  ;;  %v1671_v57 = vld [vmem:[#allocation6 + $0x1e0] sm:$0xff] }
  0xdf   :  { %1701 = vmatprep.subr.mxu0 %v1616_v46 }
  0xe0   :  { %1702 = vmatpush1.msra.mxu0 %v1615_v47 }
  0xe1   :  { %1703 = vmatprep.subr.mxu0 %v1614_v48 }
  0xe2   :  { %1704 = vmatpush1.msra.mxu0 %v1613_v50 }
  0xe3   :  { %1705 = vmatprep.subr.mxu0 %v1612_v52 }
  0xe4   :  { %1706 = vmatpush1.msra.mxu0 %v1611_v53 }
  0xe5   :  { %1707 = vmatprep.subr.mxu0 %v1674_v54 }
  0xe6   :  { %1708 = vmatpush2.msra.mxu0 %v1673_v55 }
  0xe7   :  { %1709 = vmatprep.subr.mxu0 %v1672_v56 }
  0xe8   :  { %1710 = vmatpush2.msra.mxu0 %v1671_v57 }
  0xe9   :  { %1711 = vmatprep.subr.mxu0 %v1670_v58 }
  0xea   :  { %1712 = vmatpush2.msra.mxu0 %v1669_v59 }
  0xeb   :  { %1713 = vmatprep.subr.mxu0 %v1668_v60 }
  0xec   :  { %1714 = vmatpush2.msra.mxu0 %v1667_v61  ;;  %v3726_v61 = vld [vmem:[#allocation9 + $0xe0] ss:$16 sps:$4 sm:$0xff]  }
  0xed   :  { %1715 = vmatprep.subr.mxu0 %v1666_v62  ;;  %v3728_v62 = vld [vmem:[#allocation9 + $0xe4] ss:$16 sps:$4 sm:$0xff]  }
  0xee   :  { %1716 = vmatpush2.msra.mxu0 %v1665_v63  ;;  %v3731_v63 = vld [vmem:[#allocation9 + $0xec] ss:$16 sps:$4 sm:$0xff]   ;;  %2488 = vmatprep.subr.bf16.mxu1 %v3728_v62 }
  0xef   :  { %1717 = vmatprep.subr.mxu0 %v1664_v0  ;;  %v3734_v0 = vld [vmem:[#allocation9 + $0xc4] ss:$16 sps:$4 sm:$0xff]   ;;  %2489 = vmatpush1.bf16.msra.mxu1 %v3726_v61 }
  0xf0   :  { %1718 = vmatpush2.msra.mxu0 %v1663_v1  ;;  %v3732_v1 = vld [vmem:[#allocation9 + $0xc0] ss:$16 sps:$4 sm:$0xff]   ;;  %2490 = vmatprep.subr.bf16.mxu1 %v3734_v0 }
  0xf1   :  { %1719 = vmatprep.subr.mxu0 %v1662_v2  ;;  %v3740_v2 = vld [vmem:[#allocation9 + $0xa4] ss:$16 sps:$4 sm:$0xff]  }
  0xf2   :  { %1720 = vmatpush2.msra.mxu0 %v1661_v3  ;;  %v3738_v3 = vld [vmem:[#allocation9 + $0xa0] ss:$16 sps:$4 sm:$0xff]  }
  0xf3   :  { %1721 = vmatprep.subr.mxu0 %v1660_v6  ;;  %2491 = vmatpush1.bf16.msra.mxu1 %v3732_v1  ;;  %v3746_v6 = vld [vmem:[#allocation9 + $0x84] ss:$16 sps:$4 sm:$0xff]  }
  0xf4   :  { %1722 = vmatpush2.msra.mxu0 %v1659_v7  ;;  %2492 = vmatprep.subr.bf16.mxu1 %v3740_v2  ;;  %v3744_v7 = vld [vmem:[#allocation9 + $0x80] ss:$16 sps:$4 sm:$0xff]   ;;  %v3729_v2 = vld [vmem:[#allocation9 + $0xe8] ss:$16 sps:$4 sm:$0xff]  }
  0xf5   :  { %1723 = vmatprep.subr.mxu0 %v1658_v8  ;;  %v3752_v8 = vld [vmem:[#allocation9 + $0x64] ss:$16 sps:$4 sm:$0xff]  }
  0xf6   :  { %1724 = vmatpush2.msra.mxu0 %v1657_v9  ;;  %v3750_v9 = vld [vmem:[#allocation9 + $0x60] ss:$16 sps:$4 sm:$0xff]  }
  0xf7   :  { %1725 = vmatprep.subr.mxu0 %v1656_v12  ;;  %2493 = vmatpush1.bf16.msra.mxu1 %v3738_v3  ;;  %v3758_v12 = vld [vmem:[#allocation9 + $0x44] ss:$16 sps:$4 sm:$0xff]  }
  0xf8   :  { %1726 = vmatpush2.msra.mxu0 %v1655_v13  ;;  %2494 = vmatprep.subr.bf16.mxu1 %v3746_v6 }
  0xf9   :  { %1727 = vmatprep.subr.mxu0 %v1654_v14 }
  0xfa   :  { %1728 = vmatpush2.msra.mxu0 %v1653_v49 }
  0xfb   :  { %1729 = vmatprep.subr.mxu0 %v1652_v51  ;;  %2495 = vmatpush1.bf16.msra.mxu1 %v3744_v7  ;;  %v3756_v51 = vld [vmem:[#allocation9 + $0x40] ss:$16 sps:$4 sm:$0xff]  }
  0xfc   :  { %1730 = vmatpush2.msra.mxu0 %v1651_v15  ;;  %2496 = vmatprep.subr.bf16.mxu1 %v3752_v8 }
  0xfd   :  { %1731 = vmatprep.subr.mxu0 %v1650_v16  ;;  %v3764_v16 = vld [vmem:[#allocation9 + $0x24] ss:$16 sps:$4 sm:$0xff]  }
  0xfe   :  { %1732 = vmatpush2.msra.mxu0 %v1649_v17 }
  0xff   :  { %1733 = vmatprep.subr.mxu0 %v1648_v20  ;;  %2497 = vmatpush1.bf16.msra.mxu1 %v3750_v9  ;;  %v3737_v9 = vld [vmem:[#allocation9 + $0xcc] ss:$16 sps:$4 sm:$0xff]  }
 0x100   :  { %1734 = vmatpush2.msra.mxu0 %v1647_v21  ;;  %2498 = vmatprep.subr.bf16.mxu1 %v3758_v12 }
 0x101   :  { %1735 = vmatprep.subr.mxu0 %v1646_v24 }
 0x102   :  { %1736 = vmatpush2.msra.mxu0 %v1645_v25 }
 0x103   :  { %1737 = vmatprep.subr.mxu0 %v1644_v26  ;;  %2499 = vmatpush1.bf16.msra.mxu1 %v3756_v51 }
 0x104   :  { %1738 = vmatpush2.msra.mxu0 %v1643_v27  ;;  %v3762_v27 = vld [vmem:[#allocation9 + $0x20] ss:$16 sps:$4 sm:$0xff]   ;;  %2500 = vmatprep.subr.bf16.mxu1 %v3764_v16 }
 0x105   :  { %2571 = vmatprep.subr.bf16.mxu0 %v3731_v63 }
 0x107   :  { %2501 = vmatpush1.bf16.msra.mxu1 %v3762_v27 }
 0x13d   :  { %v629_v28 = vpop.f32.mrf.mxu0 }
 0x13e   :  { %v712_v29 = vpop.f32.mrf.mxu1 }
 0x13f   :  { %v4352_v32 = vpop.f32.mrf.mxu0  ;;  %v4422_v13 = vadd.f32 %v712_v29, %v629_v28 }
 0x140   :  { %v4354_v33 = vpop.f32.mrf.mxu1 }
 0x141   :  { %v4356_v4 = vpop.f32.mrf.mxu0  ;;  %v4430_v15 = vadd.f32 %v4354_v33, %v4352_v32  ;;  %v1311_v24 = vmul.f32 %v4422_v13, %v4422_v13 }
 0x142   :  { %v4358_v5 = vpop.f32.mrf.mxu1 }
 0x143   :  { %v4360_v10 = vpop.f32.mrf.mxu0  ;;  %v1312_v28 = vmul.f32 %v4430_v15, %v4430_v15  ;;  %v4440_v29 = vadd.f32 %v4358_v5, %v4356_v4 }
 0x144   :  { %v4362_v11 = vpop.f32.mrf.mxu1 }
 0x145   :  { %v4364_v18 = vpop.f32.mrf.mxu0  ;;  %v1313_v3 = vmul.f32 %v4440_v29, %v4440_v29 }
 0x146   :  { %v4366_v19 = vpop.f32.mrf.mxu1 }
 0x147   :  { %v4368_v22 = vpop.f32.mrf.mxu0  ;;  %v4452_v61 = vadd.f32 %v4366_v19, %v4364_v18 }
 0x148   :  { %v4370_v23 = vpop.f32.mrf.mxu1 }
 0x149   :  { %v4372_v36 = vpop.f32.mrf.mxu0  ;;  %v4456_v62 = vadd.f32 %v4370_v23, %v4368_v22 }
 0x14a   :  { %v4374_v30 = vpop.f32.mrf.mxu1 }
 0x14b   :  { %v4376_v31 = vpop.f32.mrf.mxu0  ;;  %v4460_v4 = vadd.f32 %v4374_v30, %v4372_v36  ;;  %v3768_v36 = vld [vmem:[#allocation9] ss:$16 sps:$4 sm:$0xff]   ;;  %v1316_v12 = vmul.f32 %v4456_v62, %v4456_v62 }
 0x14c   :  { %v4378_v34 = vpop.f32.mrf.mxu1 }
 0x14d   :  { %v4380_v35 = vpop.f32.mrf.mxu0  ;;  %v4464_v0 = vadd.f32 %v4378_v34, %v4376_v31  ;;  %v4494_v51 = vmul.f32 %v4460_v4, %v4460_v4 }
 0x14e   :  { %v4382_v37 = vpop.f32.mrf.mxu1 }
 0x14f   :  { %v4384_v38 = vpop.f32.mrf.mxu0  ;;  %v4472_v19 = vadd.f32 %v4382_v37, %v4380_v35  ;;  %v1315_v37 = vmul.f32 %v4452_v61, %v4452_v61  ;;  %v4498_v16 = vmul.f32 %v4464_v0, %v4464_v0 }
 0x150   :  { %v4386_v39 = vpop.f32.mrf.mxu1 }
 0x151   :  { %v4388_v40 = vpop.f32.mrf.mxu0  ;;  %v4488_v6 = vadd.f32 %v4386_v39, %v4384_v38 }
 0x152   :  { %v4390_v41 = vpop.f32.mrf.mxu1 }
 0x153   :  { %v4392_v42 = vpop.f32.mrf.mxu0  ;;  %v4513_v27 = vadd.f32 %v4390_v41, %v4388_v40 }
 0x154   :  { %v4394_v43 = vpop.f32.mrf.mxu1 }
 0x155   :  { %v4396_v44 = vpop.f32.mrf.mxu0 }
 0x156   :  { %v4398_v45 = vpop.f32.mrf.mxu1 }
 0x157   :  { %v4400_v46 = vpop.f32.mrf.mxu0 }
 0x158   :  { %v4402_v47 = vpop.f32.mrf.mxu1 }
 0x159   :  { %v4404_v48 = vpop.f32.mrf.mxu0  ;;  %v4531_v40 = vadd.f32 %v4402_v47, %v4400_v46 }
 0x15a   :  { %v4406_v50 = vpop.f32.mrf.mxu1 }
 0x15b   :  { %v4408_v52 = vpop.f32.mrf.mxu0  ;;  %5655 = vst [vmem:[#allocation15_spill] sm:$0xff] %v4531_v40 }
 0x15c   :  { %v4410_v53 = vpop.f32.mrf.mxu1 }
 0x15d   :  { %v4412_v54 = vpop.f32.mrf.mxu0  ;;  %v4546_v46 = vadd.f32 %v4410_v53, %v4408_v52  ;;  %v3741_v52 = vld [vmem:[#allocation9 + $0xa8] ss:$16 sps:$4 sm:$0xff]  }
 0x15e   :  { %v4414_v55 = vpop.f32.mrf.mxu1 }
 0x15f   :  { %v4416_v56 = vpop.f32.mrf.mxu0  ;;  %5657 = vst [vmem:[#allocation17_spill] sm:$0xff] %v4546_v46  ;;  %v4550_v47 = vadd.f32 %v4414_v55, %v4412_v54 }
 0x160   :  { %v4418_v57 = vpop.f32.mrf.mxu1 }
 0x161   :  { %v673_v58 = vpop.f32.mrf.mxu0  ;;  %5658 = vst [vmem:[#allocation18_spill] sm:$0xff] %v4550_v47 }
 0x162   :  { %v756_v59 = vpop.f32.mrf.mxu1 }
 0x163   :  { %v4420_v60 = vadd.f32 %v756_v59, %v673_v58  ;;  %v4424_v14 = vpop.f32.mrf.mxu0  ;;  %v3770_v58 = vld [vmem:[#allocation9 + $0x4] ss:$16 sps:$4 sm:$0xff]   ;;  %v4448_v59 = vadd.f32 %v4362_v11, %v4360_v10 }
 0x164   :  { %v4426_v49 = vpop.f32.mrf.mxu1  ;;  %2502 = vmatprep.subr.bf16.mxu1 %v3770_v58  ;;  %v3735_v58 = vld [vmem:[#allocation9 + $0xc8] ss:$16 sps:$4 sm:$0xff]  }
 0x165   :  { %v1314_v35 = vmul.f32 %v4448_v59, %v4448_v59  ;;  %2503 = vmatpush1.bf16.msra.mxu1 %v3768_v36 }
 0x17d   :  { %v1179_v17 = vpop.f32.mrf.mxu0 }
 0x17e   :  { %v1262_v20 = vpop.f32.mrf.mxu1 }
 0x17f   :  { %v4432_v21 = vadd.f32 %v1262_v20, %v1179_v17  ;;  %v1181_v25 = vpop.f32.mrf.mxu0 }
 0x180   :  { %v1264_v26 = vpop.f32.mrf.mxu1 }
 0x181   :  { %v1331_v32 = vmul.f32 %v4432_v21, %v4432_v21  ;;  %v4444_v33 = vadd.f32 %v1264_v26, %v1181_v25  ;;  %v1183_v5 = vpop.f32.mrf.mxu0  ;;  %v4509_v26 = vmul.f32 %v4472_v19, %v4472_v19 }
 0x182   :  { %v1266_v63 = vpop.f32.mrf.mxu1 }
 0x183   :  { %v1351_v10 = vadd.f32 %v1331_v32, %v1311_v24  ;;  %v1332_v11 = vmul.f32 %v4444_v33, %v4444_v33  ;;  %v4468_v18 = vadd.f32 %v1266_v63, %v1183_v5  ;;  %v1185_v22 = vpop.f32.mrf.mxu0  ;;  %v4523_v5 = vmul.f32 %v4488_v6, %v4488_v6 }
 0x184   :  { %v1268_v23 = vpop.f32.mrf.mxu1  ;;  %v4527_v63 = vadd.f32 %v4398_v45, %v4396_v44  ;;  %v4542_v45 = vadd.f32 %v4406_v50, %v4404_v48  ;;  %v4564_v50 = vadd.f32 %v4418_v57, %v4416_v56  ;;  %v4577_v57 = vmul.f32 %v4531_v40, %v4531_v40  ;;  %v3771_v40 = vld [vmem:[#allocation9 + $0x8] ss:$16 sps:$4 sm:$0xff]  }
 0x185   :  { %v4474_v30 = vadd.f32 1e-08, %v1351_v10  ;;  %v1352_v1 = vadd.f32 %v1332_v11, %v1312_v28  ;;  %v1333_v31 = vmul.f32 %v4468_v18, %v4468_v18  ;;  %v4478_v34 = vadd.f32 %v1268_v23, %v1185_v22  ;;  %v1189_v7 = vpop.f32.mrf.mxu0 }
 0x186   :  { %v1272_v8 = vpop.f32.mrf.mxu1  ;;  %v4517_v28 = vadd.f32 %v4394_v43, %v4392_v42  ;;  %5654 = vst [vmem:[#allocation14_spill] sm:$0xff] %v4527_v63  ;;  %v3743_v43 = vld [vmem:[#allocation9 + $0xac] ss:$16 sps:$4 sm:$0xff]   ;;  %5656 = vst [vmem:[#allocation16_spill] sm:$0xff] %v4542_v45  ;;  %v4573_v56 = vmul.f32 %v4527_v63, %v4527_v63 }
 0x187   :  { %3918 = vrsqrt.f32 %v4474_v30  ;;  %1739 = vmatprep.mubr.f32.mxu0 %v1352_v1  ;;  %v4501_v17 = vadd.f32 1e-08, %v1352_v1  ;;  %v1353_v38 = vadd.f32 %v1333_v31, %v1313_v3  ;;  %v1334_v39 = vmul.f32 %v4478_v34, %v4478_v34  ;;  %v1191_v24 = vpop.f32.mrf.mxu0  ;;  %5659 = vst [vmem:[#allocation19_spill] sm:$0xff] %v4564_v50 }
 0x188   :  { %v4505_v20 = vadd.f32 %v1272_v8, %v1189_v7  ;;  %v1274_v25 = vpop.f32.mrf.mxu1  ;;  %1740 = vmatmul.mubr.f32.vlgmr.msra.gmra.mxu0 %v1351_v10  ;;  %5653 = vst [vmem:[#allocation13_spill] sm:$0xff] %v4517_v28  ;;  %v4556_v31 = vmul.f32 %v4513_v27, %v4513_v27  ;;  %v4560_v48 = vmul.f32 %v4517_v28, %v4517_v28  ;;  %v3749_v7 = vld [vmem:[#allocation9 + $0x8c] ss:$16 sps:$4 sm:$0xff]   ;;  %vm1393_vm0 = vcmp.eq.f32.partialorder %v4474_v30, inf }
 0x189   :  { %v4519_v32 = vadd.f32 %v1274_v25, %v1191_v24  ;;  %2572 = vmatpush1.bf16.msra.mxu0 %v3729_v2  ;;  %3920 = vrsqrt.f32 %v4501_v17  ;;  %v1193_v41 = vpop.f32.mrf.mxu0  ;;  %v4534_v10 = vadd.f32 1e-08, %v1353_v38  ;;  %v1354_v11 = vadd.f32 %v1334_v39, %v1314_v35 }
 0x18a   :  { %v1276_v42 = vpop.f32.mrf.mxu1  ;;  %2573 = vmatprep.subr.bf16.mxu0 %v3737_v9  ;;  %v1335_v22 = vmul.f32 %v4505_v20, %v4505_v20  ;;  %v4585_v9 = vmul.f32 %v4542_v45, %v4542_v45  ;;  %vm1395_vm1 = vcmp.eq.f32.partialorder %v4474_v30, 0.0  ;;  %vm1400_vm2 = vcmp.eq.f32.partialorder %v4501_v17, inf }
 0x18b   :  { %v1336_v44 = vmul.f32 %v4519_v32, %v4519_v32  ;;  %v4552_v23 = vadd.f32 %v1276_v42, %v1193_v41  ;;  %v1195_v36 = vpop.f32.mrf.mxu0  ;;  %3922 = vrsqrt.f32 %v4534_v10  ;;  %1745 = vmatprep.mubr.f32.mxu0 %v1354_v11  ;;  %v4567_v53 = vadd.f32 1e-08, %v1354_v11 }
 0x18c   :  { %v1278_v1 = vpop.f32.mrf.mxu1  ;;  %v1355_v54 = vadd.f32 %v1335_v22, %v1315_v37  ;;  %1746 = vmatmul.mubr.f32.gmra.mxu0 %v1353_v38  ;;  %v4593_v38 = vmul.f32 %v4550_v47, %v4550_v47  ;;  %v4605_v11 = vmul.f32 %v4564_v50, %v4564_v50  ;;  %vm1402_vm3 = vcmp.eq.f32.partialorder %v4501_v17, 0.0  ;;  %v3761_v47 = vld [vmem:[#allocation9 + $0x4c] ss:$16 sps:$4 sm:$0xff]  }
 0x18d   :  { %2574 = vmatpush1.bf16.msra.mxu0 %v3735_v58  ;;  %v1356_v55 = vadd.f32 %v1336_v44, %v1316_v12  ;;  %v1337_v2 = vmul.f32 %v4552_v23, %v4552_v23  ;;  %v1199_v3 = vpop.f32.mrf.mxu0  ;;  %v4579_v8 = vadd.f32 %v1278_v1, %v1195_v36  ;;  %v4589_v12 = vmul.f32 %v4546_v46, %v4546_v46  ;;  %v3755_v36 = vld [vmem:[#allocation9 + $0x6c] ss:$16 sps:$4 sm:$0xff]  }
 0x18e   :  { %v1282_v35 = vpop.f32.mrf.mxu1  ;;  %2575 = vmatprep.subr.bf16.mxu0 %v3743_v43  ;;  %3924 = vrsqrt.f32 %v4567_v53  ;;  %v4596_v25 = vadd.f32 1e-08, %v1355_v54  ;;  %v3747_v43 = vld [vmem:[#allocation9 + $0x88] ss:$16 sps:$4 sm:$0xff]   ;;  %vm1407_vm4 = vcmp.eq.f32.partialorder %v4534_v10, inf  ;;  %vm1409_vm5 = vcmp.eq.f32.partialorder %v4534_v10, 0.0 }
 0x18f   :  { %v4581_v37 = vadd.f32 %v1282_v35, %v1199_v3  ;;  %1751 = vmatprep.mubr.f32.mxu0 %v1356_v55  ;;  %v1201_v39 = vpop.f32.mrf.mxu0  ;;  %v4598_v58 = vadd.f32 1e-08, %v1356_v55  ;;  %v1357_v41 = vadd.f32 %v1337_v2, %v4494_v51  ;;  %v1338_v42 = vmul.f32 %v4579_v8, %v4579_v8 }
 0x190   :  { %v1284_v24 = vpop.f32.mrf.mxu1  ;;  %1752 = vmatmul.mubr.f32.gmra.mxu0 %v1355_v54  ;;  %v1396_v51 = vand.u32 2147483648, %v4474_v30  ;;  %3926 = vrsqrt.f32 %v4596_v25  ;;  %v1403_v2 = vand.u32 2147483648, %v4501_v17  ;;  %vm1414_vm6 = vcmp.eq.f32.partialorder %v4567_v53, inf }
 0x191   :  { %2576 = vmatpush1.bf16.msra.mxu0 %v3741_v52  ;;  %v1339_v22 = vmul.f32 %v4581_v37, %v4581_v37  ;;  %v4609_v44 = vadd.f32 %v1284_v24, %v1201_v39  ;;  %v1203_v1 = vpop.f32.mrf.mxu0  ;;  %3928 = vrsqrt.f32 %v4598_v58  ;;  %v4620_v3 = vadd.f32 1e-08, %v1357_v41  ;;  %v3753_v39 = vld [vmem:[#allocation9 + $0x68] ss:$16 sps:$4 sm:$0xff]  }
 0x192   :  { %2577 = vmatprep.subr.bf16.mxu0 %v3749_v7  ;;  %v1286_v52 = vpop.f32.mrf.mxu1  ;;  %v1358_v35 = vadd.f32 %v1338_v42, %v4498_v16  ;;  %vm1416_vm7 = vcmp.eq.f32.partialorder %v4567_v53, 0.0  ;;  %vm1421_vm8 = vcmp.eq.f32.partialorder %v4596_v25, inf  ;;  %vm1423_vm9 = vcmp.eq.f32.partialorder %v4596_v25, 0.0 }
 0x193   :  { %v1359_v7 = vadd.f32 %v1339_v22, %v4509_v26  ;;  %v1340_v24 = vmul.f32 %v4609_v44, %v4609_v44  ;;  %v4628_v50 = vadd.f32 %v1286_v52, %v1203_v1  ;;  %v1410_v26 = vand.u32 2147483648, %v4534_v10  ;;  %v1205_v42 = vpop.f32.mrf.mxu0 }
 0x194   :  { %v3919_v55 = vpop.eup %3918  ;;  %3930 = vrsqrt.f32 %v4620_v3  ;;  %1757 = vmatprep.mubr.f32.mxu0 %v1358_v35  ;;  %v1417_v1 = vand.u32 2147483648, %v4567_v53  ;;  %v4641_v52 = vadd.f32 1e-08, %v1358_v35  ;;  %v3767_v35 = vld [vmem:[#allocation9 + $0x2c] ss:$16 sps:$4 sm:$0xff]   ;;  %vm1428_vm10 = vcmp.eq.f32.partialorder %v4598_v58, inf }
 0x195   :  { %v1392_v54 = vmul.f32 %v3919_v55, %v4474_v30  ;;  %2578 = vmatpush1.bf16.msra.mxu0 %v3747_v43  ;;  %v1288_v43 = vpop.f32.mrf.mxu1  ;;  %v4643_v45 = vadd.f32 1e-08, %v1359_v7  ;;  %v1360_v46 = vadd.f32 %v1340_v24, %v4523_v5  ;;  %v1341_v63 = vmul.f32 %v4628_v50, %v4628_v50 }
 0x196   :  { %2579 = vmatprep.subr.bf16.mxu0 %v3755_v36  ;;  %v3921_v55 = vpop.eup %3920  ;;  %1758 = vmatmul.mubr.f32.gmra.mxu0 %v1357_v41  ;;  %3932 = vrsqrt.f32 %v4641_v52  ;;  %v4653_v41 = vadd.f32 %v1288_v43, %v1205_v42  ;;  %v1424_v24 = vand.u32 2147483648, %v4596_v25  ;;  %vm1430_vm11 = vcmp.eq.f32.partialorder %v4598_v58, 0.0 }
 0x197   :  { %v1394_v16 = vsel %vm1393_vm0, %v4474_v30, %v1392_v54  ;;  %v1399_v36 = vmul.f32 %v3921_v55, %v4501_v17  ;;  %v3759_v30 = vld [vmem:[#allocation9 + $0x48] ss:$16 sps:$4 sm:$0xff]   ;;  %1763 = vmatprep.mubr.f32.mxu0 %v1360_v46  ;;  %v4667_v42 = vadd.f32 1e-08, %v1360_v46  ;;  %v1361_v43 = vadd.f32 %v1341_v63, %v4556_v31 }
 0x198   :  { %v1397_v22 = vsel %vm1395_vm1, %v1396_v51, %v1394_v16  ;;  %v3923_v51 = vpop.eup %3922  ;;  %v1209_v16 = vpop.f32.mrf.mxu0  ;;  %vm1435_vm12 = vcmp.eq.f32.partialorder %v4620_v3, inf  ;;  %vm1437_vm13 = vcmp.eq.f32.partialorder %v4620_v3, 0.0  ;;  %vm1442_vm14 = vcmp.eq.f32.partialorder %v4641_v52, inf }
 0x199   :  { %v1531_v54 = vadd.f32 1e-08, %v1397_v22  ;;  %2580 = vmatpush1.bf16.msra.mxu0 %v3753_v39  ;;  %v1401_v55 = vsel %vm1400_vm2, %v4501_v17, %v1399_v36  ;;  %v1406_v39 = vmul.f32 %v3923_v51, %v4534_v10  ;;  %v1292_v22 = vpop.f32.mrf.mxu1  ;;  %vm1444_vm15 = vcmp.eq.f32.partialorder %v4641_v52, 0.0 }
 0x19a   :  { %2581 = vmatprep.subr.bf16.mxu0 %v3761_v47  ;;  %v1404_v5 = vsel %vm1402_vm3, %v1403_v2, %v1401_v55  ;;  %1764 = vmatmul.mubr.f32.gmra.mxu0 %v1359_v7  ;;  %v1431_v2 = vand.u32 2147483648, %v4598_v58  ;;  %v1342_v7 = vmul.f32 %v4653_v41, %v4653_v41  ;;  %v1211_v63 = vpop.f32.mrf.mxu0  ;;  %vm1449_vm0 = vcmp.eq.f32.partialorder %v4643_v45, inf }
 0x19b   :  { %3934 = vrcp.f32 %v1531_v54  ;;  %v1532_v36 = vadd.f32 1e-08, %v1404_v5  ;;  %v3925_v47 = vpop.eup %3924  ;;  %v1408_v17 = vsel %vm1407_vm4, %v4534_v10, %v1406_v39  ;;  %v3765_v54 = vld [vmem:[#allocation9 + $0x28] ss:$16 sps:$4 sm:$0xff]   ;;  %v3773_v5 = vld [vmem:[#allocation9 + $0xc] ss:$16 sps:$4 sm:$0xff]   ;;  %v1294_v46 = vpop.f32.mrf.mxu1 }
 0x19c   :  { %3936 = vrsqrt.f32 %v4643_v45  ;;  %v1411_v51 = vsel %vm1409_vm5, %v1410_v26, %v1408_v17  ;;  %v1413_v55 = vmul.f32 %v3925_v47, %v4567_v53  ;;  %v1438_v26 = vand.u32 2147483648, %v4620_v3 }
 0x19d   :  { %2582 = vmatpush1.bf16.msra.mxu0 %v3759_v30  ;;  %3938 = vrcp.f32 %v1532_v36  ;;  %v1533_v39 = vadd.f32 1e-08, %v1411_v51  ;;  %v3927_v31 = vpop.eup %3926  ;;  %v4682_v30 = vadd.f32 1e-08, %v1361_v43  ;;  %v4688_v51 = vadd.f32 %v1292_v22, %v1209_v16  ;;  %v1213_v16 = vpop.f32.mrf.mxu0 }
 0x19e   :  { %2583 = vmatprep.subr.bf16.mxu0 %v3767_v35  ;;  %3940 = vrsqrt.f32 %v4667_v42  ;;  %v1415_v10 = vsel %vm1414_vm6, %v4567_v53, %v1413_v55  ;;  %v1362_v35 = vadd.f32 %v1342_v7, %v4560_v48  ;;  %v3929_v36 = vpop.eup %3928  ;;  %v1420_v17 = vmul.f32 %v3927_v31, %v4596_v25  ;;  %v1296_v22 = vpop.f32.mrf.mxu1 }
 0x19f   :  { %3942 = vrcp.f32 %v1533_v39  ;;  %v1418_v47 = vsel %vm1416_vm7, %v1417_v1, %v1415_v10  ;;  %v1427_v55 = vmul.f32 %v3929_v36, %v4598_v58  ;;  %v1445_v53 = vand.u32 2147483648, %v4641_v52  ;;  %v1215_v36 = vpop.f32.mrf.mxu0 }
 0x1a0   :  { %v1534_v28 = vadd.f32 1e-08, %v1418_v47  ;;  %3944 = vrsqrt.f32 %v4682_v30  ;;  %1769 = vmatprep.mubr.f32.mxu0 %v1362_v35  ;;  %v1422_v48 = vsel %vm1421_vm8, %v4596_v25, %v1420_v17  ;;  %v4698_v1 = vadd.f32 1e-08, %v1362_v35  ;;  %v1298_v47 = vpop.f32.mrf.mxu1 }
 0x1a1   :  { %2584 = vmatpush1.bf16.msra.mxu0 %v3765_v54  ;;  %v3931_v54 = vpop.eup %3930  ;;  %v1425_v7 = vsel %vm1423_vm9, %v1424_v24, %v1422_v48  ;;  %v1343_v39 = vmul.f32 %v4688_v51, %v4688_v51  ;;  %vm1451_vm1 = vcmp.eq.f32.partialorder %v4643_v45, 0.0  ;;  %v1452_v25 = vand.u32 2147483648, %v4643_v45 }
 0x1a2   :  { %2585 = vmatprep.subr.bf16.mxu0 %v3773_v5  ;;  %1770 = vmatmul.mubr.f32.gmra.mxu0 %v1361_v43  ;;  %3946 = vrcp.f32 %v1534_v28  ;;  %v1429_v5 = vsel %vm1428_vm10, %v4598_v58, %v1427_v55  ;;  %v1535_v31 = vadd.f32 1e-08, %v1425_v7  ;;  %v1434_v35 = vmul.f32 %v3931_v54, %v4620_v3 }
 0x1a3   :  { %v1432_v10 = vsel %vm1430_vm11, %v1431_v2, %v1429_v5  ;;  %3948 = vrsqrt.f32 %v4698_v1  ;;  %v3933_v24 = vpop.eup %3932  ;;  %v1363_v58 = vadd.f32 %v1343_v39, %v4573_v56  ;;  %v4718_v2 = vadd.f32 %v1294_v46, %v1211_v63  ;;  %v1219_v39 = vpop.f32.mrf.mxu0 }
 0x1a4   :  { %v1536_v28 = vadd.f32 1e-08, %v1432_v10  ;;  %3950 = vrcp.f32 %v1535_v31  ;;  %v1436_v43 = vsel %vm1435_vm12, %v4620_v3, %v1434_v35  ;;  %v1441_v55 = vmul.f32 %v3933_v24, %v4641_v52  ;;  %v1302_v31 = vpop.f32.mrf.mxu1 }
 0x1a5   :  { %2586 = vmatpush1.bf16.msra.mxu0 %v3771_v40  ;;  %v1439_v17 = vsel %vm1437_vm13, %v1438_v26, %v1436_v43  ;;  %v4725_v48 = vadd.f32 %v1296_v22, %v1213_v16  ;;  %v4731_v63 = vadd.f32 1e-08, %v1363_v58  ;;  %v1344_v46 = vmul.f32 %v4718_v2, %v4718_v2 }
 0x1a6   :  { %3952 = vrcp.f32 %v1536_v28  ;;  %v1537_v56 = vadd.f32 1e-08, %v1439_v17  ;;  %v1443_v3 = vsel %vm1442_vm14, %v4641_v52, %v1441_v55  ;;  %vm1456_vm2 = vcmp.eq.f32.partialorder %v4667_v42, inf }
 0x1a7   :  { %v1345_v16 = vmul.f32 %v4725_v48, %v4725_v48  ;;  %vm1458_vm3 = vcmp.eq.f32.partialorder %v4667_v42, 0.0  ;;  %v4747_v5 = vadd.f32 %v1298_v47, %v1215_v36  ;;  %v1459_v43 = vand.u32 2147483648, %v4667_v42 }
 0x1a8   :  { %v4720_v40 = vpop.eup %3934  ;;  %3954 = vrcp.f32 %v1537_v56  ;;  %v1364_v36 = vadd.f32 %v1344_v46, %v4577_v57  ;;  %vm1463_vm4 = vcmp.eq.f32.partialorder %v4682_v30, inf  ;;  %v1221_v56 = vpop.f32.mrf.mxu0  ;;  %vm1465_vm5 = vcmp.eq.f32.partialorder %v4682_v30, 0.0 }
 0x1a9   :  { %v3937_v54 = vpop.eup %3936  ;;  %v4729_v7 = vmul.f32 %v4720_v40, %v4432_v21  ;;  %v1446_v21 = vsel %vm1444_vm15, %v1445_v53, %v1443_v3  ;;  %3956 = vrsqrt.f32 %v4731_v63  ;;  %v1365_v17 = vadd.f32 %v1345_v16, %v4585_v9  ;;  %v1304_v46 = vpop.f32.mrf.mxu1 }
 0x1aa   :  { %v1448_v26 = vmul.f32 %v3937_v54, %v4643_v45  ;;  %v4742_v22 = vpop.eup %3938  ;;  %v1538_v28 = vadd.f32 1e-08, %v1446_v21  ;;  %v1346_v57 = vmul.f32 %v4747_v5, %v4747_v5  ;;  %1775 = vmatprep.mubr.f32.mxu0 %v1364_v36  ;;  %v1466_v21 = vand.u32 2147483648, %v4682_v30 }
 0x1ab   :  { %v3941_v10 = vpop.eup %3940  ;;  %v4751_v35 = vmul.f32 %v4742_v22, %v4444_v33  ;;  %1776 = vmatmul.mubr.f32.gmra.mxu0 %v1363_v58  ;;  %vm1470_vm6 = vcmp.eq.f32.partialorder %v4698_v1, inf  ;;  %vm1472_vm7 = vcmp.eq.f32.partialorder %v4698_v1, 0.0  ;;  %vm1477_vm8 = vcmp.eq.f32.partialorder %v4731_v63, inf }
 0x1ac   :  { %v1450_v24 = vsel %vm1449_vm0, %v4643_v45, %v1448_v26  ;;  %v1455_v53 = vmul.f32 %v3941_v10, %v4667_v42  ;;  %v4762_v47 = vpop.eup %3942  ;;  %3958 = vrcp.f32 %v1538_v28  ;;  %v4786_v10 = vadd.f32 %v1302_v31, %v1219_v39  ;;  %v1223_v39 = vpop.f32.mrf.mxu0 }
 0x1ad   :  { %v1453_v52 = vsel %vm1451_vm1, %v1452_v25, %v1450_v24  ;;  %v3945_v55 = vpop.eup %3944  ;;  %v4768_v54 = vmul.f32 %v4762_v47, %v4468_v18  ;;  %v4773_v25 = vadd.f32 1e-08, %v1364_v36  ;;  %v4780_v18 = vadd.f32 1e-08, %v1365_v17  ;;  %v1306_v31 = vpop.f32.mrf.mxu1 }
 0x1ae   :  { %v1539_v33 = vadd.f32 1e-08, %v1453_v52  ;;  %v1457_v45 = vsel %vm1456_vm2, %v4667_v42, %v1455_v53  ;;  %v1462_v3 = vmul.f32 %v3945_v55, %v4682_v30  ;;  %v1366_v36 = vadd.f32 %v1346_v57, %v4589_v12 }
 0x1af   :  { %v1460_v9 = vsel %vm1458_vm3, %v1459_v43, %v1457_v45  ;;  %v4782_v26 = vpop.eup %3946  ;;  %v1473_v43 = vand.u32 2147483648, %v4698_v1  ;;  %v1347_v45 = vmul.f32 %v4786_v10, %v4786_v10  ;;  %vm1479_vm9 = vcmp.eq.f32.partialorder %v4731_v63, 0.0 }
 0x1b0   :  { %3960 = vrcp.f32 %v1539_v33  ;;  %v1540_v16 = vadd.f32 1e-08, %v1460_v9  ;;  %v3949_v28 = vpop.eup %3948  ;;  %v4790_v24 = vmul.f32 %v4782_v26, %v4478_v34  ;;  %v1464_v42 = vsel %vm1463_vm4, %v4682_v30, %v1462_v3  ;;  %1781 = vmatprep.mubr.f32.mxu0 %v1366_v36 }
 0x1b1   :  { %3962 = vrsqrt.f32 %v4773_v25  ;;  %v1467_v58 = vsel %vm1465_vm5, %v1466_v21, %v1464_v42  ;;  %v1469_v52 = vmul.f32 %v3949_v28, %v4698_v1  ;;  %v4799_v53 = vpop.eup %3950  ;;  %v4813_v9 = vadd.f32 %v1304_v46, %v1221_v56  ;;  %v1225_v28 = vpop.f32.mrf.mxu0  ;;  %1782 = vmatmul.mubr.f32.gmra.mxu0 %v1365_v17 }
 0x1b2   :  { %3964 = vrsqrt.f32 %v4780_v18  ;;  %v1541_v34 = vadd.f32 1e-08, %v1467_v58  ;;  %v4808_v33 = vmul.f32 %v4799_v53, %v4505_v20  ;;  %v4819_v12 = vadd.f32 1e-08, %v1366_v36  ;;  %v1308_v56 = vpop.f32.mrf.mxu1 }
 0x1b3   :  { %3966 = vrcp.f32 %v1540_v16  ;;  %v4804_v30 = vpop.eup %3952  ;;  %v1471_v55 = vsel %vm1470_vm6, %v4698_v1, %v1469_v52  ;;  %v1367_v20 = vadd.f32 %v1347_v45, %v4593_v38  ;;  %v1348_v1 = vmul.f32 %v4813_v9, %v4813_v9 }
 0x1b4   :  { %v4817_v3 = vmul.f32 %v4804_v30, %v4519_v32  ;;  %3968 = vrcp.f32 %v1541_v34  ;;  %v1474_v16 = vsel %vm1472_vm7, %v1473_v43, %v1471_v55  ;;  %v4824_v21 = vadd.f32 %v1306_v31, %v1223_v39 }
 0x1b5   :  { %v1542_v57 = vadd.f32 1e-08, %v1474_v16  ;;  %v4826_v46 = vpop.eup %3954  ;;  %v4830_v32 = vadd.f32 %v4426_v49, %v4424_v14  ;;  %3970 = vrsqrt.f32 %v4819_v12  ;;  %v4837_v58 = vadd.f32 1e-08, %v1367_v20 }
 0x1b6   :  { %v3957_v42 = vpop.eup %3956  ;;  %v4835_v38 = vmul.f32 %v4826_v46, %v4552_v23  ;;  %v1368_v52 = vadd.f32 %v1348_v1, %v4605_v11  ;;  %v1329_v17 = vmul.f32 %v4420_v60, %v4420_v60  ;;  %v1349_v14 = vmul.f32 %v4824_v21, %v4824_v21 }
 0x1b7   :  { %5660 = vst [vmem:[#allocation20_spill] sm:$0xff] %v4830_v32  ;;  %3972 = vrcp.f32 %v1542_v57  ;;  %v1476_v39 = vmul.f32 %v3957_v42, %v4731_v63  ;;  %v4845_v49 = vadd.f32 %v1308_v56, %v1225_v28  ;;  %v1480_v23 = vand.u32 2147483648, %v4731_v63 }
 0x1b8   :  { %3974 = vrsqrt.f32 %v4837_v58  ;;  %1787 = vmatprep.mubr.f32.mxu0 %v1368_v52  ;;  %v4858_v43 = vadd.f32 1e-08, %v1368_v52  ;;  %v1369_v36 = vadd.f32 %v1349_v14, %v1329_v17  ;;  %v1330_v45 = vmul.f32 %v4830_v32, %v4830_v32 }
 0x1b9   :  { %v4847_v31 = vpop.eup %3958  ;;  %v1478_v34 = vsel %vm1477_vm8, %v4731_v63, %v1476_v39  ;;  %1788 = vmatmul.mubr.f32.gmra.mxu0 %v1367_v20  ;;  %v1350_v57 = vmul.f32 %v4845_v49, %v4845_v49  ;;  %vm1484_vm10 = vcmp.eq.f32.partialorder %v4773_v25, inf  ;;  %vm1486_vm11 = vcmp.eq.f32.partialorder %v4773_v25, 0.0 }
 0x1ba   :  { %v4855_v11 = vmul.f32 %v4847_v31, %v4579_v8  ;;  %v1481_v16 = vsel %vm1479_vm9, %v1480_v23, %v1478_v34  ;;  %3976 = vrsqrt.f32 %v4858_v43  ;;  %v1487_v56 = vand.u32 2147483648, %v4773_v25 }
 0x1bb   :  { %v1543_v28 = vadd.f32 1e-08, %v1481_v16  ;;  %v4875_v42 = vadd.f32 1e-08, %v1369_v36  ;;  %vm1491_vm12 = vcmp.eq.f32.partialorder %v4780_v18, inf  ;;  %v1370_v17 = vadd.f32 %v1350_v57, %v1330_v45 }
 0x1bc   :  { %v1494_v23 = vand.u32 2147483648, %v4780_v18  ;;  %vm1493_vm13 = vcmp.eq.f32.partialorder %v4780_v18, 0.0  ;;  %vm1498_vm14 = vcmp.eq.f32.partialorder %v4819_v12, inf  ;;  %vm1500_vm15 = vcmp.eq.f32.partialorder %v4819_v12, 0.0 }
 0x1bd   :  { %v4860_v55 = vpop.eup %3960  ;;  %3978 = vrcp.f32 %v1543_v28  ;;  %1793 = vmatprep.mubr.f32.mxu0 %v1370_v17  ;;  %v1390_v57 = vadd.f32 1e-08, %v1370_v17  ;;  %vm1505_vm0 = vcmp.eq.f32.partialorder %v4837_v58, inf  ;;  %vm1507_vm1 = vcmp.eq.f32.partialorder %v4837_v58, 0.0 }
 0x1be   :  { %v3963_v1 = vpop.eup %3962  ;;  %v4868_v8 = vmul.f32 %v4860_v55, %v4581_v37  ;;  %3980 = vrsqrt.f32 %v4875_v42  ;;  %1794 = vmatmul.mubr.f32.gmra.mxu0 %v1369_v36  ;;  %v1501_v36 = vand.u32 2147483648, %v4819_v12  ;;  %vm1512_vm2 = vcmp.eq.f32.partialorder %v4858_v43, inf }
 0x1bf   :  { %v3965_v63 = vpop.eup %3964  ;;  %v1483_v20 = vmul.f32 %v3963_v1, %v4773_v25  ;;  %vm1514_vm3 = vcmp.eq.f32.partialorder %v4858_v43, 0.0  ;;  %vm1519_vm4 = vcmp.eq.f32.partialorder %v4875_v42, inf  ;;  %vm1521_vm5 = vcmp.eq.f32.partialorder %v4875_v42, 0.0 }
 0x1c0   :  { %v4877_v52 = vpop.eup %3966  ;;  %v1490_v37 = vmul.f32 %v3965_v63, %v4780_v18  ;;  %vm1526_vm6 = vcmp.eq.f32.partialorder %v1390_v57, inf  ;;  %vm1528_vm7 = vcmp.eq.f32.partialorder %v1390_v57, 0.0 }
 0x1c1   :  { %v4883_v39 = vmul.f32 %v4877_v52, %v4609_v44  ;;  %v1485_v14 = vsel %vm1484_vm10, %v4773_v25, %v1483_v20  ;;  %v4890_v1 = vpop.eup %3968 }
 0x1c2   :  { %v1488_v34 = vsel %vm1486_vm11, %v1487_v56, %v1485_v14  ;;  %v1492_v16 = vsel %vm1491_vm12, %v4780_v18, %v1490_v37  ;;  %v4894_v44 = vmul.f32 %v4890_v1, %v4628_v50  ;;  %v3971_v63 = vpop.eup %3970 }
 0x1c3   :  { %v1544_v28 = vadd.f32 1e-08, %v1488_v34  ;;  %v1495_v45 = vsel %vm1493_vm13, %v1494_v23, %v1492_v16  ;;  %v1497_v56 = vmul.f32 %v3971_v63, %v4819_v12  ;;  %v1508_v34 = vand.u32 2147483648, %v4837_v58 }
 0x1c4   :  { %v1545_v25 = vadd.f32 1e-08, %v1495_v45  ;;  %v4896_v20 = vpop.eup %3972  ;;  %v1515_v63 = vand.u32 2147483648, %v4858_v43 }
 0x1c5   :  { %3982 = vrcp.f32 %v1544_v28  ;;  %v4901_v18 = vmul.f32 %v4896_v20, %v4653_v41  ;;  %v3975_v37 = vpop.eup %3974  ;;  %v1499_v50 = vsel %vm1498_vm14, %v4819_v12, %v1497_v56 }
 0x1c6   :  { %3984 = vrcp.f32 %v1545_v25  ;;  %v1502_v17 = vsel %vm1500_vm15, %v1501_v36, %v1499_v50  ;;  %v1504_v14 = vmul.f32 %v3975_v37, %v4837_v58 }
 0x1c7   :  { %3986 = vrsqrt.f32 %v1390_v57  ;;  %v1546_v23 = vadd.f32 1e-08, %v1502_v17  ;;  %v3977_v41 = vpop.eup %3976 }
 0x1c8   :  { %v1506_v16 = vsel %vm1505_vm0, %v4837_v58, %v1504_v14  ;;  %v1511_v45 = vmul.f32 %v3977_v41, %v4858_v43  ;;  %v1522_v14 = vand.u32 2147483648, %v4875_v42 }
 0x1c9   :  { %3988 = vrcp.f32 %v1546_v23  ;;  %v1509_v28 = vsel %vm1507_vm1, %v1508_v34, %v1506_v16 }
 0x1ca   :  { %v4913_v25 = vpop.eup %3978  ;;  %v1547_v12 = vadd.f32 1e-08, %v1509_v28  ;;  %v1513_v37 = vsel %vm1512_vm2, %v4858_v43, %v1511_v45 }
 0x1cb   :  { %v3981_v56 = vpop.eup %3980  ;;  %v4919_v36 = vmul.f32 %v4913_v25, %v4688_v51  ;;  %v1516_v58 = vsel %vm1514_vm3, %v1515_v63, %v1513_v37 }
 0x1cc   :  { %3990 = vrcp.f32 %v1547_v12  ;;  %v1518_v50 = vmul.f32 %v3981_v56, %v4875_v42  ;;  %v1548_v17 = vadd.f32 1e-08, %v1516_v58 }
 0x1ce   :  { %v1520_v23 = vsel %vm1519_vm4, %v4875_v42, %v1518_v50  ;;  %3992 = vrcp.f32 %v1548_v17  ;;  %v1529_v42 = vand.u32 2147483648, %v1390_v57  ;;  %v3774_v17 = vld [vmem:[#allocation9 + $0x1e0] ss:$16 sps:$4 sm:$0xff]  }
 0x1cf   :  { %v1523_v51 = vsel %vm1521_vm5, %v1522_v14, %v1520_v23  ;;  %v3776_v14 = vld [vmem:[#allocation9 + $0x1e4] ss:$16 sps:$4 sm:$0xff]   ;;  %v3777_v23 = vld [vmem:[#allocation9 + $0x1e8] ss:$16 sps:$4 sm:$0xff]  }
 0x1d0   :  { %v1549_v16 = vadd.f32 1e-08, %v1523_v51  ;;  %v3779_v51 = vld [vmem:[#allocation9 + $0x1ec] ss:$16 sps:$4 sm:$0xff]   ;;  %2504 = vmatprep.subr.bf16.mxu1 %v3776_v14  ;;  %v3794_v14 = vld [vmem:[#allocation9 + $0x184] ss:$16 sps:$4 sm:$0xff]  }
 0x1d1   :  { %2587 = vmatprep.subr.bf16.mxu0 %v3779_v51  ;;  %2505 = vmatpush2.bf16.msra.mxu1 %v3774_v17  ;;  %v3789_v17 = vld [vmem:[#allocation9 + $0x1a8] ss:$16 sps:$4 sm:$0xff]   ;;  %v3797_v51 = vld [vmem:[#allocation9 + $0x18c] ss:$16 sps:$4 sm:$0xff]  }
 0x1d2   :  { %v4928_v34 = vpop.eup %3982  ;;  %3994 = vrcp.f32 %v1549_v16  ;;  %2588 = vmatpush2.bf16.msra.mxu0 %v3777_v23 }
 0x1d3   :  { %v4930_v41 = vpop.eup %3984  ;;  %v4934_v43 = vmul.f32 %v4928_v34, %v4718_v2 }
 0x1d4   :  { %v3987_v28 = vpop.eup %3986  ;;  %v4938_v45 = vmul.f32 %v4930_v41, %v4725_v48 }
 0x1d5   :  { %v1525_v12 = vmul.f32 %v3987_v28, %v1390_v57  ;;  %v3780_v28 = vld [vmem:[#allocation9 + $0x1c0] ss:$16 sps:$4 sm:$0xff]  }
 0x1d6   :  { %v4940_v37 = vpop.eup %3988 }
 0x1d7   :  { %v1527_v63 = vsel %vm1526_vm6, %v1390_v57, %v1525_v12  ;;  %v4944_v2 = vmul.f32 %v4940_v37, %v4747_v5  ;;  %v3782_v12 = vld [vmem:[#allocation9 + $0x1c4] ss:$16 sps:$4 sm:$0xff]  }
 0x1d8   :  { %v1530_v56 = vsel %vm1528_vm7, %v1529_v42, %v1527_v63  ;;  %v3783_v42 = vld [vmem:[#allocation9 + $0x1c8] ss:$16 sps:$4 sm:$0xff]   ;;  %v3785_v63 = vld [vmem:[#allocation9 + $0x1cc] ss:$16 sps:$4 sm:$0xff]   ;;  %2506 = vmatprep.subr.bf16.mxu1 %v3782_v12 }
 0x1d9   :  { %v1550_v58 = vadd.f32 1e-08, %v1530_v56  ;;  %v4946_v50 = vpop.eup %3990  ;;  %v3788_v56 = vld [vmem:[#allocation9 + $0x1a4] ss:$16 sps:$4 sm:$0xff]   ;;  %2589 = vmatprep.subr.bf16.mxu0 %v3785_v63  ;;  %2507 = vmatpush2.bf16.msra.mxu1 %v3780_v28  ;;  %v3795_v12 = vld [vmem:[#allocation9 + $0x188] ss:$16 sps:$4 sm:$0xff]  }
 0x1da   :  { %v4950_v48 = vmul.f32 %v4946_v50, %v4786_v10  ;;  %2590 = vmatpush2.bf16.msra.mxu0 %v3783_v42  ;;  %2508 = vmatprep.subr.bf16.mxu1 %v3788_v56  ;;  %v3800_v63 = vld [vmem:[#allocation9 + $0x164] ss:$16 sps:$4 sm:$0xff]   ;;  %v3803_v28 = vld [vmem:[#allocation9 + $0x16c] ss:$16 sps:$4 sm:$0xff]   ;;  %v3798_v42 = vld [vmem:[#allocation9 + $0x160] ss:$16 sps:$4 sm:$0xff]  }
 0x1db   :  { %3996 = vrcp.f32 %v1550_v58  ;;  %v4952_v57 = vpop.eup %3992  ;;  %v3791_v58 = vld [vmem:[#allocation9 + $0x1ac] ss:$16 sps:$4 sm:$0xff]   ;;  %v3801_v56 = vld [vmem:[#allocation9 + $0x168] ss:$16 sps:$4 sm:$0xff]  }
 0x1dc   :  { %5661 = vst [vmem:[#allocation21_spill] sm:$0xff] %v4950_v48  ;;  %v4956_v16 = vmul.f32 %v4952_v57, %v4813_v9  ;;  %v3786_v9 = vld [vmem:[#allocation9 + $0x1a0] ss:$16 sps:$4 sm:$0xff]   ;;  %2591 = vmatprep.subr.bf16.mxu0 %v3791_v58  ;;  %v3809_v58 = vld [vmem:[#allocation9 + $0x14c] ss:$16 sps:$4 sm:$0xff]  }
 0x1dd   :  { %2509 = vmatpush2.bf16.msra.mxu1 %v3786_v9  ;;  %v3804_v48 = vld [vmem:[#allocation9 + $0x140] ss:$16 sps:$4 sm:$0xff]  }
 0x1de   :  { %5662 = vst [vmem:[#allocation22_spill] sm:$0xff] %v4956_v16  ;;  %v3792_v16 = vld [vmem:[#allocation9 + $0x180] ss:$16 sps:$4 sm:$0xff]   ;;  %2592 = vmatpush2.bf16.msra.mxu0 %v3789_v17  ;;  %2510 = vmatprep.subr.bf16.mxu1 %v3794_v14  ;;  %v3812_v17 = vld [vmem:[#allocation9 + $0x124] ss:$16 sps:$4 sm:$0xff]  }
 0x1df   :  { %v4958_v5 = vpop.eup %3994  ;;  %2593 = vmatprep.subr.bf16.mxu0 %v3797_v51  ;;  %v3810_v9 = vld [vmem:[#allocation9 + $0x120] ss:$16 sps:$4 sm:$0xff]   ;;  %v3813_v14 = vld [vmem:[#allocation9 + $0x128] ss:$16 sps:$4 sm:$0xff]   ;;  %v3815_v51 = vld [vmem:[#allocation9 + $0x12c] ss:$16 sps:$4 sm:$0xff]  }
 0x1e0   :  { %v4962_v10 = vmul.f32 %v4958_v5, %v4824_v21 }
 0x1e1   :  { %2511 = vmatpush2.bf16.msra.mxu1 %v3792_v16  ;;  %v3818_v16 = vld [vmem:[#allocation9 + $0x104] ss:$16 sps:$4 sm:$0xff]  }
 0x1e2   :  { %5663 = vst [vmem:[#allocation23_spill] sm:$0xff] %v4962_v10  ;;  %2594 = vmatpush2.bf16.msra.mxu0 %v3795_v12  ;;  %2512 = vmatprep.subr.bf16.mxu1 %v3800_v63  ;;  %v3806_v10 = vld [vmem:[#allocation9 + $0x144] ss:$16 sps:$4 sm:$0xff]   ;;  %v3821_v12 = vld [vmem:[#allocation9 + $0x10c] ss:$16 sps:$4 sm:$0xff]  }
 0x1e3   :  { %2595 = vmatprep.subr.bf16.mxu0 %v3803_v28  ;;  %v3816_v63 = vld [vmem:[#allocation9 + $0x100] ss:$16 sps:$4 sm:$0xff]   ;;  %v3819_v28 = vld [vmem:[#allocation9 + $0x108] ss:$16 sps:$4 sm:$0xff]  }
 0x1e5   :  { %2513 = vmatpush2.bf16.msra.mxu1 %v3798_v42  ;;  %v4970_v42 = vld [vmem:[#allocation7 + $0xec] ss:$16 sps:$4 sm:$0xff]  }
 0x1e6   :  { %2596 = vmatpush2.bf16.msra.mxu0 %v3801_v56  ;;  %2514 = vmatprep.subr.bf16.mxu1 %v3806_v10  ;;  %v3824_v10 = vld [vmem:[#allocation7 + $0xe4] ss:$16 sps:$4 sm:$0xff]   ;;  %5666 = vst [vmem:[#allocation26_spill] sm:$0xff] %v4970_v42 }
 0x1e7   :  { %2597 = vmatprep.subr.bf16.mxu0 %v3809_v58 }
 0x1e8   :  { %v4964_v23 = vpop.eup %3996 }
 0x1e9   :  { %5664 = vst [vmem:[#allocation24_spill] sm:$0xff] %v4964_v23  ;;  %v4968_v21 = vmul.f32 %v4964_v23, %v4845_v49  ;;  %v3807_v49 = vld [vmem:[#allocation9 + $0x148] ss:$16 sps:$4 sm:$0xff]   ;;  %2515 = vmatpush2.bf16.msra.mxu1 %v3804_v48 }
 0x1ea   :  { %2598 = vmatpush2.bf16.msra.mxu0 %v3807_v49  ;;  %2516 = vmatprep.subr.bf16.mxu1 %v3812_v17 }
 0x1eb   :  { %5665 = vst [vmem:[#allocation25_spill] sm:$0xff] %v4968_v21  ;;  %2599 = vmatprep.subr.bf16.mxu0 %v3815_v51 }
 0x1ed   :  { %2517 = vmatpush2.bf16.msra.mxu1 %v3810_v9 }
 0x1ee   :  { %2600 = vmatpush2.bf16.msra.mxu0 %v3813_v14  ;;  %2518 = vmatprep.subr.bf16.mxu1 %v3818_v16 }
 0x1ef   :  { %2601 = vmatprep.subr.bf16.mxu0 %v3821_v12 }
 0x1f1   :  { %2519 = vmatpush2.bf16.msra.mxu1 %v3816_v63 }
 0x1f2   :  { %2602 = vmatpush2.bf16.msra.mxu0 %v3819_v28  ;;  %2974 = vmatprep.subr.bf16.mxu1 %v3824_v10 }
 0x1f3   :  { %3057 = vmatprep.subr.bf16.mxu0 %v4970_v42 }
 0x248   :  { %v1741_v48 = vpop.f32.mrf.mxu0 }
 0x249   :  { %v1742_v56 = vadd.f32 1e-08, %v1741_v48 }
 0x24a   :  { %v1743_v58 = vpop.f32.mrf.mxu0 }
 0x24b   :  { %v1800_v49 = vmax.f32 %v1742_v56, 0.0  ;;  %v1744_v9 = vadd.f32 1e-08, %v1743_v58 }
 0x24c   :  { %v1747_v51 = vpop.f32.mrf.mxu0 }
 0x24d   :  { %v4973_v17 = vadd.f32 1e-08, %v1800_v49  ;;  %v1801_v14 = vmax.f32 %v1744_v9, 0.0  ;;  %v1748_v12 = vadd.f32 1e-08, %v1747_v51 }
 0x24e   :  { %v1749_v63 = vpop.f32.mrf.mxu0 }
 0x24f   :  { %3998 = vrsqrt.f32 %v4973_v17  ;;  %v4976_v16 = vadd.f32 1e-08, %v1801_v14  ;;  %v1802_v28 = vmax.f32 %v1748_v12, 0.0  ;;  %v1750_v10 = vadd.f32 1e-08, %v1749_v63 }
 0x250   :  { %v1753_v42 = vpop.f32.mrf.mxu0  ;;  %v4989_v12 = vmul.f32 %v4742_v22, %v4430_v15  ;;  %v5008_v15 = vmul.f32 %v4804_v30, %v4456_v62  ;;  %v5016_v22 = vmul.f32 %v4799_v53, %v4452_v61  ;;  %vm1842_vm8 = vcmp.eq.f32.partialorder %v4973_v17, inf }
 0x251   :  { %4000 = vrsqrt.f32 %v4976_v16  ;;  %v4979_v21 = vadd.f32 1e-08, %v1802_v28  ;;  %v1803_v48 = vmax.f32 %v1750_v10, 0.0  ;;  %v1754_v56 = vadd.f32 1e-08, %v1753_v42 }
 0x252   :  { %v1755_v58 = vpop.f32.mrf.mxu0  ;;  %v4993_v42 = vmul.f32 %v4782_v26, %v4448_v59  ;;  %v5000_v10 = vmul.f32 %v4720_v40, %v4422_v13  ;;  %v5012_v59 = vmul.f32 %v4847_v31, %v4464_v0  ;;  %vm1844_vm9 = vcmp.eq.f32.partialorder %v4973_v17, 0.0 }
 0x253   :  { %4002 = vrsqrt.f32 %v4979_v21  ;;  %v4982_v49 = vadd.f32 1e-08, %v1803_v48  ;;  %v1804_v9 = vmax.f32 %v1754_v56, 0.0  ;;  %v1756_v23 = vadd.f32 1e-08, %v1755_v58 }
 0x254   :  { %v5027_v62 = vmul.f32 %v4860_v55, %v4472_v19  ;;  %v5031_v61 = vmul.f32 %v4890_v1, %v4513_v27  ;;  %vm1849_vm10 = vcmp.eq.f32.partialorder %v4976_v16, inf  ;;  %vm1851_vm11 = vcmp.eq.f32.partialorder %v4976_v16, 0.0 }
 0x255   :  { %4004 = vrsqrt.f32 %v4982_v49  ;;  %v4985_v14 = vadd.f32 1e-08, %v1804_v9  ;;  %v1805_v51 = vmax.f32 %v1756_v23, 0.0  ;;  %v5004_v23 = vmul.f32 %v4762_v47, %v4440_v29 }
 0x256   :  { %v1759_v32 = vpop.f32.mrf.mxu0  ;;  %v5021_v29 = vmul.f32 %v4826_v46, %v4460_v4  ;;  %v1852_v31 = vand.u32 2147483648, %v4976_v16  ;;  %v1845_v19 = vand.u32 2147483648, %v4973_v17  ;;  %vm1856_vm12 = vcmp.eq.f32.partialorder %v4979_v21, inf }
 0x257   :  { %4006 = vrsqrt.f32 %v4985_v14  ;;  %v4996_v63 = vadd.f32 1e-08, %v1805_v51  ;;  %v1760_v28 = vadd.f32 1e-08, %v1759_v32  ;;  %vm1858_vm13 = vcmp.eq.f32.partialorder %v4979_v21, 0.0 }
 0x258   :  { %v1761_v48 = vpop.f32.mrf.mxu0  ;;  %v1859_v58 = vand.u32 2147483648, %v4979_v21  ;;  %vm1863_vm14 = vcmp.eq.f32.partialorder %v4982_v49, inf  ;;  %vm1865_vm15 = vcmp.eq.f32.partialorder %v4982_v49, 0.0  ;;  %vm1870_vm0 = vcmp.eq.f32.partialorder %v4985_v14, inf }
 0x259   :  { %4008 = vrsqrt.f32 %v4996_v63  ;;  %v1806_v13 = vmax.f32 %v1760_v28, 0.0  ;;  %v1762_v40 = vadd.f32 1e-08, %v1761_v48  ;;  %vm1872_vm1 = vcmp.eq.f32.partialorder %v4985_v14, 0.0 }
 0x25a   :  { %v1765_v26 = vpop.f32.mrf.mxu0  ;;  %vm1877_vm2 = vcmp.eq.f32.partialorder %v4996_v63, inf  ;;  %vm1879_vm3 = vcmp.eq.f32.partialorder %v4996_v63, 0.0 }
 0x25b   :  { %v5034_v53 = vadd.f32 1e-08, %v1806_v13  ;;  %v1807_v4 = vmax.f32 %v1762_v40, 0.0  ;;  %v1766_v30 = vadd.f32 1e-08, %v1765_v26  ;;  %v1866_v40 = vand.u32 2147483648, %v4982_v49 }
 0x25c   :  { %v3999_v47 = vpop.eup %3998  ;;  %v1767_v32 = vpop.f32.mrf.mxu0 }
 0x25d   :  { %v1841_v0 = vmul.f32 %v3999_v47, %v4973_v17  ;;  %4010 = vrsqrt.f32 %v5034_v53  ;;  %v5041_v27 = vadd.f32 1e-08, %v1807_v4  ;;  %v1808_v55 = vmax.f32 %v1766_v30, 0.0 }
 0x25e   :  { %v4001_v46 = vpop.eup %4000  ;;  %v1768_v1 = vadd.f32 1e-08, %v1767_v32  ;;  %v1873_v32 = vand.u32 2147483648, %v4985_v14  ;;  %vm1884_vm4 = vcmp.eq.f32.partialorder %v5034_v53, inf  ;;  %vm1886_vm7 = vcmp.eq.f32.partialorder %v5034_v53, 0.0 }
 0x25f   :  { %v1848_v56 = vmul.f32 %v4001_v46, %v4976_v16  ;;  %4012 = vrsqrt.f32 %v5041_v27  ;;  %v5048_v9 = vadd.f32 1e-08, %v1808_v55  ;;  %v1843_v28 = vsel %vm1842_vm8, %v4973_v17, %v1841_v0 }
 0x260   :  { %v1809_v51 = vmax.f32 %v1768_v1, 0.0  ;;  %v4003_v48 = vpop.eup %4002  ;;  %v5066_v46 = vsel %vm1844_vm9, %v1845_v19, %v1843_v28  ;;  %vm1891_vm5 = vcmp.eq.f32.partialorder %v5041_v27, inf  ;;  %vm1893_vm6 = vcmp.eq.f32.partialorder %v5041_v27, 0.0 }
 0x261   :  { %v1850_v13 = vsel %vm1849_vm10, %v4976_v16, %v1848_v56  ;;  %v1855_v47 = vmul.f32 %v4003_v48, %v4979_v21  ;;  %4014 = vrsqrt.f32 %v5048_v9  ;;  %vm1898_vm10 = vcmp.eq.f32.partialorder %v5048_v9, inf }
 0x262   :  { %v5061_v26 = vadd.f32 1e-08, %v1809_v51  ;;  %v1771_v4 = vpop.f32.mrf.mxu0  ;;  %v4005_v0 = vpop.eup %4004  ;;  %v1853_v1 = vsel %vm1851_vm11, %v1852_v31, %v1850_v13  ;;  %v2074_v31 = vmul.f32 %v5066_v46, %v4729_v7  ;;  %vm1900_vm11 = vcmp.eq.f32.partialorder %v5048_v9, 0.0 }
 0x263   :  { %v1772_v30 = vadd.f32 1e-08, %v1771_v4  ;;  %v1862_v56 = vmul.f32 %v4005_v0, %v4982_v49  ;;  %v1857_v51 = vsel %vm1856_vm12, %v4979_v21, %v1855_v47 }
 0x264   :  { %4016 = vrsqrt.f32 %v5061_v26  ;;  %v1773_v55 = vpop.f32.mrf.mxu0  ;;  %v4007_v48 = vpop.eup %4006  ;;  %v5079_v28 = vsel %vm1858_vm13, %v1859_v58, %v1857_v51  ;;  %vm1905_vm8 = vcmp.eq.f32.partialorder %v5061_v26, inf  ;;  %vm1907_vm9 = vcmp.eq.f32.partialorder %v5061_v26, 0.0 }
 0x265   :  { %v1810_v17 = vmax.f32 %v1772_v30, 0.0  ;;  %v1774_v19 = vadd.f32 1e-08, %v1773_v55  ;;  %v1864_v16 = vsel %vm1863_vm14, %v4982_v49, %v1862_v56  ;;  %v2076_v13 = vmul.f32 %v5079_v28, %v4768_v54 }
 0x266   :  { %v1869_v47 = vmul.f32 %v4007_v48, %v4985_v14  ;;  %v4009_v4 = vpop.eup %4008  ;;  %v1867_v58 = vsel %vm1865_vm15, %v1866_v40, %v1864_v16  ;;  %v2075_v30 = vmul.f32 %v1853_v1, %v4751_v35  ;;  %v3822_v48 = vld [vmem:[#allocation7 + $0xe0] ss:$16 sps:$4 sm:$0xff]   ;;  %v5106_v40 = vld [vmem:[#allocation7 + $0xe8] ss:$16 sps:$4 sm:$0xff]  }
 0x267   :  { %v5090_v0 = vadd.f32 1e-08, %v1810_v17  ;;  %v1811_v21 = vmax.f32 %v1774_v19, 0.0  ;;  %v2077_v55 = vmul.f32 %v1867_v58, %v4790_v24  ;;  %v2094_v56 = vpack.c.bf16 %v2076_v13, %v2074_v31  ;;  %v3830_v24 = vld [vmem:[#allocation7 + $0xc4] ss:$16 sps:$4 sm:$0xff]  }
 0x268   :  { %v1876_v51 = vmul.f32 %v4009_v4, %v4996_v63  ;;  %v1871_v7 = vsel %vm1870_vm0, %v4985_v14, %v1869_v47  ;;  %v1880_v19 = vand.u32 2147483648, %v4996_v63  ;;  %v5114_v31 = vld [vmem:[#allocation7 + $0xcc] ss:$16 sps:$4 sm:$0xff]   ;;  %v1894_v14 = vand.u32 2147483648, %v5041_v27 }
 0x269   :  { %4018 = vrsqrt.f32 %v5090_v0  ;;  %v5101_v54 = vadd.f32 1e-08, %v1811_v21  ;;  %v1874_v49 = vsel %vm1872_vm1, %v1873_v32, %v1871_v7  ;;  %v2095_v35 = vpack.c.bf16 %v2077_v55, %v2075_v30  ;;  %v5129_v7 = vld [vmem:[#allocation7 + $0xc8] ss:$16 sps:$4 sm:$0xff]  }
 0x26a   :  { %v1878_v17 = vsel %vm1877_vm2, %v4996_v63, %v1876_v51  ;;  %v4011_v16 = vpop.eup %4010  ;;  %v1887_v13 = vand.u32 2147483648, %v5034_v53  ;;  %v2078_v47 = vmul.f32 %v1874_v49, %v4808_v33  ;;  %v1981_v30 = vmul.f32 %v1853_v1, %v4989_v12  ;;  %v3828_v51 = vld [vmem:[#allocation7 + $0xc0] ss:$16 sps:$4 sm:$0xff]  }
 0x26b   :  { %4020 = vrsqrt.f32 %v5101_v54  ;;  %2520 = vmatprep.mubr.bf16.mxu1 %v2095_v35  ;;  %2603 = vmatprep.mubr.bf16.mxu0 %v2095_v35  ;;  %v1883_v32 = vmul.f32 %v4011_v16, %v5034_v53  ;;  %v1881_v21 = vsel %vm1879_vm3, %v1880_v19, %v1878_v17  ;;  %v1983_v55 = vmul.f32 %v1867_v58, %v4993_v42  ;;  %v1777_v1 = vpop.f32.mrf.mxu0  ;;  %v3836_v42 = vld [vmem:[#allocation7 + $0xa4] ss:$16 sps:$4 sm:$0xff]   ;;  %v5139_v58 = vld [vmem:[#allocation7 + $0xac] ss:$16 sps:$4 sm:$0xff]  }
 0x26c   :  { %v4013_v4 = vpop.eup %4012  ;;  %2521 = vmatmul.mubr.bf16.vlgmr.msra.gmra.mxu1 %v2094_v56  ;;  %2604 = vmatmul.mubr.bf16.vlgmr.msra.gmra.mxu0 %v2094_v56  ;;  %v1908_v63 = vand.u32 2147483648, %v5061_v26  ;;  %v1980_v35 = vmul.f32 %v5066_v46, %v5000_v10  ;;  %v1982_v10 = vmul.f32 %v5079_v28, %v5004_v23  ;;  %v1778_v46 = vadd.f32 1e-08, %v1777_v1 }
 0x26d   :  { %2975 = vmatpush1.bf16.msra.mxu1 %v3822_v48  ;;  %3058 = vmatpush1.bf16.msra.mxu0 %v5106_v40  ;;  %v1890_v33 = vmul.f32 %v4013_v4, %v5041_v27  ;;  %v1885_v56 = vsel %vm1884_vm4, %v5034_v53, %v1883_v32  ;;  %v5145_v17 = vpack.c.bf16 %v1983_v55, %v1981_v30  ;;  %v1779_v32 = vpop.f32.mrf.mxu0  ;;  %vm1919_vm12 = vcmp.eq.f32.partialorder %v5101_v54, inf }
 0x26e   :  { %v4015_v12 = vpop.eup %4014  ;;  %2976 = vmatprep.subr.bf16.mxu1 %v3830_v24  ;;  %3059 = vmatprep.subr.bf16.mxu0 %v5114_v31  ;;  %v1888_v48 = vsel %vm1886_vm7, %v1887_v13, %v1885_v56  ;;  %v2079_v4 = vmul.f32 %v1881_v21, %v4817_v3  ;;  %v5157_v30 = vpack.c.bf16 %v1982_v10, %v1980_v35  ;;  %v1812_v28 = vmax.f32 %v1778_v46, 0.0  ;;  %v3834_v56 = vld [vmem:[#allocation7 + $0xa0] ss:$16 sps:$4 sm:$0xff]   ;;  %v5169_v35 = vld [vmem:[#allocation7 + $0xa8] ss:$16 sps:$4 sm:$0xff]  }
 0x26f   :  { %v1892_v24 = vsel %vm1891_vm5, %v5041_v27, %v1890_v33  ;;  %v2080_v19 = vmul.f32 %v1888_v48, %v4835_v38  ;;  %v1897_v16 = vmul.f32 %v4015_v12, %v5048_v9  ;;  %v1984_v23 = vmul.f32 %v1874_v49, %v5016_v22  ;;  %v5174_v12 = vld [vmem:[#allocation7 + $0x8c] ss:$16 sps:$4 sm:$0xff]  }
 0x270   :  { %v1895_v13 = vsel %vm1893_vm6, %v1894_v14, %v1892_v24  ;;  %v1780_v55 = vadd.f32 1e-08, %v1779_v32  ;;  %v1985_v3 = vmul.f32 %v1881_v21, %v5008_v15  ;;  %v5167_v49 = vadd.f32 1e-08, %v1812_v28  ;;  %v5194_v32 = vld [vmem:[#allocation7 + $0x88] ss:$16 sps:$4 sm:$0xff]  }
 0x271   :  { %v4017_v53 = vpop.eup %4016  ;;  %2977 = vmatpush1.bf16.msra.mxu1 %v3828_v51  ;;  %3060 = vmatpush1.bf16.msra.mxu0 %v5129_v7  ;;  %v2081_v38 = vmul.f32 %v1895_v13, %v4855_v11  ;;  %v2096_v33 = vpack.c.bf16 %v2080_v19, %v2078_v47  ;;  %v1987_v22 = vmul.f32 %v1895_v13, %v5012_v59  ;;  %v3842_v47 = vld [vmem:[#allocation7 + $0x84] ss:$16 sps:$4 sm:$0xff]   ;;  %v1901_v15 = vand.u32 2147483648, %v5048_v9  ;;  %v1783_v46 = vpop.f32.mrf.mxu0  ;;  %v3840_v19 = vld [vmem:[#allocation7 + $0x80] ss:$16 sps:$4 sm:$0xff]  }
 0x272   :  { %2978 = vmatprep.subr.bf16.mxu1 %v3836_v42  ;;  %3061 = vmatprep.subr.bf16.mxu0 %v5139_v58  ;;  %v1904_v27 = vmul.f32 %v4017_v53, %v5061_v26  ;;  %v1813_v14 = vmax.f32 %v1780_v55, 0.0  ;;  %v1899_v11 = vsel %vm1898_vm10, %v5048_v9, %v1897_v16  ;;  %v1986_v21 = vmul.f32 %v1888_v48, %v5021_v29  ;;  %v3848_v9 = vld [vmem:[#allocation7 + $0x64] ss:$16 sps:$4 sm:$0xff]  }
 0x273   :  { %v2097_v51 = vpack.c.bf16 %v2081_v38, %v2079_v4  ;;  %v5180_v59 = vpack.c.bf16 %v1987_v22, %v1985_v3  ;;  %4022 = vrsqrt.f32 %v5167_v49  ;;  %vm1921_vm13 = vcmp.eq.f32.partialorder %v5101_v54, 0.0  ;;  %v1785_v53 = vpop.f32.mrf.mxu0 }
 0x274   :  { %v1906_v1 = vsel %vm1905_vm8, %v5061_v26, %v1904_v27  ;;  %v5184_v10 = vadd.f32 1e-08, %v1813_v14  ;;  %v1784_v24 = vadd.f32 1e-08, %v1783_v46  ;;  %v1902_v16 = vsel %vm1900_vm11, %v1901_v15, %v1899_v11  ;;  %v5223_v15 = vld [vmem:[#allocation7 + $0x68] ss:$16 sps:$4 sm:$0xff]  }
 0x275   :  { %2530 = vmatprep.mubr.bf16.mxu1 %v2097_v51  ;;  %2613 = vmatprep.mubr.bf16.mxu0 %v2097_v51  ;;  %vm1912_vm14 = vcmp.eq.f32.partialorder %v5090_v0, inf  ;;  %v1909_v13 = vsel %vm1907_vm9, %v1908_v63, %v1906_v1  ;;  %vm1914_vm15 = vcmp.eq.f32.partialorder %v5090_v0, 0.0  ;;  %v1915_v4 = vand.u32 2147483648, %v5090_v0 }
 0x276   :  { %v4019_v42 = vpop.eup %4018  ;;  %2531 = vmatmul.mubr.bf16.gmra.mxu1 %v2096_v33  ;;  %2614 = vmatmul.mubr.bf16.gmra.mxu0 %v2096_v33  ;;  %4024 = vrsqrt.f32 %v5184_v10  ;;  %v1814_v28 = vmax.f32 %v1784_v24, 0.0  ;;  %v1786_v55 = vadd.f32 1e-08, %v1785_v53  ;;  %v5204_v33 = vld [vmem:[#allocation7 + $0x6c] ss:$16 sps:$4 sm:$0xff]   ;;  %v1922_v26 = vand.u32 2147483648, %v5101_v54 }
 0x277   :  { %v1911_v29 = vmul.f32 %v4019_v42, %v5090_v0  ;;  %2979 = vmatpush1.bf16.msra.mxu1 %v3834_v56  ;;  %3062 = vmatpush1.bf16.msra.mxu0 %v5169_v35  ;;  %v2082_v27 = vmul.f32 %v1902_v16, %v4868_v8  ;;  %v5211_v3 = vpack.c.bf16 %v1986_v21, %v1984_v23  ;;  %v3846_v23 = vld [vmem:[#allocation7 + $0x60] ss:$16 sps:$4 sm:$0xff]   ;;  %v5234_v53 = vld [vmem:[#allocation7 + $0x4c] ss:$16 sps:$4 sm:$0xff]   ;;  %vm1926_vm0 = vcmp.eq.f32.partialorder %v5167_v49, inf }
 0x278   :  { %v4021_v48 = vpop.eup %4020  ;;  %2980 = vmatprep.subr.bf16.mxu1 %v3842_v47  ;;  %3063 = vmatprep.subr.bf16.mxu0 %v5174_v12  ;;  %v5213_v22 = vadd.f32 1e-08, %v1814_v28  ;;  %v1815_v14 = vmax.f32 %v1786_v55, 0.0  ;;  %v2083_v8 = vmul.f32 %v1909_v13, %v4883_v39  ;;  %v1580_v39 = vmul.f32 %v4877_v52, %v4488_v6  ;;  %v3860_v6 = vld [vmem:[#allocation7 + $0x24] ss:$16 sps:$4 sm:$0xff]  }
 0x279   :  { %v1918_v38 = vmul.f32 %v4021_v48, %v5101_v54  ;;  %v1913_v56 = vsel %vm1912_vm14, %v5090_v0, %v1911_v29  ;;  %v1789_v51 = vpop.f32.mrf.mxu0  ;;  %v3854_v48 = vld [vmem:[#allocation7 + $0x44] ss:$16 sps:$4 sm:$0xff]   ;;  %v5244_v52 = vld [vmem:[#allocation7 + $0x2c] ss:$16 sps:$4 sm:$0xff]   ;;  %vm1933_vm1 = vcmp.eq.f32.partialorder %v5184_v10, inf  ;;  %vm1928_vm2 = vcmp.eq.f32.partialorder %v5167_v49, 0.0 }
 0x27a   :  { %v1916_v63 = vsel %vm1914_vm15, %v1915_v4, %v1913_v56  ;;  %v1790_v1 = vadd.f32 1e-08, %v1789_v51  ;;  %4026 = vrsqrt.f32 %v5213_v22  ;;  %v5227_v42 = vadd.f32 1e-08, %v1815_v14  ;;  %v5667_v4 = vld [vmem:[#allocation13_spill] sm:$0xff] }
 0x27b   :  { %v1920_v11 = vsel %vm1919_vm12, %v5101_v54, %v1918_v38  ;;  %v2084_v47 = vmul.f32 %v1916_v63, %v4894_v44  ;;  %2981 = vmatpush1.bf16.msra.mxu1 %v3840_v19  ;;  %3064 = vmatpush1.bf16.msra.mxu0 %v5194_v32  ;;  %v1990_v21 = vmul.f32 %v1916_v63, %v5031_v61  ;;  %v1791_v46 = vpop.f32.mrf.mxu0  ;;  %v3852_v61 = vld [vmem:[#allocation7 + $0x40] ss:$16 sps:$4 sm:$0xff]   ;;  %v5242_v38 = vld [vmem:[#allocation7 + $0x48] ss:$16 sps:$4 sm:$0xff]   ;;  %vm1935_vm3 = vcmp.eq.f32.partialorder %v5184_v10, 0.0 }
 0x27c   :  { %v1923_v0 = vsel %vm1921_vm13, %v1922_v26, %v1920_v11  ;;  %2982 = vmatprep.subr.bf16.mxu1 %v3848_v9  ;;  %3065 = vmatprep.subr.bf16.mxu0 %v5204_v33  ;;  %v1816_v54 = vmax.f32 %v1790_v1, 0.0  ;;  %v1792_v19 = vadd.f32 1e-08, %v1791_v46  ;;  %4028 = vrsqrt.f32 %v5227_v42  ;;  %v3858_v51 = vld [vmem:[#allocation7 + $0x20] ss:$16 sps:$4 sm:$0xff]  }
 0x27d   :  { %v2085_v44 = vmul.f32 %v1923_v0, %v4901_v18  ;;  %v2098_v24 = vpack.c.bf16 %v2084_v47, %v2082_v27  ;;  %v1582_v28 = vmul.f32 %v4896_v20, %v5667_v4  ;;  %v1988_v18 = vmul.f32 %v1902_v16, %v5027_v62  ;;  %v5256_v11 = vld [vmem:[#allocation7 + $0x28] ss:$16 sps:$4 sm:$0xff]   ;;  %v3866_v1 = vld [vmem:[#allocation7 + $0x4] ss:$16 sps:$4 sm:$0xff]  }
 0x27e   :  { %v5239_v9 = vadd.f32 1e-08, %v1816_v54  ;;  %v1817_v55 = vmax.f32 %v1792_v19, 0.0  ;;  %v1989_v56 = vmul.f32 %v1909_v13, %v1580_v39  ;;  %v1795_v62 = vpop.f32.mrf.mxu0  ;;  %v3864_v54 = vld [vmem:[#allocation7] ss:$16 sps:$4 sm:$0xff]   ;;  %v5669_v4 = vld [vmem:[#allocation14_spill] sm:$0xff] }
 0x27f   :  { %v2099_v29 = vpack.c.bf16 %v2085_v44, %v2083_v8  ;;  %2983 = vmatpush1.bf16.msra.mxu1 %v3846_v23  ;;  %3066 = vmatpush1.bf16.msra.mxu0 %v5223_v15  ;;  %v1991_v26 = vmul.f32 %v1923_v0, %v1582_v28  ;;  %v5246_v63 = vpack.c.bf16 %v1990_v21, %v1988_v18  ;;  %v1796_v27 = vadd.f32 1e-08, %v1795_v62  ;;  %v5260_v21 = vld [vmem:[#allocation7 + $0xc] ss:$16 sps:$4 sm:$0xff]   ;;  %v5269_v39 = vld [vmem:[#allocation7 + $0x8] ss:$16 sps:$4 sm:$0xff]  }
 0x280   :  { %4030 = vrsqrt.f32 %v5239_v9  ;;  %v5249_v20 = vadd.f32 1e-08, %v1817_v55  ;;  %v4023_v16 = vpop.eup %4022  ;;  %2984 = vmatprep.subr.bf16.mxu1 %v3854_v48  ;;  %3067 = vmatprep.subr.bf16.mxu0 %v5234_v53  ;;  %v1797_v13 = vpop.f32.mrf.mxu0  ;;  %v1583_v28 = vmul.f32 %v4913_v25, %v5669_v4  ;;  %v1936_v62 = vand.u32 2147483648, %v5184_v10 }
 0x281   :  { %2540 = vmatprep.mubr.bf16.mxu1 %v2099_v29  ;;  %2623 = vmatprep.mubr.bf16.mxu0 %v2099_v29  ;;  %v5252_v14 = vpack.c.bf16 %v1991_v26, %v1989_v56  ;;  %v1925_v47 = vmul.f32 %v4023_v16, %v5167_v49  ;;  %v1818_v8 = vmax.f32 %v1796_v27, 0.0  ;;  %v1798_v23 = vadd.f32 1e-08, %v1797_v13  ;;  %v3872_v29 = vld [vmem:[#allocation7 + $0x1e4] ss:$16 sps:$4 sm:$0xff]   ;;  %v5671_v16 = vld [vmem:[#allocation16_spill] sm:$0xff] }
 0x282   :  { %2541 = vmatmul.mubr.bf16.gmra.mxu1 %v2098_v24  ;;  %2624 = vmatmul.mubr.bf16.gmra.mxu0 %v2098_v24  ;;  %4032 = vrsqrt.f32 %v5249_v20  ;;  %v5281_v56 = vld [vmem:[#allocation7 + $0x1ec] ss:$16 sps:$4 sm:$0xff]   ;;  %v1585_v27 = vmul.f32 %v4930_v41, %v5671_v16  ;;  %vm1940_vm4 = vcmp.eq.f32.partialorder %v5213_v22, inf  ;;  %vm1942_vm5 = vcmp.eq.f32.partialorder %v5213_v22, 0.0  ;;  %v5296_v41 = vld [vmem:[#allocation7 + $0x1e8] ss:$16 sps:$4 sm:$0xff]  }
 0x283   :  { %2985 = vmatpush1.bf16.msra.mxu1 %v3852_v61  ;;  %3068 = vmatpush1.bf16.msra.mxu0 %v5242_v38  ;;  %v4025_v0 = vpop.eup %4024  ;;  %v5263_v44 = vadd.f32 1e-08, %v1818_v8  ;;  %v1819_v24 = vmax.f32 %v1798_v23, 0.0  ;;  %v1927_v19 = vsel %vm1926_vm0, %v5167_v49, %v1925_v47  ;;  %v5668_v61 = vld [vmem:[#allocation15_spill] sm:$0xff]  ;;  %vm1947_vm6 = vcmp.eq.f32.partialorder %v5227_v42, inf }
 0x284   :  { %2986 = vmatprep.subr.bf16.mxu1 %v3860_v6  ;;  %3069 = vmatprep.subr.bf16.mxu0 %v5244_v52  ;;  %v1932_v46 = vmul.f32 %v4025_v0, %v5184_v10  ;;  %v1584_v48 = vmul.f32 %v4928_v34, %v5668_v61  ;;  %v1929_v6 = vand.u32 2147483648, %v5167_v49  ;;  %v5670_v34 = vld [vmem:[#allocation17_spill] sm:$0xff]  ;;  %v1943_v49 = vand.u32 2147483648, %v5213_v22  ;;  %v5303_v23 = vld [vmem:[#allocation7 + $0x1cc] ss:$16 sps:$4 sm:$0xff]  }
 0x285   :  { %4034 = vrsqrt.f32 %v5263_v44  ;;  %v5276_v18 = vadd.f32 1e-08, %v1819_v24  ;;  %v1586_v25 = vmul.f32 %v4940_v37, %v5670_v34  ;;  %v3870_v47 = vld [vmem:[#allocation7 + $0x1e0] ss:$16 sps:$4 sm:$0xff]   ;;  %vm1949_vm7 = vcmp.eq.f32.partialorder %v5227_v42, 0.0 }
 0x286   :  { %v1934_v55 = vsel %vm1933_vm1, %v5184_v10, %v1932_v46  ;;  %v1930_v13 = vsel %vm1928_vm2, %v1929_v6, %v1927_v19  ;;  %v3878_v8 = vld [vmem:[#allocation7 + $0x1c4] ss:$16 sps:$4 sm:$0xff]   ;;  %v1950_v46 = vand.u32 2147483648, %v5227_v42  ;;  %v5312_v34 = vld [vmem:[#allocation7 + $0x1c8] ss:$16 sps:$4 sm:$0xff]   ;;  %vm1954_vm8 = vcmp.eq.f32.partialorder %v5239_v9, inf }
 0x287   :  { %2987 = vmatpush1.bf16.msra.mxu1 %v3858_v51  ;;  %3070 = vmatpush1.bf16.msra.mxu0 %v5256_v11  ;;  %v4027_v26 = vpop.eup %4026  ;;  %4036 = vrsqrt.f32 %v5276_v18  ;;  %v1937_v0 = vsel %vm1935_vm3, %v1936_v62, %v1934_v55  ;;  %v1992_v19 = vmul.f32 %v1930_v13, %v1583_v28  ;;  %v3876_v62 = vld [vmem:[#allocation7 + $0x1c0] ss:$16 sps:$4 sm:$0xff]   ;;  %vm1961_vm9 = vcmp.eq.f32.partialorder %v5249_v20, inf }
 0x288   :  { %2988 = vmatprep.subr.bf16.mxu1 %v3866_v1  ;;  %3071 = vmatprep.subr.bf16.mxu0 %v5260_v21  ;;  %v1939_v51 = vmul.f32 %v4027_v26, %v5213_v22  ;;  %v2087_v55 = vmul.f32 %v1937_v0, %v4934_v43  ;;  %v1993_v16 = vmul.f32 %v1937_v0, %v1584_v48  ;;  %v5326_v0 = vld [vmem:[#allocation7 + $0x1a8] ss:$16 sps:$4 sm:$0xff]   ;;  %vm1956_vm10 = vcmp.eq.f32.partialorder %v5239_v9, 0.0 }
 0x289   :  { %v4029_v1 = vpop.eup %4028  ;;  %vm1963_vm11 = vcmp.eq.f32.partialorder %v5249_v20, 0.0  ;;  %vm1968_vm12 = vcmp.eq.f32.partialorder %v5263_v44, inf  ;;  %vm1970_vm13 = vcmp.eq.f32.partialorder %v5263_v44, 0.0  ;;  %vm1975_vm14 = vcmp.eq.f32.partialorder %v5276_v18, inf }
 0x28a   :  { %v1946_v37 = vmul.f32 %v4029_v1, %v5227_v42  ;;  %v1941_v10 = vsel %vm1940_vm4, %v5213_v22, %v1939_v51  ;;  %v3884_v51 = vld [vmem:[#allocation7 + $0x1a4] ss:$16 sps:$4 sm:$0xff]   ;;  %vm1977_vm15 = vcmp.eq.f32.partialorder %v5276_v18, 0.0 }
 0x28b   :  { %2989 = vmatpush1.bf16.msra.mxu1 %v3864_v54  ;;  %3072 = vmatpush1.bf16.msra.mxu0 %v5269_v39  ;;  %v1944_v24 = vsel %vm1942_vm5, %v1943_v49, %v1941_v10  ;;  %v2086_v54 = vmul.f32 %v1930_v13, %v4919_v36  ;;  %v3890_v49 = vld [vmem:[#allocation7 + $0x184] ss:$16 sps:$4 sm:$0xff]   ;;  %v5672_v10 = vld [vmem:[#allocation18_spill] sm:$0xff] }
 0x28c   :  { %2990 = vmatprep.subr.bf16.mxu1 %v3872_v29  ;;  %3073 = vmatprep.subr.bf16.mxu0 %v5281_v56  ;;  %v1948_v4 = vsel %vm1947_vm6, %v5227_v42, %v1946_v37  ;;  %v2088_v6 = vmul.f32 %v1944_v24, %v4938_v45  ;;  %v1994_v22 = vmul.f32 %v1944_v24, %v1585_v27  ;;  %v5330_v37 = vld [vmem:[#allocation7 + $0x18c] ss:$16 sps:$4 sm:$0xff]  }
 0x28d   :  { %v4031_v61 = vpop.eup %4030  ;;  %v1951_v29 = vsel %vm1949_vm7, %v1950_v46, %v1948_v4  ;;  %v1964_v4 = vand.u32 2147483648, %v5249_v20 }
 0x28e   :  { %v1953_v26 = vmul.f32 %v4031_v61, %v5239_v9  ;;  %v2089_v28 = vmul.f32 %v1951_v29, %v4944_v2  ;;  %v2100_v13 = vpack.c.bf16 %v2088_v6, %v2086_v54  ;;  %v1995_v43 = vmul.f32 %v1951_v29, %v1586_v25  ;;  %v3882_v2 = vld [vmem:[#allocation7 + $0x1a0] ss:$16 sps:$4 sm:$0xff]   ;;  %v5675_v29 = vld [vmem:[#allocation24_spill] sm:$0xff] }
 0x28f   :  { %2991 = vmatpush2.bf16.msra.mxu1 %v3870_v47  ;;  %3074 = vmatpush2.bf16.msra.mxu0 %v5296_v41  ;;  %v4033_v36 = vpop.eup %4032  ;;  %v5317_v42 = vpack.c.bf16 %v1994_v22, %v1992_v19  ;;  %v5320_v47 = vld [vmem:[#allocation7 + $0x1ac] ss:$16 sps:$4 sm:$0xff]   ;;  %v1957_v25 = vand.u32 2147483648, %v5239_v9  ;;  %v5673_v54 = vld [vmem:[#allocation19_spill] sm:$0xff]  ;;  %v1589_v61 = vmul.f32 %v4958_v5, %v4420_v60  ;;  %v1971_v60 = vand.u32 2147483648, %v5263_v44 }
 0x290   :  { %2992 = vmatprep.subr.bf16.mxu1 %v3878_v8  ;;  %3075 = vmatprep.subr.bf16.mxu0 %v5303_v23  ;;  %v1960_v45 = vmul.f32 %v4033_v36, %v5249_v20  ;;  %v2101_v27 = vpack.c.bf16 %v2089_v28, %v2087_v55  ;;  %v5322_v1 = vpack.c.bf16 %v1995_v43, %v1993_v16  ;;  %v5674_v22 = vld [vmem:[#allocation20_spill] sm:$0xff]  ;;  %v1978_v28 = vand.u32 2147483648, %v5276_v18  ;;  %v5676_v43 = vld [vmem:[#allocation21_spill] sm:$0xff] }
 0x291   :  { %v1955_v48 = vsel %vm1954_vm8, %v5239_v9, %v1953_v26  ;;  %v1587_v8 = vmul.f32 %v4946_v50, %v5672_v10  ;;  %v1588_v19 = vmul.f32 %v4952_v57, %v5673_v54  ;;  %v3888_v50 = vld [vmem:[#allocation7 + $0x180] ss:$16 sps:$4 sm:$0xff]   ;;  %v1590_v26 = vmul.f32 %v5675_v29, %v5674_v22  ;;  %v5350_v57 = vld [vmem:[#allocation7 + $0x188] ss:$16 sps:$4 sm:$0xff]   ;;  %v5356_v36 = vld [vmem:[#allocation7 + $0x16c] ss:$16 sps:$4 sm:$0xff]  }
 0x292   :  { %2550 = vmatprep.mubr.bf16.mxu1 %v2101_v27  ;;  %2633 = vmatprep.mubr.bf16.mxu0 %v2101_v27  ;;  %v4035_v46 = vpop.eup %4034  ;;  %v1962_v24 = vsel %vm1961_vm9, %v5249_v20, %v1960_v45  ;;  %v1958_v55 = vsel %vm1956_vm10, %v1957_v25, %v1955_v48  ;;  %v3896_v20 = vld [vmem:[#allocation7 + $0x164] ss:$16 sps:$4 sm:$0xff]  }
 0x293   :  { %2993 = vmatpush2.bf16.msra.mxu1 %v3876_v62  ;;  %3076 = vmatpush2.bf16.msra.mxu0 %v5312_v34  ;;  %v1967_v6 = vmul.f32 %v4035_v46, %v5263_v44  ;;  %v1965_v5 = vsel %vm1963_vm11, %v1964_v4, %v1962_v24  ;;  %v2090_v45 = vmul.f32 %v1958_v55, %v5676_v43  ;;  %v3894_v46 = vld [vmem:[#allocation7 + $0x160] ss:$16 sps:$4 sm:$0xff]   ;;  %v5365_v24 = vld [vmem:[#allocation7 + $0x168] ss:$16 sps:$4 sm:$0xff]  }
 0x294   :  { %2551 = vmatmul.mubr.bf16.gmra.mxu1 %v2100_v13  ;;  %2634 = vmatmul.mubr.bf16.gmra.mxu0 %v2100_v13  ;;  %v4037_v62 = vpop.eup %4036  ;;  %v1997_v54 = vmul.f32 %v1965_v5, %v1588_v19  ;;  %v5679_v4 = vld [vmem:[#allocation25_spill] sm:$0xff] }
 0x295   :  { %2994 = vmatprep.subr.bf16.mxu1 %v3884_v51  ;;  %3077 = vmatprep.subr.bf16.mxu0 %v5320_v47  ;;  %v1974_v9 = vmul.f32 %v4037_v62, %v5276_v18  ;;  %v1969_v16 = vsel %vm1968_vm12, %v5263_v44, %v1967_v6  ;;  %v5677_v51 = vld [vmem:[#allocation23_spill] sm:$0xff]  ;;  %v5376_v62 = vld [vmem:[#allocation7 + $0x148] ss:$16 sps:$4 sm:$0xff]  }
 0x296   :  { %v1972_v13 = vsel %vm1970_vm13, %v1971_v60, %v1969_v16  ;;  %v3900_v19 = vld [vmem:[#allocation7 + $0x140] ss:$16 sps:$4 sm:$0xff]   ;;  %v3908_v60 = vld [vmem:[#allocation7 + $0x124] ss:$16 sps:$4 sm:$0xff]  }
 0x297   :  { %2995 = vmatpush2.bf16.msra.mxu1 %v3882_v2  ;;  %3078 = vmatpush2.bf16.msra.mxu0 %v5326_v0  ;;  %v1976_v27 = vsel %vm1975_vm14, %v5276_v18, %v1974_v9  ;;  %v2092_v48 = vmul.f32 %v1972_v13, %v5677_v51  ;;  %v1996_v2 = vmul.f32 %v1958_v55, %v1587_v8  ;;  %v3902_v55 = vld [vmem:[#allocation7 + $0x144] ss:$16 sps:$4 sm:$0xff]   ;;  %v3909_v9 = vld [vmem:[#allocation7 + $0x128] ss:$16 sps:$4 sm:$0xff]  }
 0x298   :  { %2996 = vmatprep.subr.bf16.mxu1 %v3890_v49  ;;  %3079 = vmatprep.subr.bf16.mxu0 %v5330_v37  ;;  %v1998_v25 = vmul.f32 %v1972_v13, %v1589_v61  ;;  %v1979_v44 = vsel %vm1977_vm15, %v1978_v28, %v1976_v27  ;;  %v5678_v49 = vld [vmem:[#allocation22_spill] sm:$0xff]  ;;  %v3914_v16 = vld [vmem:[#allocation7 + $0x104] ss:$16 sps:$4 sm:$0xff]   ;;  %v3912_v28 = vld [vmem:[#allocation7 + $0x100] ss:$16 sps:$4 sm:$0xff]  }
 0x299   :  { %v2091_v10 = vmul.f32 %v1965_v5, %v5678_v49  ;;  %v2093_v6 = vmul.f32 %v1979_v44, %v5679_v4  ;;  %v2102_v22 = vpack.c.bf16 %v2092_v48, %v2090_v45  ;;  %v1999_v18 = vmul.f32 %v1979_v44, %v1590_v26  ;;  %v5378_v26 = vld [vmem:[#allocation7 + $0x12c] ss:$16 sps:$4 sm:$0xff]   ;;  %v3906_v5 = vld [vmem:[#allocation7 + $0x120] ss:$16 sps:$4 sm:$0xff]   ;;  %v3915_v13 = vld [vmem:[#allocation7 + $0x108] ss:$16 sps:$4 sm:$0xff]  }
 0x29a   :  { %v5369_v29 = vpack.c.bf16 %v1998_v25, %v1996_v2 }
 0x29b   :  { %2997 = vmatpush2.bf16.msra.mxu1 %v3888_v50  ;;  %3080 = vmatpush2.bf16.msra.mxu0 %v5350_v57  ;;  %v2103_v8 = vpack.c.bf16 %v2093_v6, %v2091_v10  ;;  %v5371_v61 = vpack.c.bf16 %v1999_v18, %v1997_v54  ;;  %v5374_v50 = vld [vmem:[#allocation7 + $0x14c] ss:$16 sps:$4 sm:$0xff]  }
 0x29c   :  { %2998 = vmatprep.subr.bf16.mxu1 %v3896_v20  ;;  %3081 = vmatprep.subr.bf16.mxu0 %v5356_v36  ;;  %v3917_v20 = vld [vmem:[#allocation7 + $0x10c] ss:$16 sps:$4 sm:$0xff]  }
 0x29d   :  { %2560 = vmatprep.mubr.bf16.mxu1 %v2103_v8  ;;  %2643 = vmatprep.mubr.bf16.mxu0 %v2103_v8 }
 0x29e   :  { %2561 = vmatmul.mubr.bf16.gmra.mxu1 %v2102_v22  ;;  %2644 = vmatmul.mubr.bf16.gmra.mxu0 %v2102_v22 }
 0x29f   :  { %2999 = vmatpush2.bf16.msra.mxu1 %v3894_v46  ;;  %3082 = vmatpush2.bf16.msra.mxu0 %v5365_v24 }
 0x2a0   :  { %3006 = vmatprep.mubr.bf16.mxu1 %v5145_v17  ;;  %3089 = vmatprep.mubr.bf16.mxu0 %v5145_v17  ;;  %v5680_v17 = vld [vmem:[#allocation26_spill] sm:$0xff] }
 0x2a1   :  { %3000 = vmatprep.subr.bf16.mxu1 %v3902_v55  ;;  %3083 = vmatprep.subr.bf16.mxu0 %v5374_v50 }
 0x2a3   :  { %3001 = vmatpush2.bf16.msra.mxu1 %v3900_v19  ;;  %3084 = vmatpush2.bf16.msra.mxu0 %v5376_v62 }
 0x2a4   :  { %3002 = vmatprep.subr.bf16.mxu1 %v3908_v60  ;;  %3085 = vmatprep.subr.bf16.mxu0 %v5378_v26 }
 0x2a7   :  { %3003 = vmatpush2.bf16.msra.mxu1 %v3906_v5  ;;  %3086 = vmatpush2.bf16.msra.mxu0 %v3909_v9 }
 0x2a8   :  { %3004 = vmatprep.subr.bf16.mxu1 %v3914_v16  ;;  %3087 = vmatprep.subr.bf16.mxu0 %v3917_v20 }
 0x2ab   :  { %3005 = vmatpush2.bf16.msra.mxu1 %v3912_v28  ;;  %3088 = vmatpush2.bf16.msra.mxu0 %v3915_v13 }
 0x2ac   :  { %3463 = vmatprep.subr.bf16.mxu1 %v5680_v17 }
 0x2ae   :  { %3007 = vmatmul.mubr.bf16.vlgmr.msra.gmra.mxu1 %v5157_v30  ;;  %3090 = vmatmul.mubr.bf16.vlgmr.msra.gmra.mxu0 %v5157_v30 }
 0x2af   :  { %3016 = vmatprep.mubr.bf16.mxu1 %v5180_v59  ;;  %3479 = vmatpush1.bf16.msra.mxu1 %v5106_v40 }
 0x2b0   :  { %3099 = vmatprep.mubr.bf16.mxu0 %v5180_v59  ;;  %3464 = vmatprep.subr.bf16.mxu1 %v5114_v31 }
 0x2b3   :  { %3480 = vmatpush1.bf16.msra.mxu1 %v5129_v7 }
 0x2b4   :  { %3465 = vmatprep.subr.bf16.mxu1 %v5139_v58 }
 0x2b6   :  { %3017 = vmatmul.mubr.bf16.gmra.mxu1 %v5211_v3  ;;  %3100 = vmatmul.mubr.bf16.gmra.mxu0 %v5211_v3 }
 0x2b7   :  { %3026 = vmatprep.mubr.bf16.mxu1 %v5252_v14  ;;  %3481 = vmatpush1.bf16.msra.mxu1 %v5169_v35 }
 0x2b8   :  { %3109 = vmatprep.mubr.bf16.mxu0 %v5252_v14  ;;  %3466 = vmatprep.subr.bf16.mxu1 %v5174_v12 }
 0x2bb   :  { %3482 = vmatpush1.bf16.msra.mxu1 %v5194_v32 }
 0x2bc   :  { %3467 = vmatprep.subr.bf16.mxu1 %v5204_v33 }
 0x2be   :  { %3027 = vmatmul.mubr.bf16.gmra.mxu1 %v5246_v63  ;;  %3110 = vmatmul.mubr.bf16.gmra.mxu0 %v5246_v63 }
 0x2bf   :  { %3036 = vmatprep.mubr.bf16.mxu1 %v5322_v1  ;;  %3483 = vmatpush1.bf16.msra.mxu1 %v5223_v15 }
 0x2c0   :  { %3468 = vmatprep.subr.bf16.mxu1 %v5234_v53 }
 0x2c3   :  { %3484 = vmatpush1.bf16.msra.mxu1 %v5242_v38 }
 0x2c4   :  { %3469 = vmatprep.subr.bf16.mxu1 %v5244_v52 }
 0x2c6   :  { %3037 = vmatmul.mubr.bf16.gmra.mxu1 %v5317_v42 }
 0x2c7   :  { %3046 = vmatprep.mubr.bf16.mxu1 %v5371_v61  ;;  %3485 = vmatpush1.bf16.msra.mxu1 %v5256_v11 }
 0x2c8   :  { %3470 = vmatprep.subr.bf16.mxu1 %v5260_v21 }
 0x2cb   :  { %3486 = vmatpush1.bf16.msra.mxu1 %v5269_v39 }
 0x2cc   :  { %3471 = vmatprep.subr.bf16.mxu1 %v5281_v56 }
 0x2ce   :  { %3047 = vmatmul.mubr.bf16.gmra.mxu1 %v5369_v29 }
 0x2cf   :  { %3487 = vmatpush2.bf16.msra.mxu1 %v5296_v41  ;;  %3119 = vmatprep.mubr.bf16.mxu1 %v5322_v1 }
 0x2d0   :  { %3472 = vmatprep.subr.bf16.mxu1 %v5303_v23 }
 0x2d3   :  { %3488 = vmatpush2.bf16.msra.mxu1 %v5312_v34 }
 0x2d4   :  { %3473 = vmatprep.subr.bf16.mxu1 %v5320_v47 }
 0x2d7   :  { %3489 = vmatpush2.bf16.msra.mxu1 %v5326_v0 }
 0x2d8   :  { %3474 = vmatprep.subr.bf16.mxu1 %v5330_v37 }
 0x2db   :  { %3490 = vmatpush2.bf16.msra.mxu1 %v5350_v57 }
 0x2dc   :  { %3475 = vmatprep.subr.bf16.mxu1 %v5356_v36 }
 0x2df   :  { %3491 = vmatpush2.bf16.msra.mxu1 %v5365_v24 }
 0x2e0   :  { %3476 = vmatprep.subr.bf16.mxu1 %v5374_v50 }
 0x2e3   :  { %3492 = vmatpush2.bf16.msra.mxu1 %v5376_v62 }
 0x2e4   :  { %3477 = vmatprep.subr.bf16.mxu1 %v5378_v26 }
 0x2e7   :  { %3493 = vmatpush2.bf16.msra.mxu1 %v3909_v9 }
 0x2e8   :  { %3478 = vmatprep.subr.bf16.mxu1 %v3917_v20 }
 0x2eb   :  { %3494 = vmatpush2.bf16.msra.mxu1 %v3915_v13 }
 0x2ee   :  { %3120 = vmatmul.mubr.bf16.vlgmr.msra.gmra.mxu1 %v5317_v42 }
 0x2ef   :  { %3129 = vmatprep.mubr.bf16.mxu1 %v5371_v61 }
 0x2f6   :  { %3130 = vmatmul.mubr.bf16.gmra.mxu1 %v5369_v29 }
 0x32c   :  { %v2522_v40 = vpop.f32.mrf.mxu1  ;;  %v2605_v31 = vpop.f32.mrf.mxu0 }
 0x32e   :  { %v2524_v7 = vpop.f32.mrf.mxu1  ;;  %v2607_v58 = vpop.f32.mrf.mxu0 }
 0x330   :  { %v2526_v30 = vpop.f32.mrf.mxu1  ;;  %v2609_v35 = vpop.f32.mrf.mxu0 }
 0x332   :  { %v2528_v12 = vpop.f32.mrf.mxu1  ;;  %v2611_v59 = vpop.f32.mrf.mxu0 }
 0x336   :  { %v2532_v32 = vpop.f32.mrf.mxu1  ;;  %v2615_v33 = vpop.f32.mrf.mxu0 }
 0x338   :  { %v2534_v3 = vpop.f32.mrf.mxu1  ;;  %v2617_v15 = vpop.f32.mrf.mxu0 }
 0x33a   :  { %v5432_v53 = vpop.f32.mrf.mxu1  ;;  %v5434_v38 = vpop.f32.mrf.mxu0 }
 0x33c   :  { %v5436_v52 = vpop.f32.mrf.mxu1  ;;  %v5438_v63 = vpop.f32.mrf.mxu0 }
 0x342   :  { %v5440_v14 = vpop.f32.mrf.mxu1  ;;  %v5442_v11 = vpop.f32.mrf.mxu0 }
 0x344   :  { %v5444_v21 = vpop.f32.mrf.mxu1  ;;  %v5446_v39 = vpop.f32.mrf.mxu0 }
 0x346   :  { %v5448_v56 = vpop.f32.mrf.mxu1  ;;  %v5450_v41 = vpop.f32.mrf.mxu0 }
 0x348   :  { %v5452_v23 = vpop.f32.mrf.mxu1  ;;  %v5454_v34 = vpop.f32.mrf.mxu0 }
 0x354   :  { %v5456_v42 = vpop.f32.mrf.mxu1  ;;  %v5458_v47 = vpop.f32.mrf.mxu0 }
 0x356   :  { %v5460_v1 = vpop.f32.mrf.mxu1  ;;  %v5462_v0 = vpop.f32.mrf.mxu0 }
 0x358   :  { %v5464_v37 = vpop.f32.mrf.mxu1  ;;  %v5466_v57 = vpop.f32.mrf.mxu0 }
 0x35a   :  { %v5468_v36 = vpop.f32.mrf.mxu1  ;;  %v5470_v43 = vpop.f32.mrf.mxu0 }
 0x35e   :  { %v5472_v45 = vpop.f32.mrf.mxu1  ;;  %v5474_v27 = vpop.f32.mrf.mxu0 }
 0x360   :  { %v5476_v51 = vpop.f32.mrf.mxu1  ;;  %v5478_v48 = vpop.f32.mrf.mxu0 }
 0x362   :  { %v5480_v2 = vpop.f32.mrf.mxu1  ;;  %v5482_v25 = vpop.f32.mrf.mxu0 }
 0x364   :  { %v5484_v44 = vpop.f32.mrf.mxu1  ;;  %v5486_v49 = vpop.f32.mrf.mxu0 }
 0x36e   :  { %v3008_v10 = vpop.f32.mrf.mxu1  ;;  %v3091_v46 = vpop.f32.mrf.mxu0 }
 0x36f   :  { %v3009_v24 = vadd.f32 %v3008_v10, %v2522_v40  ;;  %v3092_v54 = vadd.f32 %v3091_v46, %v2605_v31 }
 0x370   :  { %v3010_v4 = vpop.f32.mrf.mxu1  ;;  %v3093_v6 = vpop.f32.mrf.mxu0 }
 0x371   :  { %3140 = vst [vmem:[%s5642_s6] sm:$0xff] %v3009_v24  ;;  %3142 = vst [vmem:[%s5642_s6 + $0x10] sm:$0xff] %v3092_v54  ;;  %v3011_v22 = vadd.f32 %v3010_v4, %v2524_v7  ;;  %v3094_v18 = vadd.f32 %v3093_v6, %v2607_v58 }
 0x372   :  { %v3012_v29 = vpop.f32.mrf.mxu1  ;;  %v3095_v8 = vpop.f32.mrf.mxu0 }
 0x373   :  { %3141 = vst [vmem:[%s5642_s6 + $0x8] sm:$0xff] %v3011_v22  ;;  %3143 = vst [vmem:[%s5642_s6 + $0x18] sm:$0xff] %v3094_v18  ;;  %v3013_v61 = vadd.f32 %v3012_v29, %v2526_v30  ;;  %v3096_v55 = vadd.f32 %v3095_v8, %v2609_v35 }
 0x374   :  { %v3014_v50 = vpop.f32.mrf.mxu1  ;;  %v3097_v19 = vpop.f32.mrf.mxu0 }
 0x375   :  { %3144 = vst [vmem:[%s5642_s6 + $0x20] sm:$0xff] %v3013_v61  ;;  %3146 = vst [vmem:[%s5642_s6 + $0x30] sm:$0xff] %v3096_v55  ;;  %v3015_v62 = vadd.f32 %v3014_v50, %v2528_v12  ;;  %v3098_v60 = vadd.f32 %v3097_v19, %v2611_v59 }
 0x376   :  { %v3018_v26 = vpop.f32.mrf.mxu1  ;;  %v3101_v5 = vpop.f32.mrf.mxu0 }
 0x377   :  { %3145 = vst [vmem:[%s5642_s6 + $0x28] sm:$0xff] %v3015_v62  ;;  %3147 = vst [vmem:[%s5642_s6 + $0x38] sm:$0xff] %v3098_v60  ;;  %v3019_v9 = vadd.f32 %v3018_v26, %v2532_v32  ;;  %v3102_v16 = vadd.f32 %v3101_v5, %v2615_v33 }
 0x378   :  { %v3020_v20 = vpop.f32.mrf.mxu1  ;;  %v3103_v28 = vpop.f32.mrf.mxu0 }
 0x379   :  { %3148 = vst [vmem:[%s5642_s6 + $0x40] sm:$0xff] %v3019_v9  ;;  %3150 = vst [vmem:[%s5642_s6 + $0x50] sm:$0xff] %v3102_v16  ;;  %v3021_v13 = vadd.f32 %v3020_v20, %v2534_v3  ;;  %v3104_v17 = vadd.f32 %v3103_v28, %v2617_v15 }
 0x37a   :  { %v3022_v40 = vpop.f32.mrf.mxu1  ;;  %v3105_v31 = vpop.f32.mrf.mxu0 }
 0x37b   :  { %3149 = vst [vmem:[%s5642_s6 + $0x48] sm:$0xff] %v3021_v13  ;;  %3151 = vst [vmem:[%s5642_s6 + $0x58] sm:$0xff] %v3104_v17  ;;  %v3023_v7 = vadd.f32 %v3022_v40, %v5432_v53  ;;  %v3106_v58 = vadd.f32 %v3105_v31, %v5434_v38 }
 0x37c   :  { %v3024_v30 = vpop.f32.mrf.mxu1  ;;  %v3107_v35 = vpop.f32.mrf.mxu0 }
 0x37d   :  { %3152 = vst [vmem:[%s5642_s6 + $0x60] sm:$0xff] %v3023_v7  ;;  %3154 = vst [vmem:[%s5642_s6 + $0x70] sm:$0xff] %v3106_v58  ;;  %v3025_v12 = vadd.f32 %v3024_v30, %v5436_v52  ;;  %v3108_v59 = vadd.f32 %v3107_v35, %v5438_v63 }
 0x37e   :  { %v3028_v32 = vpop.f32.mrf.mxu1  ;;  %v3111_v33 = vpop.f32.mrf.mxu0 }
 0x37f   :  { %3153 = vst [vmem:[%s5642_s6 + $0x68] sm:$0xff] %v3025_v12  ;;  %3155 = vst [vmem:[%s5642_s6 + $0x78] sm:$0xff] %v3108_v59  ;;  %v3029_v3 = vadd.f32 %v3028_v32, %v5440_v14  ;;  %v3112_v15 = vadd.f32 %v3111_v33, %v5442_v11 }
 0x380   :  { %v3030_v53 = vpop.f32.mrf.mxu1  ;;  %v3113_v38 = vpop.f32.mrf.mxu0 }
 0x381   :  { %3156 = vst [vmem:[%s5642_s6 + $0x80] sm:$0xff] %v3029_v3  ;;  %3158 = vst [vmem:[%s5642_s6 + $0x90] sm:$0xff] %v3112_v15  ;;  %v3031_v52 = vadd.f32 %v3030_v53, %v5444_v21  ;;  %v3114_v63 = vadd.f32 %v3113_v38, %v5446_v39 }
 0x382   :  { %v3032_v10 = vpop.f32.mrf.mxu1  ;;  %v3115_v46 = vpop.f32.mrf.mxu0 }
 0x383   :  { %3157 = vst [vmem:[%s5642_s6 + $0x88] sm:$0xff] %v3031_v52  ;;  %3159 = vst [vmem:[%s5642_s6 + $0x98] sm:$0xff] %v3114_v63  ;;  %v3033_v14 = vadd.f32 %v3032_v10, %v5448_v56  ;;  %v3116_v11 = vadd.f32 %v3115_v46, %v5450_v41 }
 0x384   :  { %v3034_v24 = vpop.f32.mrf.mxu1  ;;  %v3117_v54 = vpop.f32.mrf.mxu0 }
 0x385   :  { %3160 = vst [vmem:[%s5642_s6 + $0xa0] sm:$0xff] %v3033_v14  ;;  %3162 = vst [vmem:[%s5642_s6 + $0xb0] sm:$0xff] %v3116_v11  ;;  %v3035_v21 = vadd.f32 %v3034_v24, %v5452_v23  ;;  %v3118_v39 = vadd.f32 %v3117_v54, %v5454_v34 }
 0x386   :  { %v3038_v4 = vpop.f32.mrf.mxu1 }
 0x387   :  { %3161 = vst [vmem:[%s5642_s6 + $0xa8] sm:$0xff] %v3035_v21  ;;  %3163 = vst [vmem:[%s5642_s6 + $0xb8] sm:$0xff] %v3118_v39  ;;  %v3039_v56 = vadd.f32 %v3038_v4, %v5456_v42 }
 0x388   :  { %v3040_v41 = vpop.f32.mrf.mxu1 }
 0x389   :  { %3164 = vst [vmem:[%s5642_s6 + $0xc0] sm:$0xff] %v3039_v56  ;;  %v3041_v23 = vadd.f32 %v3040_v41, %v5460_v1 }
 0x38a   :  { %v3042_v6 = vpop.f32.mrf.mxu1 }
 0x38b   :  { %3165 = vst [vmem:[%s5642_s6 + $0xc8] sm:$0xff] %v3041_v23  ;;  %v3043_v34 = vadd.f32 %v3042_v6, %v5464_v37 }
 0x38c   :  { %v3044_v22 = vpop.f32.mrf.mxu1 }
 0x38d   :  { %3168 = vst [vmem:[%s5642_s6 + $0xe0] sm:$0xff] %v3043_v34  ;;  %v3045_v42 = vadd.f32 %v3044_v22, %v5468_v36 }
 0x38e   :  { %v3048_v18 = vpop.f32.mrf.mxu1 }
 0x38f   :  { %3169 = vst [vmem:[%s5642_s6 + $0xe8] sm:$0xff] %v3045_v42  ;;  %v3049_v1 = vadd.f32 %v3048_v18, %v5472_v45 }
 0x390   :  { %v3050_v29 = vpop.f32.mrf.mxu1 }
 0x391   :  { %3172 = vst [vmem:[%s5642_s6 + $0x100] sm:$0xff] %v3049_v1  ;;  %v3051_v37 = vadd.f32 %v3050_v29, %v5476_v51 }
 0x392   :  { %v3052_v8 = vpop.f32.mrf.mxu1 }
 0x393   :  { %3173 = vst [vmem:[%s5642_s6 + $0x108] sm:$0xff] %v3051_v37  ;;  %v3053_v36 = vadd.f32 %v3052_v8, %v5480_v2 }
 0x394   :  { %v3054_v61 = vpop.f32.mrf.mxu1 }
 0x395   :  { %3176 = vst [vmem:[%s5642_s6 + $0x120] sm:$0xff] %v3053_v36  ;;  %v3055_v45 = vadd.f32 %v3054_v61, %v5484_v44 }
 0x397   :  { %3177 = vst [vmem:[%s5642_s6 + $0x128] sm:$0xff] %v3055_v45 }
 0x3ae   :  { %v3121_v55 = vpop.f32.mrf.mxu1 }
 0x3af   :  { %v3122_v51 = vadd.f32 %v3121_v55, %v5458_v47 }
 0x3b0   :  { %v3123_v50 = vpop.f32.mrf.mxu1 }
 0x3b1   :  { %3166 = vst [vmem:[%s5642_s6 + $0xd0] sm:$0xff] %v3122_v51  ;;  %v3124_v2 = vadd.f32 %v3123_v50, %v5462_v0 }
 0x3b2   :  { %v3125_v19 = vpop.f32.mrf.mxu1 }
 0x3b3   :  { %3167 = vst [vmem:[%s5642_s6 + $0xd8] sm:$0xff] %v3124_v2  ;;  %v3126_v44 = vadd.f32 %v3125_v19, %v5466_v57 }
 0x3b4   :  { %v3127_v62 = vpop.f32.mrf.mxu1 }
 0x3b5   :  { %3170 = vst [vmem:[%s5642_s6 + $0xf0] sm:$0xff] %v3126_v44  ;;  %v3128_v47 = vadd.f32 %v3127_v62, %v5470_v43 }
 0x3b6   :  { %v3131_v60 = vpop.f32.mrf.mxu1 }
 0x3b7   :  { %3171 = vst [vmem:[%s5642_s6 + $0xf8] sm:$0xff] %v3128_v47  ;;  %v3132_v0 = vadd.f32 %v3131_v60, %v5474_v27 }
 0x3b8   :  { %v3133_v26 = vpop.f32.mrf.mxu1 }
 0x3b9   :  { %3174 = vst [vmem:[%s5642_s6 + $0x110] sm:$0xff] %v3132_v0  ;;  %v3134_v57 = vadd.f32 %v3133_v26, %v5478_v48 }
 0x3ba   :  { %v3135_v5 = vpop.f32.mrf.mxu1 }
 0x3bb   :  { %3175 = vst [vmem:[%s5642_s6 + $0x118] sm:$0xff] %v3134_v57  ;;  %v3136_v43 = vadd.f32 %v3135_v5, %v5482_v25 }
 0x3bc   :  { %v3137_v9 = vpop.f32.mrf.mxu1 }
 0x3bd   :  { %3178 = vst [vmem:[%s5642_s6 + $0x130] sm:$0xff] %v3136_v43  ;;  %v3138_v27 = vadd.f32 %v3137_v9, %v5486_v49 }
 0x3bf   :  { %3179 = vst [vmem:[%s5642_s6 + $0x138] sm:$0xff] %v3138_v27 }
 0x3c0   :  { %3184 = vsyncpa [#allocation3], 1 }
 0x3c1   :  { %3185 = vsyncpa [#allocation5], 1 }
 0x3c2   :  { %3186 = vsyncpa [#allocation8], 1 }

// kernel: forward.7
= control target key start
LH: loop header
LB: loop body
LE: loop exit
PB: predicated region body
PF: predicated region fallthrough
CT: control target
= control target key end

     0   :  { %9 = vsyncpa [#allocation3], 0  ;;  %s3835_s12 = smov 0   ;;  %s3837_s13 = smov 0   ;;  %s4290_s0 = inlined_call_operand.vmem [shape: bf16[16,1280], index: 0, kind: input, shape index: {}]   ;;  %s4291_s1 = inlined_call_operand.hbm [shape: bf16[8,1280,512], index: 1, kind: input, shape index: {}]   ;;  %s4292_s2 = inlined_call_operand.vmem [shape: f32[8,16,256], index: 2, kind: output, shape index: {0}]   ;;  %s4293_s3 = inlined_call_operand.vmem [shape: f32[8,16,256], index: 3, kind: output, shape index: {1}]  }
   0x1   :  { %s3839_s14 = smov 0  }
   0x2 LB: > { %s2867_s15 = sadd.s32 4294967295, %s3810_s14   ;;  %s24_s16 = sadd.s32 1, %s3806_s13  ;;  %s3810_s14 = sphi %s3839_s14, %s15_s14   ;;  %s3806_s13 = sphi %s3837_s13, %s4297_s13   ;;  %s3802_s12 = sphi %s3835_s12, %s4296_s12  }
   0x3   : > { %p25_p0 = scmp.ge.s32.totalorder %s24_s16, 8  ;;  %p2869_p1 = scmp.ge.s32.totalorder %s3810_s14, 1 }
   0x4   : > { %p135_p2 = scmp.lt.s32.totalorder %s3810_s14, 9  ;;  %p3860_p4 = scmp.eq.s32.totalorder %s2867_s15, 0 }
   0x5   : > { %s4299_s16 = smov (%p25_p0, %s24_s16), 0  ;;  %s3812_s19 = smov [#allocation2]  }
   0x6   : > { %p3856_p3 = pnand %p2869_p1, %p135_p2  ;;  %s157_s20 = sshll.u32 %s3812_s19, 4  ;;  %s158_s20 = int_to_ptr.vmem [resolvable:$true] %s157_s20 }
   0x7   : > { %s3769_s21 = scalar_lea.vmem %s158_s20, 327680  ;;  %p3777_p11 = scmp.lt.s32.totalorder %s158_s20, %s158_s20 }
   0x8   : > { %p3218_p5 = pneg %p3856_p3  ;;  %p3770_p8 = scmp.ne.s32.totalorder %s158_s20, %s3769_s21 }
   0x9   : > { %p3778_p12 = scmp.lt.s32.totalorder %s3769_s21, %s3769_s21 }
   0xa   : > { %p3219_p6 = pnand %p3860_p4, %p3218_p5 }
   0xb   : > { %p3779_p13 = por %p3778_p12, %p3777_p11 }
   0xc   : > { %p3760_p7 = pneg %p3219_p6 }
   0xe   : > { %p3772_p9 = pnand %p3770_p8, %p3760_p7 }
  0x10   : > { %p3773_p10 = pneg %p3772_p9 }
  0x12   : > { %p3780_p0 = pnand %p3779_p13, %p3773_p10 }
  0x14   : > { %3783 = shalt.err (!%p3780_p0)
}
  0x15   : > { %s3813_s22 = smov 256   ;;  %s3814_s23 = smov 16  }
  0x16   : > { %3221 = dma.hbm_to_vmem [thread:$0]  (!%p3219_p6), %s4291_s1, 327680, %s158_s20, [#allocation3], %s3813_s22, %s3813_s22, %s3814_s23  }
  0x17   : > { %173 = sbr.rel (%p3856_p3) target bundleno = 581 (0x245), region = 28 }
  0x1c   : > { %3797 = dma.done.wait (%p3860_p4), [#allocation3], 327680  }
  0x1d   : > { %3799 = vsyncadd (%p3860_p4), [#allocation3], 4294639616  ;;  %s3213_s26 = smul.u32 2560, %s3802_s12  ;;  %v3932_v49 = vld [vmem:[%s4290_s0 + $0x4] ss:$40 sps:$4 sm:$0xff]   ;;  %p221_p1 = scmp.lt.s32.totalorder %s3802_s12, 7 }
  0x1e   : > { %v3352_v51 = vld [vmem:[%s4290_s0 + $0xc] ss:$40 sps:$4 sm:$0xff]   ;;  %2257 = vmatprep.mubr.bf16.mxu0 %v3932_v49 }
  0x1f   : > { %s3878_s27 = scalar_lea.vmem [#allocation2], %s3213_s26  ;;  %2300 = vmatprep.mubr.bf16.mxu1 %v3352_v51  ;;  %s4301_s12 = smov (!%p221_p1, %s3802_s12), 7 }
  0x20   : > { %v3251_v0 = vld [vmem:[%s3878_s27 + $0xe4] ss:$16 sps:$4 sm:$0xff]   ;;  %v3255_v2 = vld [vmem:[%s3878_s27 + $0xe0] ss:$16 sps:$4 sm:$0xff]  }
  0x21   : > { %v3253_v1 = vld [vmem:[%s3878_s27 + $0x2e4] ss:$16 sps:$4 sm:$0xff]   ;;  %2225 = vmatprep.subr.bf16.mxu0 %v3251_v0  ;;  %v3256_v3 = vld [vmem:[%s3878_s27 + $0x2e0] ss:$16 sps:$4 sm:$0xff]  }
  0x22   : > { %2268 = vmatprep.subr.bf16.mxu1 %v3253_v1  ;;  %v3257_v4 = vld [vmem:[%s3878_s27 + $0xc4] ss:$16 sps:$4 sm:$0xff]   ;;  %2226 = vmatpush1.bf16.msra.mxu0 %v3255_v2  ;;  %v3261_v6 = vld [vmem:[%s3878_s27 + $0xc0] ss:$16 sps:$4 sm:$0xff]  }
  0x23   : > { %2269 = vmatpush1.bf16.msra.mxu1 %v3256_v3  ;;  %v3259_v5 = vld [vmem:[%s3878_s27 + $0x2c4] ss:$16 sps:$4 sm:$0xff]   ;;  %2227 = vmatprep.subr.bf16.mxu0 %v3257_v4  ;;  %v3262_v7 = vld [vmem:[%s3878_s27 + $0x2c0] ss:$16 sps:$4 sm:$0xff]  }
  0x24   : > { %2270 = vmatprep.subr.bf16.mxu1 %v3259_v5  ;;  %v3263_v8 = vld [vmem:[%s3878_s27 + $0xa4] ss:$16 sps:$4 sm:$0xff]   ;;  %v3267_v10 = vld [vmem:[%s3878_s27 + $0xa0] ss:$16 sps:$4 sm:$0xff]  }
  0x25   : > { %v3265_v9 = vld [vmem:[%s3878_s27 + $0x2a4] ss:$16 sps:$4 sm:$0xff]   ;;  %v3268_v11 = vld [vmem:[%s3878_s27 + $0x2a0] ss:$16 sps:$4 sm:$0xff]  }
  0x26   : > { %2228 = vmatpush1.bf16.msra.mxu0 %v3261_v6  ;;  %v3269_v12 = vld [vmem:[%s3878_s27 + $0x84] ss:$16 sps:$4 sm:$0xff]   ;;  %v3273_v14 = vld [vmem:[%s3878_s27 + $0x80] ss:$16 sps:$4 sm:$0xff]  }
  0x27   : > { %2271 = vmatpush1.bf16.msra.mxu1 %v3262_v7  ;;  %2229 = vmatprep.subr.bf16.mxu0 %v3263_v8  ;;  %v3271_v13 = vld [vmem:[%s3878_s27 + $0x284] ss:$16 sps:$4 sm:$0xff]   ;;  %v3274_v15 = vld [vmem:[%s3878_s27 + $0x280] ss:$16 sps:$4 sm:$0xff]  }
  0x28   : > { %2272 = vmatprep.subr.bf16.mxu1 %v3265_v9  ;;  %v3275_v16 = vld [vmem:[%s3878_s27 + $0x64] ss:$16 sps:$4 sm:$0xff]   ;;  %v3279_v18 = vld [vmem:[%s3878_s27 + $0x60] ss:$16 sps:$4 sm:$0xff]  }
  0x29   : > { %v3277_v17 = vld [vmem:[%s3878_s27 + $0x264] ss:$16 sps:$4 sm:$0xff]   ;;  %v3280_v19 = vld [vmem:[%s3878_s27 + $0x260] ss:$16 sps:$4 sm:$0xff]  }
  0x2a   : > { %2230 = vmatpush1.bf16.msra.mxu0 %v3267_v10  ;;  %v3281_v20 = vld [vmem:[%s3878_s27 + $0x44] ss:$16 sps:$4 sm:$0xff]   ;;  %v3285_v22 = vld [vmem:[%s3878_s27 + $0x40] ss:$16 sps:$4 sm:$0xff]  }
  0x2b   : > { %2273 = vmatpush1.bf16.msra.mxu1 %v3268_v11  ;;  %2231 = vmatprep.subr.bf16.mxu0 %v3269_v12  ;;  %v3283_v21 = vld [vmem:[%s3878_s27 + $0x244] ss:$16 sps:$4 sm:$0xff]   ;;  %v3286_v23 = vld [vmem:[%s3878_s27 + $0x240] ss:$16 sps:$4 sm:$0xff]  }
  0x2c   : > { %2274 = vmatprep.subr.bf16.mxu1 %v3271_v13  ;;  %v3287_v24 = vld [vmem:[%s3878_s27 + $0x24] ss:$16 sps:$4 sm:$0xff]   ;;  %v3291_v26 = vld [vmem:[%s3878_s27 + $0x20] ss:$16 sps:$4 sm:$0xff]  }
  0x2d   : > { %v3289_v25 = vld [vmem:[%s3878_s27 + $0x224] ss:$16 sps:$4 sm:$0xff]   ;;  %v3292_v27 = vld [vmem:[%s3878_s27 + $0x220] ss:$16 sps:$4 sm:$0xff]  }
  0x2e   : > { %2232 = vmatpush1.bf16.msra.mxu0 %v3273_v14  ;;  %v3293_v28 = vld [vmem:[%s3878_s27 + $0x4] ss:$16 sps:$4 sm:$0xff]   ;;  %v3297_v30 = vld [vmem:[%s3878_s27] ss:$16 sps:$4 sm:$0xff]  }
  0x2f   : > { %2275 = vmatpush1.bf16.msra.mxu1 %v3274_v15  ;;  %2233 = vmatprep.subr.bf16.mxu0 %v3275_v16  ;;  %v3295_v29 = vld [vmem:[%s3878_s27 + $0x204] ss:$16 sps:$4 sm:$0xff]   ;;  %v3298_v31 = vld [vmem:[%s3878_s27 + $0x200] ss:$16 sps:$4 sm:$0xff]  }
  0x30   : > { %2276 = vmatprep.subr.bf16.mxu1 %v3277_v17  ;;  %v3299_v32 = vld [vmem:[%s3878_s27 + $0x1e4] ss:$16 sps:$4 sm:$0xff]   ;;  %v3303_v34 = vld [vmem:[%s3878_s27 + $0x1e0] ss:$16 sps:$4 sm:$0xff]  }
  0x31   : > { %v3301_v33 = vld [vmem:[%s3878_s27 + $0x3e4] ss:$16 sps:$4 sm:$0xff]   ;;  %v3304_v35 = vld [vmem:[%s3878_s27 + $0x3e0] ss:$16 sps:$4 sm:$0xff]  }
  0x32   : > { %2234 = vmatpush1.bf16.msra.mxu0 %v3279_v18  ;;  %v3305_v36 = vld [vmem:[%s3878_s27 + $0x1c4] ss:$16 sps:$4 sm:$0xff]   ;;  %v3309_v38 = vld [vmem:[%s3878_s27 + $0x1c0] ss:$16 sps:$4 sm:$0xff]  }
  0x33   : > { %2277 = vmatpush1.bf16.msra.mxu1 %v3280_v19  ;;  %2235 = vmatprep.subr.bf16.mxu0 %v3281_v20  ;;  %v3307_v37 = vld [vmem:[%s3878_s27 + $0x3c4] ss:$16 sps:$4 sm:$0xff]   ;;  %v3310_v39 = vld [vmem:[%s3878_s27 + $0x3c0] ss:$16 sps:$4 sm:$0xff]  }
  0x34   : > { %2278 = vmatprep.subr.bf16.mxu1 %v3283_v21  ;;  %v3311_v40 = vld [vmem:[%s3878_s27 + $0x1a4] ss:$16 sps:$4 sm:$0xff]   ;;  %v3315_v42 = vld [vmem:[%s3878_s27 + $0x1a0] ss:$16 sps:$4 sm:$0xff]  }
  0x35   : > { %v3313_v41 = vld [vmem:[%s3878_s27 + $0x3a4] ss:$16 sps:$4 sm:$0xff]   ;;  %v3316_v43 = vld [vmem:[%s3878_s27 + $0x3a0] ss:$16 sps:$4 sm:$0xff]  }
  0x36   : > { %2236 = vmatpush1.bf16.msra.mxu0 %v3285_v22  ;;  %v3317_v44 = vld [vmem:[%s3878_s27 + $0x184] ss:$16 sps:$4 sm:$0xff]   ;;  %v3321_v46 = vld [vmem:[%s3878_s27 + $0x180] ss:$16 sps:$4 sm:$0xff]  }
  0x37   : > { %2279 = vmatpush1.bf16.msra.mxu1 %v3286_v23  ;;  %2237 = vmatprep.subr.bf16.mxu0 %v3287_v24  ;;  %v3319_v45 = vld [vmem:[%s3878_s27 + $0x384] ss:$16 sps:$4 sm:$0xff]   ;;  %v3322_v47 = vld [vmem:[%s3878_s27 + $0x380] ss:$16 sps:$4 sm:$0xff]  }
  0x38   : > { %2280 = vmatprep.subr.bf16.mxu1 %v3289_v25  ;;  %v3323_v48 = vld [vmem:[%s3878_s27 + $0x164] ss:$16 sps:$4 sm:$0xff]   ;;  %v3327_v52 = vld [vmem:[%s3878_s27 + $0x160] ss:$16 sps:$4 sm:$0xff]  }
  0x39   : > { %v3325_v50 = vld [vmem:[%s3878_s27 + $0x364] ss:$16 sps:$4 sm:$0xff]   ;;  %v3328_v53 = vld [vmem:[%s3878_s27 + $0x360] ss:$16 sps:$4 sm:$0xff]  }
  0x3a   : > { %2238 = vmatpush1.bf16.msra.mxu0 %v3291_v26  ;;  %v3329_v54 = vld [vmem:[%s3878_s27 + $0x144] ss:$16 sps:$4 sm:$0xff]   ;;  %v3333_v56 = vld [vmem:[%s3878_s27 + $0x140] ss:$16 sps:$4 sm:$0xff]  }
  0x3b   : > { %2281 = vmatpush1.bf16.msra.mxu1 %v3292_v27  ;;  %2239 = vmatprep.subr.bf16.mxu0 %v3293_v28  ;;  %v3331_v55 = vld [vmem:[%s3878_s27 + $0x344] ss:$16 sps:$4 sm:$0xff]   ;;  %v3334_v57 = vld [vmem:[%s3878_s27 + $0x340] ss:$16 sps:$4 sm:$0xff]  }
  0x3c   : > { %2282 = vmatprep.subr.bf16.mxu1 %v3295_v29  ;;  %v3335_v58 = vld [vmem:[%s3878_s27 + $0x124] ss:$16 sps:$4 sm:$0xff]   ;;  %v3339_v60 = vld [vmem:[%s3878_s27 + $0x120] ss:$16 sps:$4 sm:$0xff]  }
  0x3d   : > { %v3337_v59 = vld [vmem:[%s3878_s27 + $0x324] ss:$16 sps:$4 sm:$0xff]   ;;  %v3340_v61 = vld [vmem:[%s3878_s27 + $0x320] ss:$16 sps:$4 sm:$0xff]  }
  0x3e   : > { %2240 = vmatpush1.bf16.msra.mxu0 %v3297_v30  ;;  %v3341_v62 = vld [vmem:[%s3878_s27 + $0x104] ss:$16 sps:$4 sm:$0xff]   ;;  %v3345_v0 = vld [vmem:[%s3878_s27 + $0x100] ss:$16 sps:$4 sm:$0xff]  }
  0x3f   : > { %2283 = vmatpush1.bf16.msra.mxu1 %v3298_v31  ;;  %2241 = vmatprep.subr.bf16.mxu0 %v3299_v32  ;;  %v3343_v63 = vld [vmem:[%s3878_s27 + $0x304] ss:$16 sps:$4 sm:$0xff]   ;;  %v3346_v1 = vld [vmem:[%s3878_s27 + $0x300] ss:$16 sps:$4 sm:$0xff]  }
  0x40   : > { %2284 = vmatprep.subr.bf16.mxu1 %v3301_v33  ;;  %v3355_v2 = vld [vmem:[%s3878_s27 + $0x4e4] ss:$16 sps:$4 sm:$0xff]   ;;  %v3958_v4 = vld [vmem:[%s4290_s0] ss:$40 sps:$4 sm:$0xff]  }
  0x41   : > { %v3358_v3 = vld [vmem:[%s3878_s27 + $0x6e4] ss:$16 sps:$4 sm:$0xff]   ;;  %v3350_v5 = vld [vmem:[%s4290_s0 + $0x8] ss:$40 sps:$4 sm:$0xff]  }
  0x42   : > { %2242 = vmatpush2.bf16.msra.mxu0 %v3303_v34  ;;  %v3353_v6 = vld [vmem:[%s3878_s27 + $0x4e0] ss:$16 sps:$4 sm:$0xff]   ;;  %v3361_v8 = vld [vmem:[%s3878_s27 + $0x4c4] ss:$16 sps:$4 sm:$0xff]  }
  0x43   : > { %2285 = vmatpush2.bf16.msra.mxu1 %v3304_v35  ;;  %2243 = vmatprep.subr.bf16.mxu0 %v3305_v36  ;;  %v3356_v7 = vld [vmem:[%s3878_s27 + $0x6e0] ss:$16 sps:$4 sm:$0xff]   ;;  %v3364_v9 = vld [vmem:[%s3878_s27 + $0x6c4] ss:$16 sps:$4 sm:$0xff]  }
  0x44   : > { %2286 = vmatprep.subr.bf16.mxu1 %v3307_v37  ;;  %v3359_v10 = vld [vmem:[%s3878_s27 + $0x4c0] ss:$16 sps:$4 sm:$0xff]   ;;  %v3367_v12 = vld [vmem:[%s3878_s27 + $0x4a4] ss:$16 sps:$4 sm:$0xff]  }
  0x45   : > { %v3362_v11 = vld [vmem:[%s3878_s27 + $0x6c0] ss:$16 sps:$4 sm:$0xff]   ;;  %v3370_v13 = vld [vmem:[%s3878_s27 + $0x6a4] ss:$16 sps:$4 sm:$0xff]  }
  0x46   : > { %2244 = vmatpush2.bf16.msra.mxu0 %v3309_v38  ;;  %v3365_v14 = vld [vmem:[%s3878_s27 + $0x4a0] ss:$16 sps:$4 sm:$0xff]   ;;  %v3373_v16 = vld [vmem:[%s3878_s27 + $0x484] ss:$16 sps:$4 sm:$0xff]  }
  0x47   : > { %2287 = vmatpush2.bf16.msra.mxu1 %v3310_v39  ;;  %2245 = vmatprep.subr.bf16.mxu0 %v3311_v40  ;;  %v3368_v15 = vld [vmem:[%s3878_s27 + $0x6a0] ss:$16 sps:$4 sm:$0xff]   ;;  %v3376_v17 = vld [vmem:[%s3878_s27 + $0x684] ss:$16 sps:$4 sm:$0xff]  }
  0x48   : > { %2288 = vmatprep.subr.bf16.mxu1 %v3313_v41  ;;  %v3371_v18 = vld [vmem:[%s3878_s27 + $0x480] ss:$16 sps:$4 sm:$0xff]   ;;  %v3379_v20 = vld [vmem:[%s3878_s27 + $0x464] ss:$16 sps:$4 sm:$0xff]  }
  0x49   : > { %v3374_v19 = vld [vmem:[%s3878_s27 + $0x680] ss:$16 sps:$4 sm:$0xff]   ;;  %v3382_v21 = vld [vmem:[%s3878_s27 + $0x664] ss:$16 sps:$4 sm:$0xff]  }
  0x4a   : > { %2246 = vmatpush2.bf16.msra.mxu0 %v3315_v42  ;;  %v3377_v22 = vld [vmem:[%s3878_s27 + $0x460] ss:$16 sps:$4 sm:$0xff]   ;;  %v3385_v24 = vld [vmem:[%s3878_s27 + $0x444] ss:$16 sps:$4 sm:$0xff]  }
  0x4b   : > { %2289 = vmatpush2.bf16.msra.mxu1 %v3316_v43  ;;  %2247 = vmatprep.subr.bf16.mxu0 %v3317_v44  ;;  %v3380_v23 = vld [vmem:[%s3878_s27 + $0x660] ss:$16 sps:$4 sm:$0xff]   ;;  %v3388_v25 = vld [vmem:[%s3878_s27 + $0x644] ss:$16 sps:$4 sm:$0xff]  }
  0x4c   : > { %2290 = vmatprep.subr.bf16.mxu1 %v3319_v45  ;;  %v3383_v26 = vld [vmem:[%s3878_s27 + $0x440] ss:$16 sps:$4 sm:$0xff]   ;;  %v3391_v28 = vld [vmem:[%s3878_s27 + $0x424] ss:$16 sps:$4 sm:$0xff]  }
  0x4d   : > { %v3386_v27 = vld [vmem:[%s3878_s27 + $0x640] ss:$16 sps:$4 sm:$0xff]   ;;  %v3394_v29 = vld [vmem:[%s3878_s27 + $0x624] ss:$16 sps:$4 sm:$0xff]  }
  0x4e   : > { %2248 = vmatpush2.bf16.msra.mxu0 %v3321_v46  ;;  %v3389_v30 = vld [vmem:[%s3878_s27 + $0x420] ss:$16 sps:$4 sm:$0xff]   ;;  %v3397_v32 = vld [vmem:[%s3878_s27 + $0x404] ss:$16 sps:$4 sm:$0xff]  }
  0x4f   : > { %2291 = vmatpush2.bf16.msra.mxu1 %v3322_v47  ;;  %2249 = vmatprep.subr.bf16.mxu0 %v3323_v48  ;;  %v3392_v31 = vld [vmem:[%s3878_s27 + $0x620] ss:$16 sps:$4 sm:$0xff]   ;;  %v3400_v33 = vld [vmem:[%s3878_s27 + $0x604] ss:$16 sps:$4 sm:$0xff]  }
  0x50   : > { %2292 = vmatprep.subr.bf16.mxu1 %v3325_v50  ;;  %v3995_v34 = vld [vmem:[%s4290_s0 + $0x14] ss:$40 sps:$4 sm:$0xff]   ;;  %v3395_v36 = vld [vmem:[%s3878_s27 + $0x400] ss:$16 sps:$4 sm:$0xff]  }
  0x51   : > { %v3454_v35 = vld [vmem:[%s4290_s0 + $0x1c] ss:$40 sps:$4 sm:$0xff]   ;;  %v3398_v37 = vld [vmem:[%s3878_s27 + $0x600] ss:$16 sps:$4 sm:$0xff]  }
  0x52   : > { %2250 = vmatpush2.bf16.msra.mxu0 %v3327_v52  ;;  %v3403_v38 = vld [vmem:[%s3878_s27 + $0x5e4] ss:$16 sps:$4 sm:$0xff]   ;;  %v3401_v40 = vld [vmem:[%s3878_s27 + $0x5e0] ss:$16 sps:$4 sm:$0xff]  }
  0x53   : > { %2293 = vmatpush2.bf16.msra.mxu1 %v3328_v53  ;;  %2251 = vmatprep.subr.bf16.mxu0 %v3329_v54  ;;  %v3406_v39 = vld [vmem:[%s3878_s27 + $0x7e4] ss:$16 sps:$4 sm:$0xff]   ;;  %v3404_v41 = vld [vmem:[%s3878_s27 + $0x7e0] ss:$16 sps:$4 sm:$0xff]  }
  0x54   : > { %2294 = vmatprep.subr.bf16.mxu1 %v3331_v55  ;;  %v3409_v42 = vld [vmem:[%s3878_s27 + $0x5c4] ss:$16 sps:$4 sm:$0xff]   ;;  %v3407_v44 = vld [vmem:[%s3878_s27 + $0x5c0] ss:$16 sps:$4 sm:$0xff]  }
  0x55   : > { %v3412_v43 = vld [vmem:[%s3878_s27 + $0x7c4] ss:$16 sps:$4 sm:$0xff]   ;;  %v3410_v45 = vld [vmem:[%s3878_s27 + $0x7c0] ss:$16 sps:$4 sm:$0xff]  }
  0x56   : > { %2252 = vmatpush2.bf16.msra.mxu0 %v3333_v56  ;;  %v3415_v46 = vld [vmem:[%s3878_s27 + $0x5a4] ss:$16 sps:$4 sm:$0xff]   ;;  %v3413_v48 = vld [vmem:[%s3878_s27 + $0x5a0] ss:$16 sps:$4 sm:$0xff]  }
  0x57   : > { %2295 = vmatpush2.bf16.msra.mxu1 %v3334_v57  ;;  %2253 = vmatprep.subr.bf16.mxu0 %v3335_v58  ;;  %v3418_v47 = vld [vmem:[%s3878_s27 + $0x7a4] ss:$16 sps:$4 sm:$0xff]   ;;  %v3416_v50 = vld [vmem:[%s3878_s27 + $0x7a0] ss:$16 sps:$4 sm:$0xff]  }
  0x58   : > { %2296 = vmatprep.subr.bf16.mxu1 %v3337_v59  ;;  %v3421_v51 = vld [vmem:[%s3878_s27 + $0x584] ss:$16 sps:$4 sm:$0xff]   ;;  %v3419_v53 = vld [vmem:[%s3878_s27 + $0x580] ss:$16 sps:$4 sm:$0xff]  }
  0x59   : > { %v3424_v52 = vld [vmem:[%s3878_s27 + $0x784] ss:$16 sps:$4 sm:$0xff]   ;;  %v3422_v54 = vld [vmem:[%s3878_s27 + $0x780] ss:$16 sps:$4 sm:$0xff]  }
  0x5a   : > { %2254 = vmatpush2.bf16.msra.mxu0 %v3339_v60  ;;  %v3427_v55 = vld [vmem:[%s3878_s27 + $0x564] ss:$16 sps:$4 sm:$0xff]   ;;  %v3425_v57 = vld [vmem:[%s3878_s27 + $0x560] ss:$16 sps:$4 sm:$0xff]  }
  0x5b   : > { %2297 = vmatpush2.bf16.msra.mxu1 %v3340_v61  ;;  %2255 = vmatprep.subr.bf16.mxu0 %v3341_v62  ;;  %v3430_v56 = vld [vmem:[%s3878_s27 + $0x764] ss:$16 sps:$4 sm:$0xff]   ;;  %v3428_v58 = vld [vmem:[%s3878_s27 + $0x760] ss:$16 sps:$4 sm:$0xff]  }
  0x5c   : > { %2298 = vmatprep.subr.bf16.mxu1 %v3343_v63  ;;  %v3433_v59 = vld [vmem:[%s3878_s27 + $0x544] ss:$16 sps:$4 sm:$0xff]   ;;  %v3431_v61 = vld [vmem:[%s3878_s27 + $0x540] ss:$16 sps:$4 sm:$0xff]  }
  0x5d   : > { %v3436_v60 = vld [vmem:[%s3878_s27 + $0x744] ss:$16 sps:$4 sm:$0xff]   ;;  %v3434_v62 = vld [vmem:[%s3878_s27 + $0x740] ss:$16 sps:$4 sm:$0xff]  }
  0x5e   : > { %2256 = vmatpush2.bf16.msra.mxu0 %v3345_v0  ;;  %v3439_v63 = vld [vmem:[%s3878_s27 + $0x524] ss:$16 sps:$4 sm:$0xff]  }
  0x5f   : > { %2299 = vmatpush2.bf16.msra.mxu1 %v3346_v1  ;;  %2311 = vmatprep.subr.bf16.mxu0 %v3355_v2  ;;  %v3442_v0 = vld [vmem:[%s3878_s27 + $0x724] ss:$16 sps:$4 sm:$0xff]   ;;  %v3437_v1 = vld [vmem:[%s3878_s27 + $0x520] ss:$16 sps:$4 sm:$0xff]  }
  0x60   : > { %2354 = vmatprep.subr.bf16.mxu1 %v3358_v3  ;;  %v3440_v2 = vld [vmem:[%s3878_s27 + $0x720] ss:$16 sps:$4 sm:$0xff]   ;;  %v3445_v3 = vld [vmem:[%s3878_s27 + $0x504] ss:$16 sps:$4 sm:$0xff]  }
  0x61   : > { %2258 = vmatmul.mubr.bf16.vlgmr.msra.gmra.mxu0 %v3958_v4 }
  0x62   : > { %2301 = vmatmul.mubr.bf16.vlgmr.msra.gmra.mxu1 %v3350_v5  ;;  %2312 = vmatpush1.bf16.msra.mxu0 %v3353_v6  ;;  %v3448_v5 = vld [vmem:[%s3878_s27 + $0x704] ss:$16 sps:$4 sm:$0xff]   ;;  %v3443_v6 = vld [vmem:[%s3878_s27 + $0x500] ss:$16 sps:$4 sm:$0xff]  }
  0x63   : > { %2355 = vmatpush1.bf16.msra.mxu1 %v3356_v7  ;;  %2313 = vmatprep.subr.bf16.mxu0 %v3361_v8  ;;  %v3446_v7 = vld [vmem:[%s3878_s27 + $0x700] ss:$16 sps:$4 sm:$0xff]   ;;  %v3457_v8 = vld [vmem:[%s3878_s27 + $0x8e4] ss:$16 sps:$4 sm:$0xff]  }
  0x64   : > { %2356 = vmatprep.subr.bf16.mxu1 %v3364_v9  ;;  %2343 = vmatprep.mubr.bf16.mxu0 %v3995_v34  ;;  %v3460_v9 = vld [vmem:[%s3878_s27 + $0xec] ss:$16 sps:$4 sm:$0xff]  }
  0x65   : > { %2386 = vmatprep.mubr.bf16.mxu1 %v3454_v35  ;;  %v3493_v35 = vld [vmem:[%s3878_s27 + $0x824] ss:$16 sps:$4 sm:$0xff]  }
  0x66   : > { %2314 = vmatpush1.bf16.msra.mxu0 %v3359_v10  ;;  %v4040_v10 = vld [vmem:[%s4290_s0 + $0x10] ss:$40 sps:$4 sm:$0xff]  }
  0x67   : > { %2357 = vmatpush1.bf16.msra.mxu1 %v3362_v11  ;;  %2315 = vmatprep.subr.bf16.mxu0 %v3367_v12  ;;  %v3452_v11 = vld [vmem:[%s4290_s0 + $0x18] ss:$40 sps:$4 sm:$0xff]  }
  0x68   : > { %2358 = vmatprep.subr.bf16.mxu1 %v3370_v13  ;;  %v3455_v12 = vld [vmem:[%s3878_s27 + $0x8e0] ss:$16 sps:$4 sm:$0xff]   ;;  %v3458_v13 = vld [vmem:[%s3878_s27 + $0xe8] ss:$16 sps:$4 sm:$0xff]  }
  0x6a   : > { %2316 = vmatpush1.bf16.msra.mxu0 %v3365_v14  ;;  %v3463_v14 = vld [vmem:[%s3878_s27 + $0x8c4] ss:$16 sps:$4 sm:$0xff]  }
  0x6b   : > { %2359 = vmatpush1.bf16.msra.mxu1 %v3368_v15  ;;  %2317 = vmatprep.subr.bf16.mxu0 %v3373_v16  ;;  %v3466_v15 = vld [vmem:[%s3878_s27 + $0xcc] ss:$16 sps:$4 sm:$0xff]   ;;  %v3461_v16 = vld [vmem:[%s3878_s27 + $0x8c0] ss:$16 sps:$4 sm:$0xff]  }
  0x6c   : > { %2360 = vmatprep.subr.bf16.mxu1 %v3376_v17  ;;  %v3464_v17 = vld [vmem:[%s3878_s27 + $0xc8] ss:$16 sps:$4 sm:$0xff]  }
  0x6e   : > { %2318 = vmatpush1.bf16.msra.mxu0 %v3371_v18  ;;  %v3469_v18 = vld [vmem:[%s3878_s27 + $0x8a4] ss:$16 sps:$4 sm:$0xff]  }
  0x6f   : > { %2361 = vmatpush1.bf16.msra.mxu1 %v3374_v19  ;;  %2319 = vmatprep.subr.bf16.mxu0 %v3379_v20  ;;  %v3472_v19 = vld [vmem:[%s3878_s27 + $0xac] ss:$16 sps:$4 sm:$0xff]  }
  0x70   : > { %2362 = vmatprep.subr.bf16.mxu1 %v3382_v21  ;;  %v4057_v20 = vld [vmem:[%s4290_s0 + $0x24] ss:$40 sps:$4 sm:$0xff]   ;;  %v3467_v21 = vld [vmem:[%s3878_s27 + $0x8a0] ss:$16 sps:$4 sm:$0xff]  }
  0x72   : > { %2320 = vmatpush1.bf16.msra.mxu0 %v3377_v22  ;;  %v3470_v22 = vld [vmem:[%s3878_s27 + $0xa8] ss:$16 sps:$4 sm:$0xff]  }
  0x73   : > { %2363 = vmatpush1.bf16.msra.mxu1 %v3380_v23  ;;  %2321 = vmatprep.subr.bf16.mxu0 %v3385_v24  ;;  %v3475_v23 = vld [vmem:[%s3878_s27 + $0x884] ss:$16 sps:$4 sm:$0xff]   ;;  %v3478_v24 = vld [vmem:[%s3878_s27 + $0x8c] ss:$16 sps:$4 sm:$0xff]  }
  0x74   : > { %2364 = vmatprep.subr.bf16.mxu1 %v3388_v25  ;;  %v3473_v25 = vld [vmem:[%s3878_s27 + $0x880] ss:$16 sps:$4 sm:$0xff]  }
  0x76   : > { %2322 = vmatpush1.bf16.msra.mxu0 %v3383_v26  ;;  %v3476_v26 = vld [vmem:[%s3878_s27 + $0x88] ss:$16 sps:$4 sm:$0xff]  }
  0x77   : > { %2365 = vmatpush1.bf16.msra.mxu1 %v3386_v27  ;;  %2323 = vmatprep.subr.bf16.mxu0 %v3391_v28  ;;  %v3484_v27 = vld [vmem:[%s3878_s27 + $0x6c] ss:$16 sps:$4 sm:$0xff]   ;;  %v3479_v28 = vld [vmem:[%s3878_s27 + $0x860] ss:$16 sps:$4 sm:$0xff]  }
  0x78   : > { %2366 = vmatprep.subr.bf16.mxu1 %v3394_v29  ;;  %v3482_v29 = vld [vmem:[%s3878_s27 + $0x68] ss:$16 sps:$4 sm:$0xff]  }
  0x7a   : > { %2324 = vmatpush1.bf16.msra.mxu0 %v3389_v30  ;;  %v3487_v30 = vld [vmem:[%s3878_s27 + $0x844] ss:$16 sps:$4 sm:$0xff]  }
  0x7b   : > { %2367 = vmatpush1.bf16.msra.mxu1 %v3392_v31  ;;  %2325 = vmatprep.subr.bf16.mxu0 %v3397_v32  ;;  %v3490_v31 = vld [vmem:[%s3878_s27 + $0x4c] ss:$16 sps:$4 sm:$0xff]   ;;  %v3485_v32 = vld [vmem:[%s3878_s27 + $0x840] ss:$16 sps:$4 sm:$0xff]  }
  0x7c   : > { %2368 = vmatprep.subr.bf16.mxu1 %v3400_v33  ;;  %v3488_v33 = vld [vmem:[%s3878_s27 + $0x48] ss:$16 sps:$4 sm:$0xff]  }
  0x7e   : > { %2326 = vmatpush1.bf16.msra.mxu0 %v3395_v36  ;;  %v3496_v36 = vld [vmem:[%s3878_s27 + $0x2c] ss:$16 sps:$4 sm:$0xff]  }
  0x7f   : > { %2369 = vmatpush1.bf16.msra.mxu1 %v3398_v37  ;;  %2327 = vmatprep.subr.bf16.mxu0 %v3403_v38  ;;  %v3491_v37 = vld [vmem:[%s3878_s27 + $0x820] ss:$16 sps:$4 sm:$0xff]   ;;  %v3494_v38 = vld [vmem:[%s3878_s27 + $0x28] ss:$16 sps:$4 sm:$0xff]  }
  0x80   : > { %2370 = vmatprep.subr.bf16.mxu1 %v3406_v39  ;;  %v3499_v39 = vld [vmem:[%s3878_s27 + $0x804] ss:$16 sps:$4 sm:$0xff]  }
  0x82   : > { %2328 = vmatpush2.bf16.msra.mxu0 %v3401_v40  ;;  %v3502_v40 = vld [vmem:[%s3878_s27 + $0xc] ss:$16 sps:$4 sm:$0xff]  }
  0x83   : > { %2371 = vmatpush2.bf16.msra.mxu1 %v3404_v41  ;;  %2329 = vmatprep.subr.bf16.mxu0 %v3409_v42  ;;  %v3497_v41 = vld [vmem:[%s3878_s27 + $0x800] ss:$16 sps:$4 sm:$0xff]   ;;  %v3500_v42 = vld [vmem:[%s3878_s27 + $0x8] ss:$16 sps:$4 sm:$0xff]  }
  0x84   : > { %2372 = vmatprep.subr.bf16.mxu1 %v3412_v43  ;;  %v3505_v43 = vld [vmem:[%s3878_s27 + $0x9e4] ss:$16 sps:$4 sm:$0xff]  }
  0x86   : > { %2330 = vmatpush2.bf16.msra.mxu0 %v3407_v44  ;;  %v3508_v44 = vld [vmem:[%s3878_s27 + $0x1ec] ss:$16 sps:$4 sm:$0xff]  }
  0x87   : > { %2373 = vmatpush2.bf16.msra.mxu1 %v3410_v45  ;;  %2331 = vmatprep.subr.bf16.mxu0 %v3415_v46  ;;  %v3503_v45 = vld [vmem:[%s3878_s27 + $0x9e0] ss:$16 sps:$4 sm:$0xff]   ;;  %v3506_v46 = vld [vmem:[%s3878_s27 + $0x1e8] ss:$16 sps:$4 sm:$0xff]  }
  0x88   : > { %2374 = vmatprep.subr.bf16.mxu1 %v3418_v47  ;;  %v3511_v47 = vld [vmem:[%s3878_s27 + $0x9c4] ss:$16 sps:$4 sm:$0xff]  }
  0x8a   : > { %2332 = vmatpush2.bf16.msra.mxu0 %v3413_v48  ;;  %v3514_v48 = vld [vmem:[%s3878_s27 + $0x1cc] ss:$16 sps:$4 sm:$0xff]  }
  0x8b   : > { %2375 = vmatpush2.bf16.msra.mxu1 %v3416_v50  ;;  %2333 = vmatprep.subr.bf16.mxu0 %v3421_v51  ;;  %v3509_v50 = vld [vmem:[%s3878_s27 + $0x9c0] ss:$16 sps:$4 sm:$0xff]   ;;  %v3512_v51 = vld [vmem:[%s3878_s27 + $0x1c8] ss:$16 sps:$4 sm:$0xff]  }
  0x8c   : > { %2376 = vmatprep.subr.bf16.mxu1 %v3424_v52  ;;  %v3517_v52 = vld [vmem:[%s3878_s27 + $0x9a4] ss:$16 sps:$4 sm:$0xff]  }
  0x8e   : > { %2334 = vmatpush2.bf16.msra.mxu0 %v3419_v53  ;;  %v3520_v53 = vld [vmem:[%s3878_s27 + $0x1ac] ss:$16 sps:$4 sm:$0xff]  }
  0x8f   : > { %2377 = vmatpush2.bf16.msra.mxu1 %v3422_v54  ;;  %2335 = vmatprep.subr.bf16.mxu0 %v3427_v55  ;;  %v3515_v54 = vld [vmem:[%s3878_s27 + $0x9a0] ss:$16 sps:$4 sm:$0xff]   ;;  %v3518_v55 = vld [vmem:[%s3878_s27 + $0x1a8] ss:$16 sps:$4 sm:$0xff]  }
  0x90   : > { %2378 = vmatprep.subr.bf16.mxu1 %v3430_v56  ;;  %v3523_v56 = vld [vmem:[%s3878_s27 + $0x984] ss:$16 sps:$4 sm:$0xff]  }
  0x92   : > { %2336 = vmatpush2.bf16.msra.mxu0 %v3425_v57  ;;  %v3526_v57 = vld [vmem:[%s3878_s27 + $0x18c] ss:$16 sps:$4 sm:$0xff]  }
  0x93   : > { %2379 = vmatpush2.bf16.msra.mxu1 %v3428_v58  ;;  %2337 = vmatprep.subr.bf16.mxu0 %v3433_v59  ;;  %v3521_v58 = vld [vmem:[%s3878_s27 + $0x980] ss:$16 sps:$4 sm:$0xff]   ;;  %v3524_v59 = vld [vmem:[%s3878_s27 + $0x188] ss:$16 sps:$4 sm:$0xff]  }
  0x94   : > { %2380 = vmatprep.subr.bf16.mxu1 %v3436_v60  ;;  %v3529_v60 = vld [vmem:[%s3878_s27 + $0x964] ss:$16 sps:$4 sm:$0xff]  }
  0x96   : > { %2338 = vmatpush2.bf16.msra.mxu0 %v3431_v61  ;;  %v3532_v61 = vld [vmem:[%s3878_s27 + $0x16c] ss:$16 sps:$4 sm:$0xff]  }
  0x97   : > { %2381 = vmatpush2.bf16.msra.mxu1 %v3434_v62  ;;  %2339 = vmatprep.subr.bf16.mxu0 %v3439_v63  ;;  %v3527_v62 = vld [vmem:[%s3878_s27 + $0x960] ss:$16 sps:$4 sm:$0xff]   ;;  %v3530_v63 = vld [vmem:[%s3878_s27 + $0x168] ss:$16 sps:$4 sm:$0xff]  }
  0x98   : > { %2382 = vmatprep.subr.bf16.mxu1 %v3442_v0  ;;  %v3535_v0 = vld [vmem:[%s3878_s27 + $0x944] ss:$16 sps:$4 sm:$0xff]  }
  0x9a   : > { %2340 = vmatpush2.bf16.msra.mxu0 %v3437_v1  ;;  %v3538_v1 = vld [vmem:[%s3878_s27 + $0x14c] ss:$16 sps:$4 sm:$0xff]  }
  0x9b   : > { %2383 = vmatpush2.bf16.msra.mxu1 %v3440_v2  ;;  %2341 = vmatprep.subr.bf16.mxu0 %v3445_v3  ;;  %v3533_v2 = vld [vmem:[%s3878_s27 + $0x940] ss:$16 sps:$4 sm:$0xff]   ;;  %v3536_v3 = vld [vmem:[%s3878_s27 + $0x148] ss:$16 sps:$4 sm:$0xff]  }
  0x9c   : > { %2384 = vmatprep.subr.bf16.mxu1 %v3448_v5  ;;  %v3541_v5 = vld [vmem:[%s3878_s27 + $0x924] ss:$16 sps:$4 sm:$0xff]  }
  0x9e   : > { %2342 = vmatpush2.bf16.msra.mxu0 %v3443_v6  ;;  %v3544_v6 = vld [vmem:[%s3878_s27 + $0x12c] ss:$16 sps:$4 sm:$0xff]  }
  0x9f   : > { %2385 = vmatpush2.bf16.msra.mxu1 %v3446_v7  ;;  %2397 = vmatprep.subr.bf16.mxu0 %v3457_v8  ;;  %v3539_v7 = vld [vmem:[%s3878_s27 + $0x920] ss:$16 sps:$4 sm:$0xff]   ;;  %v3542_v8 = vld [vmem:[%s3878_s27 + $0x128] ss:$16 sps:$4 sm:$0xff]  }
  0xa0   : > { %2440 = vmatprep.subr.bf16.mxu1 %v3460_v9  ;;  %v3547_v9 = vld [vmem:[%s3878_s27 + $0x904] ss:$16 sps:$4 sm:$0xff]  }
  0xa1   : > { %2344 = vmatmul.mubr.bf16.vlgmr.msra.gmra.mxu0 %v4040_v10 }
  0xa2   : > { %2387 = vmatmul.mubr.bf16.vlgmr.msra.gmra.mxu1 %v3452_v11  ;;  %2398 = vmatpush1.bf16.msra.mxu0 %v3455_v12  ;;  %v3550_v11 = vld [vmem:[%s3878_s27 + $0x10c] ss:$16 sps:$4 sm:$0xff]   ;;  %v3545_v12 = vld [vmem:[%s3878_s27 + $0x900] ss:$16 sps:$4 sm:$0xff]  }
  0xa3   : > { %2441 = vmatpush1.bf16.msra.mxu1 %v3458_v13  ;;  %2399 = vmatprep.subr.bf16.mxu0 %v3463_v14  ;;  %v3548_v13 = vld [vmem:[%s3878_s27 + $0x108] ss:$16 sps:$4 sm:$0xff]   ;;  %v3556_v14 = vld [vmem:[%s3878_s27 + $0x2ec] ss:$16 sps:$4 sm:$0xff]  }
  0xa4   : > { %2442 = vmatprep.subr.bf16.mxu1 %v3466_v15  ;;  %2472 = vmatprep.mubr.bf16.mxu1 %v3932_v49  ;;  %v3481_v49 = vld [vmem:[%s3878_s27 + $0x864] ss:$16 sps:$4 sm:$0xff]   ;;  %v3559_v15 = vld [vmem:[%s3878_s27 + $0x4ec] ss:$16 sps:$4 sm:$0xff]  }
  0xa5   : > { %2429 = vmatprep.mubr.bf16.mxu0 %v4057_v20 }
  0xa6   : > { %2400 = vmatpush1.bf16.msra.mxu0 %v3461_v16  ;;  %v4120_v16 = vld [vmem:[%s4290_s0 + $0x20] ss:$40 sps:$4 sm:$0xff]  }
  0xa7   : > { %2443 = vmatpush1.bf16.msra.mxu1 %v3464_v17  ;;  %2401 = vmatprep.subr.bf16.mxu0 %v3469_v18  ;;  %v3554_v17 = vld [vmem:[%s3878_s27 + $0x2e8] ss:$16 sps:$4 sm:$0xff]  }
  0xa8   : > { %2444 = vmatprep.subr.bf16.mxu1 %v3472_v19  ;;  %v3557_v18 = vld [vmem:[%s3878_s27 + $0x4e8] ss:$16 sps:$4 sm:$0xff]   ;;  %v3562_v19 = vld [vmem:[%s3878_s27 + $0x2cc] ss:$16 sps:$4 sm:$0xff]  }
  0xaa   : > { %2402 = vmatpush1.bf16.msra.mxu0 %v3467_v21  ;;  %v3565_v21 = vld [vmem:[%s3878_s27 + $0x4cc] ss:$16 sps:$4 sm:$0xff]  }
  0xab   : > { %2445 = vmatpush1.bf16.msra.mxu1 %v3470_v22  ;;  %2403 = vmatprep.subr.bf16.mxu0 %v3475_v23  ;;  %v3560_v22 = vld [vmem:[%s3878_s27 + $0x2c8] ss:$16 sps:$4 sm:$0xff]  }
  0xac   : > { %2446 = vmatprep.subr.bf16.mxu1 %v3478_v24  ;;  %v3563_v23 = vld [vmem:[%s3878_s27 + $0x4c8] ss:$16 sps:$4 sm:$0xff]   ;;  %v3568_v24 = vld [vmem:[%s3878_s27 + $0x2ac] ss:$16 sps:$4 sm:$0xff]  }
  0xae   : > { %2404 = vmatpush1.bf16.msra.mxu0 %v3473_v25  ;;  %v3571_v25 = vld [vmem:[%s3878_s27 + $0x4ac] ss:$16 sps:$4 sm:$0xff]  }
  0xaf   : > { %2447 = vmatpush1.bf16.msra.mxu1 %v3476_v26  ;;  %2405 = vmatprep.subr.bf16.mxu0 %v3481_v49  ;;  %v3754_v26 = vld [vmem:[%s4290_s0 + $0xc] ss:$40 sps:$4 sm:$0xff]   ;;  %v3569_v49 = vld [vmem:[%s3878_s27 + $0x4a8] ss:$16 sps:$4 sm:$0xff]  }
  0xb0   : > { %2448 = vmatprep.subr.bf16.mxu1 %v3484_v27  ;;  %v3574_v27 = vld [vmem:[%s3878_s27 + $0x28c] ss:$16 sps:$4 sm:$0xff]  }
  0xb2   : > { %2406 = vmatpush1.bf16.msra.mxu0 %v3479_v28  ;;  %v3577_v28 = vld [vmem:[%s3878_s27 + $0x48c] ss:$16 sps:$4 sm:$0xff]  }
  0xb3   : > { %2449 = vmatpush1.bf16.msra.mxu1 %v3482_v29  ;;  %2407 = vmatprep.subr.bf16.mxu0 %v3487_v30  ;;  %v3572_v29 = vld [vmem:[%s3878_s27 + $0x288] ss:$16 sps:$4 sm:$0xff]  }
  0xb4   : > { %2450 = vmatprep.subr.bf16.mxu1 %v3490_v31  ;;  %v3575_v30 = vld [vmem:[%s3878_s27 + $0x488] ss:$16 sps:$4 sm:$0xff]   ;;  %v3583_v31 = vld [vmem:[%s3878_s27 + $0x46c] ss:$16 sps:$4 sm:$0xff]  }
  0xb6   : > { %2408 = vmatpush1.bf16.msra.mxu0 %v3485_v32  ;;  %v3578_v32 = vld [vmem:[%s3878_s27 + $0x268] ss:$16 sps:$4 sm:$0xff]  }
  0xb7   : > { %2451 = vmatpush1.bf16.msra.mxu1 %v3488_v33  ;;  %2409 = vmatprep.subr.bf16.mxu0 %v3493_v35  ;;  %v3581_v33 = vld [vmem:[%s3878_s27 + $0x468] ss:$16 sps:$4 sm:$0xff]   ;;  %v3586_v35 = vld [vmem:[%s3878_s27 + $0x24c] ss:$16 sps:$4 sm:$0xff]  }
  0xb8   : > { %2452 = vmatprep.subr.bf16.mxu1 %v3496_v36  ;;  %v3589_v36 = vld [vmem:[%s3878_s27 + $0x44c] ss:$16 sps:$4 sm:$0xff]  }
  0xba   : > { %2410 = vmatpush1.bf16.msra.mxu0 %v3491_v37  ;;  %v3584_v37 = vld [vmem:[%s3878_s27 + $0x248] ss:$16 sps:$4 sm:$0xff]  }
  0xbb   : > { %2453 = vmatpush1.bf16.msra.mxu1 %v3494_v38  ;;  %2411 = vmatprep.subr.bf16.mxu0 %v3499_v39  ;;  %v3587_v38 = vld [vmem:[%s3878_s27 + $0x448] ss:$16 sps:$4 sm:$0xff]   ;;  %v3592_v39 = vld [vmem:[%s3878_s27 + $0x22c] ss:$16 sps:$4 sm:$0xff]  }
  0xbc   : > { %2454 = vmatprep.subr.bf16.mxu1 %v3502_v40  ;;  %v3595_v40 = vld [vmem:[%s3878_s27 + $0x42c] ss:$16 sps:$4 sm:$0xff]  }
  0xbe   : > { %2412 = vmatpush1.bf16.msra.mxu0 %v3497_v41  ;;  %v3590_v41 = vld [vmem:[%s3878_s27 + $0x228] ss:$16 sps:$4 sm:$0xff]  }
  0xbf   : > { %2455 = vmatpush1.bf16.msra.mxu1 %v3500_v42  ;;  %2413 = vmatprep.subr.bf16.mxu0 %v3505_v43  ;;  %v3593_v42 = vld [vmem:[%s3878_s27 + $0x428] ss:$16 sps:$4 sm:$0xff]   ;;  %v3598_v43 = vld [vmem:[%s3878_s27 + $0x20c] ss:$16 sps:$4 sm:$0xff]  }
  0xc0   : > { %2456 = vmatprep.subr.bf16.mxu1 %v3508_v44  ;;  %v3601_v44 = vld [vmem:[%s3878_s27 + $0x40c] ss:$16 sps:$4 sm:$0xff]  }
  0xc2   : > { %2414 = vmatpush2.bf16.msra.mxu0 %v3503_v45  ;;  %v3596_v45 = vld [vmem:[%s3878_s27 + $0x208] ss:$16 sps:$4 sm:$0xff]  }
  0xc3   : > { %2457 = vmatpush2.bf16.msra.mxu1 %v3506_v46  ;;  %2415 = vmatprep.subr.bf16.mxu0 %v3511_v47  ;;  %v3599_v46 = vld [vmem:[%s3878_s27 + $0x408] ss:$16 sps:$4 sm:$0xff]   ;;  %v3604_v47 = vld [vmem:[%s3878_s27 + $0x3ec] ss:$16 sps:$4 sm:$0xff]  }
  0xc4   : > { %2458 = vmatprep.subr.bf16.mxu1 %v3514_v48  ;;  %v3607_v48 = vld [vmem:[%s3878_s27 + $0x5ec] ss:$16 sps:$4 sm:$0xff]  }
  0xc6   : > { %2416 = vmatpush2.bf16.msra.mxu0 %v3509_v50  ;;  %v3602_v50 = vld [vmem:[%s3878_s27 + $0x3e8] ss:$16 sps:$4 sm:$0xff]  }
  0xc7   : > { %2459 = vmatpush2.bf16.msra.mxu1 %v3512_v51  ;;  %2417 = vmatprep.subr.bf16.mxu0 %v3517_v52  ;;  %v3605_v51 = vld [vmem:[%s3878_s27 + $0x5e8] ss:$16 sps:$4 sm:$0xff]   ;;  %v3610_v52 = vld [vmem:[%s3878_s27 + $0x3cc] ss:$16 sps:$4 sm:$0xff]  }
  0xc8   : > { %2460 = vmatprep.subr.bf16.mxu1 %v3520_v53  ;;  %v3613_v53 = vld [vmem:[%s3878_s27 + $0x5cc] ss:$16 sps:$4 sm:$0xff]  }
  0xca   : > { %2418 = vmatpush2.bf16.msra.mxu0 %v3515_v54  ;;  %v3608_v54 = vld [vmem:[%s3878_s27 + $0x3c8] ss:$16 sps:$4 sm:$0xff]  }
  0xcb   : > { %2461 = vmatpush2.bf16.msra.mxu1 %v3518_v55  ;;  %2419 = vmatprep.subr.bf16.mxu0 %v3523_v56  ;;  %v3611_v55 = vld [vmem:[%s3878_s27 + $0x5c8] ss:$16 sps:$4 sm:$0xff]   ;;  %v3616_v56 = vld [vmem:[%s3878_s27 + $0x3ac] ss:$16 sps:$4 sm:$0xff]  }
  0xcc   : > { %2462 = vmatprep.subr.bf16.mxu1 %v3526_v57  ;;  %v3619_v57 = vld [vmem:[%s3878_s27 + $0x5ac] ss:$16 sps:$4 sm:$0xff]  }
  0xce   : > { %2420 = vmatpush2.bf16.msra.mxu0 %v3521_v58  ;;  %v3614_v58 = vld [vmem:[%s3878_s27 + $0x3a8] ss:$16 sps:$4 sm:$0xff]  }
  0xcf   : > { %2463 = vmatpush2.bf16.msra.mxu1 %v3524_v59  ;;  %2421 = vmatprep.subr.bf16.mxu0 %v3529_v60  ;;  %v3617_v59 = vld [vmem:[%s3878_s27 + $0x5a8] ss:$16 sps:$4 sm:$0xff]   ;;  %v3622_v60 = vld [vmem:[%s3878_s27 + $0x38c] ss:$16 sps:$4 sm:$0xff]  }
  0xd0   : > { %2464 = vmatprep.subr.bf16.mxu1 %v3532_v61  ;;  %v3625_v61 = vld [vmem:[%s3878_s27 + $0x58c] ss:$16 sps:$4 sm:$0xff]  }
  0xd2   : > { %2422 = vmatpush2.bf16.msra.mxu0 %v3527_v62  ;;  %v3620_v62 = vld [vmem:[%s3878_s27 + $0x388] ss:$16 sps:$4 sm:$0xff]  }
  0xd3   : > { %2465 = vmatpush2.bf16.msra.mxu1 %v3530_v63  ;;  %2423 = vmatprep.subr.bf16.mxu0 %v3535_v0  ;;  %v3623_v63 = vld [vmem:[%s3878_s27 + $0x588] ss:$16 sps:$4 sm:$0xff]   ;;  %v3628_v0 = vld [vmem:[%s3878_s27 + $0x36c] ss:$16 sps:$4 sm:$0xff]  }
  0xd4   : > { %2466 = vmatprep.subr.bf16.mxu1 %v3538_v1  ;;  %v3631_v1 = vld [vmem:[%s3878_s27 + $0x56c] ss:$16 sps:$4 sm:$0xff]  }
  0xd6   : > { %2424 = vmatpush2.bf16.msra.mxu0 %v3533_v2  ;;  %v3626_v2 = vld [vmem:[%s3878_s27 + $0x368] ss:$16 sps:$4 sm:$0xff]  }
  0xd7   : > { %2467 = vmatpush2.bf16.msra.mxu1 %v3536_v3  ;;  %2425 = vmatprep.subr.bf16.mxu0 %v3541_v5  ;;  %v3629_v3 = vld [vmem:[%s3878_s27 + $0x568] ss:$16 sps:$4 sm:$0xff]   ;;  %v3634_v5 = vld [vmem:[%s3878_s27 + $0x34c] ss:$16 sps:$4 sm:$0xff]  }
  0xd8   : > { %2468 = vmatprep.subr.bf16.mxu1 %v3544_v6  ;;  %v3637_v6 = vld [vmem:[%s3878_s27 + $0x54c] ss:$16 sps:$4 sm:$0xff]  }
  0xda   : > { %2426 = vmatpush2.bf16.msra.mxu0 %v3539_v7  ;;  %v3632_v7 = vld [vmem:[%s3878_s27 + $0x348] ss:$16 sps:$4 sm:$0xff]  }
  0xdb   : > { %2469 = vmatpush2.bf16.msra.mxu1 %v3542_v8  ;;  %2427 = vmatprep.subr.bf16.mxu0 %v3547_v9  ;;  %v3635_v8 = vld [vmem:[%s3878_s27 + $0x548] ss:$16 sps:$4 sm:$0xff]   ;;  %v3640_v9 = vld [vmem:[%s3878_s27 + $0x32c] ss:$16 sps:$4 sm:$0xff]  }
  0xdc   : > { %2470 = vmatprep.subr.bf16.mxu1 %v3550_v11  ;;  %v3643_v11 = vld [vmem:[%s3878_s27 + $0x52c] ss:$16 sps:$4 sm:$0xff]  }
  0xde   : > { %2428 = vmatpush2.bf16.msra.mxu0 %v3545_v12  ;;  %v3638_v12 = vld [vmem:[%s3878_s27 + $0x328] ss:$16 sps:$4 sm:$0xff]  }
  0xdf   : > { %2471 = vmatpush2.bf16.msra.mxu1 %v3548_v13  ;;  %2483 = vmatprep.subr.bf16.mxu0 %v3556_v14  ;;  %v3641_v13 = vld [vmem:[%s3878_s27 + $0x528] ss:$16 sps:$4 sm:$0xff]   ;;  %v3646_v14 = vld [vmem:[%s3878_s27 + $0x30c] ss:$16 sps:$4 sm:$0xff]  }
  0xe0   : > { %2526 = vmatprep.subr.bf16.mxu1 %v3559_v15  ;;  %v3649_v15 = vld [vmem:[%s3878_s27 + $0x50c] ss:$16 sps:$4 sm:$0xff]  }
  0xe1   : > { %2430 = vmatmul.mubr.bf16.vlgmr.msra.gmra.mxu0 %v4120_v16 }
  0xe2   : > { %2473 = vmatmul.mubr.bf16.vlgmr.msra.gmra.mxu1 %v3958_v4  ;;  %2484 = vmatpush1.bf16.msra.mxu0 %v3554_v17  ;;  %v3566_v4 = vld [vmem:[%s3878_s27 + $0x2a8] ss:$16 sps:$4 sm:$0xff]  }
  0xe3   : > { %2527 = vmatpush1.bf16.msra.mxu1 %v3557_v18  ;;  %2485 = vmatprep.subr.bf16.mxu0 %v3562_v19  ;;  %v3644_v17 = vld [vmem:[%s3878_s27 + $0x308] ss:$16 sps:$4 sm:$0xff]   ;;  %v3652_v19 = vld [vmem:[%s3878_s27 + $0x6ec] ss:$16 sps:$4 sm:$0xff]  }
  0xe4   : > { %2528 = vmatprep.subr.bf16.mxu1 %v3565_v21  ;;  %2515 = vmatprep.mubr.bf16.mxu0 %v3754_v26  ;;  %v3647_v18 = vld [vmem:[%s3878_s27 + $0x508] ss:$16 sps:$4 sm:$0xff]   ;;  %v3655_v21 = vld [vmem:[%s3878_s27 + $0x8ec] ss:$16 sps:$4 sm:$0xff]  }
  0xe5   : > { %2558 = vmatprep.mubr.bf16.mxu1 %v3995_v34  ;;  %v3580_v34 = vld [vmem:[%s3878_s27 + $0x26c] ss:$16 sps:$4 sm:$0xff]   ;;  %v3755_v26 = vld [vmem:[%s4290_s0 + $0x8] ss:$40 sps:$4 sm:$0xff]  }
  0xe6   : > { %2486 = vmatpush1.bf16.msra.mxu0 %v3560_v22  ;;  %v3650_v22 = vld [vmem:[%s3878_s27 + $0x6e8] ss:$16 sps:$4 sm:$0xff]  }
  0xe7   : > { %2529 = vmatpush1.bf16.msra.mxu1 %v3563_v23  ;;  %2487 = vmatprep.subr.bf16.mxu0 %v3568_v24  ;;  %v3653_v23 = vld [vmem:[%s3878_s27 + $0x8e8] ss:$16 sps:$4 sm:$0xff]   ;;  %v3658_v24 = vld [vmem:[%s3878_s27 + $0x6cc] ss:$16 sps:$4 sm:$0xff]  }
  0xe8   : > { %2530 = vmatprep.subr.bf16.mxu1 %v3571_v25  ;;  %v3661_v25 = vld [vmem:[%s3878_s27 + $0x8cc] ss:$16 sps:$4 sm:$0xff]  }
  0xea   : > { %2488 = vmatpush1.bf16.msra.mxu0 %v3566_v4  ;;  %v3656_v4 = vld [vmem:[%s3878_s27 + $0x6c8] ss:$16 sps:$4 sm:$0xff]  }
  0xeb   : > { %2531 = vmatpush1.bf16.msra.mxu1 %v3569_v49  ;;  %2489 = vmatprep.subr.bf16.mxu0 %v3574_v27  ;;  %v3659_v49 = vld [vmem:[%s3878_s27 + $0x8c8] ss:$16 sps:$4 sm:$0xff]   ;;  %v3664_v27 = vld [vmem:[%s3878_s27 + $0x6ac] ss:$16 sps:$4 sm:$0xff]  }
  0xec   : > { %2532 = vmatprep.subr.bf16.mxu1 %v3577_v28  ;;  %v3667_v28 = vld [vmem:[%s3878_s27 + $0x8ac] ss:$16 sps:$4 sm:$0xff]  }
  0xee   : > { %2490 = vmatpush1.bf16.msra.mxu0 %v3572_v29  ;;  %v3756_v29 = vld [vmem:[%s4290_s0 + $0x1c] ss:$40 sps:$4 sm:$0xff]  }
  0xef   : > { %2533 = vmatpush1.bf16.msra.mxu1 %v3575_v30  ;;  %2491 = vmatprep.subr.bf16.mxu0 %v3580_v34  ;;  %v3665_v30 = vld [vmem:[%s3878_s27 + $0x8a8] ss:$16 sps:$4 sm:$0xff]   ;;  %v3670_v34 = vld [vmem:[%s3878_s27 + $0x68c] ss:$16 sps:$4 sm:$0xff]  }
  0xf0   : > { %2534 = vmatprep.subr.bf16.mxu1 %v3583_v31  ;;  %v3673_v31 = vld [vmem:[%s3878_s27 + $0x88c] ss:$16 sps:$4 sm:$0xff]  }
  0xf2   : > { %2492 = vmatpush1.bf16.msra.mxu0 %v3578_v32  ;;  %v3668_v32 = vld [vmem:[%s3878_s27 + $0x688] ss:$16 sps:$4 sm:$0xff]  }
  0xf3   : > { %2535 = vmatpush1.bf16.msra.mxu1 %v3581_v33  ;;  %2493 = vmatprep.subr.bf16.mxu0 %v3586_v35  ;;  %v3671_v33 = vld [vmem:[%s3878_s27 + $0x888] ss:$16 sps:$4 sm:$0xff]   ;;  %v3679_v35 = vld [vmem:[%s3878_s27 + $0x86c] ss:$16 sps:$4 sm:$0xff]  }
  0xf4   : > { %2536 = vmatprep.subr.bf16.mxu1 %v3589_v36  ;;  %v3674_v36 = vld [vmem:[%s3878_s27 + $0x668] ss:$16 sps:$4 sm:$0xff]  }
  0xf6   : > { %2494 = vmatpush1.bf16.msra.mxu0 %v3584_v37  ;;  %v3677_v37 = vld [vmem:[%s3878_s27 + $0x868] ss:$16 sps:$4 sm:$0xff]  }
  0xf7   : > { %2537 = vmatpush1.bf16.msra.mxu1 %v3587_v38  ;;  %2495 = vmatprep.subr.bf16.mxu0 %v3592_v39  ;;  %v3682_v38 = vld [vmem:[%s3878_s27 + $0x64c] ss:$16 sps:$4 sm:$0xff]  }
  0xf8   : > { %2538 = vmatprep.subr.bf16.mxu1 %v3595_v40  ;;  %v3685_v39 = vld [vmem:[%s3878_s27 + $0x84c] ss:$16 sps:$4 sm:$0xff]   ;;  %v3680_v40 = vld [vmem:[%s3878_s27 + $0x648] ss:$16 sps:$4 sm:$0xff]  }
  0xfa   : > { %2496 = vmatpush1.bf16.msra.mxu0 %v3590_v41  ;;  %v3683_v41 = vld [vmem:[%s3878_s27 + $0x848] ss:$16 sps:$4 sm:$0xff]  }
  0xfb   : > { %2539 = vmatpush1.bf16.msra.mxu1 %v3593_v42  ;;  %2497 = vmatprep.subr.bf16.mxu0 %v3598_v43  ;;  %v3688_v42 = vld [vmem:[%s3878_s27 + $0x62c] ss:$16 sps:$4 sm:$0xff]  }
  0xfc   : > { %2540 = vmatprep.subr.bf16.mxu1 %v3601_v44  ;;  %v3691_v43 = vld [vmem:[%s3878_s27 + $0x82c] ss:$16 sps:$4 sm:$0xff]   ;;  %v3686_v44 = vld [vmem:[%s3878_s27 + $0x628] ss:$16 sps:$4 sm:$0xff]  }
  0xfe   : > { %2498 = vmatpush1.bf16.msra.mxu0 %v3596_v45  ;;  %v3689_v45 = vld [vmem:[%s3878_s27 + $0x828] ss:$16 sps:$4 sm:$0xff]  }
  0xff   : > { %2541 = vmatpush1.bf16.msra.mxu1 %v3599_v46  ;;  %2499 = vmatprep.subr.bf16.mxu0 %v3604_v47  ;;  %v3694_v46 = vld [vmem:[%s3878_s27 + $0x60c] ss:$16 sps:$4 sm:$0xff]  }
 0x100   : > { %2542 = vmatprep.subr.bf16.mxu1 %v3607_v48  ;;  %v3697_v47 = vld [vmem:[%s3878_s27 + $0x80c] ss:$16 sps:$4 sm:$0xff]   ;;  %v3692_v48 = vld [vmem:[%s3878_s27 + $0x608] ss:$16 sps:$4 sm:$0xff]  }
 0x102   : > { %2500 = vmatpush2.bf16.msra.mxu0 %v3602_v50  ;;  %v3695_v50 = vld [vmem:[%s3878_s27 + $0x808] ss:$16 sps:$4 sm:$0xff]  }
 0x103   : > { %2543 = vmatpush2.bf16.msra.mxu1 %v3605_v51  ;;  %2501 = vmatprep.subr.bf16.mxu0 %v3610_v52  ;;  %v3700_v51 = vld [vmem:[%s3878_s27 + $0x7ec] ss:$16 sps:$4 sm:$0xff]  }
 0x104   : > { %2544 = vmatprep.subr.bf16.mxu1 %v3613_v53  ;;  %v3703_v52 = vld [vmem:[%s3878_s27 + $0x9ec] ss:$16 sps:$4 sm:$0xff]   ;;  %v3698_v53 = vld [vmem:[%s3878_s27 + $0x7e8] ss:$16 sps:$4 sm:$0xff]  }
 0x106   : > { %2502 = vmatpush2.bf16.msra.mxu0 %v3608_v54  ;;  %v3701_v54 = vld [vmem:[%s3878_s27 + $0x9e8] ss:$16 sps:$4 sm:$0xff]  }
 0x107   : > { %2545 = vmatpush2.bf16.msra.mxu1 %v3611_v55  ;;  %2503 = vmatprep.subr.bf16.mxu0 %v3616_v56  ;;  %v3706_v55 = vld [vmem:[%s3878_s27 + $0x7cc] ss:$16 sps:$4 sm:$0xff]  }
 0x108   : > { %2546 = vmatprep.subr.bf16.mxu1 %v3619_v57  ;;  %v3709_v56 = vld [vmem:[%s3878_s27 + $0x9cc] ss:$16 sps:$4 sm:$0xff]   ;;  %v3704_v57 = vld [vmem:[%s3878_s27 + $0x7c8] ss:$16 sps:$4 sm:$0xff]  }
 0x10a   : > { %2504 = vmatpush2.bf16.msra.mxu0 %v3614_v58  ;;  %v3707_v58 = vld [vmem:[%s3878_s27 + $0x9c8] ss:$16 sps:$4 sm:$0xff]  }
 0x10b   : > { %2547 = vmatpush2.bf16.msra.mxu1 %v3617_v59  ;;  %2505 = vmatprep.subr.bf16.mxu0 %v3622_v60  ;;  %v3712_v59 = vld [vmem:[%s3878_s27 + $0x7ac] ss:$16 sps:$4 sm:$0xff]  }
 0x10c   : > { %2548 = vmatprep.subr.bf16.mxu1 %v3625_v61  ;;  %v3715_v60 = vld [vmem:[%s3878_s27 + $0x9ac] ss:$16 sps:$4 sm:$0xff]   ;;  %v3710_v61 = vld [vmem:[%s3878_s27 + $0x7a8] ss:$16 sps:$4 sm:$0xff]  }
 0x10e   : > { %2506 = vmatpush2.bf16.msra.mxu0 %v3620_v62  ;;  %v3713_v62 = vld [vmem:[%s3878_s27 + $0x9a8] ss:$16 sps:$4 sm:$0xff]  }
 0x10f   : > { %2549 = vmatpush2.bf16.msra.mxu1 %v3623_v63  ;;  %2507 = vmatprep.subr.bf16.mxu0 %v3628_v0  ;;  %v3718_v63 = vld [vmem:[%s3878_s27 + $0x78c] ss:$16 sps:$4 sm:$0xff]  }
 0x110   : > { %2550 = vmatprep.subr.bf16.mxu1 %v3631_v1  ;;  %v3721_v0 = vld [vmem:[%s3878_s27 + $0x98c] ss:$16 sps:$4 sm:$0xff]   ;;  %v3716_v1 = vld [vmem:[%s3878_s27 + $0x788] ss:$16 sps:$4 sm:$0xff]  }
 0x112   : > { %2508 = vmatpush2.bf16.msra.mxu0 %v3626_v2  ;;  %v3719_v2 = vld [vmem:[%s3878_s27 + $0x988] ss:$16 sps:$4 sm:$0xff]  }
 0x113   : > { %2551 = vmatpush2.bf16.msra.mxu1 %v3629_v3  ;;  %2509 = vmatprep.subr.bf16.mxu0 %v3634_v5  ;;  %v3724_v3 = vld [vmem:[%s3878_s27 + $0x76c] ss:$16 sps:$4 sm:$0xff]  }
 0x114   : > { %2552 = vmatprep.subr.bf16.mxu1 %v3637_v6  ;;  %v3727_v5 = vld [vmem:[%s3878_s27 + $0x96c] ss:$16 sps:$4 sm:$0xff]   ;;  %v3722_v6 = vld [vmem:[%s3878_s27 + $0x768] ss:$16 sps:$4 sm:$0xff]  }
 0x116   : > { %2510 = vmatpush2.bf16.msra.mxu0 %v3632_v7  ;;  %v3725_v7 = vld [vmem:[%s3878_s27 + $0x968] ss:$16 sps:$4 sm:$0xff]  }
 0x117   : > { %2553 = vmatpush2.bf16.msra.mxu1 %v3635_v8  ;;  %2511 = vmatprep.subr.bf16.mxu0 %v3640_v9  ;;  %v3730_v8 = vld [vmem:[%s3878_s27 + $0x74c] ss:$16 sps:$4 sm:$0xff]  }
 0x118   : > { %2554 = vmatprep.subr.bf16.mxu1 %v3643_v11  ;;  %v3733_v9 = vld [vmem:[%s3878_s27 + $0x94c] ss:$16 sps:$4 sm:$0xff]   ;;  %v3728_v11 = vld [vmem:[%s3878_s27 + $0x748] ss:$16 sps:$4 sm:$0xff]  }
 0x11a   : > { %2512 = vmatpush2.bf16.msra.mxu0 %v3638_v12  ;;  %v3731_v12 = vld [vmem:[%s3878_s27 + $0x948] ss:$16 sps:$4 sm:$0xff]  }
 0x11b   : > { %2555 = vmatpush2.bf16.msra.mxu1 %v3641_v13  ;;  %2513 = vmatprep.subr.bf16.mxu0 %v3646_v14  ;;  %v3736_v13 = vld [vmem:[%s3878_s27 + $0x72c] ss:$16 sps:$4 sm:$0xff]  }
 0x11c   : > { %2556 = vmatprep.subr.bf16.mxu1 %v3649_v15  ;;  %v3739_v14 = vld [vmem:[%s3878_s27 + $0x92c] ss:$16 sps:$4 sm:$0xff]   ;;  %v3734_v15 = vld [vmem:[%s3878_s27 + $0x728] ss:$16 sps:$4 sm:$0xff]  }
 0x11e   : > { %2514 = vmatpush2.bf16.msra.mxu0 %v3644_v17  ;;  %v3737_v17 = vld [vmem:[%s3878_s27 + $0x928] ss:$16 sps:$4 sm:$0xff]  }
 0x11f   : > { %2557 = vmatpush2.bf16.msra.mxu1 %v3647_v18  ;;  %2569 = vmatprep.subr.bf16.mxu0 %v3652_v19  ;;  %v3742_v18 = vld [vmem:[%s3878_s27 + $0x70c] ss:$16 sps:$4 sm:$0xff]  }
 0x120   : > { %2612 = vmatprep.subr.bf16.mxu1 %v3655_v21  ;;  %v3745_v19 = vld [vmem:[%s3878_s27 + $0x90c] ss:$16 sps:$4 sm:$0xff]   ;;  %v3740_v21 = vld [vmem:[%s3878_s27 + $0x708] ss:$16 sps:$4 sm:$0xff]  }
 0x121   : > { %2516 = vmatmul.mubr.bf16.vlgmr.msra.gmra.mxu0 %v3755_v26 }
 0x122   : > { %2559 = vmatmul.mubr.bf16.vlgmr.msra.gmra.mxu1 %v4040_v10  ;;  %2570 = vmatpush1.bf16.msra.mxu0 %v3650_v22  ;;  %v3662_v10 = vld [vmem:[%s3878_s27 + $0x6a8] ss:$16 sps:$4 sm:$0xff]   ;;  %v2302_v26 = vpop.f32.mrf.mxu1 }
 0x123   : > { %2613 = vmatpush1.bf16.msra.mxu1 %v3653_v23  ;;  %2571 = vmatprep.subr.bf16.mxu0 %v3658_v24  ;;  %v3743_v22 = vld [vmem:[%s3878_s27 + $0x908] ss:$16 sps:$4 sm:$0xff]   ;;  %v2259_v24 = vpop.f32.mrf.mxu0 }
 0x124   : > { %2614 = vmatprep.subr.bf16.mxu1 %v3661_v25  ;;  %2601 = vmatprep.mubr.bf16.mxu0 %v3756_v29  ;;  %v3757_v23 = vld [vmem:[%s4290_s0 + $0x18] ss:$40 sps:$4 sm:$0xff]  }
 0x125   : > { %2644 = vmatprep.mubr.bf16.mxu1 %v4057_v20  ;;  %v3676_v20 = vld [vmem:[%s3878_s27 + $0x66c] ss:$16 sps:$4 sm:$0xff]   ;;  %v2261_v25 = vpop.f32.mrf.mxu0  ;;  %s3211_s27 = sshll.u32 %s4301_s12, 5 }
 0x126   : > { %2572 = vmatpush1.bf16.msra.mxu0 %v3656_v4  ;;  %s229_s9 = scalar_lea.vmem %s4292_s2, %s3211_s27  ;;  %s240_s15 = scalar_lea.vmem %s4293_s3, %s3211_s27 }
 0x127   : > { %2615 = vmatpush1.bf16.msra.mxu1 %v3659_v49  ;;  %2573 = vmatprep.subr.bf16.mxu0 %v3664_v27  ;;  %v2263_v4 = vpop.f32.mrf.mxu0  ;;  %v2304_v49 = vpop.f32.mrf.mxu1 }
 0x128   : > { %2616 = vmatprep.subr.bf16.mxu1 %v3667_v28 }
 0x129   : > { %v2265_v27 = vpop.f32.mrf.mxu0  ;;  %v2306_v28 = vpop.f32.mrf.mxu1 }
 0x12a   : > { %2574 = vmatpush1.bf16.msra.mxu0 %v3662_v10 }
 0x12b   : > { %2617 = vmatpush1.bf16.msra.mxu1 %v3665_v30  ;;  %2575 = vmatprep.subr.bf16.mxu0 %v3670_v34  ;;  %v2308_v10 = vpop.f32.mrf.mxu1 }
 0x12c   : > { %2618 = vmatprep.subr.bf16.mxu1 %v3673_v31  ;;  %v2303_v31 = vadd.f32 %v2302_v26, %v2259_v24 }
 0x12e   : > { %2576 = vmatpush1.bf16.msra.mxu0 %v3668_v32 }
 0x12f   : > { %2619 = vmatpush1.bf16.msra.mxu1 %v3671_v33  ;;  %2577 = vmatprep.subr.bf16.mxu0 %v3676_v20  ;;  %v2305_v33 = vadd.f32 %v2304_v49, %v2261_v25 }
 0x130   : > { %2620 = vmatprep.subr.bf16.mxu1 %v3679_v35  ;;  %v2307_v35 = vadd.f32 %v2306_v28, %v2263_v4 }
 0x132   : > { %2578 = vmatpush1.bf16.msra.mxu0 %v3674_v36 }
 0x133   : > { %2621 = vmatpush1.bf16.msra.mxu1 %v3677_v37  ;;  %2579 = vmatprep.subr.bf16.mxu0 %v3682_v38  ;;  %v2309_v38 = vadd.f32 %v2308_v10, %v2265_v27 }
 0x134   : > { %2622 = vmatprep.subr.bf16.mxu1 %v3685_v39 }
 0x136   : > { %2580 = vmatpush1.bf16.msra.mxu0 %v3680_v40 }
 0x137   : > { %2623 = vmatpush1.bf16.msra.mxu1 %v3683_v41  ;;  %2581 = vmatprep.subr.bf16.mxu0 %v3688_v42 }
 0x138   : > { %2624 = vmatprep.subr.bf16.mxu1 %v3691_v43 }
 0x13a   : > { %2582 = vmatpush1.bf16.msra.mxu0 %v3686_v44 }
 0x13b   : > { %2625 = vmatpush1.bf16.msra.mxu1 %v3689_v45  ;;  %2583 = vmatprep.subr.bf16.mxu0 %v3694_v46 }
 0x13c   : > { %2626 = vmatprep.subr.bf16.mxu1 %v3697_v47 }
 0x13e   : > { %2584 = vmatpush1.bf16.msra.mxu0 %v3692_v48 }
 0x13f   : > { %2627 = vmatpush1.bf16.msra.mxu1 %v3695_v50  ;;  %2585 = vmatprep.subr.bf16.mxu0 %v3700_v51 }
 0x140   : > { %2628 = vmatprep.subr.bf16.mxu1 %v3703_v52 }
 0x142   : > { %2586 = vmatpush2.bf16.msra.mxu0 %v3698_v53 }
 0x143   : > { %2629 = vmatpush2.bf16.msra.mxu1 %v3701_v54  ;;  %2587 = vmatprep.subr.bf16.mxu0 %v3706_v55 }
 0x144   : > { %2630 = vmatprep.subr.bf16.mxu1 %v3709_v56 }
 0x146   : > { %2588 = vmatpush2.bf16.msra.mxu0 %v3704_v57 }
 0x147   : > { %2631 = vmatpush2.bf16.msra.mxu1 %v3707_v58  ;;  %2589 = vmatprep.subr.bf16.mxu0 %v3712_v59 }
 0x148   : > { %2632 = vmatprep.subr.bf16.mxu1 %v3715_v60 }
 0x14a   : > { %2590 = vmatpush2.bf16.msra.mxu0 %v3710_v61 }
 0x14b   : > { %2633 = vmatpush2.bf16.msra.mxu1 %v3713_v62  ;;  %2591 = vmatprep.subr.bf16.mxu0 %v3718_v63 }
 0x14c   : > { %2634 = vmatprep.subr.bf16.mxu1 %v3721_v0 }
 0x14e   : > { %2592 = vmatpush2.bf16.msra.mxu0 %v3716_v1 }
 0x14f   : > { %2635 = vmatpush2.bf16.msra.mxu1 %v3719_v2  ;;  %2593 = vmatprep.subr.bf16.mxu0 %v3724_v3 }
 0x150   : > { %2636 = vmatprep.subr.bf16.mxu1 %v3727_v5 }
 0x152   : > { %2594 = vmatpush2.bf16.msra.mxu0 %v3722_v6 }
 0x153   : > { %2637 = vmatpush2.bf16.msra.mxu1 %v3725_v7  ;;  %2595 = vmatprep.subr.bf16.mxu0 %v3730_v8 }
 0x154   : > { %2638 = vmatprep.subr.bf16.mxu1 %v3733_v9 }
 0x156   : > { %2596 = vmatpush2.bf16.msra.mxu0 %v3728_v11 }
 0x157   : > { %2639 = vmatpush2.bf16.msra.mxu1 %v3731_v12  ;;  %2597 = vmatprep.subr.bf16.mxu0 %v3736_v13 }
 0x158   : > { %2640 = vmatprep.subr.bf16.mxu1 %v3739_v14 }
 0x15a   : > { %2598 = vmatpush2.bf16.msra.mxu0 %v3734_v15 }
 0x15b   : > { %2641 = vmatpush2.bf16.msra.mxu1 %v3737_v17  ;;  %2599 = vmatprep.subr.bf16.mxu0 %v3742_v18 }
 0x15c   : > { %2642 = vmatprep.subr.bf16.mxu1 %v3745_v19 }
 0x15e   : > { %2600 = vmatpush2.bf16.msra.mxu0 %v3740_v21 }
 0x15f   : > { %2643 = vmatpush2.bf16.msra.mxu1 %v3743_v22 }
 0x161   : > { %2602 = vmatmul.mubr.bf16.vlgmr.msra.gmra.mxu0 %v3757_v23  ;;  %v2345_v29 = vpop.f32.mrf.mxu0 }
 0x162   : > { %2645 = vmatmul.mubr.bf16.vlgmr.msra.gmra.mxu1 %v4120_v16  ;;  %v2388_v34 = vpop.f32.mrf.mxu1  ;;  %v2346_v16 = vadd.f32 %v2345_v29, %v2303_v31 }
 0x163   : > { %v2347_v30 = vpop.f32.mrf.mxu0 }
 0x164   : > { %v2390_v20 = vpop.f32.mrf.mxu1  ;;  %v2348_v36 = vadd.f32 %v2347_v30, %v2305_v33  ;;  %v2389_v39 = vadd.f32 %v2388_v34, %v2346_v16 }
 0x165   : > { %v2349_v32 = vpop.f32.mrf.mxu0 }
 0x166   : > { %v2350_v40 = vadd.f32 %v2349_v32, %v2307_v35  ;;  %v2392_v41 = vpop.f32.mrf.mxu1  ;;  %v2391_v43 = vadd.f32 %v2390_v20, %v2348_v36 }
 0x167   : > { %v2351_v37 = vpop.f32.mrf.mxu0 }
 0x168   : > { %v2352_v44 = vadd.f32 %v2351_v37, %v2309_v38  ;;  %v2393_v47 = vadd.f32 %v2392_v41, %v2350_v40  ;;  %v2394_v50 = vpop.f32.mrf.mxu1 }
 0x16a   : > { %v2395_v52 = vadd.f32 %v2394_v50, %v2352_v44 }
 0x1a1   : > { %v2431_v42 = vpop.f32.mrf.mxu0 }
 0x1a2   : > { %v2432_v45 = vadd.f32 %v2431_v42, %v2389_v39  ;;  %v2474_v56 = vpop.f32.mrf.mxu1 }
 0x1a3   : > { %v2433_v46 = vpop.f32.mrf.mxu0 }
 0x1a4   : > { %2655 = vst [vmem:[%s229_s9] sm:$0xff] %v2432_v45  ;;  %v2434_v48 = vadd.f32 %v2433_v46, %v2391_v43  ;;  %v2476_v57 = vpop.f32.mrf.mxu1  ;;  %v2659_v22 = vmul.f32 %v2432_v45, %v2432_v45 }
 0x1a5   : > { %v2435_v51 = vpop.f32.mrf.mxu0 }
 0x1a6   : > { %2656 = vst [vmem:[%s229_s9 + $0x8] sm:$0xff] %v2434_v48  ;;  %v2436_v53 = vadd.f32 %v2435_v51, %v2393_v47  ;;  %v2478_v58 = vpop.f32.mrf.mxu1  ;;  %v2660_v27 = vmul.f32 %v2434_v48, %v2434_v48 }
 0x1a7   : > { %v2437_v54 = vpop.f32.mrf.mxu0 }
 0x1a8   : > { %2657 = vst [vmem:[%s229_s9 + $0x10] sm:$0xff] %v2436_v53  ;;  %v2438_v55 = vadd.f32 %v2437_v54, %v2395_v52  ;;  %v2480_v59 = vpop.f32.mrf.mxu1  ;;  %v2661_v35 = vmul.f32 %v2436_v53, %v2436_v53 }
 0x1aa   : > { %2658 = vst [vmem:[%s229_s9 + $0x18] sm:$0xff] %v2438_v55  ;;  %v2662_v39 = vmul.f32 %v2438_v55, %v2438_v55 }
 0x1e1   : > { %v2517_v60 = vpop.f32.mrf.mxu0 }
 0x1e2   : > { %v2560_v61 = vpop.f32.mrf.mxu1  ;;  %v2518_v2 = vadd.f32 %v2517_v60, %v2474_v56 }
 0x1e3   : > { %v2519_v62 = vpop.f32.mrf.mxu0 }
 0x1e4   : > { %v2562_v63 = vpop.f32.mrf.mxu1  ;;  %v2520_v3 = vadd.f32 %v2519_v62, %v2476_v57  ;;  %v2561_v7 = vadd.f32 %v2560_v61, %v2518_v2 }
 0x1e5   : > { %v2521_v0 = vpop.f32.mrf.mxu0 }
 0x1e6   : > { %v2564_v1 = vpop.f32.mrf.mxu1  ;;  %v2522_v8 = vadd.f32 %v2521_v0, %v2478_v58  ;;  %v2563_v12 = vadd.f32 %v2562_v63, %v2520_v3 }
 0x1e7   : > { %v2523_v5 = vpop.f32.mrf.mxu0 }
 0x1e8   : > { %v2566_v6 = vpop.f32.mrf.mxu1  ;;  %v2524_v13 = vadd.f32 %v2523_v5, %v2480_v59  ;;  %v2565_v18 = vadd.f32 %v2564_v1, %v2522_v8 }
 0x1ea   : > { %v2567_v25 = vadd.f32 %v2566_v6, %v2524_v13 }
 0x221   : > { %v2603_v9 = vpop.f32.mrf.mxu0 }
 0x222   : > { %v2646_v11 = vpop.f32.mrf.mxu1  ;;  %v2604_v14 = vadd.f32 %v2603_v9, %v2561_v7 }
 0x223   : > { %v2605_v15 = vpop.f32.mrf.mxu0 }
 0x224   : > { %v2648_v17 = vpop.f32.mrf.mxu1  ;;  %v2647_v19 = vadd.f32 %v2646_v11, %v2604_v14  ;;  %v2606_v21 = vadd.f32 %v2605_v15, %v2563_v12 }
 0x225   : > { %v2607_v23 = vpop.f32.mrf.mxu0 }
 0x226   : > { %v2650_v24 = vpop.f32.mrf.mxu1  ;;  %v2663_v26 = vmul.f32 %v2647_v19, %v2647_v19  ;;  %v2649_v4 = vadd.f32 %v2648_v17, %v2606_v21  ;;  %v2608_v49 = vadd.f32 %v2607_v23, %v2565_v18 }
 0x227   : > { %v2609_v28 = vpop.f32.mrf.mxu0 }
 0x228   : > { %v2667_v29 = vadd.f32 %v2663_v26, %v2659_v22  ;;  %v2664_v10 = vmul.f32 %v2649_v4, %v2649_v4  ;;  %v2651_v30 = vadd.f32 %v2650_v24, %v2608_v49  ;;  %v2610_v34 = vadd.f32 %v2609_v28, %v2567_v25  ;;  %v2652_v31 = vpop.f32.mrf.mxu1 }
 0x22a   : > { %v2671_v32 = vadd.f32 1e-08, %v2667_v29  ;;  %v2668_v33 = vadd.f32 %v2664_v10, %v2660_v27  ;;  %v2665_v16 = vmul.f32 %v2651_v30, %v2651_v30  ;;  %v2653_v20 = vadd.f32 %v2652_v31, %v2610_v34 }
 0x22c   : > { %3746 = vrsqrt.f32 %v2671_v32  ;;  %v2672_v36 = vadd.f32 1e-08, %v2668_v33  ;;  %v2669_v37 = vadd.f32 %v2665_v16, %v2661_v35  ;;  %v2666_v38 = vmul.f32 %v2653_v20, %v2653_v20 }
 0x22d   : > { %vm2677_vm0 = vcmp.eq.f32.partialorder %v2671_v32, inf  ;;  %v2680_v45 = vand.u32 2147483648, %v2671_v32  ;;  %vm2679_vm1 = vcmp.eq.f32.partialorder %v2671_v32, 0.0 }
 0x22e   : > { %3748 = vrsqrt.f32 %v2672_v36  ;;  %v2673_v40 = vadd.f32 1e-08, %v2669_v37  ;;  %v2670_v41 = vadd.f32 %v2666_v38, %v2662_v39  ;;  %vm2684_vm2 = vcmp.eq.f32.partialorder %v2672_v36, inf }
 0x22f   : > { %v2687_v51 = vand.u32 2147483648, %v2672_v36  ;;  %vm2686_vm3 = vcmp.eq.f32.partialorder %v2672_v36, 0.0 }
 0x230   : > { %3750 = vrsqrt.f32 %v2673_v40  ;;  %v2674_v42 = vadd.f32 1e-08, %v2670_v41  ;;  %vm2691_vm4 = vcmp.eq.f32.partialorder %v2673_v40, inf  ;;  %v2694_v56 = vand.u32 2147483648, %v2673_v40 }
 0x231   : > { %vm2693_vm5 = vcmp.eq.f32.partialorder %v2673_v40, 0.0 }
 0x232   : > { %3752 = vrsqrt.f32 %v2674_v42  ;;  %vm2698_vm6 = vcmp.eq.f32.partialorder %v2674_v42, inf  ;;  %v2701_v61 = vand.u32 2147483648, %v2674_v42  ;;  %vm2700_vm7 = vcmp.eq.f32.partialorder %v2674_v42, 0.0 }
 0x239   : > { %v3747_v43 = vpop.eup %3746 }
 0x23a   : > { %v2676_v44 = vmul.f32 %v3747_v43, %v2671_v32 }
 0x23b   : > { %v3749_v46 = vpop.eup %3748 }
 0x23c   : > { %v2678_v47 = vsel %vm2677_vm0, %v2671_v32, %v2676_v44  ;;  %v2683_v50 = vmul.f32 %v3749_v46, %v2672_v36 }
 0x23d   : > { %v2681_v48 = vsel %vm2679_vm1, %v2680_v45, %v2678_v47  ;;  %v3751_v52 = vpop.eup %3750 }
 0x23e   : > { %2703 = vst [vmem:[%s240_s15] sm:$0xff] %v2681_v48  ;;  %v2685_v53 = vsel %vm2684_vm2, %v2672_v36, %v2683_v50  ;;  %v2690_v55 = vmul.f32 %v3751_v52, %v2673_v40 }
 0x23f   : > { %v2688_v54 = vsel %vm2686_vm3, %v2687_v51, %v2685_v53  ;;  %v3753_v57 = vpop.eup %3752 }
 0x240   : > { %2704 = vst [vmem:[%s240_s15 + $0x8] sm:$0xff] %v2688_v54  ;;  %v2692_v58 = vsel %vm2691_vm4, %v2673_v40, %v2690_v55  ;;  %v2697_v60 = vmul.f32 %v3753_v57, %v2674_v42 }
 0x241   : > { %v2695_v59 = vsel %vm2693_vm5, %v2694_v56, %v2692_v58 }
 0x242   : > { %2705 = vst [vmem:[%s240_s15 + $0x10] sm:$0xff] %v2695_v59  ;;  %v2699_v62 = vsel %vm2698_vm6, %v2674_v42, %v2697_v60 }
 0x243   : > { %v2702_v63 = vsel %vm2700_vm7, %v2701_v61, %v2699_v62 }
 0x244   : > { %2706 = vst [vmem:[%s240_s15 + $0x18] sm:$0xff] %v2702_v63 }
 0x245 PF: > { %s15_s14 = sadd.s32 1, %s3810_s14   ;;  %s4296_s12 = smov %s3806_s13 }
 0x246   : > { %p12_p2 = scmp.ge.s32.totalorder %s15_s14, 10   ;;  %s4297_s13 = smov %s4299_s16 }
 0x248   :  { %14 = sbr.rel (!%p12_p2) target bundleno = 2 (0x2), region = 76 }
 0x24d   :  { %2766 = vsyncpa [#allocation3], 1 }
 0x24e   :  { %2768 = vsyncpa [#allocation3 + $0x1], 1 }

// kernel: forward.9
= control target key start
LH: loop header
LB: loop body
LE: loop exit
PB: predicated region body
PF: predicated region fallthrough
CT: control target
= control target key end

     0   :  { %s2216_s1 = inlined_call_operand.vmem [shape: bf16[1280,256], index: 1, kind: input, shape index: {}]   ;;  %s2217_s0 = inlined_call_operand.vmem [shape: bf16[16,1280], index: 0, kind: input, shape index: {}]   ;;  %s2218_s2 = inlined_call_operand.vmem [shape: f32[16,256], index: 2, kind: output, shape index: {}]  }
   0x1   :  { %v1424_v0 = vld [vmem:[%s2216_s1 + $0x74] ss:$8 sps:$4 sm:$0xff]   ;;  %v1428_v2 = vld [vmem:[%s2216_s1 + $0x70] ss:$8 sps:$4 sm:$0xff]   ;;  %v1430_v4 = vld [vmem:[%s2216_s1 + $0x64] ss:$8 sps:$4 sm:$0xff]  }
   0x2   :  { %v1426_v1 = vld [vmem:[%s2216_s1 + $0x174] ss:$8 sps:$4 sm:$0xff]   ;;  %1031 = vmatprep.subr.bf16.mxu0 %v1424_v0  ;;  %v1429_v3 = vld [vmem:[%s2216_s1 + $0x170] ss:$8 sps:$4 sm:$0xff]   ;;  %v1432_v5 = vld [vmem:[%s2216_s1 + $0x164] ss:$8 sps:$4 sm:$0xff]  }
   0x3   :  { %1074 = vmatprep.subr.bf16.mxu1 %v1426_v1  ;;  %1032 = vmatpush1.bf16.msra.mxu0 %v1428_v2  ;;  %v1434_v6 = vld [vmem:[%s2216_s1 + $0x60] ss:$8 sps:$4 sm:$0xff]   ;;  %v1436_v8 = vld [vmem:[%s2216_s1 + $0x54] ss:$8 sps:$4 sm:$0xff]   ;;  %v1440_v10 = vld [vmem:[%s2216_s1 + $0x50] ss:$8 sps:$4 sm:$0xff]  }
   0x4   :  { %1075 = vmatpush1.bf16.msra.mxu1 %v1429_v3  ;;  %1033 = vmatprep.subr.bf16.mxu0 %v1430_v4  ;;  %v1435_v7 = vld [vmem:[%s2216_s1 + $0x160] ss:$8 sps:$4 sm:$0xff]   ;;  %v1438_v9 = vld [vmem:[%s2216_s1 + $0x154] ss:$8 sps:$4 sm:$0xff]   ;;  %v1441_v11 = vld [vmem:[%s2216_s1 + $0x150] ss:$8 sps:$4 sm:$0xff]  }
   0x5   :  { %1076 = vmatprep.subr.bf16.mxu1 %v1432_v5  ;;  %v1442_v12 = vld [vmem:[%s2216_s1 + $0x44] ss:$8 sps:$4 sm:$0xff]   ;;  %v1446_v14 = vld [vmem:[%s2216_s1 + $0x40] ss:$8 sps:$4 sm:$0xff]   ;;  %v1448_v16 = vld [vmem:[%s2216_s1 + $0x34] ss:$8 sps:$4 sm:$0xff]  }
   0x6   :  { %v1444_v13 = vld [vmem:[%s2216_s1 + $0x144] ss:$8 sps:$4 sm:$0xff]   ;;  %v1447_v15 = vld [vmem:[%s2216_s1 + $0x140] ss:$8 sps:$4 sm:$0xff]   ;;  %v1450_v17 = vld [vmem:[%s2216_s1 + $0x134] ss:$8 sps:$4 sm:$0xff]  }
   0x7   :  { %1034 = vmatpush1.bf16.msra.mxu0 %v1434_v6  ;;  %v1452_v18 = vld [vmem:[%s2216_s1 + $0x30] ss:$8 sps:$4 sm:$0xff]   ;;  %v1454_v20 = vld [vmem:[%s2216_s1 + $0x24] ss:$8 sps:$4 sm:$0xff]   ;;  %v1458_v22 = vld [vmem:[%s2216_s1 + $0x20] ss:$8 sps:$4 sm:$0xff]  }
   0x8   :  { %1077 = vmatpush1.bf16.msra.mxu1 %v1435_v7  ;;  %1035 = vmatprep.subr.bf16.mxu0 %v1436_v8  ;;  %v1453_v19 = vld [vmem:[%s2216_s1 + $0x130] ss:$8 sps:$4 sm:$0xff]   ;;  %v1456_v21 = vld [vmem:[%s2216_s1 + $0x124] ss:$8 sps:$4 sm:$0xff]   ;;  %v1459_v23 = vld [vmem:[%s2216_s1 + $0x120] ss:$8 sps:$4 sm:$0xff]  }
   0x9   :  { %1078 = vmatprep.subr.bf16.mxu1 %v1438_v9  ;;  %v1460_v24 = vld [vmem:[%s2216_s1 + $0x14] ss:$8 sps:$4 sm:$0xff]   ;;  %v1464_v26 = vld [vmem:[%s2216_s1 + $0x10] ss:$8 sps:$4 sm:$0xff]   ;;  %v1466_v28 = vld [vmem:[%s2216_s1 + $0x4] ss:$8 sps:$4 sm:$0xff]  }
   0xa   :  { %v1462_v25 = vld [vmem:[%s2216_s1 + $0x114] ss:$8 sps:$4 sm:$0xff]   ;;  %v1465_v27 = vld [vmem:[%s2216_s1 + $0x110] ss:$8 sps:$4 sm:$0xff]   ;;  %v1468_v29 = vld [vmem:[%s2216_s1 + $0x104] ss:$8 sps:$4 sm:$0xff]  }
   0xb   :  { %1036 = vmatpush1.bf16.msra.mxu0 %v1440_v10  ;;  %v1470_v30 = vld [vmem:[%s2216_s1] ss:$8 sps:$4 sm:$0xff]   ;;  %v1472_v32 = vld [vmem:[%s2216_s1 + $0xf4] ss:$8 sps:$4 sm:$0xff]   ;;  %v1476_v34 = vld [vmem:[%s2216_s1 + $0xf0] ss:$8 sps:$4 sm:$0xff]  }
   0xc   :  { %1079 = vmatpush1.bf16.msra.mxu1 %v1441_v11  ;;  %1037 = vmatprep.subr.bf16.mxu0 %v1442_v12  ;;  %v1471_v31 = vld [vmem:[%s2216_s1 + $0x100] ss:$8 sps:$4 sm:$0xff]   ;;  %v1474_v33 = vld [vmem:[%s2216_s1 + $0x1f4] ss:$8 sps:$4 sm:$0xff]   ;;  %v1477_v35 = vld [vmem:[%s2216_s1 + $0x1f0] ss:$8 sps:$4 sm:$0xff]  }
   0xd   :  { %1080 = vmatprep.subr.bf16.mxu1 %v1444_v13  ;;  %v1478_v36 = vld [vmem:[%s2216_s1 + $0xe4] ss:$8 sps:$4 sm:$0xff]   ;;  %v1482_v38 = vld [vmem:[%s2216_s1 + $0xe0] ss:$8 sps:$4 sm:$0xff]   ;;  %v1484_v40 = vld [vmem:[%s2216_s1 + $0xd4] ss:$8 sps:$4 sm:$0xff]  }
   0xe   :  { %v1480_v37 = vld [vmem:[%s2216_s1 + $0x1e4] ss:$8 sps:$4 sm:$0xff]   ;;  %v1483_v39 = vld [vmem:[%s2216_s1 + $0x1e0] ss:$8 sps:$4 sm:$0xff]   ;;  %v1486_v41 = vld [vmem:[%s2216_s1 + $0x1d4] ss:$8 sps:$4 sm:$0xff]  }
   0xf   :  { %1038 = vmatpush1.bf16.msra.mxu0 %v1446_v14  ;;  %v1488_v42 = vld [vmem:[%s2216_s1 + $0xd0] ss:$8 sps:$4 sm:$0xff]   ;;  %v1490_v44 = vld [vmem:[%s2216_s1 + $0xc4] ss:$8 sps:$4 sm:$0xff]   ;;  %v1494_v46 = vld [vmem:[%s2216_s1 + $0xc0] ss:$8 sps:$4 sm:$0xff]  }
  0x10   :  { %1081 = vmatpush1.bf16.msra.mxu1 %v1447_v15  ;;  %1039 = vmatprep.subr.bf16.mxu0 %v1448_v16  ;;  %v1489_v43 = vld [vmem:[%s2216_s1 + $0x1d0] ss:$8 sps:$4 sm:$0xff]   ;;  %v1492_v45 = vld [vmem:[%s2216_s1 + $0x1c4] ss:$8 sps:$4 sm:$0xff]   ;;  %v1495_v47 = vld [vmem:[%s2216_s1 + $0x1c0] ss:$8 sps:$4 sm:$0xff]  }
  0x11   :  { %1082 = vmatprep.subr.bf16.mxu1 %v1450_v17  ;;  %v1496_v48 = vld [vmem:[%s2216_s1 + $0xb4] ss:$8 sps:$4 sm:$0xff]   ;;  %v1522_v49 = vld [vmem:[%s2217_s0 + $0x4] ss:$40 sps:$4 sm:$0xff]   ;;  %v1500_v52 = vld [vmem:[%s2216_s1 + $0xb0] ss:$8 sps:$4 sm:$0xff]  }
  0x12   :  { %v1498_v50 = vld [vmem:[%s2216_s1 + $0x1b4] ss:$8 sps:$4 sm:$0xff]   ;;  %1063 = vmatprep.mubr.bf16.mxu0 %v1522_v49  ;;  %v1501_v53 = vld [vmem:[%s2216_s1 + $0x1b0] ss:$8 sps:$4 sm:$0xff]   ;;  %v1502_v54 = vld [vmem:[%s2216_s1 + $0xa4] ss:$8 sps:$4 sm:$0xff]  }
  0x13   :  { %1040 = vmatpush1.bf16.msra.mxu0 %v1452_v18  ;;  %v1525_v51 = vld [vmem:[%s2217_s0 + $0xc] ss:$40 sps:$4 sm:$0xff]   ;;  %v1506_v56 = vld [vmem:[%s2216_s1 + $0xa0] ss:$8 sps:$4 sm:$0xff]   ;;  %v1512_v60 = vld [vmem:[%s2216_s1 + $0x90] ss:$8 sps:$4 sm:$0xff]  }
  0x14   :  { %1083 = vmatpush1.bf16.msra.mxu1 %v1453_v19  ;;  %1041 = vmatprep.subr.bf16.mxu0 %v1454_v20  ;;  %v1504_v55 = vld [vmem:[%s2216_s1 + $0x1a4] ss:$8 sps:$4 sm:$0xff]   ;;  %v1507_v57 = vld [vmem:[%s2216_s1 + $0x1a0] ss:$8 sps:$4 sm:$0xff]   ;;  %v1508_v58 = vld [vmem:[%s2216_s1 + $0x94] ss:$8 sps:$4 sm:$0xff]  }
  0x15   :  { %1084 = vmatprep.subr.bf16.mxu1 %v1456_v21  ;;  %1106 = vmatprep.mubr.bf16.mxu1 %v1525_v51  ;;  %v1510_v59 = vld [vmem:[%s2216_s1 + $0x194] ss:$8 sps:$4 sm:$0xff]   ;;  %v1513_v61 = vld [vmem:[%s2216_s1 + $0x190] ss:$8 sps:$4 sm:$0xff]   ;;  %v1514_v62 = vld [vmem:[%s2216_s1 + $0x84] ss:$8 sps:$4 sm:$0xff]  }
  0x16   :  { %v1516_v63 = vld [vmem:[%s2216_s1 + $0x184] ss:$8 sps:$4 sm:$0xff]   ;;  %v1518_v0 = vld [vmem:[%s2216_s1 + $0x80] ss:$8 sps:$4 sm:$0xff]   ;;  %v1528_v2 = vld [vmem:[%s2216_s1 + $0x274] ss:$8 sps:$4 sm:$0xff]  }
  0x17   :  { %1042 = vmatpush1.bf16.msra.mxu0 %v1458_v22  ;;  %v1519_v1 = vld [vmem:[%s2216_s1 + $0x180] ss:$8 sps:$4 sm:$0xff]   ;;  %v1531_v3 = vld [vmem:[%s2216_s1 + $0x374] ss:$8 sps:$4 sm:$0xff]   ;;  %v1526_v6 = vld [vmem:[%s2216_s1 + $0x270] ss:$8 sps:$4 sm:$0xff]  }
  0x18   :  { %1085 = vmatpush1.bf16.msra.mxu1 %v1459_v23  ;;  %1043 = vmatprep.subr.bf16.mxu0 %v1460_v24  ;;  %v1520_v4 = vld [vmem:[%s2217_s0] ss:$40 sps:$4 sm:$0xff]   ;;  %v1529_v7 = vld [vmem:[%s2216_s1 + $0x370] ss:$8 sps:$4 sm:$0xff]   ;;  %v1534_v8 = vld [vmem:[%s2216_s1 + $0x264] ss:$8 sps:$4 sm:$0xff]  }
  0x19   :  { %1086 = vmatprep.subr.bf16.mxu1 %v1462_v25  ;;  %v1523_v5 = vld [vmem:[%s2217_s0 + $0x8] ss:$40 sps:$4 sm:$0xff]   ;;  %v1537_v9 = vld [vmem:[%s2216_s1 + $0x364] ss:$8 sps:$4 sm:$0xff]   ;;  %v1540_v12 = vld [vmem:[%s2216_s1 + $0x254] ss:$8 sps:$4 sm:$0xff]  }
  0x1a   :  { %v1532_v10 = vld [vmem:[%s2216_s1 + $0x260] ss:$8 sps:$4 sm:$0xff]   ;;  %v1543_v13 = vld [vmem:[%s2216_s1 + $0x354] ss:$8 sps:$4 sm:$0xff]   ;;  %v1538_v14 = vld [vmem:[%s2216_s1 + $0x250] ss:$8 sps:$4 sm:$0xff]  }
  0x1b   :  { %1044 = vmatpush1.bf16.msra.mxu0 %v1464_v26  ;;  %v1535_v11 = vld [vmem:[%s2216_s1 + $0x360] ss:$8 sps:$4 sm:$0xff]   ;;  %v1541_v15 = vld [vmem:[%s2216_s1 + $0x350] ss:$8 sps:$4 sm:$0xff]   ;;  %v1546_v16 = vld [vmem:[%s2216_s1 + $0x244] ss:$8 sps:$4 sm:$0xff]  }
  0x1c   :  { %1087 = vmatpush1.bf16.msra.mxu1 %v1465_v27  ;;  %1045 = vmatprep.subr.bf16.mxu0 %v1466_v28  ;;  %v1549_v17 = vld [vmem:[%s2216_s1 + $0x344] ss:$8 sps:$4 sm:$0xff]   ;;  %v1544_v18 = vld [vmem:[%s2216_s1 + $0x240] ss:$8 sps:$4 sm:$0xff]   ;;  %v1552_v20 = vld [vmem:[%s2216_s1 + $0x234] ss:$8 sps:$4 sm:$0xff]  }
  0x1d   :  { %1088 = vmatprep.subr.bf16.mxu1 %v1468_v29  ;;  %v1547_v19 = vld [vmem:[%s2216_s1 + $0x340] ss:$8 sps:$4 sm:$0xff]   ;;  %v1555_v21 = vld [vmem:[%s2216_s1 + $0x334] ss:$8 sps:$4 sm:$0xff]   ;;  %v1550_v22 = vld [vmem:[%s2216_s1 + $0x230] ss:$8 sps:$4 sm:$0xff]  }
  0x1e   :  { %v1553_v23 = vld [vmem:[%s2216_s1 + $0x330] ss:$8 sps:$4 sm:$0xff]   ;;  %v1558_v24 = vld [vmem:[%s2216_s1 + $0x224] ss:$8 sps:$4 sm:$0xff]   ;;  %v1556_v26 = vld [vmem:[%s2216_s1 + $0x220] ss:$8 sps:$4 sm:$0xff]  }
  0x1f   :  { %1046 = vmatpush1.bf16.msra.mxu0 %v1470_v30  ;;  %v1561_v25 = vld [vmem:[%s2216_s1 + $0x324] ss:$8 sps:$4 sm:$0xff]   ;;  %v1559_v27 = vld [vmem:[%s2216_s1 + $0x320] ss:$8 sps:$4 sm:$0xff]   ;;  %v1564_v28 = vld [vmem:[%s2216_s1 + $0x214] ss:$8 sps:$4 sm:$0xff]  }
  0x20   :  { %1089 = vmatpush1.bf16.msra.mxu1 %v1471_v31  ;;  %1047 = vmatprep.subr.bf16.mxu0 %v1472_v32  ;;  %v1567_v29 = vld [vmem:[%s2216_s1 + $0x314] ss:$8 sps:$4 sm:$0xff]   ;;  %v1562_v30 = vld [vmem:[%s2216_s1 + $0x210] ss:$8 sps:$4 sm:$0xff]   ;;  %v1570_v32 = vld [vmem:[%s2216_s1 + $0x204] ss:$8 sps:$4 sm:$0xff]  }
  0x21   :  { %1090 = vmatprep.subr.bf16.mxu1 %v1474_v33  ;;  %v1565_v31 = vld [vmem:[%s2216_s1 + $0x310] ss:$8 sps:$4 sm:$0xff]   ;;  %v1573_v33 = vld [vmem:[%s2216_s1 + $0x304] ss:$8 sps:$4 sm:$0xff]  }
  0x22   :  { %v1589_v49 = vld [vmem:[%s2216_s1 + $0x3d0] ss:$8 sps:$4 sm:$0xff]   ;;  %v1597_v51 = vld [vmem:[%s2216_s1 + $0x3c4] ss:$8 sps:$4 sm:$0xff]  }
  0x23   :  { %1048 = vmatpush2.bf16.msra.mxu0 %v1476_v34  ;;  %v1624_v34 = vld [vmem:[%s2217_s0 + $0x14] ss:$40 sps:$4 sm:$0xff]  }
  0x24   :  { %1091 = vmatpush2.bf16.msra.mxu1 %v1477_v35  ;;  %1049 = vmatprep.subr.bf16.mxu0 %v1478_v36  ;;  %v1568_v35 = vld [vmem:[%s2216_s1 + $0x200] ss:$8 sps:$4 sm:$0xff]  }
  0x25   :  { %1092 = vmatprep.subr.bf16.mxu1 %v1480_v37  ;;  %v1571_v36 = vld [vmem:[%s2216_s1 + $0x300] ss:$8 sps:$4 sm:$0xff]   ;;  %v1630_v37 = vld [vmem:[%s2217_s0 + $0x1c] ss:$40 sps:$4 sm:$0xff]  }
  0x27   :  { %1050 = vmatpush2.bf16.msra.mxu0 %v1482_v38  ;;  %v1576_v38 = vld [vmem:[%s2216_s1 + $0x2f4] ss:$8 sps:$4 sm:$0xff]  }
  0x28   :  { %1093 = vmatpush2.bf16.msra.mxu1 %v1483_v39  ;;  %1051 = vmatprep.subr.bf16.mxu0 %v1484_v40  ;;  %v1579_v39 = vld [vmem:[%s2216_s1 + $0x3f4] ss:$8 sps:$4 sm:$0xff]   ;;  %v1574_v40 = vld [vmem:[%s2216_s1 + $0x2f0] ss:$8 sps:$4 sm:$0xff]  }
  0x29   :  { %1094 = vmatprep.subr.bf16.mxu1 %v1486_v41  ;;  %v1577_v41 = vld [vmem:[%s2216_s1 + $0x3f0] ss:$8 sps:$4 sm:$0xff]  }
  0x2b   :  { %1052 = vmatpush2.bf16.msra.mxu0 %v1488_v42  ;;  %v1582_v42 = vld [vmem:[%s2216_s1 + $0x2e4] ss:$8 sps:$4 sm:$0xff]  }
  0x2c   :  { %1095 = vmatpush2.bf16.msra.mxu1 %v1489_v43  ;;  %1053 = vmatprep.subr.bf16.mxu0 %v1490_v44  ;;  %v1585_v43 = vld [vmem:[%s2216_s1 + $0x3e4] ss:$8 sps:$4 sm:$0xff]   ;;  %v1580_v44 = vld [vmem:[%s2216_s1 + $0x2e0] ss:$8 sps:$4 sm:$0xff]  }
  0x2d   :  { %1096 = vmatprep.subr.bf16.mxu1 %v1492_v45  ;;  %v1583_v45 = vld [vmem:[%s2216_s1 + $0x3e0] ss:$8 sps:$4 sm:$0xff]  }
  0x2f   :  { %1054 = vmatpush2.bf16.msra.mxu0 %v1494_v46  ;;  %v1588_v46 = vld [vmem:[%s2216_s1 + $0x2d4] ss:$8 sps:$4 sm:$0xff]  }
  0x30   :  { %1097 = vmatpush2.bf16.msra.mxu1 %v1495_v47  ;;  %1055 = vmatprep.subr.bf16.mxu0 %v1496_v48  ;;  %v1591_v47 = vld [vmem:[%s2216_s1 + $0x3d4] ss:$8 sps:$4 sm:$0xff]   ;;  %v1586_v48 = vld [vmem:[%s2216_s1 + $0x2d0] ss:$8 sps:$4 sm:$0xff]  }
  0x31   :  { %1098 = vmatprep.subr.bf16.mxu1 %v1498_v50  ;;  %v1594_v50 = vld [vmem:[%s2216_s1 + $0x2c4] ss:$8 sps:$4 sm:$0xff]  }
  0x33   :  { %1056 = vmatpush2.bf16.msra.mxu0 %v1500_v52  ;;  %v1592_v52 = vld [vmem:[%s2216_s1 + $0x2c0] ss:$8 sps:$4 sm:$0xff]  }
  0x34   :  { %1099 = vmatpush2.bf16.msra.mxu1 %v1501_v53  ;;  %1057 = vmatprep.subr.bf16.mxu0 %v1502_v54  ;;  %v1595_v53 = vld [vmem:[%s2216_s1 + $0x3c0] ss:$8 sps:$4 sm:$0xff]   ;;  %v1600_v54 = vld [vmem:[%s2216_s1 + $0x2b4] ss:$8 sps:$4 sm:$0xff]  }
  0x35   :  { %1100 = vmatprep.subr.bf16.mxu1 %v1504_v55  ;;  %v1603_v55 = vld [vmem:[%s2216_s1 + $0x3b4] ss:$8 sps:$4 sm:$0xff]  }
  0x37   :  { %1058 = vmatpush2.bf16.msra.mxu0 %v1506_v56  ;;  %v1598_v56 = vld [vmem:[%s2216_s1 + $0x2b0] ss:$8 sps:$4 sm:$0xff]  }
  0x38   :  { %1101 = vmatpush2.bf16.msra.mxu1 %v1507_v57  ;;  %1059 = vmatprep.subr.bf16.mxu0 %v1508_v58  ;;  %v1601_v57 = vld [vmem:[%s2216_s1 + $0x3b0] ss:$8 sps:$4 sm:$0xff]   ;;  %v1606_v58 = vld [vmem:[%s2216_s1 + $0x2a4] ss:$8 sps:$4 sm:$0xff]  }
  0x39   :  { %1102 = vmatprep.subr.bf16.mxu1 %v1510_v59  ;;  %v1609_v59 = vld [vmem:[%s2216_s1 + $0x3a4] ss:$8 sps:$4 sm:$0xff]  }
  0x3b   :  { %1060 = vmatpush2.bf16.msra.mxu0 %v1512_v60  ;;  %v1604_v60 = vld [vmem:[%s2216_s1 + $0x2a0] ss:$8 sps:$4 sm:$0xff]  }
  0x3c   :  { %1103 = vmatpush2.bf16.msra.mxu1 %v1513_v61  ;;  %1061 = vmatprep.subr.bf16.mxu0 %v1514_v62  ;;  %v1607_v61 = vld [vmem:[%s2216_s1 + $0x3a0] ss:$8 sps:$4 sm:$0xff]   ;;  %v1612_v62 = vld [vmem:[%s2216_s1 + $0x294] ss:$8 sps:$4 sm:$0xff]  }
  0x3d   :  { %1104 = vmatprep.subr.bf16.mxu1 %v1516_v63  ;;  %v1615_v63 = vld [vmem:[%s2216_s1 + $0x394] ss:$8 sps:$4 sm:$0xff]  }
  0x3f   :  { %1062 = vmatpush2.bf16.msra.mxu0 %v1518_v0  ;;  %v1610_v0 = vld [vmem:[%s2216_s1 + $0x290] ss:$8 sps:$4 sm:$0xff]  }
  0x40   :  { %1105 = vmatpush2.bf16.msra.mxu1 %v1519_v1  ;;  %1117 = vmatprep.subr.bf16.mxu0 %v1528_v2  ;;  %v1613_v1 = vld [vmem:[%s2216_s1 + $0x390] ss:$8 sps:$4 sm:$0xff]   ;;  %v1618_v2 = vld [vmem:[%s2216_s1 + $0x284] ss:$8 sps:$4 sm:$0xff]  }
  0x41   :  { %1160 = vmatprep.subr.bf16.mxu1 %v1531_v3  ;;  %v1621_v3 = vld [vmem:[%s2216_s1 + $0x384] ss:$8 sps:$4 sm:$0xff]  }
  0x42   :  { %1064 = vmatmul.mubr.bf16.vlgmr.msra.gmra.mxu0 %v1520_v4  ;;  %v1616_v4 = vld [vmem:[%s2216_s1 + $0x280] ss:$8 sps:$4 sm:$0xff]  }
  0x43   :  { %1107 = vmatmul.mubr.bf16.vlgmr.msra.gmra.mxu1 %v1523_v5  ;;  %1118 = vmatpush1.bf16.msra.mxu0 %v1526_v6  ;;  %v1619_v5 = vld [vmem:[%s2216_s1 + $0x380] ss:$8 sps:$4 sm:$0xff]   ;;  %v1627_v6 = vld [vmem:[%s2216_s1 + $0x474] ss:$8 sps:$4 sm:$0xff]  }
  0x44   :  { %1161 = vmatpush1.bf16.msra.mxu1 %v1529_v7  ;;  %1119 = vmatprep.subr.bf16.mxu0 %v1534_v8  ;;  %v1622_v7 = vld [vmem:[%s2217_s0 + $0x10] ss:$40 sps:$4 sm:$0xff]  }
  0x45   :  { %1162 = vmatprep.subr.bf16.mxu1 %v1537_v9  ;;  %1149 = vmatprep.mubr.bf16.mxu0 %v1624_v34  ;;  %v1628_v8 = vld [vmem:[%s2217_s0 + $0x18] ss:$40 sps:$4 sm:$0xff]  }
  0x46   :  { %1192 = vmatprep.mubr.bf16.mxu1 %v1630_v37  ;;  %v1625_v9 = vld [vmem:[%s2216_s1 + $0x470] ss:$8 sps:$4 sm:$0xff]   ;;  %v1672_v37 = vld [vmem:[%s2216_s1 + $0x494] ss:$8 sps:$4 sm:$0xff]  }
  0x47   :  { %1120 = vmatpush1.bf16.msra.mxu0 %v1532_v10  ;;  %v1678_v10 = vld [vmem:[%s2217_s0 + $0x24] ss:$40 sps:$4 sm:$0xff]   ;;  %v1664_v34 = vld [vmem:[%s2216_s1 + $0x4b0] ss:$8 sps:$4 sm:$0xff]  }
  0x48   :  { %1163 = vmatpush1.bf16.msra.mxu1 %v1535_v11  ;;  %1121 = vmatprep.subr.bf16.mxu0 %v1540_v12  ;;  %v1633_v11 = vld [vmem:[%s2216_s1 + $0x464] ss:$8 sps:$4 sm:$0xff]   ;;  %v1631_v12 = vld [vmem:[%s2216_s1 + $0x460] ss:$8 sps:$4 sm:$0xff]  }
  0x49   :  { %1164 = vmatprep.subr.bf16.mxu1 %v1543_v13  ;;  %v1636_v13 = vld [vmem:[%s2216_s1 + $0x454] ss:$8 sps:$4 sm:$0xff]  }
  0x4b   :  { %1122 = vmatpush1.bf16.msra.mxu0 %v1538_v14  ;;  %v1634_v14 = vld [vmem:[%s2216_s1 + $0x450] ss:$8 sps:$4 sm:$0xff]  }
  0x4c   :  { %1165 = vmatpush1.bf16.msra.mxu1 %v1541_v15  ;;  %1123 = vmatprep.subr.bf16.mxu0 %v1546_v16  ;;  %v1639_v15 = vld [vmem:[%s2216_s1 + $0x444] ss:$8 sps:$4 sm:$0xff]   ;;  %v1637_v16 = vld [vmem:[%s2216_s1 + $0x440] ss:$8 sps:$4 sm:$0xff]  }
  0x4d   :  { %1166 = vmatprep.subr.bf16.mxu1 %v1549_v17  ;;  %v1642_v17 = vld [vmem:[%s2216_s1 + $0x434] ss:$8 sps:$4 sm:$0xff]  }
  0x4f   :  { %1124 = vmatpush1.bf16.msra.mxu0 %v1544_v18  ;;  %v1640_v18 = vld [vmem:[%s2216_s1 + $0x430] ss:$8 sps:$4 sm:$0xff]  }
  0x50   :  { %1167 = vmatpush1.bf16.msra.mxu1 %v1547_v19  ;;  %1125 = vmatprep.subr.bf16.mxu0 %v1552_v20  ;;  %v1645_v19 = vld [vmem:[%s2216_s1 + $0x424] ss:$8 sps:$4 sm:$0xff]   ;;  %v1643_v20 = vld [vmem:[%s2216_s1 + $0x420] ss:$8 sps:$4 sm:$0xff]  }
  0x51   :  { %1168 = vmatprep.subr.bf16.mxu1 %v1555_v21  ;;  %v1648_v21 = vld [vmem:[%s2216_s1 + $0x414] ss:$8 sps:$4 sm:$0xff]  }
  0x53   :  { %1126 = vmatpush1.bf16.msra.mxu0 %v1550_v22  ;;  %v1646_v22 = vld [vmem:[%s2216_s1 + $0x410] ss:$8 sps:$4 sm:$0xff]  }
  0x54   :  { %1169 = vmatpush1.bf16.msra.mxu1 %v1553_v23  ;;  %1127 = vmatprep.subr.bf16.mxu0 %v1558_v24  ;;  %v1651_v23 = vld [vmem:[%s2216_s1 + $0x404] ss:$8 sps:$4 sm:$0xff]   ;;  %v1649_v24 = vld [vmem:[%s2216_s1 + $0x400] ss:$8 sps:$4 sm:$0xff]  }
  0x55   :  { %1170 = vmatprep.subr.bf16.mxu1 %v1561_v25  ;;  %v1654_v25 = vld [vmem:[%s2216_s1 + $0x4f4] ss:$8 sps:$4 sm:$0xff]  }
  0x57   :  { %1128 = vmatpush1.bf16.msra.mxu0 %v1556_v26  ;;  %v1652_v26 = vld [vmem:[%s2216_s1 + $0x4f0] ss:$8 sps:$4 sm:$0xff]  }
  0x58   :  { %1171 = vmatpush1.bf16.msra.mxu1 %v1559_v27  ;;  %1129 = vmatprep.subr.bf16.mxu0 %v1564_v28  ;;  %v1657_v27 = vld [vmem:[%s2216_s1 + $0x4e4] ss:$8 sps:$4 sm:$0xff]   ;;  %v1655_v28 = vld [vmem:[%s2216_s1 + $0x4e0] ss:$8 sps:$4 sm:$0xff]  }
  0x59   :  { %1172 = vmatprep.subr.bf16.mxu1 %v1567_v29  ;;  %v1660_v29 = vld [vmem:[%s2216_s1 + $0x4d4] ss:$8 sps:$4 sm:$0xff]  }
  0x5b   :  { %1130 = vmatpush1.bf16.msra.mxu0 %v1562_v30  ;;  %v1658_v30 = vld [vmem:[%s2216_s1 + $0x4d0] ss:$8 sps:$4 sm:$0xff]  }
  0x5c   :  { %1173 = vmatpush1.bf16.msra.mxu1 %v1565_v31  ;;  %1131 = vmatprep.subr.bf16.mxu0 %v1570_v32  ;;  %v1663_v31 = vld [vmem:[%s2216_s1 + $0x4c4] ss:$8 sps:$4 sm:$0xff]   ;;  %v1661_v32 = vld [vmem:[%s2216_s1 + $0x4c0] ss:$8 sps:$4 sm:$0xff]  }
  0x5d   :  { %1174 = vmatprep.subr.bf16.mxu1 %v1573_v33  ;;  %v1666_v33 = vld [vmem:[%s2216_s1 + $0x4b4] ss:$8 sps:$4 sm:$0xff]  }
  0x5f   :  { %1132 = vmatpush1.bf16.msra.mxu0 %v1568_v35  ;;  %v1669_v35 = vld [vmem:[%s2216_s1 + $0x4a4] ss:$8 sps:$4 sm:$0xff]  }
  0x60   :  { %1175 = vmatpush1.bf16.msra.mxu1 %v1571_v36  ;;  %1133 = vmatprep.subr.bf16.mxu0 %v1576_v38  ;;  %v1667_v36 = vld [vmem:[%s2216_s1 + $0x4a0] ss:$8 sps:$4 sm:$0xff]   ;;  %v1670_v38 = vld [vmem:[%s2216_s1 + $0x490] ss:$8 sps:$4 sm:$0xff]  }
  0x61   :  { %1176 = vmatprep.subr.bf16.mxu1 %v1579_v39  ;;  %v1675_v39 = vld [vmem:[%s2216_s1 + $0x484] ss:$8 sps:$4 sm:$0xff]  }
  0x63   :  { %1134 = vmatpush2.bf16.msra.mxu0 %v1574_v40  ;;  %v1673_v40 = vld [vmem:[%s2216_s1 + $0x480] ss:$8 sps:$4 sm:$0xff]  }
  0x64   :  { %1177 = vmatpush2.bf16.msra.mxu1 %v1577_v41  ;;  %1135 = vmatprep.subr.bf16.mxu0 %v1582_v42  ;;  %v1676_v41 = vld [vmem:[%s2217_s0 + $0x20] ss:$40 sps:$4 sm:$0xff]  }
  0x65   :  { %1178 = vmatprep.subr.bf16.mxu1 %v1585_v43 }
  0x67   :  { %1136 = vmatpush2.bf16.msra.mxu0 %v1580_v44 }
  0x68   :  { %1179 = vmatpush2.bf16.msra.mxu1 %v1583_v45  ;;  %1137 = vmatprep.subr.bf16.mxu0 %v1588_v46 }
  0x69   :  { %1180 = vmatprep.subr.bf16.mxu1 %v1591_v47 }
  0x6b   :  { %1138 = vmatpush2.bf16.msra.mxu0 %v1586_v48 }
  0x6c   :  { %1181 = vmatpush2.bf16.msra.mxu1 %v1589_v49  ;;  %1139 = vmatprep.subr.bf16.mxu0 %v1594_v50 }
  0x6d   :  { %1182 = vmatprep.subr.bf16.mxu1 %v1597_v51 }
  0x6f   :  { %1140 = vmatpush2.bf16.msra.mxu0 %v1592_v52 }
  0x70   :  { %1183 = vmatpush2.bf16.msra.mxu1 %v1595_v53  ;;  %1141 = vmatprep.subr.bf16.mxu0 %v1600_v54 }
  0x71   :  { %1184 = vmatprep.subr.bf16.mxu1 %v1603_v55 }
  0x73   :  { %1142 = vmatpush2.bf16.msra.mxu0 %v1598_v56 }
  0x74   :  { %1185 = vmatpush2.bf16.msra.mxu1 %v1601_v57  ;;  %1143 = vmatprep.subr.bf16.mxu0 %v1606_v58 }
  0x75   :  { %1186 = vmatprep.subr.bf16.mxu1 %v1609_v59 }
  0x77   :  { %1144 = vmatpush2.bf16.msra.mxu0 %v1604_v60 }
  0x78   :  { %1187 = vmatpush2.bf16.msra.mxu1 %v1607_v61  ;;  %1145 = vmatprep.subr.bf16.mxu0 %v1612_v62 }
  0x79   :  { %1188 = vmatprep.subr.bf16.mxu1 %v1615_v63 }
  0x7b   :  { %1146 = vmatpush2.bf16.msra.mxu0 %v1610_v0 }
  0x7c   :  { %1189 = vmatpush2.bf16.msra.mxu1 %v1613_v1  ;;  %1147 = vmatprep.subr.bf16.mxu0 %v1618_v2 }
  0x7d   :  { %1190 = vmatprep.subr.bf16.mxu1 %v1621_v3 }
  0x7f   :  { %1148 = vmatpush2.bf16.msra.mxu0 %v1616_v4 }
  0x80   :  { %1191 = vmatpush2.bf16.msra.mxu1 %v1619_v5  ;;  %1203 = vmatprep.subr.bf16.mxu0 %v1627_v6 }
  0x82   :  { %1150 = vmatmul.mubr.bf16.vlgmr.msra.gmra.mxu0 %v1622_v7 }
  0x83   :  { %1193 = vmatmul.mubr.bf16.vlgmr.msra.gmra.mxu1 %v1628_v8  ;;  %1204 = vmatpush1.bf16.msra.mxu0 %v1625_v9 }
  0x84   :  { %1235 = vmatprep.mubr.bf16.mxu0 %v1678_v10  ;;  %1205 = vmatprep.subr.bf16.mxu0 %v1633_v11 }
  0x87   :  { %1206 = vmatpush1.bf16.msra.mxu0 %v1631_v12 }
  0x88   :  { %1207 = vmatprep.subr.bf16.mxu0 %v1636_v13 }
  0x8b   :  { %1208 = vmatpush1.bf16.msra.mxu0 %v1634_v14 }
  0x8c   :  { %1209 = vmatprep.subr.bf16.mxu0 %v1639_v15 }
  0x8f   :  { %1210 = vmatpush1.bf16.msra.mxu0 %v1637_v16 }
  0x90   :  { %1211 = vmatprep.subr.bf16.mxu0 %v1642_v17 }
  0x93   :  { %1212 = vmatpush1.bf16.msra.mxu0 %v1640_v18 }
  0x94   :  { %1213 = vmatprep.subr.bf16.mxu0 %v1645_v19 }
  0x97   :  { %1214 = vmatpush1.bf16.msra.mxu0 %v1643_v20 }
  0x98   :  { %1215 = vmatprep.subr.bf16.mxu0 %v1648_v21 }
  0x9b   :  { %1216 = vmatpush1.bf16.msra.mxu0 %v1646_v22 }
  0x9c   :  { %1217 = vmatprep.subr.bf16.mxu0 %v1651_v23 }
  0x9f   :  { %1218 = vmatpush1.bf16.msra.mxu0 %v1649_v24 }
  0xa0   :  { %1219 = vmatprep.subr.bf16.mxu0 %v1654_v25 }
  0xa3   :  { %1220 = vmatpush2.bf16.msra.mxu0 %v1652_v26 }
  0xa4   :  { %1221 = vmatprep.subr.bf16.mxu0 %v1657_v27 }
  0xa7   :  { %1222 = vmatpush2.bf16.msra.mxu0 %v1655_v28 }
  0xa8   :  { %1223 = vmatprep.subr.bf16.mxu0 %v1660_v29 }
  0xab   :  { %1224 = vmatpush2.bf16.msra.mxu0 %v1658_v30 }
  0xac   :  { %1225 = vmatprep.subr.bf16.mxu0 %v1663_v31 }
  0xaf   :  { %1226 = vmatpush2.bf16.msra.mxu0 %v1661_v32 }
  0xb0   :  { %1227 = vmatprep.subr.bf16.mxu0 %v1666_v33 }
  0xb3   :  { %1228 = vmatpush2.bf16.msra.mxu0 %v1664_v34 }
  0xb4   :  { %1229 = vmatprep.subr.bf16.mxu0 %v1669_v35 }
  0xb7   :  { %1230 = vmatpush2.bf16.msra.mxu0 %v1667_v36 }
  0xb8   :  { %1231 = vmatprep.subr.bf16.mxu0 %v1672_v37 }
  0xbb   :  { %1232 = vmatpush2.bf16.msra.mxu0 %v1670_v38 }
  0xbc   :  { %1233 = vmatprep.subr.bf16.mxu0 %v1675_v39 }
  0xbf   :  { %1234 = vmatpush2.bf16.msra.mxu0 %v1673_v40 }
  0xc2   :  { %1236 = vmatmul.mubr.bf16.vlgmr.msra.gmra.mxu0 %v1676_v41 }
 0x102   :  { %v1065_v42 = vpop.f32.mrf.mxu0 }
 0x103   :  { %v1108_v43 = vpop.f32.mrf.mxu1 }
 0x104   :  { %v1067_v44 = vpop.f32.mrf.mxu0  ;;  %v1109_v53 = vadd.f32 %v1108_v43, %v1065_v42 }
 0x105   :  { %v1110_v45 = vpop.f32.mrf.mxu1 }
 0x106   :  { %v1069_v46 = vpop.f32.mrf.mxu0  ;;  %v1111_v56 = vadd.f32 %v1110_v45, %v1067_v44 }
 0x107   :  { %v1112_v47 = vpop.f32.mrf.mxu1 }
 0x108   :  { %v1071_v48 = vpop.f32.mrf.mxu0  ;;  %v1113_v58 = vadd.f32 %v1112_v47, %v1069_v46 }
 0x109   :  { %v1114_v50 = vpop.f32.mrf.mxu1 }
 0x10a   :  { %v1115_v62 = vadd.f32 %v1114_v50, %v1071_v48 }
 0x142   :  { %v1151_v49 = vpop.f32.mrf.mxu0 }
 0x143   :  { %v1194_v52 = vpop.f32.mrf.mxu1  ;;  %v1152_v57 = vadd.f32 %v1151_v49, %v1109_v53 }
 0x144   :  { %v1153_v51 = vpop.f32.mrf.mxu0 }
 0x145   :  { %v1196_v55 = vpop.f32.mrf.mxu1  ;;  %v1154_v59 = vadd.f32 %v1153_v51, %v1111_v56  ;;  %v1195_v63 = vadd.f32 %v1194_v52, %v1152_v57 }
 0x146   :  { %v1155_v54 = vpop.f32.mrf.mxu0 }
 0x147   :  { %v1198_v61 = vpop.f32.mrf.mxu1  ;;  %v1156_v0 = vadd.f32 %v1155_v54, %v1113_v58  ;;  %v1197_v2 = vadd.f32 %v1196_v55, %v1154_v59 }
 0x148   :  { %v1157_v60 = vpop.f32.mrf.mxu0 }
 0x149   :  { %v1158_v3 = vadd.f32 %v1157_v60, %v1115_v62  ;;  %v1200_v5 = vpop.f32.mrf.mxu1  ;;  %v1199_v7 = vadd.f32 %v1198_v61, %v1156_v0 }
 0x14b   :  { %v1201_v10 = vadd.f32 %v1200_v5, %v1158_v3 }
 0x182   :  { %v1237_v1 = vpop.f32.mrf.mxu0 }
 0x183   :  { %v1238_v4 = vadd.f32 %v1237_v1, %v1195_v63 }
 0x184   :  { %v1239_v6 = vpop.f32.mrf.mxu0 }
 0x185   :  { %1246 = vst [vmem:[%s2218_s2] sm:$0xff] %v1238_v4  ;;  %v1240_v8 = vadd.f32 %v1239_v6, %v1197_v2 }
 0x186   :  { %v1241_v9 = vpop.f32.mrf.mxu0 }
 0x187   :  { %1247 = vst [vmem:[%s2218_s2 + $0x8] sm:$0xff] %v1240_v8  ;;  %v1242_v11 = vadd.f32 %v1241_v9, %v1199_v7 }
 0x188   :  { %v1243_v12 = vpop.f32.mrf.mxu0 }
 0x189   :  { %1248 = vst [vmem:[%s2218_s2 + $0x10] sm:$0xff] %v1242_v11  ;;  %v1244_v13 = vadd.f32 %v1243_v12, %v1201_v10 }
 0x18b   :  { %1249 = vst [vmem:[%s2218_s2 + $0x18] sm:$0xff] %v1244_v13 }

// kernel: forward.8
= control target key start
LH: loop header
LB: loop body
LE: loop exit
PB: predicated region body
PF: predicated region fallthrough
CT: control target
= control target key end

     0   :  { %10 = vsyncpa [#allocation3], 0  ;;  %s2654_s0 = inlined_call_operand.vmem [shape: f32[8], index: 0, kind: input, shape index: {}]   ;;  %s2655_s1 = inlined_call_operand.vmem [shape: f32[8], index: 1, kind: input, shape index: {}]   ;;  %s2656_s2 = inlined_call_operand.vmem [shape: bf16[8,16,1280], index: 2, kind: input, shape index: {}]   ;;  %s2657_s3 = inlined_call_operand.vmem [shape: bf16[8,1280,256], index: 3, kind: input, shape index: {}]   ;;  %s2658_s4 = inlined_call_operand.vmem [shape: bf16[8,16,256], index: 4, kind: input, shape index: {}]   ;;  %s2659_s5 = inlined_call_operand.vmem [shape: f32[16,256], index: 5, kind: output, shape index: {}]  }
   0x1   :  { %11 = vsyncpa [#allocation5], 0  ;;  %s2353_s18 = smov 0   ;;  %s2355_s19 = smov 0  }
   0x2   :  { %s2357_s20 = smov 0  }
   0x3 LB: > { %s1751_s21 = sadd.s32 4294967295, %s2318_s20   ;;  %s26_s22 = sadd.s32 1, %s2314_s19  ;;  %s2318_s20 = sphi %s2357_s20, %s17_s20   ;;  %s2314_s19 = sphi %s2355_s19, %s2669_s19   ;;  %s2310_s18 = sphi %s2353_s18, %s2668_s18  }
   0x4   : > { %p27_p0 = scmp.ge.s32.totalorder %s26_s22, 8  ;;  %p1752_p1 = scmp.ge.s32.totalorder %s2318_s20, 1 }
   0x5   : > { %p179_p2 = scmp.lt.s32.totalorder %s2318_s20, 9  ;;  %p2378_p4 = scmp.eq.s32.totalorder %s1751_s21, 0 }
   0x6   : > { %s2671_s22 = smov (%p27_p0, %s26_s22), 0  ;;  %s192_s27 = sshll.u32 %s2654_s0, 4  ;;  %s193_s27 = int_to_ptr.vmem [resolvable:$true] %s192_s27 }
   0x7   : > { %p2374_p3 = pnand %p1752_p1, %p179_p2  ;;  %s203_s30 = sshll.u32 %s2655_s1, 4  ;;  %s204_s30 = int_to_ptr.vmem [resolvable:$true] %s203_s30 }
   0x8   : > { %s2664_s24 = scalar_select %p2378_p4, 1, 0 }
   0x9   : > { %s2663_s23 = scalar_select %p2374_p3, 1, 0 }
   0xa   : > { %p1949_p5 = pneg %p2374_p3  ;;  %s2258_s7 = scalar_lea.vmem %s193_s27, 16 }
   0xb   : > { %p2259_p7 = scmp.ne.s32.totalorder %s193_s27, %s2258_s7  ;;  %p2266_p11 = scmp.lt.s32.totalorder %s193_s27, %s193_s27 }
   0xc   : > { %p2392_p6 = pnand %p2378_p4, %p1949_p5  ;;  %p2267_p12 = scmp.lt.s32.totalorder %s2258_s7, %s2258_s7 }
   0xe   : > { %p2260_p8 = pneg %p2392_p6  ;;  %p2268_p13 = por %p2267_p12, %p2266_p11 }
  0x10   : > { %p2261_p9 = pnand %p2260_p8, %p2259_p7 }
  0x12   : > { %p2262_p10 = pneg %p2261_p9 }
  0x14   : > { %p2269_p0 = pnand %p2268_p13, %p2262_p10 }
  0x16   : > { %2272 = shalt.err (!%p2269_p0)
}
  0x17   : > { %s2320_s8 = smov [#allocation2]   ;;  %s2273_s9 = scalar_lea.vmem %s204_s30, 16 }
  0x18   : > { %1952 = dma.vmem_to_smem (!%p2392_p6), %s193_s27, 16, %s2320_s8, [#allocation3]  }
  0x19   : > { %p2274_p1 = scmp.ne.s32.totalorder %s204_s30, %s2273_s9  ;;  %p2281_p4 = scmp.lt.s32.totalorder %s204_s30, %s204_s30 }
  0x1a   : > { %p2282_p3 = scmp.lt.s32.totalorder %s2273_s9, %s2273_s9 }
  0x1b   : > { %p2276_p2 = pnand %p2274_p1, %p2260_p8 }
  0x1c   : > { %p2283_p7 = por %p2282_p3, %p2281_p4 }
  0x1d   : > { %p2277_p5 = pneg %p2276_p2 }
  0x1f   : > { %p2284_p9 = pnand %p2283_p7, %p2277_p5 }
  0x21   : > { %2287 = shalt.err (!%p2284_p9)
}
  0x22   : > { %s2321_s10 = smov [#allocation4]   ;;  %p2666_p10 = scmp.ne.s32.totalorder %s2663_s23, 0 }
  0x23   : > { %1955 = dma.vmem_to_smem (!%p2392_p6), %s204_s30, 16, %s2321_s10, [#allocation5]  }
  0x24   : > { %247 = sbr.rel (%p2666_p10) target bundleno = 497 (0x1f1), region = 40  ;;  %p2667_p11 = scmp.ne.s32.totalorder (!%p2666_p10), %s2664_s24, 0 }
  0x29   : > { %2301 = dma.done.wait (%p2667_p11), [#allocation3], 16  }
  0x2a   : > { %2303 = vsyncadd (%p2667_p11), [#allocation3], 4294967280 }
  0x2b   : > { %2305 = dma.done.wait (%p2667_p11), [#allocation5], 16  }
  0x2c   : > { %2307 = vsyncadd (%p2667_p11), [#allocation5], 4294967280 }
  0x2d   : > { %257 = sfence }
  0x2e   : > { %s1939_s11 = smul.u32 1280, %s2310_s18  ;;  %p297_p3 = scmp.lt.s32.totalorder %s2310_s18, 7 }
  0x2f   : > { %s1564_s28 = sld [smem:[#allocation4 + %s2310_s18]]  ;;  %p1933_p4 = scmp.ne.s32.totalorder %s2310_s18, 0 }
  0x30   : > { %s2417_s14 = scalar_lea.vmem %s2657_s3, %s1939_s11  ;;  %s1563_s29 = sld [smem:[#allocation2 + %s2310_s18]] }
  0x31   : > { %v1987_v0 = vld [vmem:[%s2417_s14 + $0x74] ss:$8 sps:$4 sm:$0xff]   ;;  %s2422_s15 = scalar_select %p297_p3, %s2310_s18, 7  ;;  %v1991_v2 = vld [vmem:[%s2417_s14 + $0x70] ss:$8 sps:$4 sm:$0xff]  }
  0x32   : > { %v1989_v1 = vld [vmem:[%s2417_s14 + $0x174] ss:$8 sps:$4 sm:$0xff]   ;;  %1348 = vmatprep.subr.bf16.mxu0 %v1987_v0  ;;  %v1992_v3 = vld [vmem:[%s2417_s14 + $0x170] ss:$8 sps:$4 sm:$0xff]   ;;  %v1993_v4 = vld [vmem:[%s2417_s14 + $0x64] ss:$8 sps:$4 sm:$0xff]  }
  0x33   : > { %1391 = vmatprep.subr.bf16.mxu1 %v1989_v1  ;;  %s1938_s16 = sshll.u32 %s2422_s15, 4  ;;  %1349 = vmatpush1.bf16.msra.mxu0 %v1991_v2  ;;  %v1995_v5 = vld [vmem:[%s2417_s14 + $0x164] ss:$8 sps:$4 sm:$0xff]   ;;  %v1997_v6 = vld [vmem:[%s2417_s14 + $0x60] ss:$8 sps:$4 sm:$0xff]   ;;  %s1940_s24 = smul.u32 80, %s2422_s15 }
  0x34   : > { %1392 = vmatpush1.bf16.msra.mxu1 %v1992_v3  ;;  %s2433_s23 = scalar_lea.vmem %s2658_s4, %s1938_s16  ;;  %1350 = vmatprep.subr.bf16.mxu0 %v1993_v4  ;;  %v1998_v7 = vld [vmem:[%s2417_s14 + $0x160] ss:$8 sps:$4 sm:$0xff]   ;;  %v1999_v8 = vld [vmem:[%s2417_s14 + $0x54] ss:$8 sps:$4 sm:$0xff]   ;;  %v2003_v10 = vld [vmem:[%s2417_s14 + $0x50] ss:$8 sps:$4 sm:$0xff]  }
  0x35   : > { %1393 = vmatprep.subr.bf16.mxu1 %v1995_v5  ;;  %v2001_v9 = vld [vmem:[%s2417_s14 + $0x154] ss:$8 sps:$4 sm:$0xff]   ;;  %v2004_v11 = vld [vmem:[%s2417_s14 + $0x150] ss:$8 sps:$4 sm:$0xff]   ;;  %v2005_v12 = vld [vmem:[%s2417_s14 + $0x44] ss:$8 sps:$4 sm:$0xff]   ;;  %s2477_s27 = scalar_lea.vmem %s2656_s2, %s1940_s24 }
  0x36   : > { %v2007_v13 = vld [vmem:[%s2417_s14 + $0x144] ss:$8 sps:$4 sm:$0xff]   ;;  %v2009_v14 = vld [vmem:[%s2417_s14 + $0x40] ss:$8 sps:$4 sm:$0xff]   ;;  %v2011_v16 = vld [vmem:[%s2417_s14 + $0x34] ss:$8 sps:$4 sm:$0xff]  }
  0x37   : > { %1351 = vmatpush1.bf16.msra.mxu0 %v1997_v6  ;;  %v2010_v15 = vld [vmem:[%s2417_s14 + $0x140] ss:$8 sps:$4 sm:$0xff]   ;;  %v2013_v17 = vld [vmem:[%s2417_s14 + $0x134] ss:$8 sps:$4 sm:$0xff]   ;;  %v2015_v18 = vld [vmem:[%s2417_s14 + $0x30] ss:$8 sps:$4 sm:$0xff]  }
  0x38   : > { %1394 = vmatpush1.bf16.msra.mxu1 %v1998_v7  ;;  %1352 = vmatprep.subr.bf16.mxu0 %v1999_v8  ;;  %v2016_v19 = vld [vmem:[%s2417_s14 + $0x130] ss:$8 sps:$4 sm:$0xff]   ;;  %v2017_v20 = vld [vmem:[%s2417_s14 + $0x24] ss:$8 sps:$4 sm:$0xff]   ;;  %v2021_v22 = vld [vmem:[%s2417_s14 + $0x20] ss:$8 sps:$4 sm:$0xff]  }
  0x39   : > { %1395 = vmatprep.subr.bf16.mxu1 %v2001_v9  ;;  %v2019_v21 = vld [vmem:[%s2417_s14 + $0x124] ss:$8 sps:$4 sm:$0xff]   ;;  %v2022_v23 = vld [vmem:[%s2417_s14 + $0x120] ss:$8 sps:$4 sm:$0xff]   ;;  %v2023_v24 = vld [vmem:[%s2417_s14 + $0x14] ss:$8 sps:$4 sm:$0xff]  }
  0x3a   : > { %v2025_v25 = vld [vmem:[%s2417_s14 + $0x114] ss:$8 sps:$4 sm:$0xff]   ;;  %v2027_v26 = vld [vmem:[%s2417_s14 + $0x10] ss:$8 sps:$4 sm:$0xff]   ;;  %v2029_v28 = vld [vmem:[%s2417_s14 + $0x4] ss:$8 sps:$4 sm:$0xff]  }
  0x3b   : > { %1353 = vmatpush1.bf16.msra.mxu0 %v2003_v10  ;;  %v2028_v27 = vld [vmem:[%s2417_s14 + $0x110] ss:$8 sps:$4 sm:$0xff]   ;;  %v2031_v29 = vld [vmem:[%s2417_s14 + $0x104] ss:$8 sps:$4 sm:$0xff]   ;;  %v2033_v30 = vld [vmem:[%s2417_s14] ss:$8 sps:$4 sm:$0xff]  }
  0x3c   : > { %1396 = vmatpush1.bf16.msra.mxu1 %v2004_v11  ;;  %1354 = vmatprep.subr.bf16.mxu0 %v2005_v12  ;;  %v2034_v31 = vld [vmem:[%s2417_s14 + $0x100] ss:$8 sps:$4 sm:$0xff]   ;;  %v2035_v32 = vld [vmem:[%s2417_s14 + $0xf4] ss:$8 sps:$4 sm:$0xff]   ;;  %v2039_v34 = vld [vmem:[%s2417_s14 + $0xf0] ss:$8 sps:$4 sm:$0xff]  }
  0x3d   : > { %1397 = vmatprep.subr.bf16.mxu1 %v2007_v13  ;;  %v2037_v33 = vld [vmem:[%s2417_s14 + $0x1f4] ss:$8 sps:$4 sm:$0xff]   ;;  %v2040_v35 = vld [vmem:[%s2417_s14 + $0x1f0] ss:$8 sps:$4 sm:$0xff]   ;;  %v2041_v36 = vld [vmem:[%s2417_s14 + $0xe4] ss:$8 sps:$4 sm:$0xff]  }
  0x3e   : > { %v2043_v37 = vld [vmem:[%s2417_s14 + $0x1e4] ss:$8 sps:$4 sm:$0xff]   ;;  %v2045_v38 = vld [vmem:[%s2417_s14 + $0xe0] ss:$8 sps:$4 sm:$0xff]   ;;  %v2047_v40 = vld [vmem:[%s2417_s14 + $0xd4] ss:$8 sps:$4 sm:$0xff]  }
  0x3f   : > { %1355 = vmatpush1.bf16.msra.mxu0 %v2009_v14  ;;  %v2046_v39 = vld [vmem:[%s2417_s14 + $0x1e0] ss:$8 sps:$4 sm:$0xff]   ;;  %v2049_v41 = vld [vmem:[%s2417_s14 + $0x1d4] ss:$8 sps:$4 sm:$0xff]   ;;  %v2051_v42 = vld [vmem:[%s2417_s14 + $0xd0] ss:$8 sps:$4 sm:$0xff]  }
  0x40   : > { %1398 = vmatpush1.bf16.msra.mxu1 %v2010_v15  ;;  %1356 = vmatprep.subr.bf16.mxu0 %v2011_v16  ;;  %v2052_v43 = vld [vmem:[%s2417_s14 + $0x1d0] ss:$8 sps:$4 sm:$0xff]   ;;  %v2053_v44 = vld [vmem:[%s2417_s14 + $0xc4] ss:$8 sps:$4 sm:$0xff]   ;;  %v2057_v46 = vld [vmem:[%s2417_s14 + $0xc0] ss:$8 sps:$4 sm:$0xff]  }
  0x41   : > { %1399 = vmatprep.subr.bf16.mxu1 %v2013_v17  ;;  %v2055_v45 = vld [vmem:[%s2417_s14 + $0x1c4] ss:$8 sps:$4 sm:$0xff]   ;;  %v2058_v47 = vld [vmem:[%s2417_s14 + $0x1c0] ss:$8 sps:$4 sm:$0xff]   ;;  %v2059_v48 = vld [vmem:[%s2417_s14 + $0xb4] ss:$8 sps:$4 sm:$0xff]  }
  0x42   : > { %v2085_v49 = vld [vmem:[%s2477_s27 + $0x4] ss:$40 sps:$4 sm:$0xff]   ;;  %v2061_v50 = vld [vmem:[%s2417_s14 + $0x1b4] ss:$8 sps:$4 sm:$0xff]   ;;  %v2063_v52 = vld [vmem:[%s2417_s14 + $0xb0] ss:$8 sps:$4 sm:$0xff]  }
  0x43   : > { %1357 = vmatpush1.bf16.msra.mxu0 %v2015_v18  ;;  %v2088_v51 = vld [vmem:[%s2477_s27 + $0xc] ss:$40 sps:$4 sm:$0xff]   ;;  %1380 = vmatprep.mubr.bf16.mxu0 %v2085_v49  ;;  %v2064_v53 = vld [vmem:[%s2417_s14 + $0x1b0] ss:$8 sps:$4 sm:$0xff]   ;;  %v2069_v56 = vld [vmem:[%s2417_s14 + $0xa0] ss:$8 sps:$4 sm:$0xff]  }
  0x44   : > { %1400 = vmatpush1.bf16.msra.mxu1 %v2016_v19  ;;  %1358 = vmatprep.subr.bf16.mxu0 %v2017_v20  ;;  %v2065_v54 = vld [vmem:[%s2417_s14 + $0xa4] ss:$8 sps:$4 sm:$0xff]   ;;  %v2070_v57 = vld [vmem:[%s2417_s14 + $0x1a0] ss:$8 sps:$4 sm:$0xff]   ;;  %v2071_v58 = vld [vmem:[%s2417_s14 + $0x94] ss:$8 sps:$4 sm:$0xff]  }
  0x45   : > { %1401 = vmatprep.subr.bf16.mxu1 %v2019_v21  ;;  %1423 = vmatprep.mubr.bf16.mxu1 %v2088_v51  ;;  %v2067_v55 = vld [vmem:[%s2417_s14 + $0x1a4] ss:$8 sps:$4 sm:$0xff]   ;;  %v2073_v59 = vld [vmem:[%s2417_s14 + $0x194] ss:$8 sps:$4 sm:$0xff]   ;;  %v2075_v60 = vld [vmem:[%s2417_s14 + $0x90] ss:$8 sps:$4 sm:$0xff]  }
  0x46   : > { %v2076_v61 = vld [vmem:[%s2417_s14 + $0x190] ss:$8 sps:$4 sm:$0xff]   ;;  %v2077_v62 = vld [vmem:[%s2417_s14 + $0x84] ss:$8 sps:$4 sm:$0xff]   ;;  %v2081_v0 = vld [vmem:[%s2417_s14 + $0x80] ss:$8 sps:$4 sm:$0xff]  }
  0x47   : > { %1359 = vmatpush1.bf16.msra.mxu0 %v2021_v22  ;;  %v2079_v63 = vld [vmem:[%s2417_s14 + $0x184] ss:$8 sps:$4 sm:$0xff]   ;;  %v2082_v1 = vld [vmem:[%s2417_s14 + $0x180] ss:$8 sps:$4 sm:$0xff]   ;;  %v2091_v2 = vld [vmem:[%s2417_s14 + $0x274] ss:$8 sps:$4 sm:$0xff]  }
  0x48   : > { %1402 = vmatpush1.bf16.msra.mxu1 %v2022_v23  ;;  %1360 = vmatprep.subr.bf16.mxu0 %v2023_v24  ;;  %v2094_v3 = vld [vmem:[%s2417_s14 + $0x374] ss:$8 sps:$4 sm:$0xff]   ;;  %v2083_v4 = vld [vmem:[%s2477_s27] ss:$40 sps:$4 sm:$0xff]   ;;  %v2089_v6 = vld [vmem:[%s2417_s14 + $0x270] ss:$8 sps:$4 sm:$0xff]  }
  0x49   : > { %1403 = vmatprep.subr.bf16.mxu1 %v2025_v25  ;;  %v2086_v5 = vld [vmem:[%s2477_s27 + $0x8] ss:$40 sps:$4 sm:$0xff]   ;;  %v2097_v8 = vld [vmem:[%s2417_s14 + $0x264] ss:$8 sps:$4 sm:$0xff]   ;;  %v2103_v12 = vld [vmem:[%s2417_s14 + $0x254] ss:$8 sps:$4 sm:$0xff]  }
  0x4a   : > { %v2092_v7 = vld [vmem:[%s2417_s14 + $0x370] ss:$8 sps:$4 sm:$0xff]   ;;  %v2100_v9 = vld [vmem:[%s2417_s14 + $0x364] ss:$8 sps:$4 sm:$0xff]   ;;  %v2095_v10 = vld [vmem:[%s2417_s14 + $0x260] ss:$8 sps:$4 sm:$0xff]  }
  0x4b   : > { %1361 = vmatpush1.bf16.msra.mxu0 %v2027_v26  ;;  %v2098_v11 = vld [vmem:[%s2417_s14 + $0x360] ss:$8 sps:$4 sm:$0xff]   ;;  %v2106_v13 = vld [vmem:[%s2417_s14 + $0x354] ss:$8 sps:$4 sm:$0xff]   ;;  %v2101_v14 = vld [vmem:[%s2417_s14 + $0x250] ss:$8 sps:$4 sm:$0xff]  }
  0x4c   : > { %1404 = vmatpush1.bf16.msra.mxu1 %v2028_v27  ;;  %1362 = vmatprep.subr.bf16.mxu0 %v2029_v28  ;;  %v2104_v15 = vld [vmem:[%s2417_s14 + $0x350] ss:$8 sps:$4 sm:$0xff]   ;;  %v2109_v16 = vld [vmem:[%s2417_s14 + $0x244] ss:$8 sps:$4 sm:$0xff]   ;;  %v2107_v18 = vld [vmem:[%s2417_s14 + $0x240] ss:$8 sps:$4 sm:$0xff]  }
  0x4d   : > { %1405 = vmatprep.subr.bf16.mxu1 %v2031_v29  ;;  %v2112_v17 = vld [vmem:[%s2417_s14 + $0x344] ss:$8 sps:$4 sm:$0xff]   ;;  %v2110_v19 = vld [vmem:[%s2417_s14 + $0x340] ss:$8 sps:$4 sm:$0xff]   ;;  %v2115_v20 = vld [vmem:[%s2417_s14 + $0x234] ss:$8 sps:$4 sm:$0xff]  }
  0x4e   : > { %v2118_v21 = vld [vmem:[%s2417_s14 + $0x334] ss:$8 sps:$4 sm:$0xff]   ;;  %v2113_v22 = vld [vmem:[%s2417_s14 + $0x230] ss:$8 sps:$4 sm:$0xff]   ;;  %v2121_v24 = vld [vmem:[%s2417_s14 + $0x224] ss:$8 sps:$4 sm:$0xff]  }
  0x4f   : > { %1363 = vmatpush1.bf16.msra.mxu0 %v2033_v30  ;;  %v2116_v23 = vld [vmem:[%s2417_s14 + $0x330] ss:$8 sps:$4 sm:$0xff]   ;;  %v2124_v25 = vld [vmem:[%s2417_s14 + $0x324] ss:$8 sps:$4 sm:$0xff]   ;;  %v2119_v26 = vld [vmem:[%s2417_s14 + $0x220] ss:$8 sps:$4 sm:$0xff]  }
  0x50   : > { %1406 = vmatpush1.bf16.msra.mxu1 %v2034_v31  ;;  %1364 = vmatprep.subr.bf16.mxu0 %v2035_v32  ;;  %v2122_v27 = vld [vmem:[%s2417_s14 + $0x320] ss:$8 sps:$4 sm:$0xff]   ;;  %v2127_v28 = vld [vmem:[%s2417_s14 + $0x214] ss:$8 sps:$4 sm:$0xff]   ;;  %v2125_v30 = vld [vmem:[%s2417_s14 + $0x210] ss:$8 sps:$4 sm:$0xff]  }
  0x51   : > { %1407 = vmatprep.subr.bf16.mxu1 %v2037_v33  ;;  %v2130_v29 = vld [vmem:[%s2417_s14 + $0x314] ss:$8 sps:$4 sm:$0xff]   ;;  %v2128_v31 = vld [vmem:[%s2417_s14 + $0x310] ss:$8 sps:$4 sm:$0xff]   ;;  %v2133_v32 = vld [vmem:[%s2417_s14 + $0x204] ss:$8 sps:$4 sm:$0xff]  }
  0x52   : > { %v2136_v33 = vld [vmem:[%s2417_s14 + $0x304] ss:$8 sps:$4 sm:$0xff]   ;;  %v2152_v49 = vld [vmem:[%s2417_s14 + $0x3d0] ss:$8 sps:$4 sm:$0xff]  }
  0x53   : > { %1365 = vmatpush2.bf16.msra.mxu0 %v2039_v34  ;;  %v2187_v34 = vld [vmem:[%s2477_s27 + $0x14] ss:$40 sps:$4 sm:$0xff]   ;;  %v2160_v51 = vld [vmem:[%s2417_s14 + $0x3c4] ss:$8 sps:$4 sm:$0xff]  }
  0x54   : > { %1408 = vmatpush2.bf16.msra.mxu1 %v2040_v35  ;;  %1366 = vmatprep.subr.bf16.mxu0 %v2041_v36  ;;  %v2131_v35 = vld [vmem:[%s2417_s14 + $0x200] ss:$8 sps:$4 sm:$0xff]  }
  0x55   : > { %1409 = vmatprep.subr.bf16.mxu1 %v2043_v37  ;;  %v2134_v36 = vld [vmem:[%s2417_s14 + $0x300] ss:$8 sps:$4 sm:$0xff]   ;;  %v2193_v37 = vld [vmem:[%s2477_s27 + $0x1c] ss:$40 sps:$4 sm:$0xff]  }
  0x57   : > { %1367 = vmatpush2.bf16.msra.mxu0 %v2045_v38  ;;  %v2139_v38 = vld [vmem:[%s2417_s14 + $0x2f4] ss:$8 sps:$4 sm:$0xff]  }
  0x58   : > { %1410 = vmatpush2.bf16.msra.mxu1 %v2046_v39  ;;  %1368 = vmatprep.subr.bf16.mxu0 %v2047_v40  ;;  %v2142_v39 = vld [vmem:[%s2417_s14 + $0x3f4] ss:$8 sps:$4 sm:$0xff]   ;;  %v2137_v40 = vld [vmem:[%s2417_s14 + $0x2f0] ss:$8 sps:$4 sm:$0xff]  }
  0x59   : > { %1411 = vmatprep.subr.bf16.mxu1 %v2049_v41  ;;  %v2140_v41 = vld [vmem:[%s2417_s14 + $0x3f0] ss:$8 sps:$4 sm:$0xff]  }
  0x5b   : > { %1369 = vmatpush2.bf16.msra.mxu0 %v2051_v42  ;;  %v2145_v42 = vld [vmem:[%s2417_s14 + $0x2e4] ss:$8 sps:$4 sm:$0xff]  }
  0x5c   : > { %1412 = vmatpush2.bf16.msra.mxu1 %v2052_v43  ;;  %1370 = vmatprep.subr.bf16.mxu0 %v2053_v44  ;;  %v2148_v43 = vld [vmem:[%s2417_s14 + $0x3e4] ss:$8 sps:$4 sm:$0xff]   ;;  %v2143_v44 = vld [vmem:[%s2417_s14 + $0x2e0] ss:$8 sps:$4 sm:$0xff]  }
  0x5d   : > { %1413 = vmatprep.subr.bf16.mxu1 %v2055_v45  ;;  %v2146_v45 = vld [vmem:[%s2417_s14 + $0x3e0] ss:$8 sps:$4 sm:$0xff]  }
  0x5f   : > { %1371 = vmatpush2.bf16.msra.mxu0 %v2057_v46  ;;  %v2151_v46 = vld [vmem:[%s2417_s14 + $0x2d4] ss:$8 sps:$4 sm:$0xff]  }
  0x60   : > { %1414 = vmatpush2.bf16.msra.mxu1 %v2058_v47  ;;  %1372 = vmatprep.subr.bf16.mxu0 %v2059_v48  ;;  %v2154_v47 = vld [vmem:[%s2417_s14 + $0x3d4] ss:$8 sps:$4 sm:$0xff]   ;;  %v2149_v48 = vld [vmem:[%s2417_s14 + $0x2d0] ss:$8 sps:$4 sm:$0xff]  }
  0x61   : > { %1415 = vmatprep.subr.bf16.mxu1 %v2061_v50  ;;  %v2157_v50 = vld [vmem:[%s2417_s14 + $0x2c4] ss:$8 sps:$4 sm:$0xff]  }
  0x63   : > { %1373 = vmatpush2.bf16.msra.mxu0 %v2063_v52  ;;  %v2155_v52 = vld [vmem:[%s2417_s14 + $0x2c0] ss:$8 sps:$4 sm:$0xff]  }
  0x64   : > { %1416 = vmatpush2.bf16.msra.mxu1 %v2064_v53  ;;  %1374 = vmatprep.subr.bf16.mxu0 %v2065_v54  ;;  %v2158_v53 = vld [vmem:[%s2417_s14 + $0x3c0] ss:$8 sps:$4 sm:$0xff]   ;;  %v2163_v54 = vld [vmem:[%s2417_s14 + $0x2b4] ss:$8 sps:$4 sm:$0xff]  }
  0x65   : > { %1417 = vmatprep.subr.bf16.mxu1 %v2067_v55  ;;  %v2166_v55 = vld [vmem:[%s2417_s14 + $0x3b4] ss:$8 sps:$4 sm:$0xff]  }
  0x67   : > { %1375 = vmatpush2.bf16.msra.mxu0 %v2069_v56  ;;  %v2161_v56 = vld [vmem:[%s2417_s14 + $0x2b0] ss:$8 sps:$4 sm:$0xff]  }
  0x68   : > { %1418 = vmatpush2.bf16.msra.mxu1 %v2070_v57  ;;  %1376 = vmatprep.subr.bf16.mxu0 %v2071_v58  ;;  %v2164_v57 = vld [vmem:[%s2417_s14 + $0x3b0] ss:$8 sps:$4 sm:$0xff]   ;;  %v2169_v58 = vld [vmem:[%s2417_s14 + $0x2a4] ss:$8 sps:$4 sm:$0xff]  }
  0x69   : > { %1419 = vmatprep.subr.bf16.mxu1 %v2073_v59  ;;  %v2172_v59 = vld [vmem:[%s2417_s14 + $0x3a4] ss:$8 sps:$4 sm:$0xff]  }
  0x6b   : > { %1377 = vmatpush2.bf16.msra.mxu0 %v2075_v60  ;;  %v2167_v60 = vld [vmem:[%s2417_s14 + $0x2a0] ss:$8 sps:$4 sm:$0xff]  }
  0x6c   : > { %1420 = vmatpush2.bf16.msra.mxu1 %v2076_v61  ;;  %1378 = vmatprep.subr.bf16.mxu0 %v2077_v62  ;;  %v2170_v61 = vld [vmem:[%s2417_s14 + $0x3a0] ss:$8 sps:$4 sm:$0xff]   ;;  %v2175_v62 = vld [vmem:[%s2417_s14 + $0x294] ss:$8 sps:$4 sm:$0xff]  }
  0x6d   : > { %1421 = vmatprep.subr.bf16.mxu1 %v2079_v63  ;;  %v2178_v63 = vld [vmem:[%s2417_s14 + $0x394] ss:$8 sps:$4 sm:$0xff]  }
  0x6f   : > { %1379 = vmatpush2.bf16.msra.mxu0 %v2081_v0  ;;  %v2173_v0 = vld [vmem:[%s2417_s14 + $0x290] ss:$8 sps:$4 sm:$0xff]  }
  0x70   : > { %1422 = vmatpush2.bf16.msra.mxu1 %v2082_v1  ;;  %1434 = vmatprep.subr.bf16.mxu0 %v2091_v2  ;;  %v2176_v1 = vld [vmem:[%s2417_s14 + $0x390] ss:$8 sps:$4 sm:$0xff]   ;;  %v2181_v2 = vld [vmem:[%s2417_s14 + $0x284] ss:$8 sps:$4 sm:$0xff]  }
  0x71   : > { %1477 = vmatprep.subr.bf16.mxu1 %v2094_v3  ;;  %v2184_v3 = vld [vmem:[%s2417_s14 + $0x384] ss:$8 sps:$4 sm:$0xff]  }
  0x72   : > { %1381 = vmatmul.mubr.bf16.vlgmr.msra.gmra.mxu0 %v2083_v4  ;;  %v2179_v4 = vld [vmem:[%s2417_s14 + $0x280] ss:$8 sps:$4 sm:$0xff]  }
  0x73   : > { %1424 = vmatmul.mubr.bf16.vlgmr.msra.gmra.mxu1 %v2086_v5  ;;  %1435 = vmatpush1.bf16.msra.mxu0 %v2089_v6  ;;  %v2182_v5 = vld [vmem:[%s2417_s14 + $0x380] ss:$8 sps:$4 sm:$0xff]   ;;  %v2190_v6 = vld [vmem:[%s2417_s14 + $0x474] ss:$8 sps:$4 sm:$0xff]  }
  0x74   : > { %1478 = vmatpush1.bf16.msra.mxu1 %v2092_v7  ;;  %1436 = vmatprep.subr.bf16.mxu0 %v2097_v8  ;;  %v2185_v7 = vld [vmem:[%s2477_s27 + $0x10] ss:$40 sps:$4 sm:$0xff]  }
  0x75   : > { %1479 = vmatprep.subr.bf16.mxu1 %v2100_v9  ;;  %1466 = vmatprep.mubr.bf16.mxu0 %v2187_v34  ;;  %v2191_v8 = vld [vmem:[%s2477_s27 + $0x18] ss:$40 sps:$4 sm:$0xff]  }
  0x76   : > { %1509 = vmatprep.mubr.bf16.mxu1 %v2193_v37  ;;  %v2188_v9 = vld [vmem:[%s2417_s14 + $0x470] ss:$8 sps:$4 sm:$0xff]   ;;  %v2235_v37 = vld [vmem:[%s2417_s14 + $0x494] ss:$8 sps:$4 sm:$0xff]  }
  0x77   : > { %1437 = vmatpush1.bf16.msra.mxu0 %v2095_v10  ;;  %v2241_v10 = vld [vmem:[%s2477_s27 + $0x24] ss:$40 sps:$4 sm:$0xff]   ;;  %v2227_v34 = vld [vmem:[%s2417_s14 + $0x4b0] ss:$8 sps:$4 sm:$0xff]  }
  0x78   : > { %1480 = vmatpush1.bf16.msra.mxu1 %v2098_v11  ;;  %1438 = vmatprep.subr.bf16.mxu0 %v2103_v12  ;;  %v2196_v11 = vld [vmem:[%s2417_s14 + $0x464] ss:$8 sps:$4 sm:$0xff]   ;;  %v2194_v12 = vld [vmem:[%s2417_s14 + $0x460] ss:$8 sps:$4 sm:$0xff]  }
  0x79   : > { %1481 = vmatprep.subr.bf16.mxu1 %v2106_v13  ;;  %v2199_v13 = vld [vmem:[%s2417_s14 + $0x454] ss:$8 sps:$4 sm:$0xff]  }
  0x7b   : > { %1439 = vmatpush1.bf16.msra.mxu0 %v2101_v14  ;;  %v2197_v14 = vld [vmem:[%s2417_s14 + $0x450] ss:$8 sps:$4 sm:$0xff]  }
  0x7c   : > { %1482 = vmatpush1.bf16.msra.mxu1 %v2104_v15  ;;  %1440 = vmatprep.subr.bf16.mxu0 %v2109_v16  ;;  %v2202_v15 = vld [vmem:[%s2417_s14 + $0x444] ss:$8 sps:$4 sm:$0xff]   ;;  %v2200_v16 = vld [vmem:[%s2417_s14 + $0x440] ss:$8 sps:$4 sm:$0xff]  }
  0x7d   : > { %1483 = vmatprep.subr.bf16.mxu1 %v2112_v17  ;;  %v2205_v17 = vld [vmem:[%s2417_s14 + $0x434] ss:$8 sps:$4 sm:$0xff]  }
  0x7f   : > { %1441 = vmatpush1.bf16.msra.mxu0 %v2107_v18  ;;  %v2203_v18 = vld [vmem:[%s2417_s14 + $0x430] ss:$8 sps:$4 sm:$0xff]  }
  0x80   : > { %1484 = vmatpush1.bf16.msra.mxu1 %v2110_v19  ;;  %1442 = vmatprep.subr.bf16.mxu0 %v2115_v20  ;;  %v2208_v19 = vld [vmem:[%s2417_s14 + $0x424] ss:$8 sps:$4 sm:$0xff]   ;;  %v2206_v20 = vld [vmem:[%s2417_s14 + $0x420] ss:$8 sps:$4 sm:$0xff]  }
  0x81   : > { %1485 = vmatprep.subr.bf16.mxu1 %v2118_v21  ;;  %v2211_v21 = vld [vmem:[%s2417_s14 + $0x414] ss:$8 sps:$4 sm:$0xff]  }
  0x83   : > { %1443 = vmatpush1.bf16.msra.mxu0 %v2113_v22  ;;  %v2209_v22 = vld [vmem:[%s2417_s14 + $0x410] ss:$8 sps:$4 sm:$0xff]  }
  0x84   : > { %1486 = vmatpush1.bf16.msra.mxu1 %v2116_v23  ;;  %1444 = vmatprep.subr.bf16.mxu0 %v2121_v24  ;;  %v2214_v23 = vld [vmem:[%s2417_s14 + $0x404] ss:$8 sps:$4 sm:$0xff]   ;;  %v2212_v24 = vld [vmem:[%s2417_s14 + $0x400] ss:$8 sps:$4 sm:$0xff]  }
  0x85   : > { %1487 = vmatprep.subr.bf16.mxu1 %v2124_v25  ;;  %v2217_v25 = vld [vmem:[%s2417_s14 + $0x4f4] ss:$8 sps:$4 sm:$0xff]  }
  0x87   : > { %1445 = vmatpush1.bf16.msra.mxu0 %v2119_v26  ;;  %v2215_v26 = vld [vmem:[%s2417_s14 + $0x4f0] ss:$8 sps:$4 sm:$0xff]  }
  0x88   : > { %1488 = vmatpush1.bf16.msra.mxu1 %v2122_v27  ;;  %1446 = vmatprep.subr.bf16.mxu0 %v2127_v28  ;;  %v2220_v27 = vld [vmem:[%s2417_s14 + $0x4e4] ss:$8 sps:$4 sm:$0xff]   ;;  %v2218_v28 = vld [vmem:[%s2417_s14 + $0x4e0] ss:$8 sps:$4 sm:$0xff]  }
  0x89   : > { %1489 = vmatprep.subr.bf16.mxu1 %v2130_v29  ;;  %v2223_v29 = vld [vmem:[%s2417_s14 + $0x4d4] ss:$8 sps:$4 sm:$0xff]  }
  0x8b   : > { %1447 = vmatpush1.bf16.msra.mxu0 %v2125_v30  ;;  %v2221_v30 = vld [vmem:[%s2417_s14 + $0x4d0] ss:$8 sps:$4 sm:$0xff]  }
  0x8c   : > { %1490 = vmatpush1.bf16.msra.mxu1 %v2128_v31  ;;  %1448 = vmatprep.subr.bf16.mxu0 %v2133_v32  ;;  %v2226_v31 = vld [vmem:[%s2417_s14 + $0x4c4] ss:$8 sps:$4 sm:$0xff]   ;;  %v2224_v32 = vld [vmem:[%s2417_s14 + $0x4c0] ss:$8 sps:$4 sm:$0xff]  }
  0x8d   : > { %1491 = vmatprep.subr.bf16.mxu1 %v2136_v33  ;;  %v2229_v33 = vld [vmem:[%s2417_s14 + $0x4b4] ss:$8 sps:$4 sm:$0xff]  }
  0x8f   : > { %1449 = vmatpush1.bf16.msra.mxu0 %v2131_v35  ;;  %v2232_v35 = vld [vmem:[%s2417_s14 + $0x4a4] ss:$8 sps:$4 sm:$0xff]  }
  0x90   : > { %1492 = vmatpush1.bf16.msra.mxu1 %v2134_v36  ;;  %1450 = vmatprep.subr.bf16.mxu0 %v2139_v38  ;;  %v2230_v36 = vld [vmem:[%s2417_s14 + $0x4a0] ss:$8 sps:$4 sm:$0xff]   ;;  %v2233_v38 = vld [vmem:[%s2417_s14 + $0x490] ss:$8 sps:$4 sm:$0xff]  }
  0x91   : > { %1493 = vmatprep.subr.bf16.mxu1 %v2142_v39  ;;  %v2238_v39 = vld [vmem:[%s2417_s14 + $0x484] ss:$8 sps:$4 sm:$0xff]  }
  0x93   : > { %1451 = vmatpush2.bf16.msra.mxu0 %v2137_v40  ;;  %v2236_v40 = vld [vmem:[%s2417_s14 + $0x480] ss:$8 sps:$4 sm:$0xff]  }
  0x94   : > { %1494 = vmatpush2.bf16.msra.mxu1 %v2140_v41  ;;  %1452 = vmatprep.subr.bf16.mxu0 %v2145_v42  ;;  %v2239_v41 = vld [vmem:[%s2477_s27 + $0x20] ss:$40 sps:$4 sm:$0xff]  }
  0x95   : > { %1495 = vmatprep.subr.bf16.mxu1 %v2148_v43 }
  0x97   : > { %1453 = vmatpush2.bf16.msra.mxu0 %v2143_v44 }
  0x98   : > { %1496 = vmatpush2.bf16.msra.mxu1 %v2146_v45  ;;  %1454 = vmatprep.subr.bf16.mxu0 %v2151_v46 }
  0x99   : > { %1497 = vmatprep.subr.bf16.mxu1 %v2154_v47 }
  0x9b   : > { %1455 = vmatpush2.bf16.msra.mxu0 %v2149_v48 }
  0x9c   : > { %1498 = vmatpush2.bf16.msra.mxu1 %v2152_v49  ;;  %1456 = vmatprep.subr.bf16.mxu0 %v2157_v50 }
  0x9d   : > { %1499 = vmatprep.subr.bf16.mxu1 %v2160_v51 }
  0x9f   : > { %1457 = vmatpush2.bf16.msra.mxu0 %v2155_v52 }
  0xa0   : > { %1500 = vmatpush2.bf16.msra.mxu1 %v2158_v53  ;;  %1458 = vmatprep.subr.bf16.mxu0 %v2163_v54 }
  0xa1   : > { %1501 = vmatprep.subr.bf16.mxu1 %v2166_v55 }
  0xa3   : > { %1459 = vmatpush2.bf16.msra.mxu0 %v2161_v56 }
  0xa4   : > { %1502 = vmatpush2.bf16.msra.mxu1 %v2164_v57  ;;  %1460 = vmatprep.subr.bf16.mxu0 %v2169_v58 }
  0xa5   : > { %1503 = vmatprep.subr.bf16.mxu1 %v2172_v59 }
  0xa7   : > { %1461 = vmatpush2.bf16.msra.mxu0 %v2167_v60 }
  0xa8   : > { %1504 = vmatpush2.bf16.msra.mxu1 %v2170_v61  ;;  %1462 = vmatprep.subr.bf16.mxu0 %v2175_v62 }
  0xa9   : > { %1505 = vmatprep.subr.bf16.mxu1 %v2178_v63 }
  0xab   : > { %1463 = vmatpush2.bf16.msra.mxu0 %v2173_v0 }
  0xac   : > { %1506 = vmatpush2.bf16.msra.mxu1 %v2176_v1  ;;  %1464 = vmatprep.subr.bf16.mxu0 %v2181_v2  ;;  %v1565_v2 = vstv %s1564_s28 }
  0xad   : > { %1507 = vmatprep.subr.bf16.mxu1 %v2184_v3 }
  0xaf   : > { %1465 = vmatpush2.bf16.msra.mxu0 %v2179_v4 }
  0xb0   : > { %1508 = vmatpush2.bf16.msra.mxu1 %v2182_v5  ;;  %1520 = vmatprep.subr.bf16.mxu0 %v2190_v6 }
  0xb2   : > { %1467 = vmatmul.mubr.bf16.vlgmr.msra.gmra.mxu0 %v2185_v7 }
  0xb3   : > { %1510 = vmatmul.mubr.bf16.vlgmr.msra.gmra.mxu1 %v2191_v8  ;;  %1521 = vmatpush1.bf16.msra.mxu0 %v2188_v9 }
  0xb4   : > { %1552 = vmatprep.mubr.bf16.mxu0 %v2241_v10  ;;  %1522 = vmatprep.subr.bf16.mxu0 %v2196_v11 }
  0xb7   : > { %1523 = vmatpush1.bf16.msra.mxu0 %v2194_v12 }
  0xb8   : > { %1524 = vmatprep.subr.bf16.mxu0 %v2199_v13 }
  0xbb   : > { %1525 = vmatpush1.bf16.msra.mxu0 %v2197_v14 }
  0xbc   : > { %1526 = vmatprep.subr.bf16.mxu0 %v2202_v15 }
  0xbf   : > { %1527 = vmatpush1.bf16.msra.mxu0 %v2200_v16 }
  0xc0   : > { %1528 = vmatprep.subr.bf16.mxu0 %v2205_v17 }
  0xc3   : > { %1529 = vmatpush1.bf16.msra.mxu0 %v2203_v18 }
  0xc4   : > { %1530 = vmatprep.subr.bf16.mxu0 %v2208_v19 }
  0xc7   : > { %1531 = vmatpush1.bf16.msra.mxu0 %v2206_v20 }
  0xc8   : > { %1532 = vmatprep.subr.bf16.mxu0 %v2211_v21 }
  0xcb   : > { %1533 = vmatpush1.bf16.msra.mxu0 %v2209_v22 }
  0xcc   : > { %1534 = vmatprep.subr.bf16.mxu0 %v2214_v23 }
  0xcf   : > { %1535 = vmatpush1.bf16.msra.mxu0 %v2212_v24 }
  0xd0   : > { %1536 = vmatprep.subr.bf16.mxu0 %v2217_v25 }
  0xd3   : > { %1537 = vmatpush2.bf16.msra.mxu0 %v2215_v26 }
  0xd4   : > { %1538 = vmatprep.subr.bf16.mxu0 %v2220_v27 }
  0xd7   : > { %1539 = vmatpush2.bf16.msra.mxu0 %v2218_v28  ;;  %v1586_v28 = vstv %s1563_s29 }
  0xd8   : > { %1540 = vmatprep.subr.bf16.mxu0 %v2223_v29 }
  0xdb   : > { %1541 = vmatpush2.bf16.msra.mxu0 %v2221_v30 }
  0xdc   : > { %1542 = vmatprep.subr.bf16.mxu0 %v2226_v31 }
  0xdf   : > { %1543 = vmatpush2.bf16.msra.mxu0 %v2224_v32 }
  0xe0   : > { %1544 = vmatprep.subr.bf16.mxu0 %v2229_v33 }
  0xe3   : > { %1545 = vmatpush2.bf16.msra.mxu0 %v2227_v34 }
  0xe4   : > { %1546 = vmatprep.subr.bf16.mxu0 %v2232_v35 }
  0xe7   : > { %1547 = vmatpush2.bf16.msra.mxu0 %v2230_v36 }
  0xe8   : > { %1548 = vmatprep.subr.bf16.mxu0 %v2235_v37 }
  0xeb   : > { %1549 = vmatpush2.bf16.msra.mxu0 %v2233_v38 }
  0xec   : > { %1550 = vmatprep.subr.bf16.mxu0 %v2238_v39 }
  0xef   : > { %1551 = vmatpush2.bf16.msra.mxu0 %v2236_v40 }
  0xf2   : > { %1553 = vmatmul.mubr.bf16.vlgmr.msra.gmra.mxu0 %v2239_v41 }
 0x132   : > { %v1382_v42 = vpop.f32.mrf.mxu0 }
 0x133   : > { %v1425_v43 = vpop.f32.mrf.mxu1 }
 0x134   : > { %v1384_v44 = vpop.f32.mrf.mxu0  ;;  %v1426_v53 = vadd.f32 %v1425_v43, %v1382_v42 }
 0x135   : > { %v1427_v45 = vpop.f32.mrf.mxu1 }
 0x136   : > { %v1386_v46 = vpop.f32.mrf.mxu0  ;;  %v1428_v56 = vadd.f32 %v1427_v45, %v1384_v44 }
 0x137   : > { %v1429_v47 = vpop.f32.mrf.mxu1 }
 0x138   : > { %v1388_v48 = vpop.f32.mrf.mxu0  ;;  %v1430_v58 = vadd.f32 %v1429_v47, %v1386_v46 }
 0x139   : > { %v1431_v50 = vpop.f32.mrf.mxu1 }
 0x13a   : > { %v1432_v62 = vadd.f32 %v1431_v50, %v1388_v48 }
 0x172   : > { %v1468_v49 = vpop.f32.mrf.mxu0 }
 0x173   : > { %v1511_v52 = vpop.f32.mrf.mxu1  ;;  %v1469_v57 = vadd.f32 %v1468_v49, %v1426_v53 }
 0x174   : > { %v1470_v51 = vpop.f32.mrf.mxu0 }
 0x175   : > { %v1513_v55 = vpop.f32.mrf.mxu1  ;;  %v1471_v59 = vadd.f32 %v1470_v51, %v1428_v56  ;;  %v1512_v63 = vadd.f32 %v1511_v52, %v1469_v57 }
 0x176   : > { %v1472_v54 = vpop.f32.mrf.mxu0 }
 0x177   : > { %v1515_v61 = vpop.f32.mrf.mxu1  ;;  %v1473_v0 = vadd.f32 %v1472_v54, %v1430_v58  ;;  %v1514_v3 = vadd.f32 %v1513_v55, %v1471_v59 }
 0x178   : > { %v1474_v60 = vpop.f32.mrf.mxu0 }
 0x179   : > { %v1475_v4 = vadd.f32 %v1474_v60, %v1432_v62  ;;  %v1517_v6 = vpop.f32.mrf.mxu1  ;;  %v1516_v8 = vadd.f32 %v1515_v61, %v1473_v0 }
 0x17b   : > { %v1518_v12 = vadd.f32 %v1517_v6, %v1475_v4 }
 0x1b2   : > { %v1554_v1 = vpop.f32.mrf.mxu0 }
 0x1b3   : > { %v1555_v5 = vadd.f32 %v1554_v1, %v1512_v63 }
 0x1b4   : > { %v1556_v7 = vpop.f32.mrf.mxu0 }
 0x1b5   : > { %v1566_v9 = vmul.f32 %v1565_v2, %v1555_v5  ;;  %v1557_v10 = vadd.f32 %v1556_v7, %v1514_v3 }
 0x1b6   : > { %v1558_v11 = vpop.f32.mrf.mxu0 }
 0x1b7   : > { %v1570_v13 = vmax.f32 %v1566_v9, 1e-08  ;;  %v1567_v14 = vmul.f32 %v1565_v2, %v1557_v10  ;;  %v1559_v15 = vadd.f32 %v1558_v11, %v1516_v8 }
 0x1b8   : > { %v1560_v16 = vpop.f32.mrf.mxu0 }
 0x1b9   : > { %v1574_v17 = vmin.f32 %v1570_v13, 1.0  ;;  %v1571_v18 = vmax.f32 %v1567_v14, 1e-08  ;;  %v1568_v19 = vmul.f32 %v1565_v2, %v1559_v15  ;;  %v1561_v20 = vadd.f32 %v1560_v16, %v1518_v12 }
 0x1bb   : > { %2242 = vlog2.f32 %v1574_v17  ;;  %v1575_v21 = vmin.f32 %v1571_v18, 1.0  ;;  %v1572_v22 = vmax.f32 %v1568_v19, 1e-08  ;;  %v1569_v23 = vmul.f32 %v1565_v2, %v1561_v20 }
 0x1bd   : > { %2244 = vlog2.f32 %v1575_v21  ;;  %v1576_v24 = vmin.f32 %v1572_v22, 1.0  ;;  %v1573_v25 = vmax.f32 %v1569_v23, 1e-08 }
 0x1bf   : > { %2246 = vlog2.f32 %v1576_v24  ;;  %v1577_v26 = vmin.f32 %v1573_v25, 1.0 }
 0x1c1   : > { %2248 = vlog2.f32 %v1577_v26 }
 0x1c8   : > { %v2243_v27 = vpop.eup %2242 }
 0x1c9   : > { %v1579_v29 = vmul.f32 0.6931472, %v2243_v27 }
 0x1ca   : > { %v2245_v30 = vpop.eup %2244 }
 0x1cb   : > { %v1587_v31 = vmul.f32 %v1586_v28, %v1579_v29  ;;  %v1581_v32 = vmul.f32 0.6931472, %v2245_v30 }
 0x1cc   : > { %v2247_v33 = vpop.eup %2246 }
 0x1cd   : > { %v1591_v34 = vmul.f32 1.442695, %v1587_v31  ;;  %v1588_v35 = vmul.f32 %v1586_v28, %v1581_v32  ;;  %v1583_v36 = vmul.f32 0.6931472, %v2247_v33 }
 0x1ce   : > { %v2249_v37 = vpop.eup %2248 }
 0x1cf   : > { %2250 = vpow2.f32 %v1591_v34  ;;  %v1593_v38 = vmul.f32 1.442695, %v1588_v35  ;;  %v1589_v39 = vmul.f32 %v1586_v28, %v1583_v36  ;;  %v1585_v40 = vmul.f32 0.6931472, %v2249_v37 }
 0x1d1   : > { %2252 = vpow2.f32 %v1593_v38  ;;  %v1595_v41 = vmul.f32 1.442695, %v1589_v39  ;;  %v1590_v42 = vmul.f32 %v1586_v28, %v1585_v40 }
 0x1d3   : > { %2254 = vpow2.f32 %v1595_v41  ;;  %v1597_v43 = vmul.f32 1.442695, %v1590_v42 }
 0x1d5   : > { %2256 = vpow2.f32 %v1597_v43 }
 0x1dc   : > { %v2251_v44 = vpop.eup %2250 }
 0x1de   : > { %v2253_v45 = vpop.eup %2252  ;;  %1602 = sbr.rel (%p1933_p4) target bundleno = 486 (0x1e6), region = 52 }
 0x1e0   : > { %v2255_v46 = vpop.eup %2254 }
 0x1e2   : > { %v2257_v47 = vpop.eup %2256 }
 0x1e3   : > { %v2322_v48 = vmov 0.0  }
 0x1e4   : > { %1603 = vst [vmem:[%s2659_s5] sm:$0xff] %v2322_v48  ;;  %1604 = vst [vmem:[%s2659_s5 + $0x8] sm:$0xff] %v2322_v48 }
 0x1e5   : > { %1605 = vst [vmem:[%s2659_s5 + $0x10] sm:$0xff] %v2322_v48  ;;  %1606 = vst [vmem:[%s2659_s5 + $0x18] sm:$0xff] %v2322_v48 }
 0x1e6 PF: > { %v1611_v49 = vld [vmem:[%s2433_s23] sm:$0xff]  ;;  %v1612_v52 = vld [vmem:[%s2433_s23 + $0x8] sm:$0xff] }
 0x1e7   : > { %v1613_v50 = vunpack.c.l.bf16 %v1611_v49  ;;  %v1614_v51 = vunpack.c.h.bf16 %v1611_v49  ;;  %v1615_v53 = vunpack.c.l.bf16 %v1612_v52  ;;  %v1616_v54 = vunpack.c.h.bf16 %v1612_v52 }
 0x1e9   : > { %v1617_v55 = vmul.f32 %v2251_v44, %v1613_v50  ;;  %v1618_v56 = vmul.f32 %v2253_v45, %v1614_v51  ;;  %v1619_v59 = vmul.f32 %v2255_v46, %v1615_v53  ;;  %v1620_v60 = vmul.f32 %v2257_v47, %v1616_v54 }
 0x1eb   : > { %v1607_v57 = vld [vmem:[%s2659_s5] sm:$0xff]  ;;  %v1608_v58 = vld [vmem:[%s2659_s5 + $0x8] sm:$0xff]  ;;  %v1621_v61 = vmul.f32 0.3548134, %v1617_v55  ;;  %v1622_v62 = vmul.f32 0.3548134, %v1618_v56 }
 0x1ec   : > { %v1609_v63 = vld [vmem:[%s2659_s5 + $0x10] sm:$0xff]  ;;  %v1610_v0 = vld [vmem:[%s2659_s5 + $0x18] sm:$0xff]  ;;  %v1623_v1 = vmul.f32 0.3548134, %v1619_v59  ;;  %v1624_v2 = vmul.f32 0.3548134, %v1620_v60 }
 0x1ed   : > { %v1625_v3 = vadd.f32 %v1621_v61, %v1607_v57  ;;  %v1626_v4 = vadd.f32 %v1622_v62, %v1608_v58 }
 0x1ee   : > { %v1627_v5 = vadd.f32 %v1623_v1, %v1609_v63  ;;  %v1628_v6 = vadd.f32 %v1624_v2, %v1610_v0 }
 0x1ef   : > { %1629 = vst [vmem:[%s2659_s5] sm:$0xff] %v1625_v3  ;;  %1630 = vst [vmem:[%s2659_s5 + $0x8] sm:$0xff] %v1626_v4 }
 0x1f0   : > { %1631 = vst [vmem:[%s2659_s5 + $0x10] sm:$0xff] %v1627_v5  ;;  %1632 = vst [vmem:[%s2659_s5 + $0x18] sm:$0xff] %v1628_v6 }
 0x1f1 PF: > { %s17_s20 = sadd.s32 1, %s2318_s20   ;;  %s2668_s18 = smov %s2314_s19 }
 0x1f2   : > { %p14_p6 = scmp.ge.s32.totalorder %s17_s20, 10   ;;  %s2669_s19 = smov %s2671_s22 }
 0x1f4   :  { %16 = sbr.rel (!%p14_p6) target bundleno = 3 (0x3), region = 87 }
 0x1f9   :  { %1657 = vsyncpa [#allocation3], 1 }
 0x1fa   :  { %1659 = vsyncpa [#allocation3 + $0x1], 1 }
 0x1fb   :  { %1660 = vsyncpa [#allocation5], 1 }

</bundles_post_ra>
